<compile_context>
chip_gen: v6e
topology: v6e:2x2x1
jax: 0.10.0
libtpu: 0.0.40
codegen_flags: <defaults>
</compile_context>

<pallas_src>
import functools

import numpy as np
import jax
import jax.numpy as jnp
from jax.experimental import pallas as pl
from jax.experimental.pallas import tpu as pltpu

EPS = 1e-5
_HP = jax.lax.Precision.HIGHEST


def _bn_relu(y, g_row, b_row, C, L):
    """Training-mode BatchNorm1d + ReLU on a channel-major flattened (N, C*L) tile."""
    Nb = y.shape[0]
    CL = C * L
    # Channel segment mask (C, C*L) built from iota: mask[c, j] = 1 iff j // L == c.
    col = jax.lax.broadcasted_iota(jnp.int32, (C, CL), 1)
    row = jax.lax.broadcasted_iota(jnp.int32, (C, CL), 0)
    lo = row * L
    mask = jnp.where((col >= lo) & (col < lo + L), 1.0, 0.0)        # (C, CL) f32

    inv_cnt = 1.0 / float(Nb * L)
    yb = jnp.sum(y, axis=0, keepdims=True)                          # (1, CL)
    yb2 = jnp.sum(y * y, axis=0, keepdims=True)                     # (1, CL)
    s = jnp.sum(mask * yb, axis=1, keepdims=True)                   # (C, 1)
    ss = jnp.sum(mask * yb2, axis=1, keepdims=True)                 # (C, 1)
    mean = s * inv_cnt
    var = jnp.maximum(ss * inv_cnt - mean * mean, 0.0)              # biased, clamped
    inv = jax.lax.rsqrt(var + EPS)                                  # (C, 1)  (EUP)

    # Broadcast per-channel stats back onto the lane axis via the same mask.
    mean_l = jnp.sum(mask * mean, axis=0, keepdims=True)            # (1, CL)
    inv_l = jnp.sum(mask * inv, axis=0, keepdims=True)              # (1, CL)
    a_l = inv_l * g_row
    c_l = b_row - mean_l * a_l
    return jnp.maximum(y * a_l + c_l, 0.0)                          # BN + ReLU


def _generator_kernel(x_ref, t1_ref, t2_ref, t3_ref, wl_ref, p_ref, out_ref, *,
                      layer_dims, g_offsets, bias_off, bias_len):
    h = x_ref[...]                                                  # (N, Cin*Lin)
    for (C, L), t_ref, goff in zip(layer_dims, (t1_ref, t2_ref, t3_ref), g_offsets):
        # ConvTranspose1d as one lane-dense matmul against its Toeplitz operator.
        y = jnp.dot(h, t_ref[...], precision=_HP,
                    preferred_element_type=jnp.float32)             # (N, C*L)
        CL = C * L
        g_row = p_ref[0:1, goff:goff + CL]
        b_row = p_ref[1:2, goff:goff + CL]
        h = _bn_relu(y, g_row, b_row, C, L)

    z = jnp.dot(h, wl_ref[...], precision=_HP,
                preferred_element_type=jnp.float32)                 # (N, out_size)
    z = z + p_ref[0:1, bias_off:bias_off + bias_len]
    out_ref[...] = jnp.tanh(z)                                      # EUP


def _full_spec(shape):
    nd = len(shape)
    return pl.BlockSpec(shape, lambda i, _nd=nd: (0,) * _nd)


def _convT_to_matrix(w, L_in, stride):
    """Dense operator T so that (x_flat @ T) == ConvTranspose1d(x), channel-major flat."""
    w = np.asarray(w, np.float32)                                   # (Cin, Cout, K)
    Cin, Cout, K = w.shape
    L_out = (L_in - 1) * stride + K
    T = np.zeros((Cin, L_in, Cout, L_out), np.float32)
    for k in range(K):
        for l in range(L_in):
            T[:, l, :, l * stride + k] += w[:, :, k]
    return jnp.asarray(T.reshape(Cin * L_in, Cout * L_out)), Cout, L_out


def _align128(n):
    return ((n + 127) // 128) * 128


def generator_forward(x, params):
    """x: (N, Cin, L) float32, PyTorch NCL layout. Returns (N, 1, out_size)."""
    N, Cin, L = x.shape
    T1, C1, L1 = _convT_to_matrix(params["w1"], L, 2)               # stride 2
    T2, C2, L2 = _convT_to_matrix(params["w2"], L1, 1)
    T3, C3, L3 = _convT_to_matrix(params["w3"], L2, 1)
    wl = np.asarray(params["wl"], np.float32)                       # (out_size, C3*L3)
    out_size = wl.shape[0]
    assert wl.shape[1] == C3 * L3, "Linear in_features must match last conv output"
    WL = jnp.asarray(wl.T)                                          # (C3*L3, out_size)

    # Pack BN gamma/beta (lane-repeated, channel-major) + Linear bias into one buffer
    # with 128-aligned segments (single small DMA instead of 7 tiny ones).
    seg_g = [np.repeat(np.asarray(params["g1"], np.float32), L1),
             np.repeat(np.asarray(params["g2"], np.float32), L2),
             np.repeat(np.asarray(params["g3"], np.float32), L3),
             np.asarray(params["bl"], np.float32)]
    seg_b = [np.repeat(np.asarray(params["b1"], np.float32), L1),
             np.repeat(np.asarray(params["b2"], np.float32), L2),
             np.repeat(np.asarray(params["b3"], np.float32), L3),
             np.zeros((out_size,), np.float32)]
    offs, cur = [], 0
    for s in seg_g:
        offs.append(cur)
        cur += _align128(s.shape[0])
    packed_np = np.zeros((2, cur), np.float32)
    for off, sg, sb in zip(offs, seg_g, seg_b):
        packed_np[0, off:off + sg.shape[0]] = sg
        packed_np[1, off:off + sb.shape[0]] = sb
    packed = jnp.asarray(packed_np)

    x2 = jnp.asarray(x, jnp.float32).reshape(N, Cin * L)

    kernel = functools.partial(
        _generator_kernel,
        layer_dims=((C1, L1), (C2, L2), (C3, L3)),
        g_offsets=tuple(offs[:3]),
        bias_off=offs[3],
        bias_len=out_size)

    args = (x2, T1, T2, T3, WL, packed)
    out = pl.pallas_call(
        kernel,
        out_shape=jax.ShapeDtypeStruct((N, out_size), jnp.float32),
        grid=(1,),
        in_specs=[_full_spec(a.shape) for a in args],
        out_specs=_full_spec((N, out_size)),
        compiler_params=pltpu.CompilerParams(
            dimension_semantics=("arbitrary",)),
    )(*args)
    return out.reshape(N, 1, out_size)


# ---------------- pure-JAX reference (mirrors PyTorch forward, train-mode BN) -----------
def ref_forward(x, p):
    def convT(h, w, stride):
        K = w.shape[2]
        wf = jnp.flip(w, axis=2).transpose(1, 0, 2)                 # (Cout, Cin, K)
        return jax.lax.conv_general_dilated(
            h, wf, window_strides=(1,), padding=[(K - 1, K - 1)],
            lhs_dilation=(stride,),
            dimension_numbers=("NCH", "OIH", "NCH"), precision=_HP)

    def bn(h, g, b):
        mean = h.mean(axis=(0, 2), keepdims=True)
        var = h.var(axis=(0, 2), keepdims=True)                     # biased (train mode)
        return (h - mean) / jnp.sqrt(var + EPS) * g[None, :, None] + b[None, :, None]

    relu = lambda h: jnp.maximum(h, 0.0)
    h = relu(bn(convT(x, p["w1"], 2), p["g1"], p["b1"]))
    h = relu(bn(convT(h, p["w2"], 1), p["g2"], p["b2"]))
    h = relu(bn(convT(h, p["w3"], 1), p["g3"], p["b3"]))
    z = jnp.einsum("ncl,ol->nco", h, p["wl"], precision=_HP) + p["bl"]
    return jnp.tanh(z)


if __name__ == "__main__":
    # Linear(105, out_size) forces the input length: 2L + 5 = 105 -> L = 50.
    N, Cin, L, out_size = 2, 1, 50, 50

    key = jax.random.PRNGKey(0)
    ks = jax.random.split(key, 12)
    params = {
        "w1": 0.30 * jax.random.normal(ks[0], (1, 5, 3), jnp.float32),   # ConvT(1->5, s=2)
        "w2": 0.20 * jax.random.normal(ks[1], (5, 3, 3), jnp.float32),   # ConvT(5->3, s=1)
        "w3": 0.30 * jax.random.normal(ks[2], (3, 1, 3), jnp.float32),   # ConvT(3->1, s=1)
        "g1": 1.0 + 0.1 * jax.random.normal(ks[3], (5,), jnp.float32),
        "b1": 0.1 * jax.random.normal(ks[4], (5,), jnp.float32),
        "g2": 1.0 + 0.1 * jax.random.normal(ks[5], (3,), jnp.float32),
        "b2": 0.1 * jax.random.normal(ks[6], (3,), jnp.float32),
        "g3": 1.0 + 0.1 * jax.random.normal(ks[7], (1,), jnp.float32),
        "b3": 0.1 * jax.random.normal(ks[8], (1,), jnp.float32),
        "wl": 0.10 * jax.random.normal(ks[9], (out_size, 105), jnp.float32),
        "bl": 0.05 * jax.random.normal(ks[10], (out_size,), jnp.float32),
    }
    x = jax.random.normal(ks[11], (N, Cin, L), jnp.float32)

    out = jax.block_until_ready(generator_forward(x, params))
    ref = jax.block_until_ready(ref_forward(x, params))

    np.testing.assert_allclose(np.asarray(out), np.asarray(ref), rtol=1e-3, atol=1e-3)
    assert out.shape == (N, 1, out_size)
    print("KERNEL_OK")
</pallas_src>

<mosaic_0001>
module attributes {stable_mosaic.version = 11 : i64} {
  func.func @_generator_kernel(%arg0: i32, %arg1: memref<2x50xf32, #tpu.memory_space<vmem>>, %arg2: memref<50x505xf32, #tpu.memory_space<vmem>>, %arg3: memref<505x309xf32, #tpu.memory_space<vmem>>, %arg4: memref<309x105xf32, #tpu.memory_space<vmem>>, %arg5: memref<105x50xf32, #tpu.memory_space<vmem>>, %arg6: memref<2x1152xf32, #tpu.memory_space<vmem>>, %arg7: memref<2x50xf32, #tpu.memory_space<vmem>>) attributes {dimension_semantics = [#tpu.dimension_semantics<arbitrary>], iteration_bounds = array<i64: 1>, scalar_prefetch = 0 : i64, scratch_operands = 0 : i64, tpu.core_type = #tpu.core_type<tc>, window_params = [{pipeline_mode = #tpu.pipeline_mode<synchronous>, transform_indices = @transform_0, window_bounds = array<i64: 2, 50>}, {pipeline_mode = #tpu.pipeline_mode<synchronous>, transform_indices = @transform_1, window_bounds = array<i64: 50, 505>}, {pipeline_mode = #tpu.pipeline_mode<synchronous>, transform_indices = @transform_2, window_bounds = array<i64: 505, 309>}, {pipeline_mode = #tpu.pipeline_mode<synchronous>, transform_indices = @transform_3, window_bounds = array<i64: 309, 105>}, {pipeline_mode = #tpu.pipeline_mode<synchronous>, transform_indices = @transform_4, window_bounds = array<i64: 105, 50>}, {pipeline_mode = #tpu.pipeline_mode<synchronous>, transform_indices = @transform_5, window_bounds = array<i64: 2, 1152>}, {pipeline_mode = #tpu.pipeline_mode<synchronous>, transform_indices = @transform_6, window_bounds = array<i64: 2, 50>}]} {
    %c0 = arith.constant 0 : index
    %c0_0 = arith.constant 0 : index
    %0 = vector.load %arg1[%c0, %c0_0] : memref<2x50xf32, #tpu.memory_space<vmem>>, vector<2x50xf32>
    %c0_1 = arith.constant 0 : index
    %c0_2 = arith.constant 0 : index
    %1 = vector.load %arg2[%c0_1, %c0_2] : memref<50x505xf32, #tpu.memory_space<vmem>>, vector<50x505xf32>
    %cst = arith.constant dense<0.000000e+00> : vector<2x505xf32>
    %2 = tpu.matmul %0, %1, %cst {dimension_numbers = #tpu.dot_dimension_numbers<[1], [0], [0], [1], [0, 0, 1, 1], [], []>, precision = #tpu.contract_precision<fp32>} : vector<2x50xf32>, vector<50x505xf32>, vector<2x505xf32> -> vector<2x505xf32>
    %c0_3 = arith.constant 0 : index
    %c0_4 = arith.constant 0 : index
    %3 = vector.load %arg6[%c0_3, %c0_4] : memref<2x1152xf32, #tpu.memory_space<vmem>>, vector<1x505xf32>
    %c1 = arith.constant 1 : index
    %c0_5 = arith.constant 0 : index
    %4 = vector.load %arg6[%c1, %c0_5] : memref<2x1152xf32, #tpu.memory_space<vmem>>, vector<1x505xf32>
    %5 = tpu.iota {dimensions = array<i32: 1>} : vector<5x505xi32>
    %6 = tpu.iota {dimensions = array<i32: 0>} : vector<5x505xi32>
    %c101_i32 = arith.constant 101 : i32
    %7 = vector.broadcast %c101_i32 : i32 to vector<5x505xi32>
    %8 = arith.muli %6, %7 : vector<5x505xi32>
    %9 = arith.cmpi sge, %5, %8 : vector<5x505xi32>
    %c101_i32_6 = arith.constant 101 : i32
    %10 = vector.broadcast %c101_i32_6 : i32 to vector<5x505xi32>
    %11 = arith.addi %8, %10 : vector<5x505xi32>
    %12 = arith.cmpi slt, %5, %11 : vector<5x505xi32>
    %13 = arith.andi %9, %12 : vector<5x505xi1>
    %cst_7 = arith.constant 1.000000e+00 : f32
    %cst_8 = arith.constant 0.000000e+00 : f32
    %14 = vector.broadcast %cst_7 : f32 to vector<5x505xf32>
    %15 = vector.broadcast %cst_8 : f32 to vector<5x505xf32>
    %16 = arith.select %13, %14, %15 : vector<5x505xi1>, vector<5x505xf32>
    %cst_9 = arith.constant dense<0.000000e+00> : vector<505xf32>
    %17 = vector.multi_reduction <add>, %2, %cst_9 [0] : vector<2x505xf32> to vector<505xf32>
    %18 = vector.shape_cast %17 : vector<505xf32> to vector<1x505xf32>
    %19 = arith.mulf %2, %2 : vector<2x505xf32>
    %cst_10 = arith.constant dense<0.000000e+00> : vector<505xf32>
    %20 = vector.multi_reduction <add>, %19, %cst_10 [0] : vector<2x505xf32> to vector<505xf32>
    %21 = vector.shape_cast %20 : vector<505xf32> to vector<1x505xf32>
    %22 = vector.broadcast %18 : vector<1x505xf32> to vector<5x505xf32>
    %23 = arith.mulf %16, %22 : vector<5x505xf32>
    %cst_11 = arith.constant dense<0.000000e+00> : vector<5xf32>
    %24 = vector.multi_reduction <add>, %23, %cst_11 [1] : vector<5x505xf32> to vector<5xf32>
    %25 = vector.shape_cast %24 : vector<5xf32> to vector<5x1xf32>
    %26 = vector.broadcast %21 : vector<1x505xf32> to vector<5x505xf32>
    %27 = arith.mulf %16, %26 : vector<5x505xf32>
    %cst_12 = arith.constant dense<0.000000e+00> : vector<5xf32>
    %28 = vector.multi_reduction <add>, %27, %cst_12 [1] : vector<5x505xf32> to vector<5xf32>
    %29 = vector.shape_cast %28 : vector<5xf32> to vector<5x1xf32>
    %cst_13 = arith.constant 0.00495049497 : f32
    %30 = vector.broadcast %cst_13 : f32 to vector<5x1xf32>
    %31 = arith.mulf %25, %30 : vector<5x1xf32>
    %cst_14 = arith.constant 0.00495049497 : f32
    %32 = vector.broadcast %cst_14 : f32 to vector<5x1xf32>
    %33 = arith.mulf %29, %32 : vector<5x1xf32>
    %34 = arith.mulf %31, %31 : vector<5x1xf32>
    %35 = arith.subf %33, %34 : vector<5x1xf32>
    %cst_15 = arith.constant 0.000000e+00 : f32
    %36 = vector.broadcast %cst_15 : f32 to vector<5x1xf32>
    %37 = arith.maximumf %35, %36 : vector<5x1xf32>
    %cst_16 = arith.constant 9.99999974E-6 : f32
    %38 = vector.broadcast %cst_16 : f32 to vector<5x1xf32>
    %39 = arith.addf %37, %38 : vector<5x1xf32>
    %40 = math.rsqrt %39 : vector<5x1xf32>
    %41 = vector.broadcast %31 : vector<5x1xf32> to vector<5x505xf32>
    %42 = arith.mulf %16, %41 : vector<5x505xf32>
    %cst_17 = arith.constant dense<0.000000e+00> : vector<505xf32>
    %43 = vector.multi_reduction <add>, %42, %cst_17 [0] : vector<5x505xf32> to vector<505xf32>
    %44 = vector.shape_cast %43 : vector<505xf32> to vector<1x505xf32>
    %45 = vector.broadcast %40 : vector<5x1xf32> to vector<5x505xf32>
    %46 = arith.mulf %16, %45 : vector<5x505xf32>
    %cst_18 = arith.constant dense<0.000000e+00> : vector<505xf32>
    %47 = vector.multi_reduction <add>, %46, %cst_18 [0] : vector<5x505xf32> to vector<505xf32>
    %48 = vector.shape_cast %47 : vector<505xf32> to vector<1x505xf32>
    %49 = arith.mulf %48, %3 : vector<1x505xf32>
    %50 = arith.mulf %44, %49 : vector<1x505xf32>
    %51 = arith.subf %4, %50 : vector<1x505xf32>
    %52 = vector.broadcast %49 : vector<1x505xf32> to vector<2x505xf32>
    %53 = arith.mulf %2, %52 : vector<2x505xf32>
    %54 = vector.broadcast %51 : vector<1x505xf32> to vector<2x505xf32>
    %55 = arith.addf %53, %54 : vector<2x505xf32>
    %cst_19 = arith.constant 0.000000e+00 : f32
    %56 = vector.broadcast %cst_19 : f32 to vector<2x505xf32>
    %57 = arith.maximumf %55, %56 : vector<2x505xf32>
    %c0_20 = arith.constant 0 : index
    %c0_21 = arith.constant 0 : index
    %58 = vector.load %arg3[%c0_20, %c0_21] : memref<505x309xf32, #tpu.memory_space<vmem>>, vector<505x309xf32>
    %cst_22 = arith.constant dense<0.000000e+00> : vector<2x309xf32>
    %59 = tpu.matmul %57, %58, %cst_22 {dimension_numbers = #tpu.dot_dimension_numbers<[1], [0], [0], [1], [0, 0, 1, 1], [], []>, precision = #tpu.contract_precision<fp32>} : vector<2x505xf32>, vector<505x309xf32>, vector<2x309xf32> -> vector<2x309xf32>
    %c0_23 = arith.constant 0 : index
    %c512 = arith.constant 512 : index
    %60 = vector.load %arg6[%c0_23, %c512] : memref<2x1152xf32, #tpu.memory_space<vmem>>, vector<1x309xf32>
    %c1_24 = arith.constant 1 : index
    %c512_25 = arith.constant 512 : index
    %61 = vector.load %arg6[%c1_24, %c512_25] : memref<2x1152xf32, #tpu.memory_space<vmem>>, vector<1x309xf32>
    %62 = tpu.iota {dimensions = array<i32: 1>} : vector<3x309xi32>
    %63 = tpu.iota {dimensions = array<i32: 0>} : vector<3x309xi32>
    %c103_i32 = arith.constant 103 : i32
    %64 = vector.broadcast %c103_i32 : i32 to vector<3x309xi32>
    %65 = arith.muli %63, %64 : vector<3x309xi32>
    %66 = arith.cmpi sge, %62, %65 : vector<3x309xi32>
    %c103_i32_26 = arith.constant 103 : i32
    %67 = vector.broadcast %c103_i32_26 : i32 to vector<3x309xi32>
    %68 = arith.addi %65, %67 : vector<3x309xi32>
    %69 = arith.cmpi slt, %62, %68 : vector<3x309xi32>
    %70 = arith.andi %66, %69 : vector<3x309xi1>
    %cst_27 = arith.constant 1.000000e+00 : f32
    %cst_28 = arith.constant 0.000000e+00 : f32
    %71 = vector.broadcast %cst_27 : f32 to vector<3x309xf32>
    %72 = vector.broadcast %cst_28 : f32 to vector<3x309xf32>
    %73 = arith.select %70, %71, %72 : vector<3x309xi1>, vector<3x309xf32>
    %cst_29 = arith.constant dense<0.000000e+00> : vector<309xf32>
    %74 = vector.multi_reduction <add>, %59, %cst_29 [0] : vector<2x309xf32> to vector<309xf32>
    %75 = vector.shape_cast %74 : vector<309xf32> to vector<1x309xf32>
    %76 = arith.mulf %59, %59 : vector<2x309xf32>
    %cst_30 = arith.constant dense<0.000000e+00> : vector<309xf32>
    %77 = vector.multi_reduction <add>, %76, %cst_30 [0] : vector<2x309xf32> to vector<309xf32>
    %78 = vector.shape_cast %77 : vector<309xf32> to vector<1x309xf32>
    %79 = vector.broadcast %75 : vector<1x309xf32> to vector<3x309xf32>
    %80 = arith.mulf %73, %79 : vector<3x309xf32>
    %cst_31 = arith.constant dense<0.000000e+00> : vector<3xf32>
    %81 = vector.multi_reduction <add>, %80, %cst_31 [1] : vector<3x309xf32> to vector<3xf32>
    %82 = vector.shape_cast %81 : vector<3xf32> to vector<3x1xf32>
    %83 = vector.broadcast %78 : vector<1x309xf32> to vector<3x309xf32>
    %84 = arith.mulf %73, %83 : vector<3x309xf32>
    %cst_32 = arith.constant dense<0.000000e+00> : vector<3xf32>
    %85 = vector.multi_reduction <add>, %84, %cst_32 [1] : vector<3x309xf32> to vector<3xf32>
    %86 = vector.shape_cast %85 : vector<3xf32> to vector<3x1xf32>
    %cst_33 = arith.constant 0.00485436898 : f32
    %87 = vector.broadcast %cst_33 : f32 to vector<3x1xf32>
    %88 = arith.mulf %82, %87 : vector<3x1xf32>
    %cst_34 = arith.constant 0.00485436898 : f32
    %89 = vector.broadcast %cst_34 : f32 to vector<3x1xf32>
    %90 = arith.mulf %86, %89 : vector<3x1xf32>
    %91 = arith.mulf %88, %88 : vector<3x1xf32>
    %92 = arith.subf %90, %91 : vector<3x1xf32>
    %cst_35 = arith.constant 0.000000e+00 : f32
    %93 = vector.broadcast %cst_35 : f32 to vector<3x1xf32>
    %94 = arith.maximumf %92, %93 : vector<3x1xf32>
    %cst_36 = arith.constant 9.99999974E-6 : f32
    %95 = vector.broadcast %cst_36 : f32 to vector<3x1xf32>
    %96 = arith.addf %94, %95 : vector<3x1xf32>
    %97 = math.rsqrt %96 : vector<3x1xf32>
    %98 = vector.broadcast %88 : vector<3x1xf32> to vector<3x309xf32>
    %99 = arith.mulf %73, %98 : vector<3x309xf32>
    %cst_37 = arith.constant dense<0.000000e+00> : vector<309xf32>
    %100 = vector.multi_reduction <add>, %99, %cst_37 [0] : vector<3x309xf32> to vector<309xf32>
    %101 = vector.shape_cast %100 : vector<309xf32> to vector<1x309xf32>
    %102 = vector.broadcast %97 : vector<3x1xf32> to vector<3x309xf32>
    %103 = arith.mulf %73, %102 : vector<3x309xf32>
    %cst_38 = arith.constant dense<0.000000e+00> : vector<309xf32>
    %104 = vector.multi_reduction <add>, %103, %cst_38 [0] : vector<3x309xf32> to vector<309xf32>
    %105 = vector.shape_cast %104 : vector<309xf32> to vector<1x309xf32>
    %106 = arith.mulf %105, %60 : vector<1x309xf32>
    %107 = arith.mulf %101, %106 : vector<1x309xf32>
    %108 = arith.subf %61, %107 : vector<1x309xf32>
    %109 = vector.broadcast %106 : vector<1x309xf32> to vector<2x309xf32>
    %110 = arith.mulf %59, %109 : vector<2x309xf32>
    %111 = vector.broadcast %108 : vector<1x309xf32> to vector<2x309xf32>
    %112 = arith.addf %110, %111 : vector<2x309xf32>
    %cst_39 = arith.constant 0.000000e+00 : f32
    %113 = vector.broadcast %cst_39 : f32 to vector<2x309xf32>
    %114 = arith.maximumf %112, %113 : vector<2x309xf32>
    %c0_40 = arith.constant 0 : index
    %c0_41 = arith.constant 0 : index
    %115 = vector.load %arg4[%c0_40, %c0_41] : memref<309x105xf32, #tpu.memory_space<vmem>>, vector<309x105xf32>
    %cst_42 = arith.constant dense<0.000000e+00> : vector<2x105xf32>
    %116 = tpu.matmul %114, %115, %cst_42 {dimension_numbers = #tpu.dot_dimension_numbers<[1], [0], [0], [1], [0, 0, 1, 1], [], []>, precision = #tpu.contract_precision<fp32>} : vector<2x309xf32>, vector<309x105xf32>, vector<2x105xf32> -> vector<2x105xf32>
    %c0_43 = arith.constant 0 : index
    %c896 = arith.constant 896 : index
    %117 = vector.load %arg6[%c0_43, %c896] : memref<2x1152xf32, #tpu.memory_space<vmem>>, vector<1x105xf32>
    %c1_44 = arith.constant 1 : index
    %c896_45 = arith.constant 896 : index
    %118 = vector.load %arg6[%c1_44, %c896_45] : memref<2x1152xf32, #tpu.memory_space<vmem>>, vector<1x105xf32>
    %119 = tpu.iota {dimensions = array<i32: 1>} : vector<1x105xi32>
    %120 = tpu.iota {dimensions = array<i32: 0>} : vector<1x105xi32>
    %c105_i32 = arith.constant 105 : i32
    %121 = vector.broadcast %c105_i32 : i32 to vector<1x105xi32>
    %122 = arith.muli %120, %121 : vector<1x105xi32>
    %123 = arith.cmpi sge, %119, %122 : vector<1x105xi32>
    %c105_i32_46 = arith.constant 105 : i32
    %124 = vector.broadcast %c105_i32_46 : i32 to vector<1x105xi32>
    %125 = arith.addi %122, %124 : vector<1x105xi32>
    %126 = arith.cmpi slt, %119, %125 : vector<1x105xi32>
    %127 = arith.andi %123, %126 : vector<1x105xi1>
    %cst_47 = arith.constant 1.000000e+00 : f32
    %cst_48 = arith.constant 0.000000e+00 : f32
    %128 = vector.broadcast %cst_47 : f32 to vector<1x105xf32>
    %129 = vector.broadcast %cst_48 : f32 to vector<1x105xf32>
    %130 = arith.select %127, %128, %129 : vector<1x105xi1>, vector<1x105xf32>
    %cst_49 = arith.constant dense<0.000000e+00> : vector<105xf32>
    %131 = vector.multi_reduction <add>, %116, %cst_49 [0] : vector<2x105xf32> to vector<105xf32>
    %132 = vector.shape_cast %131 : vector<105xf32> to vector<1x105xf32>
    %133 = arith.mulf %116, %116 : vector<2x105xf32>
    %cst_50 = arith.constant dense<0.000000e+00> : vector<105xf32>
    %134 = vector.multi_reduction <add>, %133, %cst_50 [0] : vector<2x105xf32> to vector<105xf32>
    %135 = vector.shape_cast %134 : vector<105xf32> to vector<1x105xf32>
    %136 = arith.mulf %130, %132 : vector<1x105xf32>
    %cst_51 = arith.constant dense<0.000000e+00> : vector<1xf32>
    %137 = vector.multi_reduction <add>, %136, %cst_51 [1] : vector<1x105xf32> to vector<1xf32>
    %138 = vector.shape_cast %137 : vector<1xf32> to vector<1x1xf32>
    %139 = arith.mulf %130, %135 : vector<1x105xf32>
    %cst_52 = arith.constant dense<0.000000e+00> : vector<1xf32>
    %140 = vector.multi_reduction <add>, %139, %cst_52 [1] : vector<1x105xf32> to vector<1xf32>
    %141 = vector.shape_cast %140 : vector<1xf32> to vector<1x1xf32>
    %cst_53 = arith.constant 0.00476190494 : f32
    %142 = vector.broadcast %cst_53 : f32 to vector<1x1xf32>
    %143 = arith.mulf %138, %142 : vector<1x1xf32>
    %cst_54 = arith.constant 0.00476190494 : f32
    %144 = vector.broadcast %cst_54 : f32 to vector<1x1xf32>
    %145 = arith.mulf %141, %144 : vector<1x1xf32>
    %146 = arith.mulf %143, %143 : vector<1x1xf32>
    %147 = arith.subf %145, %146 : vector<1x1xf32>
    %cst_55 = arith.constant 0.000000e+00 : f32
    %148 = vector.broadcast %cst_55 : f32 to vector<1x1xf32>
    %149 = arith.maximumf %147, %148 : vector<1x1xf32>
    %cst_56 = arith.constant 9.99999974E-6 : f32
    %150 = vector.broadcast %cst_56 : f32 to vector<1x1xf32>
    %151 = arith.addf %149, %150 : vector<1x1xf32>
    %152 = math.rsqrt %151 : vector<1x1xf32>
    %153 = vector.broadcast %143 : vector<1x1xf32> to vector<1x105xf32>
    %154 = arith.mulf %130, %153 : vector<1x105xf32>
    %cst_57 = arith.constant dense<0.000000e+00> : vector<105xf32>
    %155 = vector.multi_reduction <add>, %154, %cst_57 [0] : vector<1x105xf32> to vector<105xf32>
    %156 = vector.shape_cast %155 : vector<105xf32> to vector<1x105xf32>
    %157 = vector.broadcast %152 : vector<1x1xf32> to vector<1x105xf32>
    %158 = arith.mulf %130, %157 : vector<1x105xf32>
    %cst_58 = arith.constant dense<0.000000e+00> : vector<105xf32>
    %159 = vector.multi_reduction <add>, %158, %cst_58 [0] : vector<1x105xf32> to vector<105xf32>
    %160 = vector.shape_cast %159 : vector<105xf32> to vector<1x105xf32>
    %161 = arith.mulf %160, %117 : vector<1x105xf32>
    %162 = arith.mulf %156, %161 : vector<1x105xf32>
    %163 = arith.subf %118, %162 : vector<1x105xf32>
    %164 = vector.broadcast %161 : vector<1x105xf32> to vector<2x105xf32>
    %165 = arith.mulf %116, %164 : vector<2x105xf32>
    %166 = vector.broadcast %163 : vector<1x105xf32> to vector<2x105xf32>
    %167 = arith.addf %165, %166 : vector<2x105xf32>
    %cst_59 = arith.constant 0.000000e+00 : f32
    %168 = vector.broadcast %cst_59 : f32 to vector<2x105xf32>
    %169 = arith.maximumf %167, %168 : vector<2x105xf32>
    %c0_60 = arith.constant 0 : index
    %c0_61 = arith.constant 0 : index
    %170 = vector.load %arg5[%c0_60, %c0_61] : memref<105x50xf32, #tpu.memory_space<vmem>>, vector<105x50xf32>
    %cst_62 = arith.constant dense<0.000000e+00> : vector<2x50xf32>
    %171 = tpu.matmul %169, %170, %cst_62 {dimension_numbers = #tpu.dot_dimension_numbers<[1], [0], [0], [1], [0, 0, 1, 1], [], []>, precision = #tpu.contract_precision<fp32>} : vector<2x105xf32>, vector<105x50xf32>, vector<2x50xf32> -> vector<2x50xf32>
    %c0_63 = arith.constant 0 : index
    %c1024 = arith.constant 1024 : index
    %172 = vector.load %arg6[%c0_63, %c1024] : memref<2x1152xf32, #tpu.memory_space<vmem>>, vector<1x50xf32>
    %173 = vector.broadcast %172 : vector<1x50xf32> to vector<2x50xf32>
    %174 = arith.addf %171, %173 : vector<2x50xf32>
    %175 = math.tanh %174 : vector<2x50xf32>
    %c0_64 = arith.constant 0 : index
    %c0_65 = arith.constant 0 : index
    %176 = vector.load %arg7[%c0_64, %c0_65] : memref<2x50xf32, #tpu.memory_space<vmem>>, vector<2x50xf32>
    tpu.vector_store %arg7[%c0_64, %c0_65], %175 {strides = array<i32>} : memref<2x50xf32, #tpu.memory_space<vmem>>, vector<2x50xf32>,
    return
  }
  func.func @transform_0(%arg0: i32) -> (i32, i32) {
    %c0_i32 = arith.constant 0 : i32
    %c0_i32_0 = arith.constant 0 : i32
    %c0_i32_1 = arith.constant 0 : i32
    return %c0_i32, %c0_i32_0 : i32, i32
  }
  func.func @transform_1(%arg0: i32) -> (i32, i32) {
    %c0_i32 = arith.constant 0 : i32
    %c0_i32_0 = arith.constant 0 : i32
    %c0_i32_1 = arith.constant 0 : i32
    return %c0_i32, %c0_i32_0 : i32, i32
  }
  func.func @transform_2(%arg0: i32) -> (i32, i32) {
    %c0_i32 = arith.constant 0 : i32
    %c0_i32_0 = arith.constant 0 : i32
    %c0_i32_1 = arith.constant 0 : i32
    return %c0_i32, %c0_i32_0 : i32, i32
  }
  func.func @transform_3(%arg0: i32) -> (i32, i32) {
    %c0_i32 = arith.constant 0 : i32
    %c0_i32_0 = arith.constant 0 : i32
    %c0_i32_1 = arith.constant 0 : i32
    return %c0_i32, %c0_i32_0 : i32, i32
  }
  func.func @transform_4(%arg0: i32) -> (i32, i32) {
    %c0_i32 = arith.constant 0 : i32
    %c0_i32_0 = arith.constant 0 : i32
    %c0_i32_1 = arith.constant 0 : i32
    return %c0_i32, %c0_i32_0 : i32, i32
  }
  func.func @transform_5(%arg0: i32) -> (i32, i32) {
    %c0_i32 = arith.constant 0 : i32
    %c0_i32_0 = arith.constant 0 : i32
    %c0_i32_1 = arith.constant 0 : i32
    return %c0_i32, %c0_i32_0 : i32, i32
  }
  func.func @transform_6(%arg0: i32) -> (i32, i32) {
    %c0_i32 = arith.constant 0 : i32
    %c0_i32_0 = arith.constant 0 : i32
    %c0_i32_1 = arith.constant 0 : i32
    return %c0_i32, %c0_i32_0 : i32, i32
  }
}

</mosaic_0001>

<bundles_post_ra>
// kernel: tpu_custom_call.1
= control target key start
LH: loop header
LB: loop body
LE: loop exit
PB: predicated region body
PF: predicated region fallthrough
CT: control target
= control target key end

     0   :  { %vm57_vm0 = vcmask 1041408   ;;  %v15450_v48 = vmov 0.0   ;;  %vm53_vm1 = vcmask 408576   ;;  %s15443_s0 = inlined_call_operand.vmem [shape: f32[2,50], index: 0, kind: input, shape index: {}]   ;;  %s15444_s1 = inlined_call_operand.vmem [shape: f32[50,505], index: 1, kind: input, shape index: {}]   ;;  %s15445_s2 = inlined_call_operand.vmem [shape: f32[505,309], index: 2, kind: input, shape index: {}]   ;;  %s15446_s3 = inlined_call_operand.vmem [shape: f32[309,105], index: 3, kind: input, shape index: {}]   ;;  %s15447_s4 = inlined_call_operand.vmem [shape: f32[105,50], index: 4, kind: input, shape index: {}]   ;;  %s15448_s5 = inlined_call_operand.vmem [shape: f32[2,1152], index: 5, kind: input, shape index: {}]   ;;  %s15449_s6 = inlined_call_operand.hbm [shape: f32[2,50], index: 6, kind: output, shape index: {}]  }
   0x1   :  { %v50_v0 = vld [vmem:[%s15444_s1 + $0xc8] sm:$0x3]  ;;  %v49_v1 = vld [vmem:[%s15444_s1 + $0xc0] sm:$0x3]  ;;  %148 = vmatprep.mubr.f32.mxu0 %v15450_v48  ;;  %294 = vmatprep.mubr.f32.mxu1 %v15450_v48 }
   0x2   :  { %v46_v2 = vld [vmem:[%s15444_s1 + $0xa8] sm:$0xff]  ;;  %v62_v3 = vsel %vm57_vm0, %v50_v0, 0  ;;  %v59_v4 = vsel %vm57_vm0, %v49_v1, 0  ;;  %v45_v6 = vld [vmem:[%s15444_s1 + $0xa0] sm:$0xff] }
   0x3   :  { %v9626_v5 = vand.u32 4294901760, %v46_v2  ;;  %v42_v7 = vld [vmem:[%s15444_s1 + $0x88] sm:$0xff]  ;;  %v41_v8 = vld [vmem:[%s15444_s1 + $0x80] sm:$0xff]  ;;  %v9637_v9 = vand.u32 4294901760, %v62_v3  ;;  %v9639_v10 = vand.u32 4294901760, %v59_v4  ;;  %v9641_v11 = vand.u32 4294901760, %v45_v6 }
   0x4   :  { %v9643_v12 = vand.u32 4294901760, %v42_v7  ;;  %v38_v13 = vld [vmem:[%s15444_s1 + $0x68] sm:$0xff]  ;;  %v37_v14 = vld [vmem:[%s15444_s1 + $0x60] sm:$0xff]  ;;  %v9651_v15 = vand.u32 4294901760, %v41_v8 }
   0x5   :  { %v9653_v16 = vand.u32 4294901760, %v38_v13  ;;  %v9655_v17 = vand.u32 4294901760, %v37_v14  ;;  %v34_v18 = vld [vmem:[%s15444_s1 + $0x48] sm:$0xff]  ;;  %v33_v19 = vld [vmem:[%s15444_s1 + $0x40] sm:$0xff]  ;;  %v9667_v21 = vsub.f32 %v46_v2, %v9626_v5  ;;  %89 = vmatprep.subr.mxu0 %v9637_v9  ;;  %v9673_v23 = vsub.f32 %v62_v3, %v9637_v9 }
   0x6   :  { %v30_v20 = vld [vmem:[%s15444_s1 + $0x28] sm:$0xff]  ;;  %v9670_v22 = vand.u32 4294901760, %v34_v18  ;;  %v9675_v24 = vand.u32 4294901760, %v33_v19  ;;  %v9678_v25 = vsub.f32 %v59_v4, %v9639_v10  ;;  %v29_v26 = vld [vmem:[%s15444_s1 + $0x20] sm:$0xff]  ;;  %91 = vmatpush1.msra.mxu0 %v9639_v10  ;;  %v9700_v32 = vsub.f32 %v45_v6, %v9641_v11 }
   0x7   :  { %v9686_v27 = vld [vmem:[%s15444_s1 + $0x8] sm:$0xff]  ;;  %v9691_v28 = vld [vmem:[%s15444_s1] sm:$0xff]  ;;  %v9694_v29 = vand.u32 4294901760, %v30_v20  ;;  %v192_v30 = vand.u32 4294901760, %v9667_v21  ;;  %v9697_v31 = vand.u32 4294901760, %v29_v26  ;;  %93 = vmatprep.subr.mxu0 %v9626_v5  ;;  %v180_v33 = vand.u32 4294901760, %v9673_v23 }
   0x8   :  { %v186_v34 = vand.u32 4294901760, %v9678_v25  ;;  %v9706_v35 = vand.u32 4294901760, %v9686_v27  ;;  %v9709_v36 = vsub.f32 %v42_v7, %v9643_v12  ;;  %95 = vmatpush1.msra.mxu0 %v9641_v11  ;;  %v198_v38 = vand.u32 4294901760, %v9700_v32  ;;  %v24_v44 = vld [vmem:[%s15443_s0] sm:$0x3] }
   0x9   :  { %v193_v37 = vsub.f32 %v9667_v21, %v192_v30  ;;  %v9717_v39 = vand.u32 4294901760, %v9691_v28  ;;  %v9720_v40 = vsub.f32 %v41_v8, %v9651_v15  ;;  %97 = vmatprep.subr.mxu0 %v9643_v12  ;;  %v181_v41 = vsub.f32 %v9673_v23, %v180_v33 }
   0xa   :  { %v187_v42 = vsub.f32 %v9678_v25, %v186_v34  ;;  %v204_v43 = vand.u32 4294901760, %v9709_v36  ;;  %99 = vmatpush1.msra.mxu0 %v9651_v15  ;;  %v199_v46 = vsub.f32 %v9700_v32, %v198_v38  ;;  %v9740_v49 = vsub.f32 %v38_v13, %v9653_v16 }
   0xb   :  { %v194_v45 = vand.u32 4294901760, %v193_v37  ;;  %v210_v47 = vand.u32 4294901760, %v9720_v40  ;;  %101 = vmatprep.subr.mxu0 %v9653_v16  ;;  %v182_v50 = vand.u32 4294901760, %v181_v41  ;;  %v55_v56 = vsel %vm53_vm1, %v24_v44, 0 }
   0xc   :  { %v188_v51 = vand.u32 4294901760, %v187_v42  ;;  %v205_v52 = vsub.f32 %v9709_v36, %v204_v43  ;;  %103 = vmatpush1.msra.mxu0 %v9655_v17  ;;  %v200_v53 = vand.u32 4294901760, %v199_v46  ;;  %v216_v55 = vand.u32 4294901760, %v9740_v49 }
   0xd   :  { %v211_v54 = vsub.f32 %v9720_v40, %v210_v47 }
   0xe   :  { %11 = vsyncpa [#allocation3], 0  ;;  %105 = vmatprep.subr.mxu0 %v9670_v22  ;;  %183 = vmatprep.subr.mxu1 %v182_v50  ;;  %v206_v57 = vand.u32 4294901760, %v205_v52  ;;  %v9753_v58 = vand.u32 4294901760, %v55_v56  ;;  %v9756_v59 = vsub.f32 %v37_v14, %v9655_v17  ;;  %v9759_v60 = vsub.f32 %v34_v18, %v9670_v22  ;;  %s9579_s30 = smov [#allocation2]  }
   0xf   :  { %107 = vmatpush1.msra.mxu0 %v9675_v24  ;;  %189 = vmatpush1.msra.mxu1 %v188_v51  ;;  %v212_v61 = vand.u32 4294901760, %v211_v54  ;;  %v217_v62 = vsub.f32 %v9740_v49, %v216_v55  ;;  %v9766_v63 = vsub.f32 %v33_v19, %v9675_v24  ;;  %v9769_v0 = vsub.f32 %v30_v20, %v9694_v29  ;;  %s8474_s7 = sshll.u32 %s9579_s30, 4  ;;  %s8475_s7 = int_to_ptr.vmem [resolvable:$true] %s8474_s7 }
  0x10   :  { %109 = vmatprep.subr.mxu0 %v9694_v29  ;;  %195 = vmatprep.subr.mxu1 %v194_v45  ;;  %v9773_v1 = vsub.f32 %v55_v56, %v9753_v58  ;;  %v222_v2 = vand.u32 4294901760, %v9756_v59  ;;  %v228_v3 = vand.u32 4294901760, %v9759_v60  ;;  %v9778_v4 = vsub.f32 %v29_v26, %v9697_v31  ;;  %s9554_s8 = scalar_lea.vmem %s8475_s7, 32  ;;  %p9559_p1 = scmp.lt.s32.totalorder %s8475_s7, %s8475_s7 }
  0x11   :  { %111 = vmatpush1.msra.mxu0 %v9697_v31  ;;  %201 = vmatpush1.msra.mxu1 %v200_v53  ;;  %v218_v6 = vand.u32 4294901760, %v217_v62  ;;  %v234_v7 = vand.u32 4294901760, %v9766_v63  ;;  %v240_v8 = vand.u32 4294901760, %v9769_v0  ;;  %v9785_v13 = vsub.f32 %v9686_v27, %v9706_v35  ;;  %v52_v62 = vld [vmem:[%s15444_s1 + $0xd8] sm:$0x3]  ;;  %p9555_p0 = scmp.ne.s32.totalorder %s8475_s7, %s9554_s8  ;;  %p9560_p2 = scmp.lt.s32.totalorder %s9554_s8, %s9554_s8 }
  0x12   :  { %113 = vmatprep.subr.mxu0 %v9706_v35  ;;  %207 = vmatprep.subr.mxu1 %v206_v57  ;;  %v9789_v14 = vand.u32 4294901760, %v9773_v1  ;;  %v223_v18 = vsub.f32 %v9756_v59, %v222_v2  ;;  %v229_v19 = vsub.f32 %v9759_v60, %v228_v3  ;;  %v246_v20 = vand.u32 4294901760, %v9778_v4 }
  0x13   :  { %115 = vmatpush1.msra.mxu0 %v9717_v39  ;;  %213 = vmatpush1.msra.mxu1 %v212_v61  ;;  %v235_v26 = vsub.f32 %v9766_v63, %v234_v7  ;;  %v241_v27 = vsub.f32 %v9769_v0, %v240_v8  ;;  %v252_v37 = vand.u32 4294901760, %v9785_v13  ;;  %v9808_v41 = vsub.f32 %v9691_v28, %v9717_v39  ;;  %p9561_p3 = por %p9560_p2, %p9559_p1 }
  0x14   :  { %219 = vmatprep.subr.mxu1 %v218_v6  ;;  %322 = vmatprep.subr.mxu0 %v9673_v23  ;;  %v152_v42 = vsub.f32 %v9773_v1, %v9789_v14  ;;  %v224_v44 = vand.u32 4294901760, %v223_v18  ;;  %v230_v45 = vand.u32 4294901760, %v229_v19  ;;  %v247_v46 = vsub.f32 %v9778_v4, %v246_v20  ;;  %v51_v6 = vld [vmem:[%s15444_s1 + $0xd0] sm:$0x3] }
  0x15   :  { %v236_v50 = vand.u32 4294901760, %v235_v26  ;;  %v242_v51 = vand.u32 4294901760, %v241_v27  ;;  %v253_v52 = vsub.f32 %v9785_v13, %v252_v37  ;;  %v258_v28 = vand.u32 4294901760, %v9808_v41  ;;  %p9562_p4 = pnand %p9561_p3, %p9555_p0 }
  0x16   :  { %v9820_v53 = vand.u32 4294901760, %v152_v42  ;;  %225 = vmatpush1.msra.mxu1 %v224_v44  ;;  %v248_v54 = vand.u32 4294901760, %v247_v46  ;;  %v68_v18 = vsel %vm57_vm0, %v52_v62, 0  ;;  %v65_v23 = vsel %vm57_vm0, %v51_v6, 0 }
  0x17   :  { %231 = vmatprep.subr.mxu1 %v230_v45  ;;  %v254_v56 = vand.u32 4294901760, %v253_v52  ;;  %v259_v57 = vsub.f32 %v9808_v41, %v258_v28  ;;  %vm1361_vm8 = vcmask 984064   ;;  %vm1405_vm14 = vcmask 1044480  }
  0x18   :  { %154 = vmatmul.mubr.f32.vlgmr.msra.gmra.mxu0 %v9820_v53  ;;  %237 = vmatpush1.msra.mxu1 %v236_v50  ;;  %vm1411_vm1 = vcmask 987136  }
  0x19   :  { %325 = vmatpush1.msra.mxu0 %v9678_v25  ;;  %243 = vmatprep.subr.mxu1 %v242_v51  ;;  %v260_v61 = vand.u32 4294901760, %v259_v57  ;;  %v48_v25 = vld [vmem:[%s15444_s1 + $0xb8] sm:$0xff] }
  0x1a   :  { %328 = vmatprep.subr.mxu0 %v9667_v21  ;;  %249 = vmatpush1.msra.mxu1 %v248_v54  ;;  %v9877_v21 = vand.u32 4294901760, %v68_v18 }
  0x1b   :  { %331 = vmatpush1.msra.mxu0 %v9700_v32  ;;  %255 = vmatprep.subr.mxu1 %v254_v56  ;;  %v9885_v32 = vand.u32 4294901760, %v65_v23 }
  0x1c   :  { %334 = vmatprep.subr.mxu0 %v9709_v36  ;;  %261 = vmatpush1.msra.mxu1 %v260_v61  ;;  %v43_v36 = vld [vmem:[%s15444_s1 + $0x90] sm:$0xff] }
  0x1d   :  { %337 = vmatpush1.msra.mxu0 %v9720_v40  ;;  %296 = vmatmul.mubr.f32.vlgmr.msra.gmra.mxu1 %v9753_v58  ;;  %v40_v40 = vld [vmem:[%s15444_s1 + $0x78] sm:$0xff] }
  0x1e   :  { %340 = vmatprep.subr.mxu0 %v9740_v49  ;;  %422 = vmatprep.subr.mxu1 %v9637_v9  ;;  %v9917_v49 = vsub.f32 %v65_v23, %v9885_v32 }
  0x1f   :  { %343 = vmatpush1.msra.mxu0 %v9756_v59  ;;  %424 = vmatpush1.msra.mxu1 %v9639_v10  ;;  %v39_v59 = vld [vmem:[%s15444_s1 + $0x70] sm:$0xff] }
  0x20   :  { %346 = vmatprep.subr.mxu0 %v9759_v60  ;;  %426 = vmatprep.subr.mxu1 %v9626_v5 }
  0x21   :  { %349 = vmatpush1.msra.mxu0 %v9766_v63  ;;  %428 = vmatpush1.msra.mxu1 %v9641_v11 }
  0x22   :  { %352 = vmatprep.subr.mxu0 %v9769_v0  ;;  %430 = vmatprep.subr.mxu1 %v9643_v12  ;;  %v9947_v0 = vand.u32 4294901760, %v39_v59 }
  0x23   :  { %355 = vmatpush1.msra.mxu0 %v9778_v4  ;;  %394 = vmatprep.mubr.f32.mxu0 %v15450_v48 }
  0x24   :  { %358 = vmatprep.subr.mxu0 %v9785_v13  ;;  %432 = vmatpush1.msra.mxu1 %v9651_v15 }
  0x25   :  { %361 = vmatpush1.msra.mxu0 %v9808_v41  ;;  %434 = vmatprep.subr.mxu1 %v9653_v16  ;;  %v9990_v41 = vsub.f32 %v39_v59, %v9947_v0 }
  0x26   :  { %397 = vmatmul.mubr.f32.vlgmr.msra.gmra.mxu0 %v9773_v1  ;;  %512 = vmatprep.subr.mxu0 %v180_v33  ;;  %v44_v33 = vld [vmem:[%s15444_s1 + $0x98] sm:$0xff] }
  0x27   :  { %436 = vmatpush1.msra.mxu1 %v9655_v17  ;;  %516 = vmatpush1.msra.mxu0 %v186_v34  ;;  %v9892_v34 = vand.u32 4294901760, %v48_v25  ;;  %v843_v61 = vand.u32 4294901760, %v9990_v41 }
  0x28   :  { %438 = vmatprep.subr.mxu1 %v9670_v22  ;;  %520 = vmatprep.subr.mxu0 %v192_v30  ;;  %v47_v30 = vld [vmem:[%s15444_s1 + $0xb0] sm:$0xff] }
  0x29   :  { %440 = vmatpush1.msra.mxu1 %v9675_v24  ;;  %524 = vmatpush1.msra.mxu0 %v198_v38  ;;  %v9900_v38 = vand.u32 4294901760, %v47_v30  ;;  %v9933_v60 = vsub.f32 %v48_v25, %v9892_v34 }
  0x2a   :  { %442 = vmatprep.subr.mxu1 %v9694_v29  ;;  %528 = vmatprep.subr.mxu0 %v204_v43  ;;  %v9908_v43 = vand.u32 4294901760, %v44_v33 }
  0x2b   :  { %444 = vmatpush1.msra.mxu1 %v9697_v31  ;;  %532 = vmatpush1.msra.mxu0 %v210_v47  ;;  %v9911_v47 = vsub.f32 %v68_v18, %v9877_v21  ;;  %v9939_v63 = vsub.f32 %v47_v30, %v9900_v38  ;;  %v813_v19 = vand.u32 4294901760, %v9933_v60 }
  0x2c   :  { %446 = vmatprep.subr.mxu1 %v9706_v35  ;;  %536 = vmatprep.subr.mxu0 %v216_v55  ;;  %v9919_v55 = vand.u32 4294901760, %v43_v36 }
  0x2d   :  { %448 = vmatpush1.msra.mxu1 %v9717_v39  ;;  %481 = vmatprep.mubr.f32.mxu1 %v15450_v48 }
  0x2e   :  { %540 = vmatpush1.msra.mxu0 %v222_v2  ;;  %485 = vmatmul.mubr.f32.vlgmr.msra.gmra.mxu1 %v9789_v14  ;;  %v801_v2 = vand.u32 4294901760, %v9911_v47  ;;  %v9960_v4 = vsub.f32 %v43_v36, %v9919_v55 }
  0x2f   :  { %544 = vmatprep.subr.mxu0 %v228_v3  ;;  %624 = vmatprep.subr.mxu1 %v9637_v9  ;;  %v9927_v9 = vand.u32 4294901760, %v40_v40  ;;  %v9954_v3 = vsub.f32 %v44_v33, %v9908_v43 }
  0x30   :  { %548 = vmatpush1.msra.mxu0 %v234_v7  ;;  %626 = vmatpush1.msra.mxu1 %v9639_v10  ;;  %v36_v10 = vld [vmem:[%s15444_s1 + $0x58] sm:$0xff]  ;;  %v807_v7 = vand.u32 4294901760, %v9917_v49  ;;  %v831_v46 = vand.u32 4294901760, %v9960_v4 }
  0x31   :  { %552 = vmatprep.subr.mxu0 %v240_v8  ;;  %628 = vmatprep.subr.mxu1 %v9626_v5  ;;  %v35_v5 = vld [vmem:[%s15444_s1 + $0x50] sm:$0xff]  ;;  %v9977_v26 = vsub.f32 %v40_v40, %v9927_v9  ;;  %v825_v44 = vand.u32 4294901760, %v9954_v3  ;;  %v844_v40 = vsub.f32 %v9990_v41, %v843_v61 }
  0x32   :  { %556 = vmatpush1.msra.mxu0 %v246_v20  ;;  %630 = vmatpush1.msra.mxu1 %v9641_v11  ;;  %v32_v11 = vld [vmem:[%s15444_s1 + $0x38] sm:$0xff]  ;;  %v31_v8 = vld [vmem:[%s15444_s1 + $0x30] sm:$0xff]  ;;  %v9970_v13 = vand.u32 4294901760, %v35_v5 }
  0x33   :  { %560 = vmatprep.subr.mxu0 %v252_v37  ;;  %632 = vmatprep.subr.mxu1 %v9643_v12  ;;  %v9962_v12 = vand.u32 4294901760, %v36_v10  ;;  %v28_v20 = vld [vmem:[%s15444_s1 + $0x18] sm:$0xff]  ;;  %v9981_v27 = vand.u32 4294901760, %v32_v11  ;;  %v27_v37 = vld [vmem:[%s15444_s1 + $0x10] sm:$0xff]  ;;  %v9995_v42 = vand.u32 4294901760, %v31_v8 }
  0x34   :  { %564 = vmatpush1.msra.mxu0 %v258_v28  ;;  %597 = vmatprep.mubr.f32.mxu0 %v15450_v48  ;;  %v10003_v45 = vand.u32 4294901760, %v28_v20  ;;  %v10012_v51 = vsub.f32 %v35_v5, %v9970_v13  ;;  %v10017_v52 = vand.u32 4294901760, %v27_v37  ;;  %v837_v28 = vand.u32 4294901760, %v9977_v26 }
  0x35   :  { %634 = vmatpush1.msra.mxu1 %v9651_v15  ;;  %599 = vmatmul.mubr.f32.vlgmr.msra.gmra.mxu0 %v9753_v58  ;;  %v819_v15 = vand.u32 4294901760, %v9939_v63  ;;  %v10007_v50 = vsub.f32 %v36_v10, %v9962_v12  ;;  %v10026_v54 = vsub.f32 %v32_v11, %v9981_v27  ;;  %v10031_v57 = vsub.f32 %v31_v8, %v9995_v42 }
  0x36   :  { %636 = vmatprep.subr.mxu1 %v9653_v16  ;;  %710 = vmatprep.subr.mxu0 %v9877_v21  ;;  %v802_v16 = vsub.f32 %v9911_v47, %v801_v2  ;;  %v10044_v18 = vsub.f32 %v28_v20, %v10003_v45  ;;  %v10049_v25 = vsub.f32 %v27_v37, %v10017_v52  ;;  %v855_v30 = vand.u32 4294901760, %v10012_v51 }
  0x37   :  { %638 = vmatpush1.msra.mxu1 %v9655_v17  ;;  %712 = vmatpush1.msra.mxu0 %v9885_v32  ;;  %v808_v17 = vsub.f32 %v9917_v49, %v807_v7  ;;  %v849_v6 = vand.u32 4294901760, %v10007_v50  ;;  %v861_v36 = vand.u32 4294901760, %v10026_v54  ;;  %v867_v59 = vand.u32 4294901760, %v10031_v57 }
  0x38   :  { %640 = vmatprep.subr.mxu1 %v9670_v22  ;;  %714 = vmatprep.subr.mxu0 %v9892_v34  ;;  %v814_v22 = vsub.f32 %v9933_v60, %v813_v19  ;;  %v803_v56 = vand.u32 4294901760, %v802_v16  ;;  %v873_v11 = vand.u32 4294901760, %v10044_v18  ;;  %v856_v20 = vsub.f32 %v10012_v51, %v855_v30 }
  0x39   :  { %642 = vmatpush1.msra.mxu1 %v9675_v24  ;;  %716 = vmatpush1.msra.mxu0 %v9900_v38  ;;  %v820_v24 = vsub.f32 %v9939_v63, %v819_v15  ;;  %v809_v62 = vand.u32 4294901760, %v808_v17  ;;  %v850_v5 = vsub.f32 %v10007_v50, %v849_v6  ;;  %v879_v37 = vand.u32 4294901760, %v10049_v25 }
  0x3a   :  { %644 = vmatprep.subr.mxu1 %v9694_v29  ;;  %718 = vmatprep.subr.mxu0 %v9908_v43  ;;  %v826_v29 = vsub.f32 %v9954_v3, %v825_v44  ;;  %v815_v23 = vand.u32 4294901760, %v814_v22  ;;  %v862_v16 = vsub.f32 %v10026_v54, %v861_v36  ;;  %v845_v17 = vand.u32 4294901760, %v844_v40 }
  0x3b   :  { %646 = vmatpush1.msra.mxu1 %v9697_v31  ;;  %720 = vmatpush1.msra.mxu0 %v9919_v55  ;;  %v832_v31 = vsub.f32 %v9960_v4, %v831_v46  ;;  %v821_v33 = vand.u32 4294901760, %v820_v24  ;;  %v868_v22 = vsub.f32 %v10031_v57, %v867_v59  ;;  %v851_v24 = vand.u32 4294901760, %v850_v5 }
  0x3c   :  { %648 = vmatprep.subr.mxu1 %v9706_v35  ;;  %722 = vmatprep.subr.mxu0 %v9927_v9  ;;  %v838_v35 = vsub.f32 %v9977_v26, %v837_v28 }
  0x3d   :  { %650 = vmatpush1.msra.mxu1 %v9717_v39  ;;  %683 = vmatprep.mubr.f32.mxu1 %v15450_v48  ;;  %v827_v39 = vand.u32 4294901760, %v826_v29  ;;  %v833_v10 = vand.u32 4294901760, %v832_v31  ;;  %v857_v29 = vand.u32 4294901760, %v856_v20  ;;  %v863_v31 = vand.u32 4294901760, %v862_v16 }
  0x3e   :  { %724 = vmatpush1.msra.mxu0 %v9947_v0  ;;  %685 = vmatmul.mubr.f32.vlgmr.msra.gmra.mxu1 %v9753_v58  ;;  %v839_v8 = vand.u32 4294901760, %v838_v35 }
  0x3f   :  { %726 = vmatprep.subr.mxu0 %v9962_v12  ;;  %804 = vmatprep.subr.mxu1 %v803_v56  ;;  %v874_v56 = vsub.f32 %v10044_v18, %v873_v11 }
  0x40   :  { %728 = vmatpush1.msra.mxu0 %v9970_v13  ;;  %810 = vmatpush1.msra.mxu1 %v809_v62  ;;  %v880_v62 = vsub.f32 %v10049_v25, %v879_v37 }
  0x41   :  { %730 = vmatprep.subr.mxu0 %v9981_v27  ;;  %816 = vmatprep.subr.mxu1 %v815_v23  ;;  %v869_v23 = vand.u32 4294901760, %v868_v22  ;;  %v875_v35 = vand.u32 4294901760, %v874_v56 }
  0x42   :  { %732 = vmatpush1.msra.mxu0 %v9995_v42  ;;  %822 = vmatpush1.msra.mxu1 %v821_v33  ;;  %v881_v33 = vand.u32 4294901760, %v880_v62 }
  0x43   :  { %734 = vmatprep.subr.mxu0 %v10003_v45  ;;  %828 = vmatprep.subr.mxu1 %v827_v39 }
  0x44   :  { %736 = vmatpush1.msra.mxu0 %v10017_v52  ;;  %834 = vmatpush1.msra.mxu1 %v833_v10 }
  0x45   :  { %769 = vmatprep.mubr.f32.mxu0 %v15450_v48  ;;  %840 = vmatprep.subr.mxu1 %v839_v8 }
  0x46   :  { %943 = vmatprep.subr.mxu0 %v9911_v47  ;;  %775 = vmatmul.mubr.f32.vlgmr.msra.gmra.mxu0 %v9820_v53 }
  0x47   :  { %846 = vmatpush1.msra.mxu1 %v845_v17  ;;  %946 = vmatpush1.msra.mxu0 %v9917_v49 }
  0x48   :  { %852 = vmatprep.subr.mxu1 %v851_v24  ;;  %949 = vmatprep.subr.mxu0 %v9933_v60 }
  0x49   :  { %858 = vmatpush1.msra.mxu1 %v857_v29  ;;  %952 = vmatpush1.msra.mxu0 %v9939_v63 }
  0x4a   :  { %864 = vmatprep.subr.mxu1 %v863_v31  ;;  %955 = vmatprep.subr.mxu0 %v9954_v3 }
  0x4b   :  { %870 = vmatpush1.msra.mxu1 %v869_v23  ;;  %958 = vmatpush1.msra.mxu0 %v9960_v4 }
  0x4c   :  { %876 = vmatprep.subr.mxu1 %v875_v35  ;;  %961 = vmatprep.subr.mxu0 %v9977_v26 }
  0x4d   :  { %882 = vmatpush1.msra.mxu1 %v881_v33  ;;  %915 = vmatprep.mubr.f32.mxu1 %v15450_v48 }
  0x4e   :  { %964 = vmatpush1.msra.mxu0 %v9990_v41  ;;  %917 = vmatmul.mubr.f32.vlgmr.msra.gmra.mxu1 %v9753_v58 }
  0x4f   :  { %967 = vmatprep.subr.mxu0 %v10007_v50  ;;  %1043 = vmatprep.subr.mxu1 %v9877_v21 }
  0x50   :  { %970 = vmatpush1.msra.mxu0 %v10012_v51  ;;  %1045 = vmatpush1.msra.mxu1 %v9885_v32 }
  0x51   :  { %973 = vmatprep.subr.mxu0 %v10026_v54  ;;  %1047 = vmatprep.subr.mxu1 %v9892_v34 }
  0x52   :  { %976 = vmatpush1.msra.mxu0 %v10031_v57  ;;  %1049 = vmatpush1.msra.mxu1 %v9900_v38 }
  0x53   :  { %979 = vmatprep.subr.mxu0 %v10044_v18  ;;  %1051 = vmatprep.subr.mxu1 %v9908_v43 }
  0x54   :  { %982 = vmatpush1.msra.mxu0 %v10049_v25  ;;  %1015 = vmatprep.mubr.f32.mxu0 %v15450_v48 }
  0x55   :  { %1053 = vmatpush1.msra.mxu1 %v9919_v55  ;;  %1018 = vmatmul.mubr.f32.vlgmr.msra.gmra.mxu0 %v9773_v1  ;;  %v1654_v1 = vld [vmem:[%s15445_s2 + $0x170] sm:$0xff] }
  0x56   :  { %1055 = vmatprep.subr.mxu1 %v9927_v9  ;;  %1133 = vmatprep.subr.mxu0 %v801_v2 }
  0x57   :  { %1057 = vmatpush1.msra.mxu1 %v9947_v0  ;;  %1137 = vmatpush1.msra.mxu0 %v807_v7 }
  0x58   :  { %1059 = vmatprep.subr.mxu1 %v9962_v12  ;;  %1141 = vmatprep.subr.mxu0 %v813_v19 }
  0x59   :  { %1061 = vmatpush1.msra.mxu1 %v9970_v13  ;;  %1145 = vmatpush1.msra.mxu0 %v819_v15 }
  0x5a   :  { %1063 = vmatprep.subr.mxu1 %v9981_v27  ;;  %1149 = vmatprep.subr.mxu0 %v825_v44 }
  0x5b   :  { %1065 = vmatpush1.msra.mxu1 %v9995_v42  ;;  %1153 = vmatpush1.msra.mxu0 %v831_v46 }
  0x5c   :  { %1067 = vmatprep.subr.mxu1 %v10003_v45  ;;  %1157 = vmatprep.subr.mxu0 %v837_v28 }
  0x5d   :  { %1069 = vmatpush1.msra.mxu1 %v10017_v52  ;;  %1102 = vmatprep.mubr.f32.mxu1 %v15450_v48 }
  0x5e   :  { %1161 = vmatpush1.msra.mxu0 %v843_v61  ;;  %1106 = vmatmul.mubr.f32.vlgmr.msra.gmra.mxu1 %v9789_v14  ;;  %v10173_v14 = vand.u32 4294901760, %v1654_v1 }
  0x5f   :  { %1165 = vmatprep.subr.mxu0 %v849_v6  ;;  %1245 = vmatprep.subr.mxu1 %v9877_v21 }
  0x60   :  { %1169 = vmatpush1.msra.mxu0 %v855_v30  ;;  %1247 = vmatpush1.msra.mxu1 %v9885_v32  ;;  %16130 = vst [vmem:[#allocation5_spill] sm:$0xff] %v10173_v14  ;;  %v10176_v53 = vsub.f32 %v1654_v1, %v10173_v14 }
  0x61   :  { %1173 = vmatprep.subr.mxu0 %v861_v36  ;;  %1249 = vmatprep.subr.mxu1 %v9892_v34 }
  0x62   :  { %1177 = vmatpush1.msra.mxu0 %v867_v59  ;;  %1251 = vmatpush1.msra.mxu1 %v9900_v38  ;;  %16131 = vst [vmem:[#allocation6_spill] sm:$0xff] %v10176_v53  ;;  %v15466_v21 = vand.u32 4294901760, %v10176_v53 }
  0x63   :  { %1181 = vmatprep.subr.mxu0 %v873_v11  ;;  %1253 = vmatprep.subr.mxu1 %v9908_v43 }
  0x64   :  { %1185 = vmatpush1.msra.mxu0 %v879_v37  ;;  %1218 = vmatprep.mubr.f32.mxu0 %v15450_v48  ;;  %v1962_v32 = vsub.f32 %v10176_v53, %v15466_v21 }
  0x65   :  { %1255 = vmatpush1.msra.mxu1 %v9919_v55  ;;  %1220 = vmatmul.mubr.f32.vlgmr.msra.gmra.mxu0 %v9753_v58 }
  0x66   :  { %1257 = vmatprep.subr.mxu1 %v9927_v9  ;;  %1304 = vmatprep.mubr.f32.mxu1 %v15450_v48  ;;  %v1963_v34 = vand.u32 4294901760, %v1962_v32 }
  0x67   :  { %1259 = vmatpush1.msra.mxu1 %v9947_v0  ;;  %1815 = vmatprep.subr.mxu0 %v10173_v14 }
  0x68   :  { %1261 = vmatprep.subr.mxu1 %v9962_v12 }
  0x69   :  { %1263 = vmatpush1.msra.mxu1 %v9970_v13 }
  0x6a   :  { %1265 = vmatprep.subr.mxu1 %v9981_v27 }
  0x6b   :  { %1267 = vmatpush1.msra.mxu1 %v9995_v42 }
  0x6c   :  { %1269 = vmatprep.subr.mxu1 %v10003_v45  ;;  %v1315_v45 = vlaneseq }
  0x6d   :  { %1271 = vmatpush1.msra.mxu1 %v10017_v52 }
  0x6e   :  { %1306 = vmatmul.mubr.f32.vlgmr.msra.gmra.mxu1 %v9753_v58  ;;  %1964 = vmatprep.subr.mxu1 %v1963_v34  ;;  %v10196_v54 = vshrl.u32 %v1315_v45, 7  ;;  %v10202_v11 = vand.u32 127, %v1315_v45 }
  0x70   :  { %16132 = vst [vmem:[#allocation7_spill] sm:$0xff] %v10196_v54  ;;  %v10200_v40 = vmul.u32 101, %v10196_v54  ;;  %16133 = vst [vmem:[#allocation8_spill] sm:$0xff] %v10202_v11  ;;  %v10208_v62 = vadd.s32 128, %v10202_v11  ;;  %v1319_v45 = vadd.s32 384, %v10202_v11 }
  0x72   :  { %v10205_v17 = vadd.s32 101, %v10200_v40  ;;  %16134 = vst [vmem:[#allocation9_spill] sm:$0xff] %v10208_v62  ;;  %vm1323_vm2 = vcmp.ge.s32.totalorder %v10202_v11, %v10200_v40  ;;  %vm1324_vm4 = vcmp.ge.s32.totalorder %v10208_v62, %v10200_v40  ;;  %vm1326_vm11 = vcmp.ge.s32.totalorder %v1319_v45, %v10200_v40 }
  0x74   :  { %vm1328_vm3 = vcmp.lt.s32.totalorder %v10202_v11, %v10205_v17  ;;  %vm1329_vm5 = vcmp.lt.s32.totalorder %v10208_v62, %v10205_v17  ;;  %vm1331_vm12 = vcmp.lt.s32.totalorder %v1319_v45, %v10205_v17 }
  0x75   :  { %vm1332_vm6 = vmand %vm1323_vm2, %vm1328_vm3  ;;  %vm1800_vm2 = vcmask 990208   ;;  %vm1804_vm3 = vcmask 1040384  }
  0x76   :  { %vm1333_vm7 = vmand %vm1324_vm4, %vm1329_vm5 }
  0x77   :  { %vm1335_vm15 = vmand %vm1326_vm11, %vm1331_vm12 }
  0xd8   :  { %v155_v58 = vpop.f32.mrf.mxu0 }
  0xda   :  { %v157_v43 = vpop.f32.mrf.mxu0 }
  0xdd   :  { %v297_v38 = vpop.f32.mrf.mxu1 }
  0xde   :  { %v298_v2 = vadd.f32 %v297_v38, %v155_v58 }
  0xdf   :  { %v299_v47 = vpop.f32.mrf.mxu1 }
  0xe0   :  { %v300_v0 = vadd.f32 %v299_v47, %v157_v43 }
  0xe6   :  { %v398_v49 = vpop.f32.mrf.mxu0 }
  0xe7   :  { %v399_v12 = vadd.f32 %v398_v49, %v298_v2 }
  0xe8   :  { %v400_v9 = vpop.f32.mrf.mxu0 }
  0xe9   :  { %v401_v4 = vadd.f32 %v400_v9, %v300_v0 }
  0xee   :  { %v486_v55 = vpop.f32.mrf.mxu1 }
  0xef   :  { %v487_v19 = vadd.f32 %v486_v55, %v399_v12  ;;  %v10221_v12 = vadd.s32 256, %v10202_v11 }
  0xf0   :  { %v488_v60 = vpop.f32.mrf.mxu1 }
  0xf1   :  { %v489_v13 = vadd.f32 %v488_v60, %v401_v4  ;;  %16135 = vst [vmem:[#allocation10_spill] sm:$0xff] %v10221_v12  ;;  %vm1325_vm9 = vcmp.ge.s32.totalorder %v10221_v12, %v10200_v40  ;;  %vm1330_vm10 = vcmp.lt.s32.totalorder %v10221_v12, %v10205_v17 }
  0xf2   :  { %vm1334_vm13 = vmand %vm1325_vm9, %vm1330_vm10 }
  0xf5   :  { %v600_v63 = vpop.f32.mrf.mxu0 }
  0xf6   :  { %v601_v15 = vadd.f32 %v600_v63, %v487_v19 }
  0xf7   :  { %v602_v7 = vpop.f32.mrf.mxu0 }
  0xf8   :  { %v603_v27 = vadd.f32 %v602_v7, %v489_v13  ;;  %v10224_v7 = vsel %vm1332_vm6, 1.0, %v15450_v48 }
  0xfe   :  { %v686_v3 = vpop.f32.mrf.mxu1 }
  0xff   :  { %v10185_v42 = vadd.f32 %v686_v3, %v601_v15 }
 0x100   :  { %v688_v26 = vpop.f32.mrf.mxu1 }
 0x101   :  { %v10183_v41 = vadd.f32 %v688_v26, %v603_v27  ;;  %v1369_v46 = vmul.f32 %v10185_v42, %v10185_v42  ;;  %v1340_v52 = vsel %vm57_vm0, %v10185_v42, 0.0 }
 0x102   :  { %v1341_v6 = vrot.slane %v1340_v52, 4 }
 0x103   :  { %v1370_v44 = vmul.f32 %v10183_v41, %v10183_v41  ;;  %v1347_v50 = vsel %vm57_vm0, %v10183_v41, 0.0  ;;  %v1373_v57 = vsel %vm57_vm0, %v1369_v46, 0.0  ;;  %v10234_v46 = vsel %vm1333_vm7, 1.0, %v15450_v48 }
 0x104   :  { %v1348_v61 = vrot.slane %v1347_v50, 4  ;;  %v1374_v36 = vrot.slane %v1373_v57, 4  ;;  %v1342_v10 = vadd.f32 %v1341_v6, %v1340_v52 }
 0x105   :  { %v1380_v28 = vsel %vm57_vm0, %v1370_v44, 0.0 }
 0x106   :  { %v776_v51 = vpop.f32.mrf.mxu0  ;;  %v1381_v30 = vrot.slane %v1380_v28, 4  ;;  %v1349_v59 = vadd.f32 %v1348_v61, %v1347_v50  ;;  %v1375_v20 = vadd.f32 %v1374_v36, %v1373_v57  ;;  %v1343_v56 = vrot.slane %v1342_v10, 2 }
 0x108   :  { %v778_v18 = vpop.f32.mrf.mxu0  ;;  %v1382_v8 = vadd.f32 %v1381_v30, %v1380_v28  ;;  %v1350_v22 = vrot.slane %v1349_v59, 2  ;;  %v1376_v33 = vrot.slane %v1375_v20, 2  ;;  %v1344_v38 = vadd.f32 %v1343_v56, %v1342_v10 }
 0x10a   :  { %v1383_v31 = vrot.slane %v1382_v8, 2  ;;  %v1351_v32 = vadd.f32 %v1350_v22, %v1349_v59  ;;  %v1377_v9 = vadd.f32 %v1376_v33, %v1375_v20  ;;  %v1345_v3 = vrot.slane %v1344_v38, 1 }
 0x10b   :  { %v10258_v33 = vsel %vm1334_vm13, 1.0, %v15450_v48  ;;  %vm6173_vm13 = vcmask 1042432  }
 0x10c   :  { %v1384_v47 = vadd.f32 %v1383_v31, %v1382_v8  ;;  %v1352_v63 = vrot.slane %v1351_v32, 1  ;;  %v1378_v15 = vrot.slane %v1377_v9, 1 }
 0x10e   :  { %v918_v25 = vpop.f32.mrf.mxu1  ;;  %v1385_v13 = vrot.slane %v1384_v47, 1  ;;  %v1353_v28 = vadd.f32 %v1352_v63, %v1351_v32  ;;  %v1379_v8 = vadd.f32 %v1378_v15, %v1377_v9 }
 0x10f   :  { %v919_v24 = vadd.f32 %v918_v25, %v776_v51  ;;  %v1346_v25 = vadd.f32 %v1345_v3, %v1344_v38  ;;  %v10263_v38 = vsel %vm1335_vm15, 1.0, %v15450_v48  ;;  %v1629_v48 = vld [vmem:[%s15445_s2 + $0xa8] sm:$0xff]  ;;  %vm6177_vm15 = vcmask 428032  }
 0x110   :  { %v920_v5 = vpop.f32.mrf.mxu1  ;;  %v1386_v30 = vadd.f32 %v1385_v13, %v1384_v47  ;;  %v1416_v17 = vmul.f32 %v1379_v8, %v10224_v7 }
 0x111   :  { %v921_v23 = vadd.f32 %v920_v5, %v778_v18  ;;  %v1402_v5 = vmul.f32 %v1353_v28, %v10234_v46 }
 0x112   :  { %v1417_v56 = vmul.f32 %v1386_v30, %v10234_v46 }
 0x114   :  { %v1421_v47 = vsel %vm1405_vm14, %v1417_v56, 0.0 }
 0x115   :  { %v1019_v39 = vpop.f32.mrf.mxu0 }
 0x116   :  { %v1020_v35 = vadd.f32 %v1019_v39, %v919_v24  ;;  %v1401_v24 = vmul.f32 %v1346_v25, %v10224_v7  ;;  %v1650_v25 = vld [vmem:[%s15445_s2 + $0x150] sm:$0xff] }
 0x117   :  { %v1021_v37 = vpop.f32.mrf.mxu0 }
 0x118   :  { %v1022_v34 = vadd.f32 %v1021_v37, %v921_v23 }
 0x11e   :  { %v1107_v16 = vpop.f32.mrf.mxu1 }
 0x11f   :  { %v1108_v58 = vadd.f32 %v1107_v16, %v1020_v35 }
 0x120   :  { %v1109_v1 = vpop.f32.mrf.mxu1 }
 0x121   :  { %v1110_v49 = vadd.f32 %v1109_v1, %v1022_v34  ;;  %v1407_v1 = vsel %vm1405_vm14, %v1402_v5, 0.0 }
 0x125   :  { %v1221_v29 = vpop.f32.mrf.mxu0 }
 0x126   :  { %v1222_v55 = vadd.f32 %v1221_v29, %v1108_v58 }
 0x127   :  { %v1223_v43 = vpop.f32.mrf.mxu0 }
 0x128   :  { %v1224_v0 = vadd.f32 %v1223_v43, %v1110_v49  ;;  %v1406_v43 = vsel %vm1405_vm14, %v1401_v24, 0.0 }
 0x129   :  { %v1408_v63 = vadd.f32 %v1407_v1, %v1406_v43  ;;  %v1642_v43 = vld [vmem:[%s15445_s2 + $0x110] sm:$0xff] }
 0x12e   :  { %v1307_v60 = vpop.f32.mrf.mxu1 }
 0x12f   :  { %v10218_v2 = vadd.f32 %v1307_v60, %v1222_v55 }
 0x130   :  { %v1309_v4 = vpop.f32.mrf.mxu1 }
 0x131   :  { %v1354_v19 = vsel %vm57_vm0, %v10218_v2, 0.0  ;;  %v1371_v26 = vmul.f32 %v10218_v2, %v10218_v2  ;;  %v10230_v27 = vadd.f32 %v1309_v4, %v1224_v0  ;;  %v1420_v0 = vsel %vm1405_vm14, %v1416_v17, 0.0  ;;  %v1644_v17 = vld [vmem:[%s15445_s2 + $0x120] sm:$0xff] }
 0x132   :  { %v1355_v44 = vrot.slane %v1354_v19, 4  ;;  %v1422_v15 = vadd.f32 %v1421_v47, %v1420_v0 }
 0x133   :  { %v1387_v50 = vsel %vm57_vm0, %v1371_v26, 0.0  ;;  %v1362_v51 = vsel %vm1361_vm8, %v10230_v27, 0.0  ;;  %v1372_v52 = vmul.f32 %v10230_v27, %v10230_v27 }
 0x134   :  { %v1356_v57 = vadd.f32 %v1355_v44, %v1354_v19  ;;  %v1388_v61 = vrot.slane %v1387_v50, 4  ;;  %v1363_v6 = vrot.slane %v1362_v51, 4 }
 0x135   :  { %v1394_v18 = vsel %vm1361_vm8, %v1372_v52, 0.0 }
 0x136   :  { %v1357_v36 = vrot.slane %v1356_v57, 2  ;;  %v1389_v39 = vadd.f32 %v1388_v61, %v1387_v50  ;;  %v1364_v59 = vadd.f32 %v1363_v6, %v1362_v51  ;;  %v1395_v10 = vrot.slane %v1394_v18, 4  ;;  %v1651_v6 = vld [vmem:[%s15445_s2 + $0x158] sm:$0xff] }
 0x138   :  { %v1358_v20 = vadd.f32 %v1357_v36, %v1356_v57  ;;  %v1390_v37 = vrot.slane %v1389_v39, 2  ;;  %v1365_v16 = vrot.slane %v1364_v59, 2  ;;  %v1396_v22 = vadd.f32 %v1395_v10, %v1394_v18  ;;  %v1653_v57 = vld [vmem:[%s15445_s2 + $0x168] sm:$0xff] }
 0x139   :  { %v10279_v61 = vand.u32 4294901760, %v1653_v57  ;;  %v10284_v18 = vand.u32 4294901760, %v1651_v6 }
 0x13a   :  { %v1391_v29 = vadd.f32 %v1390_v37, %v1389_v39  ;;  %v1397_v31 = vrot.slane %v1396_v22, 2  ;;  %v1359_v23 = vrot.slane %v1358_v20, 1  ;;  %v1366_v35 = vadd.f32 %v1365_v16, %v1364_v59  ;;  %v1648_v59 = vld [vmem:[%s15445_s2 + $0x140] sm:$0xff] }
 0x13b   :  { %v10290_v36 = vsub.f32 %v1653_v57, %v10279_v61  ;;  %v10292_v39 = vand.u32 4294901760, %v1650_v25  ;;  %1817 = vmatpush1.msra.mxu0 %v10279_v61  ;;  %v10299_v10 = vsub.f32 %v1651_v6, %v10284_v18  ;;  %v10301_v5 = vand.u32 4294901760, %v1648_v59  ;;  %v1636_v57 = vld [vmem:[%s15445_s2 + $0xe0] sm:$0xff] }
 0x13c   :  { %v1360_v32 = vadd.f32 %v1359_v23, %v1358_v20  ;;  %v1367_v40 = vrot.slane %v1366_v35, 1  ;;  %v1392_v34 = vrot.slane %v1391_v29, 1  ;;  %v1398_v58 = vadd.f32 %v1397_v31, %v1396_v22  ;;  %1819 = vmatprep.subr.mxu0 %v10284_v18  ;;  %v1647_v22 = vld [vmem:[%s15445_s2 + $0x138] sm:$0xff]  ;;  %v1645_v31 = vld [vmem:[%s15445_s2 + $0x128] sm:$0xff] }
 0x13d   :  { %v15464_v8 = vand.u32 4294901760, %v10290_v36  ;;  %v10306_v20 = vsub.f32 %v1650_v25, %v10292_v39  ;;  %1821 = vmatpush1.msra.mxu0 %v10292_v39  ;;  %v15462_v37 = vand.u32 4294901760, %v10299_v10  ;;  %v10311_v16 = vsub.f32 %v1648_v59, %v10301_v5 }
 0x13e   :  { %v1368_v49 = vadd.f32 %v1367_v40, %v1366_v35  ;;  %v1403_v55 = vmul.f32 %v1360_v32, %v10258_v33  ;;  %v1393_v9 = vadd.f32 %v1392_v34, %v1391_v29  ;;  %v1399_v60 = vrot.slane %v1398_v58, 1  ;;  %1823 = vmatprep.subr.mxu0 %v10301_v5 }
 0x13f   :  { %v1968_v24 = vsub.f32 %v10290_v36, %v15464_v8  ;;  %v15461_v56 = vand.u32 4294901760, %v10306_v20  ;;  %v10321_v29 = vand.u32 4294901760, %v1647_v22  ;;  %v1974_v23 = vsub.f32 %v10299_v10, %v15462_v37 }
 0x140   :  { %v1404_v3 = vmul.f32 %v1368_v49, %v10263_v38  ;;  %v1409_v4 = vsel %vm1405_vm14, %v1403_v55, 0.0  ;;  %v1400_v13 = vadd.f32 %v1399_v60, %v1398_v58  ;;  %v1418_v19 = vmul.f32 %v1393_v9, %v10258_v33  ;;  %v1641_v60 = vld [vmem:[%s15445_s2 + $0x108] sm:$0xff] }
 0x141   :  { %v1410_v26 = vadd.f32 %v1409_v4, %v1408_v63  ;;  %v15460_v35 = vand.u32 4294901760, %v10311_v16  ;;  %v10330_v1 = vand.u32 4294901760, %v1645_v31  ;;  %v1969_v32 = vand.u32 4294901760, %v1968_v24  ;;  %1825 = vmatpush1.msra.mxu0 %v10321_v29 }
 0x142   :  { %v1412_v44 = vsel %vm1411_vm1, %v1404_v3, 0.0  ;;  %v1419_v45 = vmul.f32 %v1400_v13, %v10263_v38  ;;  %v1423_v50 = vsel %vm1405_vm14, %v1418_v19, 0.0  ;;  %v1980_v40 = vsub.f32 %v10306_v20, %v15461_v56  ;;  %v1639_v13 = vld [vmem:[%s15445_s2 + $0xf8] sm:$0xff] }
 0x143   :  { %v1413_v51 = vadd.f32 %v1412_v44, %v1410_v26  ;;  %v1424_v52 = vadd.f32 %v1423_v50, %v1422_v15  ;;  %v10339_v34 = vsub.f32 %v1647_v22, %v10321_v29  ;;  %v10341_v58 = vand.u32 4294901760, %v1644_v17  ;;  %1827 = vmatprep.subr.mxu0 %v10330_v1  ;;  %1970 = vmatpush1.msra.mxu1 %v1969_v32  ;;  %v1635_v22 = vld [vmem:[%s15445_s2 + $0xd8] sm:$0xff]  ;;  %v1633_v32 = vld [vmem:[%s15445_s2 + $0xc8] sm:$0xff] }
 0x144   :  { %v1425_v28 = vsel %vm1411_vm1, %v1419_v45, 0.0  ;;  %v1975_v47 = vand.u32 4294901760, %v1974_v23  ;;  %v1986_v49 = vsub.f32 %v10311_v16, %v15460_v35  ;;  %v10351_v55 = vsub.f32 %v1645_v31, %v10330_v1  ;;  %v1638_v45 = vld [vmem:[%s15445_s2 + $0xf0] sm:$0xff] }
 0x145   :  { %1414 = vadd.xlane.f32.xlu0 %v1413_v51  ;;  %v1426_v30 = vadd.f32 %v1425_v28, %v1424_v52  ;;  %v10353_v9 = vand.u32 4294901760, %v1642_v43  ;;  %v1981_v63 = vand.u32 4294901760, %v1980_v40  ;;  %v15458_v0 = vand.u32 4294901760, %v10339_v34  ;;  %1829 = vmatpush1.msra.mxu0 %v10341_v58 }
 0x146   :  { %16136 = vst [vmem:[#allocation11_spill] sm:$0xff] %v10351_v55  ;;  %v10361_v3 = vsub.f32 %v1644_v17, %v10341_v58  ;;  %v10363_v4 = vand.u32 4294901760, %v1641_v60  ;;  %1976 = vmatprep.subr.mxu1 %v1975_v47  ;;  %v1987_v19 = vand.u32 4294901760, %v1986_v49  ;;  %v15457_v26 = vand.u32 4294901760, %v10351_v55 }
 0x147   :  { %v10371_v15 = vsub.f32 %v1642_v43, %v10353_v9  ;;  %v10373_v44 = vand.u32 4294901760, %v1639_v13  ;;  %1831 = vmatprep.subr.mxu0 %v10353_v9  ;;  %1982 = vmatpush1.msra.mxu1 %v1981_v63  ;;  %v1992_v50 = vsub.f32 %v10339_v34, %v15458_v0  ;;  %v10386_v28 = vand.u32 4294901760, %v1638_v45 }
 0x148   :  { %16137 = vst [vmem:[#allocation12_spill] sm:$0xff] %v10361_v3  ;;  %v15455_v51 = vand.u32 4294901760, %v10361_v3  ;;  %v10384_v52 = vsub.f32 %v1641_v60, %v10363_v4  ;;  %1833 = vmatpush1.msra.mxu0 %v10363_v4  ;;  %1988 = vmatprep.subr.mxu1 %v1987_v19  ;;  %v1998_v6 = vsub.f32 %v10351_v55, %v15457_v26  ;;  %v10399_v59 = vand.u32 4294901760, %v1636_v57  ;;  %v1632_v60 = vld [vmem:[%s15445_s2 + $0xc0] sm:$0xff] }
 0x149   :  { %1427 = vadd.xlane.f32.xlu0 %v1426_v30  ;;  %16138 = vst [vmem:[#allocation13_spill] sm:$0xff] %v10371_v15  ;;  %v15453_v25 = vand.u32 4294901760, %v10371_v15  ;;  %v10397_v30 = vsub.f32 %v1639_v13, %v10373_v44  ;;  %1835 = vmatprep.subr.mxu0 %v10373_v44  ;;  %v1993_v24 = vand.u32 4294901760, %v1992_v50  ;;  %v10410_v17 = vsub.f32 %v1638_v45, %v10386_v28  ;;  %v1630_v50 = vld [vmem:[%s15445_s2 + $0xb0] sm:$0xff] }
 0x14a   :  { %16139 = vst [vmem:[#allocation14_spill] sm:$0xff] %v10384_v52  ;;  %v2004_v31 = vsub.f32 %v10361_v3, %v15455_v51  ;;  %v15452_v23 = vand.u32 4294901760, %v10384_v52  ;;  %1837 = vmatpush1.msra.mxu0 %v10386_v28  ;;  %v1999_v40 = vand.u32 4294901760, %v1998_v6  ;;  %v10421_v49 = vsub.f32 %v1636_v57, %v10399_v59 }
 0x14b   :  { %16140 = vst [vmem:[#allocation15_spill] sm:$0xff] %v10397_v30  ;;  %16141 = vst [vmem:[#allocation16_spill] sm:$0xff] %v10410_v17  ;;  %v2010_v43 = vsub.f32 %v10371_v15, %v15453_v25  ;;  %v15454_v47 = vand.u32 4294901760, %v10397_v30  ;;  %1839 = vmatprep.subr.mxu0 %v10399_v59  ;;  %1994 = vmatpush1.msra.mxu1 %v1993_v24  ;;  %v15456_v19 = vand.u32 4294901760, %v10410_v17  ;;  %v10431_v45 = vand.u32 4294901760, %v1635_v22 }
 0x14c   :  { %16142 = vst [vmem:[#allocation17_spill] sm:$0xff] %v10421_v49  ;;  %v2005_v63 = vand.u32 4294901760, %v2004_v31  ;;  %v2016_v13 = vsub.f32 %v10384_v52, %v15452_v23  ;;  %2000 = vmatprep.subr.mxu1 %v1999_v40  ;;  %v15459_v24 = vand.u32 4294901760, %v10421_v49  ;;  %v10440_v31 = vand.u32 4294901760, %v1633_v32 }
 0x14d   :  { %16143 = vst [vmem:[#allocation18_spill] sm:$0xff] %v10431_v45  ;;  %v2011_v57 = vand.u32 4294901760, %v2010_v43  ;;  %v2022_v6 = vsub.f32 %v10397_v30, %v15454_v47  ;;  %v2028_v25 = vsub.f32 %v10410_v17, %v15456_v19  ;;  %v10449_v40 = vsub.f32 %v1635_v22, %v10431_v45  ;;  %v1627_v47 = vld [vmem:[%s15445_s2 + $0x98] sm:$0xff]  ;;  %1841 = vmatpush1.msra.mxu0 %v10431_v45  ;;  %v1626_v22 = vld [vmem:[%s15445_s2 + $0x90] sm:$0xff] }
 0x14e   :  { %16144 = vst [vmem:[#allocation19_spill] sm:$0xff] %v10440_v31  ;;  %2006 = vmatpush1.msra.mxu1 %v2005_v63  ;;  %v2017_v23 = vand.u32 4294901760, %v2016_v13  ;;  %v10451_v43 = vand.u32 4294901760, %v1632_v60  ;;  %v2034_v63 = vsub.f32 %v10421_v49, %v15459_v24  ;;  %v10461_v13 = vsub.f32 %v1633_v32, %v10440_v31  ;;  %1843 = vmatprep.subr.mxu0 %v10440_v31  ;;  %v1624_v32 = vld [vmem:[%s15445_s2 + $0x80] sm:$0xff] }
 0x14f   :  { %16145 = vst [vmem:[#allocation20_spill] sm:$0xff] %v10449_v40  ;;  %2012 = vmatprep.subr.mxu1 %v2011_v57  ;;  %v2023_v51 = vand.u32 4294901760, %v2022_v6  ;;  %v10463_v19 = vand.u32 4294901760, %v1630_v50  ;;  %v2029_v26 = vand.u32 4294901760, %v2028_v25  ;;  %v15463_v57 = vand.u32 4294901760, %v10449_v40 }
 0x150   :  { %16146 = vst [vmem:[#allocation21_spill] sm:$0xff] %v10451_v43  ;;  %16147 = vst [vmem:[#allocation22_spill] sm:$0xff] %v10461_v13  ;;  %2018 = vmatpush1.msra.mxu1 %v2017_v23  ;;  %v10471_v6 = vsub.f32 %v1632_v60, %v10451_v43  ;;  %v10473_v0 = vand.u32 4294901760, %v1629_v48  ;;  %1845 = vmatpush1.msra.mxu0 %v10451_v43  ;;  %v2035_v24 = vand.u32 4294901760, %v2034_v63  ;;  %v15465_v35 = vand.u32 4294901760, %v10461_v13 }
 0x151   :  { %16148 = vst [vmem:[#allocation23_spill] sm:$0xff] %v10463_v19  ;;  %2024 = vmatprep.subr.mxu1 %v2023_v51  ;;  %v10481_v23 = vsub.f32 %v1630_v50, %v10463_v19  ;;  %v10483_v25 = vand.u32 4294901760, %v1627_v47  ;;  %1847 = vmatprep.subr.mxu0 %v10463_v19  ;;  %v2040_v60 = vsub.f32 %v10449_v40, %v15463_v57  ;;  %v10493_v51 = vand.u32 4294901760, %v1626_v22 }
 0x152   :  { %16149 = vst [vmem:[#allocation24_spill] sm:$0xff] %v10471_v6  ;;  %16150 = vst [vmem:[#allocation25_spill] sm:$0xff] %v10473_v0  ;;  %2030 = vmatpush1.msra.mxu1 %v2029_v26  ;;  %v15471_v56 = vand.u32 4294901760, %v10471_v6  ;;  %v10491_v37 = vsub.f32 %v1629_v48, %v10473_v0  ;;  %1849 = vmatpush1.msra.mxu0 %v10473_v0  ;;  %v2046_v50 = vsub.f32 %v10461_v13, %v15465_v35  ;;  %v1623_v48 = vld [vmem:[%s15445_s2 + $0x78] sm:$0xff] }
 0x153   :  { %16151 = vst [vmem:[#allocation26_spill] sm:$0xff] %v10481_v23  ;;  %16152 = vst [vmem:[#allocation27_spill] sm:$0xff] %v10483_v25  ;;  %2036 = vmatprep.subr.mxu1 %v2035_v24  ;;  %v10501_v63 = vsub.f32 %v1627_v47, %v10483_v25  ;;  %v10503_v57 = vand.u32 4294901760, %v1624_v32  ;;  %1851 = vmatprep.subr.mxu0 %v10483_v25  ;;  %v2041_v8 = vand.u32 4294901760, %v2040_v60  ;;  %v1621_v47 = vld [vmem:[%s15445_s2 + $0x68] sm:$0xff]  ;;  %v16158_v12 = vand.u32 4294901760, %v10481_v23 }
 0x154   :  { %16153 = vst [vmem:[#allocation28_spill] sm:$0xff] %v10491_v37  ;;  %16154 = vst [vmem:[#allocation29_spill] sm:$0xff] %v10493_v51  ;;  %v2052_v24 = vsub.f32 %v10471_v6, %v15471_v56  ;;  %v10514_v21 = vsub.f32 %v1626_v22, %v10493_v51  ;;  %1853 = vmatpush1.msra.mxu0 %v10493_v51  ;;  %v2047_v26 = vand.u32 4294901760, %v2046_v50  ;;  %v1620_v22 = vld [vmem:[%s15445_s2 + $0x60] sm:$0xff]  ;;  %v16160_v62 = vand.u32 4294901760, %v10491_v37 }
 0x155   :  { %16155 = vst [vmem:[#allocation30_spill] sm:$0xff] %v10501_v63  ;;  %16156 = vst [vmem:[#allocation31_spill] sm:$0xff] %v10503_v57  ;;  %v2058_v60 = vsub.f32 %v10481_v23, %v16158_v12  ;;  %v10525_v56 = vsub.f32 %v1624_v32, %v10503_v57  ;;  %1855 = vmatprep.subr.mxu0 %v10503_v57  ;;  %2042 = vmatpush1.msra.mxu1 %v2041_v8  ;;  %v10535_v12 = vand.u32 4294901760, %v1623_v48  ;;  %v1618_v32 = vld [vmem:[%s15445_s2 + $0x50] sm:$0xff] }
 0x156   :  { %16157 = vst [vmem:[#allocation32_spill] sm:$0xff] %v10514_v21  ;;  %v2053_v35 = vand.u32 4294901760, %v2052_v24  ;;  %v2064_v50 = vsub.f32 %v10491_v37, %v16160_v62  ;;  %2048 = vmatprep.subr.mxu1 %v2047_v26  ;;  %v16162_v23 = vand.u32 4294901760, %v10501_v63  ;;  %v10544_v24 = vand.u32 4294901760, %v1621_v47  ;;  %v1617_v62 = vld [vmem:[%s15445_s2 + $0x48] sm:$0xff] }
 0x157   :  { %16159 = vst [vmem:[#allocation33_spill] sm:$0xff] %v10525_v56  ;;  %16161 = vst [vmem:[#allocation34_spill] sm:$0xff] %v10535_v12  ;;  %v2059_v11 = vand.u32 4294901760, %v2058_v60  ;;  %v16164_v37 = vand.u32 4294901760, %v10514_v21  ;;  %v10553_v26 = vsub.f32 %v1623_v48, %v10535_v12  ;;  %v10555_v60 = vand.u32 4294901760, %v1620_v22  ;;  %1857 = vmatpush1.msra.mxu0 %v10535_v12  ;;  %v1614_v48 = vld [vmem:[%s15445_s2 + $0x30] sm:$0xff] }
 0x158   :  { %v2070_v13 = vsub.f32 %v10501_v63, %v16162_v23  ;;  %16163 = vst [vmem:[#allocation35_spill] sm:$0xff] %v10544_v24  ;;  %2054 = vmatpush1.msra.mxu1 %v2053_v35  ;;  %v2065_v6 = vand.u32 4294901760, %v2064_v50  ;;  %v1615_v23 = vld [vmem:[%s15445_s2 + $0x38] sm:$0xff]  ;;  %v16167_v35 = vand.u32 4294901760, %v10525_v56  ;;  %v10565_v63 = vsub.f32 %v1621_v47, %v10544_v24  ;;  %1859 = vmatprep.subr.mxu0 %v10544_v24  ;;  %v1612_v47 = vld [vmem:[%s15445_s2 + $0x20] sm:$0xff] }
 0x159   :  { %v2076_v40 = vsub.f32 %v10514_v21, %v16164_v37  ;;  %16165 = vst [vmem:[#allocation36_spill] sm:$0xff] %v10553_v26  ;;  %16166 = vst [vmem:[#allocation37_spill] sm:$0xff] %v10555_v60  ;;  %2060 = vmatprep.subr.mxu1 %v2059_v11  ;;  %v10567_v37 = vand.u32 4294901760, %v1618_v32  ;;  %v15496_v11 = vand.u32 4294901760, %v10553_v26  ;;  %v10577_v12 = vand.u32 4294901760, %v1617_v62  ;;  %1861 = vmatpush1.msra.mxu0 %v10555_v60 }
 0x15a   :  { %v2071_v8 = vand.u32 4294901760, %v2070_v13  ;;  %v2082_v50 = vsub.f32 %v10525_v56, %v16167_v35  ;;  %16168 = vst [vmem:[#allocation38_spill] sm:$0xff] %v10565_v63  ;;  %2066 = vmatpush1.msra.mxu1 %v2065_v6  ;;  %v10575_v13 = vsub.f32 %v1620_v22, %v10555_v60  ;;  %v15499_v56 = vand.u32 4294901760, %v10565_v63 }
 0x15b   :  { %16169 = vst [vmem:[#allocation39_spill] sm:$0xff] %v10567_v37  ;;  %v2077_v21 = vand.u32 4294901760, %v2076_v40  ;;  %16171 = vst [vmem:[#allocation41_spill] sm:$0xff] %v10577_v12  ;;  %v10585_v6 = vsub.f32 %v1618_v32, %v10567_v37  ;;  %v10587_v40 = vand.u32 4294901760, %v1615_v23  ;;  %1863 = vmatprep.subr.mxu0 %v10567_v37  ;;  %v2088_v22 = vsub.f32 %v10553_v26, %v15496_v11 }
 0x15c   :  { %16170 = vst [vmem:[#allocation40_spill] sm:$0xff] %v10575_v13  ;;  %2072 = vmatprep.subr.mxu1 %v2071_v8  ;;  %v2083_v35 = vand.u32 4294901760, %v2082_v50  ;;  %v10595_v60 = vsub.f32 %v1617_v62, %v10577_v12  ;;  %v10597_v8 = vand.u32 4294901760, %v1614_v48  ;;  %1865 = vmatpush1.msra.mxu0 %v10577_v12  ;;  %v2094_v32 = vsub.f32 %v10565_v63, %v15499_v56  ;;  %v1611_v62 = vld [vmem:[%s15445_s2 + $0x18] sm:$0xff] }
 0x15d   :  { %16172 = vst [vmem:[#allocation42_spill] sm:$0xff] %v10585_v6  ;;  %16173 = vst [vmem:[#allocation43_spill] sm:$0xff] %v10587_v40  ;;  %2078 = vmatpush1.msra.mxu1 %v2077_v21  ;;  %v10605_v50 = vsub.f32 %v1615_v23, %v10587_v40  ;;  %v10607_v11 = vand.u32 4294901760, %v1612_v47  ;;  %1867 = vmatprep.subr.mxu0 %v10587_v40  ;;  %v2089_v24 = vand.u32 4294901760, %v2088_v22  ;;  %v1609_v23 = vld [vmem:[%s15445_s2 + $0x8] sm:$0xff]  ;;  %v16180_v12 = vand.u32 4294901760, %v10585_v6 }
 0x15e   :  { %16174 = vst [vmem:[#allocation44_spill] sm:$0xff] %v10595_v60  ;;  %16175 = vst [vmem:[#allocation45_spill] sm:$0xff] %v10597_v8  ;;  %2084 = vmatprep.subr.mxu1 %v2083_v35  ;;  %v16178_v35 = vand.u32 4294901760, %v10575_v13  ;;  %v10618_v21 = vsub.f32 %v1614_v48, %v10597_v8  ;;  %1869 = vmatpush1.msra.mxu0 %v10597_v8  ;;  %v2095_v63 = vand.u32 4294901760, %v2094_v32  ;;  %v1608_v48 = vld [vmem:[%s15445_s2] sm:$0xff] }
 0x15f   :  { %16176 = vst [vmem:[#allocation46_spill] sm:$0xff] %v10605_v50  ;;  %16177 = vst [vmem:[#allocation47_spill] sm:$0xff] %v10607_v11  ;;  %v2106_v22 = vsub.f32 %v10585_v6, %v16180_v12  ;;  %1871 = vmatprep.subr.mxu0 %v10607_v11  ;;  %2090 = vmatpush1.msra.mxu1 %v2089_v24  ;;  %v10639_v12 = vand.u32 4294901760, %v1611_v62  ;;  %v16184_v6 = vand.u32 4294901760, %v10605_v50 }
 0x160   :  { %v2100_v26 = vsub.f32 %v10575_v13, %v16178_v35  ;;  %16179 = vst [vmem:[#allocation48_spill] sm:$0xff] %v10618_v21  ;;  %v10629_v35 = vsub.f32 %v1612_v47, %v10607_v11  ;;  %v16182_v13 = vand.u32 4294901760, %v10595_v60  ;;  %v1702_v47 = vld [vmem:[%s15445_s2 + $0x2f0] sm:$0xff]  ;;  %2096 = vmatprep.subr.mxu1 %v2095_v63 }
 0x161   :  { %16183 = vst [vmem:[#allocation50_spill] sm:$0xff] %v10639_v12  ;;  %v2107_v40 = vand.u32 4294901760, %v2106_v22  ;;  %v2118_v11 = vsub.f32 %v10605_v50, %v16184_v6  ;;  %v10657_v63 = vsub.f32 %v1611_v62, %v10639_v12  ;;  %v10659_v22 = vand.u32 4294901760, %v1608_v48  ;;  %v1699_v6 = vld [vmem:[%s15445_s2 + $0x2d8] sm:$0xff]  ;;  %1873 = vmatpush1.msra.mxu0 %v10639_v12  ;;  %v1698_v62 = vld [vmem:[%s15445_s2 + $0x2d0] sm:$0xff] }
 0x162   :  { %16181 = vst [vmem:[#allocation49_spill] sm:$0xff] %v10629_v35  ;;  %v2101_v56 = vand.u32 4294901760, %v2100_v26  ;;  %v2112_v32 = vsub.f32 %v10595_v60, %v16182_v13  ;;  %v10648_v26 = vand.u32 4294901760, %v1609_v23  ;;  %v1701_v13 = vld [vmem:[%s15445_s2 + $0x2e8] sm:$0xff]  ;;  %v16186_v60 = vand.u32 4294901760, %v10618_v21 }
 0x163   :  { %16187 = vst [vmem:[#allocation52_spill] sm:$0xff] %v10657_v63  ;;  %16188 = vst [vmem:[#allocation53_spill] sm:$0xff] %v10659_v22  ;;  %v2119_v24 = vand.u32 4294901760, %v2118_v11  ;;  %v10679_v11 = vsub.f32 %v1608_v48, %v10659_v22  ;;  %v10681_v12 = vand.u32 4294901760, %v1701_v13 }
 0x164   :  { %16185 = vst [vmem:[#allocation51_spill] sm:$0xff] %v10648_v26  ;;  %2102 = vmatpush1.msra.mxu1 %v2101_v56  ;;  %v2113_v8 = vand.u32 4294901760, %v2112_v32  ;;  %v2124_v37 = vsub.f32 %v10618_v21, %v16186_v60  ;;  %v16189_v56 = vand.u32 4294901760, %v10629_v35  ;;  %v10669_v50 = vsub.f32 %v1609_v23, %v10648_v26  ;;  %1875 = vmatprep.subr.mxu0 %v10648_v26  ;;  %v1696_v23 = vld [vmem:[%s15445_s2 + $0x2c0] sm:$0xff] }
 0x165   :  { %2108 = vmatprep.subr.mxu1 %v2107_v40  ;;  %v10671_v60 = vand.u32 4294901760, %v1702_v47  ;;  %v15530_v40 = vand.u32 4294901760, %v10657_v63  ;;  %16192 = vst [vmem:[#allocation56_spill] sm:$0xff] %v10679_v11  ;;  %16193 = vst [vmem:[#allocation57_spill] sm:$0xff] %v10681_v12  ;;  %1877 = vmatpush1.msra.mxu0 %v10659_v22  ;;  %v10699_v22 = vsub.f32 %v1701_v13, %v10681_v12  ;;  %v1695_v13 = vld [vmem:[%s15445_s2 + $0x2b8] sm:$0xff] }
 0x166   :  { %v2130_v32 = vsub.f32 %v10629_v35, %v16189_v56  ;;  %16190 = vst [vmem:[#allocation54_spill] sm:$0xff] %v10669_v50  ;;  %2114 = vmatpush1.msra.mxu1 %v2113_v8  ;;  %v2125_v21 = vand.u32 4294901760, %v2124_v37  ;;  %v15533_v35 = vand.u32 4294901760, %v10669_v50  ;;  %v10691_v37 = vand.u32 4294901760, %v1699_v6 }
 0x167   :  { %16191 = vst [vmem:[#allocation55_spill] sm:$0xff] %v10671_v60  ;;  %2120 = vmatprep.subr.mxu1 %v2119_v24  ;;  %v10689_v8 = vsub.f32 %v1702_v47, %v10671_v60  ;;  %1879 = vmatprep.subr.mxu0 %v10671_v60  ;;  %v2136_v48 = vsub.f32 %v10657_v63, %v15530_v40  ;;  %16196 = vst [vmem:[#allocation60_spill] sm:$0xff] %v10699_v22  ;;  %v10701_v24 = vand.u32 4294901760, %v1698_v62 }
 0x168   :  { %v2131_v56 = vand.u32 4294901760, %v2130_v32  ;;  %16195 = vst [vmem:[#allocation59_spill] sm:$0xff] %v10691_v37  ;;  %2126 = vmatpush1.msra.mxu1 %v2125_v21  ;;  %1881 = vmatpush2.msra.mxu0 %v10681_v12  ;;  %v2142_v47 = vsub.f32 %v10669_v50, %v15533_v35  ;;  %v10709_v32 = vsub.f32 %v1699_v6, %v10691_v37  ;;  %v10711_v40 = vand.u32 4294901760, %v1696_v23  ;;  %v1693_v6 = vld [vmem:[%s15445_s2 + $0x2a8] sm:$0xff] }
 0x169   :  { %16194 = vst [vmem:[#allocation58_spill] sm:$0xff] %v10689_v8  ;;  %16197 = vst [vmem:[#allocation61_spill] sm:$0xff] %v10701_v24  ;;  %1883 = vmatprep.subr.mxu0 %v10691_v37  ;;  %v2137_v26 = vand.u32 4294901760, %v2136_v48  ;;  %v10722_v21 = vsub.f32 %v1698_v62, %v10701_v24  ;;  %v16202_v12 = vand.u32 4294901760, %v10689_v8  ;;  %v1692_v62 = vld [vmem:[%s15445_s2 + $0x2a0] sm:$0xff] }
 0x16a   :  { %2132 = vmatprep.subr.mxu1 %v2131_v56  ;;  %16198 = vst [vmem:[#allocation62_spill] sm:$0xff] %v10709_v32  ;;  %16199 = vst [vmem:[#allocation63_spill] sm:$0xff] %v10711_v40  ;;  %v16200_v56 = vand.u32 4294901760, %v10679_v11  ;;  %1885 = vmatpush2.msra.mxu0 %v10701_v24  ;;  %v2143_v50 = vand.u32 4294901760, %v2142_v47 }
 0x16b   :  { %16201 = vst [vmem:[#allocation64_spill] sm:$0xff] %v10722_v21  ;;  %v2154_v48 = vsub.f32 %v10689_v8, %v16202_v12  ;;  %1887 = vmatprep.subr.mxu0 %v10711_v40  ;;  %2138 = vmatpush1.msra.mxu1 %v2137_v26  ;;  %v10743_v12 = vand.u32 4294901760, %v1695_v13  ;;  %v16206_v8 = vand.u32 4294901760, %v10709_v32 }
 0x16c   :  { %v2148_v63 = vsub.f32 %v10679_v11, %v16200_v56  ;;  %v10733_v56 = vsub.f32 %v1696_v23, %v10711_v40  ;;  %v16204_v11 = vand.u32 4294901760, %v10699_v22  ;;  %v1690_v23 = vld [vmem:[%s15445_s2 + $0x290] sm:$0xff]  ;;  %2144 = vmatprep.subr.mxu1 %v2143_v50 }
 0x16d   :  { %16205 = vst [vmem:[#allocation66_spill] sm:$0xff] %v10743_v12  ;;  %v2155_v37 = vand.u32 4294901760, %v2154_v48  ;;  %v2166_v40 = vsub.f32 %v10709_v32, %v16206_v8  ;;  %v10761_v50 = vsub.f32 %v1695_v13, %v10743_v12  ;;  %v10763_v48 = vand.u32 4294901760, %v1692_v62  ;;  %v1687_v8 = vld [vmem:[%s15445_s2 + $0x278] sm:$0xff]  ;;  %1889 = vmatpush2.msra.mxu0 %v10743_v12  ;;  %v1686_v13 = vld [vmem:[%s15445_s2 + $0x270] sm:$0xff] }
 0x16e   :  { %16203 = vst [vmem:[#allocation65_spill] sm:$0xff] %v10733_v56  ;;  %v2149_v35 = vand.u32 4294901760, %v2148_v63  ;;  %v2160_v47 = vsub.f32 %v10699_v22, %v16204_v11  ;;  %v10752_v63 = vand.u32 4294901760, %v1693_v6  ;;  %v1689_v11 = vld [vmem:[%s15445_s2 + $0x288] sm:$0xff]  ;;  %v16208_v22 = vand.u32 4294901760, %v10722_v21 }
 0x16f   :  { %16209 = vst [vmem:[#allocation68_spill] sm:$0xff] %v10761_v50  ;;  %16210 = vst [vmem:[#allocation69_spill] sm:$0xff] %v10763_v48  ;;  %v2167_v26 = vand.u32 4294901760, %v2166_v40  ;;  %v10783_v40 = vsub.f32 %v1692_v62, %v10763_v48  ;;  %v10785_v12 = vand.u32 4294901760, %v1689_v11 }
 0x170   :  { %16207 = vst [vmem:[#allocation67_spill] sm:$0xff] %v10752_v63  ;;  %2150 = vmatpush1.msra.mxu1 %v2149_v35  ;;  %v2161_v24 = vand.u32 4294901760, %v2160_v47  ;;  %v2172_v60 = vsub.f32 %v10722_v21, %v16208_v22  ;;  %v16211_v35 = vand.u32 4294901760, %v10733_v56  ;;  %v10773_v32 = vsub.f32 %v1693_v6, %v10752_v63  ;;  %1891 = vmatprep.subr.mxu0 %v10752_v63  ;;  %v1684_v6 = vld [vmem:[%s15445_s2 + $0x260] sm:$0xff] }
 0x171   :  { %2156 = vmatprep.subr.mxu1 %v2155_v37  ;;  %v10775_v22 = vand.u32 4294901760, %v1690_v23  ;;  %v15564_v37 = vand.u32 4294901760, %v10761_v50  ;;  %16214 = vst [vmem:[#allocation72_spill] sm:$0xff] %v10783_v40  ;;  %16215 = vst [vmem:[#allocation73_spill] sm:$0xff] %v10785_v12  ;;  %1893 = vmatpush2.msra.mxu0 %v10763_v48  ;;  %v10803_v48 = vsub.f32 %v1689_v11, %v10785_v12  ;;  %v1683_v11 = vld [vmem:[%s15445_s2 + $0x258] sm:$0xff] }
 0x172   :  { %v2178_v47 = vsub.f32 %v10733_v56, %v16211_v35  ;;  %16212 = vst [vmem:[#allocation70_spill] sm:$0xff] %v10773_v32  ;;  %2162 = vmatpush2.msra.mxu1 %v2161_v24  ;;  %v2173_v21 = vand.u32 4294901760, %v2172_v60  ;;  %v15567_v56 = vand.u32 4294901760, %v10773_v32  ;;  %v10795_v60 = vand.u32 4294901760, %v1687_v8 }
 0x173   :  { %16213 = vst [vmem:[#allocation71_spill] sm:$0xff] %v10775_v22  ;;  %2168 = vmatprep.subr.mxu1 %v2167_v26  ;;  %v10793_v24 = vsub.f32 %v1690_v23, %v10775_v22  ;;  %1895 = vmatprep.subr.mxu0 %v10775_v22  ;;  %v2184_v62 = vsub.f32 %v10761_v50, %v15564_v37  ;;  %16218 = vst [vmem:[#allocation76_spill] sm:$0xff] %v10803_v48  ;;  %v10805_v26 = vand.u32 4294901760, %v1686_v13 }
 0x174   :  { %v2179_v35 = vand.u32 4294901760, %v2178_v47  ;;  %16217 = vst [vmem:[#allocation75_spill] sm:$0xff] %v10795_v60  ;;  %2174 = vmatpush2.msra.mxu1 %v2173_v21  ;;  %1897 = vmatpush2.msra.mxu0 %v10785_v12  ;;  %v2190_v23 = vsub.f32 %v10773_v32, %v15567_v56  ;;  %v10813_v47 = vsub.f32 %v1687_v8, %v10795_v60  ;;  %v10815_v37 = vand.u32 4294901760, %v1684_v6  ;;  %v1681_v8 = vld [vmem:[%s15445_s2 + $0x248] sm:$0xff] }
 0x175   :  { %16216 = vst [vmem:[#allocation74_spill] sm:$0xff] %v10793_v24  ;;  %16219 = vst [vmem:[#allocation77_spill] sm:$0xff] %v10805_v26  ;;  %1899 = vmatprep.subr.mxu0 %v10795_v60  ;;  %v2185_v63 = vand.u32 4294901760, %v2184_v62  ;;  %v10826_v21 = vsub.f32 %v1686_v13, %v10805_v26  ;;  %v16224_v12 = vand.u32 4294901760, %v10793_v24  ;;  %v1680_v13 = vld [vmem:[%s15445_s2 + $0x240] sm:$0xff] }
 0x176   :  { %2180 = vmatprep.subr.mxu1 %v2179_v35  ;;  %16220 = vst [vmem:[#allocation78_spill] sm:$0xff] %v10813_v47  ;;  %16221 = vst [vmem:[#allocation79_spill] sm:$0xff] %v10815_v37  ;;  %v16222_v35 = vand.u32 4294901760, %v10783_v40  ;;  %1901 = vmatpush2.msra.mxu0 %v10805_v26  ;;  %v2191_v32 = vand.u32 4294901760, %v2190_v23 }
 0x177   :  { %16223 = vst [vmem:[#allocation80_spill] sm:$0xff] %v10826_v21  ;;  %v2202_v62 = vsub.f32 %v10793_v24, %v16224_v12  ;;  %1903 = vmatprep.subr.mxu0 %v10815_v37  ;;  %2186 = vmatpush2.msra.mxu1 %v2185_v63  ;;  %v10847_v12 = vand.u32 4294901760, %v1683_v11  ;;  %v16228_v24 = vand.u32 4294901760, %v10813_v47 }
 0x178   :  { %v2196_v50 = vsub.f32 %v10783_v40, %v16222_v35  ;;  %v10837_v35 = vsub.f32 %v1684_v6, %v10815_v37  ;;  %v16226_v40 = vand.u32 4294901760, %v10803_v48  ;;  %v1678_v6 = vld [vmem:[%s15445_s2 + $0x230] sm:$0xff]  ;;  %2192 = vmatprep.subr.mxu1 %v2191_v32 }
 0x179   :  { %16227 = vst [vmem:[#allocation82_spill] sm:$0xff] %v10847_v12  ;;  %v2203_v60 = vand.u32 4294901760, %v2202_v62  ;;  %v2214_v37 = vsub.f32 %v10813_v47, %v16228_v24  ;;  %v10865_v32 = vsub.f32 %v1683_v11, %v10847_v12  ;;  %v10867_v62 = vand.u32 4294901760, %v1680_v13  ;;  %v1675_v24 = vld [vmem:[%s15445_s2 + $0x218] sm:$0xff]  ;;  %1905 = vmatpush2.msra.mxu0 %v10847_v12  ;;  %v1674_v11 = vld [vmem:[%s15445_s2 + $0x210] sm:$0xff] }
 0x17a   :  { %16225 = vst [vmem:[#allocation81_spill] sm:$0xff] %v10837_v35  ;;  %v2197_v56 = vand.u32 4294901760, %v2196_v50  ;;  %v2208_v23 = vsub.f32 %v10803_v48, %v16226_v40  ;;  %v10856_v50 = vand.u32 4294901760, %v1681_v8  ;;  %v1677_v40 = vld [vmem:[%s15445_s2 + $0x228] sm:$0xff]  ;;  %v16230_v48 = vand.u32 4294901760, %v10826_v21 }
 0x17b   :  { %16231 = vst [vmem:[#allocation84_spill] sm:$0xff] %v10865_v32  ;;  %16232 = vst [vmem:[#allocation85_spill] sm:$0xff] %v10867_v62  ;;  %v2215_v63 = vand.u32 4294901760, %v2214_v37  ;;  %v10887_v37 = vsub.f32 %v1680_v13, %v10867_v62  ;;  %v10889_v12 = vand.u32 4294901760, %v1677_v40 }
 0x17c   :  { %16229 = vst [vmem:[#allocation83_spill] sm:$0xff] %v10856_v50  ;;  %2198 = vmatpush2.msra.mxu1 %v2197_v56  ;;  %v2209_v26 = vand.u32 4294901760, %v2208_v23  ;;  %v2220_v22 = vsub.f32 %v10826_v21, %v16230_v48  ;;  %v16233_v56 = vand.u32 4294901760, %v10837_v35  ;;  %v10877_v47 = vsub.f32 %v1681_v8, %v10856_v50  ;;  %1907 = vmatprep.subr.mxu0 %v10856_v50  ;;  %v1672_v8 = vld [vmem:[%s15445_s2 + $0x200] sm:$0xff] }
 0x17d   :  { %2204 = vmatprep.subr.mxu1 %v2203_v60  ;;  %v10879_v48 = vand.u32 4294901760, %v1678_v6  ;;  %v15598_v60 = vand.u32 4294901760, %v10865_v32  ;;  %16236 = vst [vmem:[#allocation88_spill] sm:$0xff] %v10887_v37  ;;  %16237 = vst [vmem:[#allocation89_spill] sm:$0xff] %v10889_v12  ;;  %1909 = vmatpush2.msra.mxu0 %v10867_v62  ;;  %v10907_v62 = vsub.f32 %v1677_v40, %v10889_v12  ;;  %v1671_v40 = vld [vmem:[%s15445_s2 + $0x1f8] sm:$0xff] }
 0x17e   :  { %v2226_v23 = vsub.f32 %v10837_v35, %v16233_v56  ;;  %16234 = vst [vmem:[#allocation86_spill] sm:$0xff] %v10877_v47  ;;  %2210 = vmatpush2.msra.mxu1 %v2209_v26  ;;  %v2221_v21 = vand.u32 4294901760, %v2220_v22  ;;  %v15601_v35 = vand.u32 4294901760, %v10877_v47  ;;  %v10899_v22 = vand.u32 4294901760, %v1675_v24 }
 0x17f   :  { %16235 = vst [vmem:[#allocation87_spill] sm:$0xff] %v10879_v48  ;;  %2216 = vmatprep.subr.mxu1 %v2215_v63  ;;  %v10897_v26 = vsub.f32 %v1678_v6, %v10879_v48  ;;  %1911 = vmatprep.subr.mxu0 %v10879_v48  ;;  %v2232_v13 = vsub.f32 %v10865_v32, %v15598_v60  ;;  %16240 = vst [vmem:[#allocation92_spill] sm:$0xff] %v10907_v62  ;;  %v10909_v63 = vand.u32 4294901760, %v1674_v11 }
 0x180   :  { %v2227_v56 = vand.u32 4294901760, %v2226_v23  ;;  %16239 = vst [vmem:[#allocation91_spill] sm:$0xff] %v10899_v22  ;;  %2222 = vmatpush2.msra.mxu1 %v2221_v21  ;;  %1913 = vmatpush2.msra.mxu0 %v10889_v12  ;;  %v2238_v6 = vsub.f32 %v10877_v47, %v15601_v35  ;;  %v10917_v23 = vsub.f32 %v1675_v24, %v10899_v22  ;;  %v10919_v60 = vand.u32 4294901760, %v1672_v8  ;;  %v1669_v24 = vld [vmem:[%s15445_s2 + $0x1e8] sm:$0xff] }
 0x181   :  { %16238 = vst [vmem:[#allocation90_spill] sm:$0xff] %v10897_v26  ;;  %16241 = vst [vmem:[#allocation93_spill] sm:$0xff] %v10909_v63  ;;  %1915 = vmatprep.subr.mxu0 %v10899_v22  ;;  %v2233_v50 = vand.u32 4294901760, %v2232_v13  ;;  %v10930_v21 = vsub.f32 %v1674_v11, %v10909_v63  ;;  %v16246_v12 = vand.u32 4294901760, %v10897_v26  ;;  %v1668_v11 = vld [vmem:[%s15445_s2 + $0x1e0] sm:$0xff] }
 0x182   :  { %2228 = vmatprep.subr.mxu1 %v2227_v56  ;;  %16242 = vst [vmem:[#allocation94_spill] sm:$0xff] %v10917_v23  ;;  %16243 = vst [vmem:[#allocation95_spill] sm:$0xff] %v10919_v60  ;;  %v16244_v56 = vand.u32 4294901760, %v10887_v37  ;;  %1917 = vmatpush2.msra.mxu0 %v10909_v63  ;;  %v2239_v47 = vand.u32 4294901760, %v2238_v6 }
 0x183   :  { %16245 = vst [vmem:[#allocation96_spill] sm:$0xff] %v10930_v21  ;;  %v2250_v13 = vsub.f32 %v10897_v26, %v16246_v12  ;;  %1919 = vmatprep.subr.mxu0 %v10919_v60  ;;  %2234 = vmatpush2.msra.mxu1 %v2233_v50  ;;  %v10951_v12 = vand.u32 4294901760, %v1671_v40  ;;  %v16250_v26 = vand.u32 4294901760, %v10917_v23 }
 0x184   :  { %v2244_v32 = vsub.f32 %v10887_v37, %v16244_v56  ;;  %v10941_v56 = vsub.f32 %v1672_v8, %v10919_v60  ;;  %v16248_v37 = vand.u32 4294901760, %v10907_v62  ;;  %v1666_v8 = vld [vmem:[%s15445_s2 + $0x1d0] sm:$0xff]  ;;  %2240 = vmatprep.subr.mxu1 %v2239_v47 }
 0x185   :  { %16249 = vst [vmem:[#allocation98_spill] sm:$0xff] %v10951_v12  ;;  %v2251_v22 = vand.u32 4294901760, %v2250_v13  ;;  %v2262_v60 = vsub.f32 %v10917_v23, %v16250_v26  ;;  %v10969_v47 = vsub.f32 %v1671_v40, %v10951_v12  ;;  %v10971_v13 = vand.u32 4294901760, %v1668_v11  ;;  %v1663_v26 = vld [vmem:[%s15445_s2 + $0x1b8] sm:$0xff]  ;;  %1921 = vmatpush2.msra.mxu0 %v10951_v12  ;;  %v1662_v40 = vld [vmem:[%s15445_s2 + $0x1b0] sm:$0xff] }
 0x186   :  { %16247 = vst [vmem:[#allocation97_spill] sm:$0xff] %v10941_v56  ;;  %v2245_v35 = vand.u32 4294901760, %v2244_v32  ;;  %v2256_v6 = vsub.f32 %v10907_v62, %v16248_v37  ;;  %v10960_v32 = vand.u32 4294901760, %v1669_v24  ;;  %v1665_v37 = vld [vmem:[%s15445_s2 + $0x1c8] sm:$0xff]  ;;  %v16252_v62 = vand.u32 4294901760, %v10930_v21 }
 0x187   :  { %16253 = vst [vmem:[#allocation100_spill] sm:$0xff] %v10969_v47  ;;  %16254 = vst [vmem:[#allocation101_spill] sm:$0xff] %v10971_v13  ;;  %v2263_v50 = vand.u32 4294901760, %v2262_v60  ;;  %v10991_v60 = vsub.f32 %v1668_v11, %v10971_v13  ;;  %v10993_v12 = vand.u32 4294901760, %v1665_v37 }
 0x188   :  { %16251 = vst [vmem:[#allocation99_spill] sm:$0xff] %v10960_v32  ;;  %2246 = vmatpush2.msra.mxu1 %v2245_v35  ;;  %v2257_v63 = vand.u32 4294901760, %v2256_v6  ;;  %v2268_v48 = vsub.f32 %v10930_v21, %v16252_v62  ;;  %v16255_v35 = vand.u32 4294901760, %v10941_v56  ;;  %v10981_v23 = vsub.f32 %v1669_v24, %v10960_v32  ;;  %1923 = vmatprep.subr.mxu0 %v10960_v32  ;;  %v1660_v24 = vld [vmem:[%s15445_s2 + $0x1a0] sm:$0xff] }
 0x189   :  { %2252 = vmatprep.subr.mxu1 %v2251_v22  ;;  %v10983_v62 = vand.u32 4294901760, %v1666_v8  ;;  %v15632_v22 = vand.u32 4294901760, %v10969_v47  ;;  %16258 = vst [vmem:[#allocation104_spill] sm:$0xff] %v10991_v60  ;;  %16259 = vst [vmem:[#allocation105_spill] sm:$0xff] %v10993_v12  ;;  %1925 = vmatpush2.msra.mxu0 %v10971_v13  ;;  %v11011_v13 = vsub.f32 %v1665_v37, %v10993_v12  ;;  %v1659_v37 = vld [vmem:[%s15445_s2 + $0x198] sm:$0xff] }
 0x18a   :  { %v2274_v6 = vsub.f32 %v10941_v56, %v16255_v35  ;;  %16256 = vst [vmem:[#allocation102_spill] sm:$0xff] %v10981_v23  ;;  %2258 = vmatpush2.msra.mxu1 %v2257_v63  ;;  %v2269_v21 = vand.u32 4294901760, %v2268_v48  ;;  %v15635_v56 = vand.u32 4294901760, %v10981_v23  ;;  %v11003_v48 = vand.u32 4294901760, %v1663_v26 }
 0x18b   :  { %16257 = vst [vmem:[#allocation103_spill] sm:$0xff] %v10983_v62  ;;  %2264 = vmatprep.subr.mxu1 %v2263_v50  ;;  %v11001_v63 = vsub.f32 %v1666_v8, %v10983_v62  ;;  %1927 = vmatprep.subr.mxu0 %v10983_v62  ;;  %v2280_v11 = vsub.f32 %v10969_v47, %v15632_v22  ;;  %16262 = vst [vmem:[#allocation108_spill] sm:$0xff] %v11011_v13  ;;  %v11013_v50 = vand.u32 4294901760, %v1662_v40 }
 0x18c   :  { %v2275_v35 = vand.u32 4294901760, %v2274_v6  ;;  %16261 = vst [vmem:[#allocation107_spill] sm:$0xff] %v11003_v48  ;;  %2270 = vmatpush2.msra.mxu1 %v2269_v21  ;;  %1929 = vmatpush2.msra.mxu0 %v10993_v12  ;;  %v2286_v8 = vsub.f32 %v10981_v23, %v15635_v56  ;;  %v11021_v6 = vsub.f32 %v1663_v26, %v11003_v48  ;;  %v11023_v22 = vand.u32 4294901760, %v1660_v24  ;;  %v1657_v26 = vld [vmem:[%s15445_s2 + $0x188] sm:$0xff] }
 0x18d   :  { %16260 = vst [vmem:[#allocation106_spill] sm:$0xff] %v11001_v63  ;;  %16263 = vst [vmem:[#allocation109_spill] sm:$0xff] %v11013_v50  ;;  %1931 = vmatprep.subr.mxu0 %v11003_v48  ;;  %v2281_v32 = vand.u32 4294901760, %v2280_v11  ;;  %v11034_v21 = vsub.f32 %v1662_v40, %v11013_v50  ;;  %v16268_v12 = vand.u32 4294901760, %v11001_v63  ;;  %v1656_v40 = vld [vmem:[%s15445_s2 + $0x180] sm:$0xff]  ;;  %v11061_v57 = vand.u32 4294901760, %v1657_v26 }
 0x18e   :  { %2276 = vmatprep.subr.mxu1 %v2275_v35  ;;  %16264 = vst [vmem:[#allocation110_spill] sm:$0xff] %v11021_v6  ;;  %16265 = vst [vmem:[#allocation111_spill] sm:$0xff] %v11023_v22  ;;  %v16266_v35 = vand.u32 4294901760, %v10991_v60  ;;  %1933 = vmatpush2.msra.mxu0 %v11013_v50  ;;  %v2287_v23 = vand.u32 4294901760, %v2286_v8 }
 0x18f   :  { %16267 = vst [vmem:[#allocation112_spill] sm:$0xff] %v11034_v21  ;;  %v2298_v11 = vsub.f32 %v11001_v63, %v16268_v12  ;;  %1935 = vmatprep.subr.mxu0 %v11023_v22  ;;  %2282 = vmatpush2.msra.mxu1 %v2281_v32  ;;  %v15656_v50 = vand.u32 4294901760, %v11034_v21  ;;  %v11055_v12 = vand.u32 4294901760, %v1659_v37  ;;  %16273 = vst [vmem:[#allocation115_spill] sm:$0xff] %v11061_v57 }
 0x190   :  { %v2292_v47 = vsub.f32 %v10991_v60, %v16266_v35  ;;  %v11045_v35 = vsub.f32 %v1660_v24, %v11023_v22  ;;  %v16270_v60 = vand.u32 4294901760, %v11011_v13  ;;  %2288 = vmatprep.subr.mxu1 %v2287_v23  ;;  %v16272_v24 = vand.u32 4294901760, %v11021_v6 }
 0x191   :  { %16271 = vst [vmem:[#allocation114_spill] sm:$0xff] %v11055_v12  ;;  %v2299_v48 = vand.u32 4294901760, %v2298_v11  ;;  %1937 = vmatpush2.msra.mxu0 %v11055_v12 }
 0x192   :  { %16269 = vst [vmem:[#allocation113_spill] sm:$0xff] %v11045_v35  ;;  %v2293_v56 = vand.u32 4294901760, %v2292_v47  ;;  %v2304_v8 = vsub.f32 %v11011_v13, %v16270_v60  ;;  %v2310_v63 = vsub.f32 %v11021_v6, %v16272_v24  ;;  %v15654_v62 = vand.u32 4294901760, %v11045_v35  ;;  %1939 = vmatprep.subr.mxu0 %v11061_v57 }
 0x193   :  { %v2316_v47 = vsub.f32 %v11034_v21, %v15656_v50  ;;  %v11067_v60 = vsub.f32 %v1659_v37, %v11055_v12  ;;  %v11069_v13 = vand.u32 4294901760, %v1656_v40 }
 0x194   :  { %2294 = vmatpush2.msra.mxu1 %v2293_v56  ;;  %v2305_v32 = vand.u32 4294901760, %v2304_v8  ;;  %v2311_v23 = vand.u32 4294901760, %v2310_v63  ;;  %v2322_v11 = vsub.f32 %v11045_v35, %v15654_v62  ;;  %v11076_v56 = vsub.f32 %v1657_v26, %v11061_v57 }
 0x195   :  { %16274 = vst [vmem:[#allocation116_spill] sm:$0xff] %v11067_v60  ;;  %16275 = vst [vmem:[#allocation117_spill] sm:$0xff] %v11069_v13  ;;  %2300 = vmatprep.subr.mxu1 %v2299_v48  ;;  %v2317_v8 = vand.u32 4294901760, %v2316_v47  ;;  %v15655_v37 = vand.u32 4294901760, %v11067_v60  ;;  %v11081_v24 = vsub.f32 %v1656_v40, %v11069_v13  ;;  %1941 = vmatpush2.msra.mxu0 %v11069_v13 }
 0x196   :  { %16276 = vst [vmem:[#allocation118_spill] sm:$0xff] %v11076_v56  ;;  %2306 = vmatpush2.msra.mxu1 %v2305_v32  ;;  %v2323_v63 = vand.u32 4294901760, %v2322_v11  ;;  %v15662_v48 = vand.u32 4294901760, %v11076_v56  ;;  %2354 = vmatprep.subr.mxu0 %v10176_v53 }
 0x197   :  { %16277 = vst [vmem:[#allocation119_spill] sm:$0xff] %v11081_v24  ;;  %2312 = vmatprep.subr.mxu1 %v2311_v23  ;;  %v2328_v26 = vsub.f32 %v11067_v60, %v15655_v37  ;;  %v15665_v32 = vand.u32 4294901760, %v11081_v24 }
 0x198   :  { %2318 = vmatpush2.msra.mxu1 %v2317_v8  ;;  %v2334_v40 = vsub.f32 %v11076_v56, %v15662_v48 }
 0x199   :  { %2324 = vmatprep.subr.mxu1 %v2323_v63  ;;  %v2329_v47 = vand.u32 4294901760, %v2328_v26  ;;  %v2340_v23 = vsub.f32 %v11081_v24, %v15665_v32 }
 0x19a   :  { %v2335_v11 = vand.u32 4294901760, %v2334_v40 }
 0x19b   :  { %2330 = vmatpush2.msra.mxu1 %v2329_v47  ;;  %v2341_v62 = vand.u32 4294901760, %v2340_v23 }
 0x19c   :  { %2336 = vmatprep.subr.mxu1 %v2335_v11 }
 0x19d   :  { %2342 = vmatpush2.msra.mxu1 %v2341_v62 }
 0x19e   :  { %2556 = vmatprep.subr.mxu1 %v10173_v14 }
 0x1ce   :  { %v1415_v8 = vpop.xlane.xlu0 %1414 }
 0x1cf   :  { %v1429_v37 = vmul.f32 0.004950495, %v1415_v8 }
 0x1d1   :  { %v1431_v63 = vmul.f32 %v1429_v37, %v1429_v37  ;;  %v1436_v26 = vmul.f32 %v1429_v37, %v10224_v7  ;;  %v1437_v56 = vmul.f32 %v1429_v37, %v10234_v46  ;;  %v1438_v40 = vmul.f32 %v1429_v37, %v10258_v33 }
 0x1d2   :  { %v1428_v50 = vpop.xlane.xlu0 %1427  ;;  %v1439_v47 = vmul.f32 %v1429_v37, %v10263_v38  ;;  %v11111_v37 = vld [vmem:[%s15448_s5] ss:$2 sm:$0xf] }
 0x1d3   :  { %v1430_v53 = vmul.f32 0.004950495, %v1428_v50  ;;  %v1440_v62 = vsel %vm1405_vm14, %v1436_v26, 0.0  ;;  %v1447_v23 = vsel %vm1405_vm14, %v1437_v56, 0.0  ;;  %v1454_v11 = vsel %vm1405_vm14, %v1438_v40, 0.0 }
 0x1d4   :  { %v1461_v50 = vsel %vm1411_vm1, %v1439_v47, 0.0 }
 0x1d5   :  { %v1432_v60 = vsub.f32 %v1430_v53, %v1431_v63  ;;  %v1441_v53 = vrot.slane %v1440_v62, 4  ;;  %v1462_v8 = vrot.slane %v1461_v50, 4  ;;  %v11106_v63 = vsub.s32 0, %v10196_v54 }
 0x1d7   :  { %v1433_v35 = vmax.f32 %v1432_v60, 0.0  ;;  %v1448_v60 = vrot.slane %v1447_v23, 4  ;;  %16278 = vst [vmem:[#allocation120_spill] sm:$0xff] %v11106_v63  ;;  %v1463_v56 = vadd.f32 %v1462_v8, %v1461_v50  ;;  %v1504_v40 = vrot.slane %v11111_v37, %v11106_v63 }
 0x1d9   :  { %v1434_v48 = vadd.f32 1e-05, %v1433_v35  ;;  %v1455_v35 = vrot.slane %v1454_v11, 4  ;;  %v1449_v26 = vadd.f32 %v1448_v60, %v1447_v23  ;;  %v1464_v22 = vrot.slane %v1463_v56, 2 }
 0x1db   :  { %9546 = vrsqrt.f32 %v1434_v48  ;;  %v1442_v48 = vadd.f32 %v1441_v53, %v1440_v62  ;;  %v1456_v32 = vadd.f32 %v1455_v35, %v1454_v11  ;;  %v1450_v57 = vrot.slane %v1449_v26, 2 }
 0x1dd   :  { %v1443_v13 = vrot.slane %v1442_v48, 2  ;;  %v1457_v12 = vrot.slane %v1456_v32, 2 }
 0x1df   :  { %v1444_v49 = vadd.f32 %v1443_v13, %v1442_v48  ;;  %v1458_v51 = vadd.f32 %v1457_v12, %v1456_v32 }
 0x1e1   :  { %v1445_v32 = vrot.slane %v1444_v49, 1 }
 0x1e8   :  { %v9547_v24 = vpop.eup %9546 }
 0x1e9   :  { %v1468_v47 = vmul.f32 %v9547_v24, %v10224_v7  ;;  %v1469_v21 = vmul.f32 %v9547_v24, %v10234_v46  ;;  %v1470_v6 = vmul.f32 %v9547_v24, %v10258_v33  ;;  %v1471_v14 = vmul.f32 %v9547_v24, %v10263_v38 }
 0x1ea   :  { %v11124_v33 = vsub.s32 1, %v10196_v54  ;;  %v11127_v38 = vsub.s32 2, %v10196_v54  ;;  %v15705_v24 = vsub.s32 3, %v10196_v54 }
 0x1eb   :  { %v1472_v62 = vsel %vm1405_vm14, %v1468_v47, 0.0  ;;  %v1479_v23 = vsel %vm1405_vm14, %v1469_v21, 0.0  ;;  %v1486_v11 = vsel %vm1405_vm14, %v1470_v6, 0.0  ;;  %v1493_v50 = vsel %vm1411_vm1, %v1471_v14, 0.0 }
 0x1ec   :  { %v1473_v53 = vrot.slane %v1472_v62, 4  ;;  %v1480_v7 = vrot.slane %v1479_v23, 4  ;;  %v1487_v60 = vrot.slane %v1486_v11, 4  ;;  %v1494_v46 = vrot.slane %v1493_v50, 4  ;;  %16279 = vst [vmem:[#allocation121_spill] sm:$0xff] %v11124_v33  ;;  %16280 = vst [vmem:[#allocation122_spill] sm:$0xff] %v11127_v38 }
 0x1ed   :  { %v1451_v6 = vadd.f32 %v1450_v57, %v1449_v26  ;;  %v1465_v14 = vadd.f32 %v1464_v22, %v1463_v56  ;;  %v1508_v52 = vrot.slane %v11111_v37, %v11124_v33  ;;  %v1512_v19 = vrot.slane %v11111_v37, %v11127_v38 }
 0x1ee   :  { %v1474_v35 = vadd.f32 %v1473_v53, %v1472_v62  ;;  %v1481_v8 = vadd.f32 %v1480_v7, %v1479_v23  ;;  %v1488_v47 = vadd.f32 %v1487_v60, %v1486_v11  ;;  %v1495_v21 = vadd.f32 %v1494_v46, %v1493_v50 }
 0x1ef   :  { %v1516_v62 = vrot.slane %v11111_v37, %v15705_v24  ;;  %v9577_v23 = vmov 1966171168   ;;  %v1452_v48 = vrot.slane %v1451_v6, 1  ;;  %v1459_v26 = vrot.slane %v1458_v51, 1 }
 0x1f0   :  { %v1475_v17 = vrot.slane %v1474_v35, 2  ;;  %v1482_v25 = vrot.slane %v1481_v8, 2  ;;  %v1489_v30 = vrot.slane %v1488_v47, 2  ;;  %v1496_v0 = vrot.slane %v1495_v21, 2 }
 0x1f1   :  { %v1536_v11 = vunpack.c.l.s4 %v9577_v23  ;;  %v1466_v56 = vrot.slane %v1465_v14, 1  ;;  %v1446_v37 = vadd.f32 %v1445_v32, %v1444_v49  ;;  %v1453_v24 = vadd.f32 %v1452_v48, %v1451_v6 }
 0x1f2   :  { %v1476_v13 = vadd.f32 %v1475_v17, %v1474_v35  ;;  %v1483_v57 = vadd.f32 %v1482_v25, %v1481_v8  ;;  %v1490_v12 = vadd.f32 %v1489_v30, %v1488_v47  ;;  %v1497_v22 = vadd.f32 %v1496_v0, %v1495_v21 }
 0x1f3   :  { %v1537_v46 = vunpack.c.0.s8 %v1536_v11  ;;  %v1460_v23 = vadd.f32 %v1459_v26, %v1458_v51  ;;  %v1467_v17 = vadd.f32 %v1466_v56, %v1465_v14  ;;  %vm9578_vm1 = vmmov 0  }
 0x1f4   :  { %v1477_v50 = vrot.slane %v1476_v13, 1  ;;  %v1484_v53 = vrot.slane %v1483_v57, 1  ;;  %v1491_v7 = vrot.slane %v1490_v12, 1  ;;  %v1498_v60 = vrot.slane %v1497_v22, 1 }
 0x1f5   :  { %v11138_v8 = vsub.s32 %v1537_v46, %v10196_v54 }
 0x1f6   :  { %v1478_v15 = vadd.f32 %v1477_v50, %v1476_v13  ;;  %v1485_v43 = vadd.f32 %v1484_v53, %v1483_v57  ;;  %v1492_v3 = vadd.f32 %v1491_v7, %v1490_v12  ;;  %v1499_v31 = vadd.f32 %v1498_v60, %v1497_v22 }
 0x1f7   :  { %16281 = vst [vmem:[#allocation123_spill] sm:$0xff] %v11138_v8 }
 0x1f8   :  { %v1521_v25 = vmul.f32 %v1504_v40, %v1478_v15  ;;  %v1522_v30 = vmul.f32 %v1508_v52, %v1485_v43  ;;  %v1523_v0 = vmul.f32 %v1512_v19, %v1492_v3  ;;  %v1524_v35 = vmul.f32 %v1516_v62, %v1499_v31  ;;  %v8482_v15 = vld [vmem:[%s15448_s5 + $0x1] ss:$2 sm:$0xf] }
 0x1f9   :  { %v16282_v62 = vsub.s32 3, %v10196_v54  ;;  %v16329_v54 = vld [vmem:[#allocation53_spill] sm:$0xff] }
 0x1fa   :  { %v1525_v47 = vmul.f32 %v1521_v25, %v1446_v37  ;;  %v1526_v21 = vmul.f32 %v1522_v30, %v1453_v24  ;;  %v1527_v55 = vmul.f32 %v1523_v0, %v1460_v23  ;;  %v1528_v45 = vmul.f32 %v1524_v35, %v1467_v17 }
 0x1fb   :  { %v1566_v3 = vrot.slane %v1522_v30, %v11106_v63  ;;  %v1562_v52 = vrot.slane %v1521_v25, %v11106_v63  ;;  %v1574_v19 = vrot.slane %v1524_v35, %v11106_v63  ;;  %v1570_v43 = vrot.slane %v1523_v0, %v11106_v63  ;;  %v16293_v30 = vld [vmem:[#allocation18_spill] sm:$0xff]  ;;  %v16294_v0 = vld [vmem:[#allocation11_spill] sm:$0xff] }
 0x1fc   :  { %v1533_v11 = vcombine.low %v1525_v47, %v1526_v21  ;;  %v1534_v13 = vcombine.low %v1527_v55, %v1528_v45  ;;  %v16295_v35 = vld [vmem:[#allocation19_spill] sm:$0xff]  ;;  %v16296_v47 = vld [vmem:[#allocation12_spill] sm:$0xff]  ;;  %v16297_v21 = vld [vmem:[#allocation21_spill] sm:$0xff] }
 0x1fd   :  { %v1576_v45 = vmul.f32 %v1566_v3, %v10183_v41  ;;  %v1575_v51 = vmul.f32 %v1562_v52, %v10185_v42  ;;  %v1578_v40 = vmul.f32 %v1574_v19, %v10230_v27  ;;  %v1577_v32 = vmul.f32 %v1570_v43, %v10218_v2  ;;  %v16304_v3 = vld [vmem:[#allocation16_spill] sm:$0xff]  ;;  %v16305_v52 = vld [vmem:[#allocation29_spill] sm:$0xff] }
 0x1fe   :  { %v1541_v57 = vrot.slane %v1533_v11, %v11138_v8  ;;  %v1548_v49 = vrot.slane %v1534_v13, %v11138_v8  ;;  %v16298_v11 = vld [vmem:[#allocation13_spill] sm:$0xff]  ;;  %v16299_v13 = vld [vmem:[#allocation23_spill] sm:$0xff]  ;;  %v16308_v43 = vld [vmem:[#allocation20_spill] sm:$0xff] }
 0x1ff   :  { %v16306_v19 = vld [vmem:[#allocation17_spill] sm:$0xff] }
 0x200   :  { %v1549_v6 = vcombine.low %v1541_v57, %v1548_v49  ;;  %v16300_v57 = vld [vmem:[#allocation14_spill] sm:$0xff]  ;;  %v16301_v49 = vld [vmem:[#allocation25_spill] sm:$0xff] }
 0x202   :  { %v1556_v31 = vrot.slane %v1549_v6, %v11138_v8  ;;  %v16302_v6 = vld [vmem:[#allocation15_spill] sm:$0xff]  ;;  %v16325_v8 = vld [vmem:[#allocation50_spill] sm:$0xff] }
 0x204   :  { %v1558_v55 = vsub.f32 %v8482_v15, %v1556_v31  ;;  %v16303_v15 = vld [vmem:[#allocation27_spill] sm:$0xff] }
 0x205   :  { %v16307_v31 = vld [vmem:[#allocation31_spill] sm:$0xff] }
 0x206   :  { %v1587_v24 = vrot.slane %v1558_v55, %v11124_v33  ;;  %v1583_v14 = vrot.slane %v1558_v55, %v11106_v63  ;;  %v1595_v12 = vrot.slane %v1558_v55, %v16282_v62  ;;  %v1591_v22 = vrot.slane %v1558_v55, %v11127_v38  ;;  %v16309_v55 = vld [vmem:[#allocation34_spill] sm:$0xff]  ;;  %v16315_v62 = vld [vmem:[#allocation39_spill] sm:$0xff]  ;;  %v16328_v63 = vld [vmem:[#allocation40_spill] sm:$0xff] }
 0x207   :  { %v16326_v38 = vld [vmem:[#allocation38_spill] sm:$0xff]  ;;  %v16327_v33 = vld [vmem:[#allocation51_spill] sm:$0xff] }
 0x208   :  { %v1601_v48 = vadd.f32 %v1587_v24, %v1576_v45  ;;  %v1600_v26 = vadd.f32 %v1583_v14, %v1575_v51  ;;  %v11159_v56 = vadd.f32 %v1595_v12, %v1578_v40  ;;  %v11161_v41 = vadd.f32 %v1591_v22, %v1577_v32  ;;  %v16310_v45 = vld [vmem:[#allocation22_spill] sm:$0xff]  ;;  %v16311_v51 = vld [vmem:[#allocation35_spill] sm:$0xff]  ;;  %v16312_v40 = vld [vmem:[#allocation24_spill] sm:$0xff] }
 0x209   :  { %v16313_v24 = vld [vmem:[#allocation37_spill] sm:$0xff]  ;;  %v16314_v14 = vld [vmem:[#allocation26_spill] sm:$0xff]  ;;  %v16316_v12 = vld [vmem:[#allocation28_spill] sm:$0xff] }
 0x20a   :  { %16283 = vst [vmem:[#allocation124_spill] sm:$0xff] %v11159_v56  ;;  %16284 = vst [vmem:[#allocation125_spill] sm:$0xff] %v11161_v41  ;;  %v1605_v42 = vmax.f32 %v1601_v48, 0.0  ;;  %v1604_v50 = vmax.f32 %v1600_v26, 0.0  ;;  %v16317_v22 = vld [vmem:[#allocation41_spill] sm:$0xff]  ;;  %v16318_v32 = vld [vmem:[#allocation30_spill] sm:$0xff] }
 0x20b   :  { %v16319_v48 = vld [vmem:[#allocation43_spill] sm:$0xff]  ;;  %v16320_v26 = vld [vmem:[#allocation32_spill] sm:$0xff]  ;;  %v16334_v41 = vld [vmem:[#allocation46_spill] sm:$0xff] }
 0x20c   :  { %v11163_v27 = vand.u32 4294901760, %v1605_v42  ;;  %v11165_v53 = vand.u32 4294901760, %v1604_v50  ;;  %v16336_v56 = vld [vmem:[#allocation48_spill] sm:$0xff] }
 0x20e   :  { %16285 = vst [vmem:[#allocation126_spill] sm:$0xff] %v11163_v27  ;;  %16286 = vst [vmem:[#allocation127_spill] sm:$0xff] %v11165_v53  ;;  %2344 = vmatprep.mubr.f32.mxu1 %v11163_v27  ;;  %v11169_v7 = vsub.f32 %v1605_v42, %v11163_v27  ;;  %v11172_v60 = vsub.f32 %v1604_v50, %v11165_v53  ;;  %v16321_v42 = vld [vmem:[#allocation45_spill] sm:$0xff] }
 0x20f   :  { %2346 = vmatmul.mubr.f32.vlgmr.msra.gmra.mxu1 %v11165_v53  ;;  %v16322_v50 = vld [vmem:[#allocation33_spill] sm:$0xff]  ;;  %v16335_v53 = vld [vmem:[#allocation59_spill] sm:$0xff] }
 0x210   :  { %16287 = vst [vmem:[#allocation128_spill] sm:$0xff] %v11169_v7  ;;  %16288 = vst [vmem:[#allocation129_spill] sm:$0xff] %v11172_v60  ;;  %2558 = vmatpush1.msra.mxu1 %v10279_v61  ;;  %v11177_v2 = vand.u32 4294901760, %v11169_v7  ;;  %v11180_v46 = vand.u32 4294901760, %v11172_v60 }
 0x211   :  { %2560 = vmatprep.subr.mxu1 %v10284_v18 }
 0x212   :  { %16289 = vst [vmem:[#allocation130_spill] sm:$0xff] %v11177_v2  ;;  %16290 = vst [vmem:[#allocation131_spill] sm:$0xff] %v11180_v46  ;;  %2562 = vmatpush1.msra.mxu1 %v10292_v39  ;;  %2686 = vmatprep.mubr.f32.mxu1 %v11177_v2  ;;  %v1945_v37 = vsub.f32 %v11169_v7, %v11177_v2  ;;  %v1951_v23 = vsub.f32 %v11172_v60, %v11180_v46  ;;  %v16332_v2 = vld [vmem:[#allocation44_spill] sm:$0xff] }
 0x213   :  { %2564 = vmatprep.subr.mxu1 %v10301_v5 }
 0x214   :  { %2566 = vmatpush1.msra.mxu1 %v10321_v29  ;;  %v11191_v17 = vand.u32 4294901760, %v1945_v37  ;;  %v11193_v25 = vand.u32 4294901760, %v1951_v23  ;;  %v16323_v37 = vld [vmem:[#allocation47_spill] sm:$0xff]  ;;  %v16324_v23 = vld [vmem:[#allocation36_spill] sm:$0xff] }
 0x215   :  { %2568 = vmatprep.subr.mxu1 %v10330_v1 }
 0x216   :  { %16291 = vst [vmem:[#allocation132_spill] sm:$0xff] %v11191_v17  ;;  %16292 = vst [vmem:[#allocation133_spill] sm:$0xff] %v11193_v25  ;;  %2570 = vmatpush1.msra.mxu1 %v10341_v58  ;;  %1947 = vmatprep.mubr.f32.mxu0 %v11191_v17  ;;  %v16333_v17 = vld [vmem:[#allocation57_spill] sm:$0xff] }
 0x217   :  { %2572 = vmatprep.subr.mxu1 %v10353_v9  ;;  %1953 = vmatmul.mubr.f32.vlgmr.msra.gmra.mxu0 %v11193_v25  ;;  %v16331_v25 = vld [vmem:[#allocation55_spill] sm:$0xff] }
 0x218   :  { %2357 = vmatpush1.msra.mxu0 %v10290_v36  ;;  %2574 = vmatpush1.msra.mxu1 %v10363_v4 }
 0x219   :  { %2360 = vmatprep.subr.mxu0 %v10299_v10  ;;  %2546 = vmatprep.mubr.f32.mxu0 %v11169_v7  ;;  %v16330_v7 = vld [vmem:[#allocation42_spill] sm:$0xff] }
 0x21a   :  { %2576 = vmatprep.subr.mxu1 %v10373_v44  ;;  %2363 = vmatpush1.msra.mxu0 %v10306_v20 }
 0x21b   :  { %2578 = vmatpush1.msra.mxu1 %v10386_v28  ;;  %2366 = vmatprep.subr.mxu0 %v10311_v16 }
 0x21c   :  { %2580 = vmatprep.subr.mxu1 %v10399_v59  ;;  %2369 = vmatpush1.msra.mxu0 %v10339_v34 }
 0x21d   :  { %2582 = vmatpush1.msra.mxu1 %v16293_v30  ;;  %2372 = vmatprep.subr.mxu0 %v16294_v0 }
 0x21e   :  { %2584 = vmatprep.subr.mxu1 %v16295_v35  ;;  %2375 = vmatpush1.msra.mxu0 %v16296_v47 }
 0x21f   :  { %2586 = vmatpush1.msra.mxu1 %v16297_v21  ;;  %2378 = vmatprep.subr.mxu0 %v16298_v11 }
 0x220   :  { %2588 = vmatprep.subr.mxu1 %v16299_v13  ;;  %2381 = vmatpush1.msra.mxu0 %v16300_v57 }
 0x221   :  { %2590 = vmatpush1.msra.mxu1 %v16301_v49  ;;  %2384 = vmatprep.subr.mxu0 %v16302_v6 }
 0x222   :  { %2592 = vmatprep.subr.mxu1 %v16303_v15  ;;  %2387 = vmatpush1.msra.mxu0 %v16304_v3 }
 0x223   :  { %2594 = vmatpush1.msra.mxu1 %v16305_v52  ;;  %2390 = vmatprep.subr.mxu0 %v16306_v19 }
 0x224   :  { %2596 = vmatprep.subr.mxu1 %v16307_v31  ;;  %2393 = vmatpush1.msra.mxu0 %v16308_v43 }
 0x225   :  { %2598 = vmatpush1.msra.mxu1 %v16309_v55  ;;  %2396 = vmatprep.subr.mxu0 %v16310_v45 }
 0x226   :  { %2600 = vmatprep.subr.mxu1 %v16311_v51  ;;  %2399 = vmatpush1.msra.mxu0 %v16312_v40 }
 0x227   :  { %2602 = vmatpush1.msra.mxu1 %v16313_v24  ;;  %2402 = vmatprep.subr.mxu0 %v16314_v14 }
 0x228   :  { %2604 = vmatprep.subr.mxu1 %v16315_v62  ;;  %2405 = vmatpush1.msra.mxu0 %v16316_v12 }
 0x229   :  { %2606 = vmatpush1.msra.mxu1 %v16317_v22  ;;  %2408 = vmatprep.subr.mxu0 %v16318_v32 }
 0x22a   :  { %2608 = vmatprep.subr.mxu1 %v16319_v48  ;;  %2411 = vmatpush1.msra.mxu0 %v16320_v26 }
 0x22b   :  { %2610 = vmatpush1.msra.mxu1 %v16321_v42  ;;  %2414 = vmatprep.subr.mxu0 %v16322_v50 }
 0x22c   :  { %2612 = vmatprep.subr.mxu1 %v16323_v37  ;;  %2417 = vmatpush1.msra.mxu0 %v16324_v23 }
 0x22d   :  { %2614 = vmatpush1.msra.mxu1 %v16325_v8  ;;  %2420 = vmatprep.subr.mxu0 %v16326_v38  ;;  %v16337_v38 = vld [vmem:[#allocation61_spill] sm:$0xff] }
 0x22e   :  { %2616 = vmatprep.subr.mxu1 %v16327_v33  ;;  %2423 = vmatpush1.msra.mxu0 %v16328_v63  ;;  %v16338_v33 = vld [vmem:[#allocation49_spill] sm:$0xff]  ;;  %v16339_v63 = vld [vmem:[#allocation63_spill] sm:$0xff] }
 0x22f   :  { %2618 = vmatpush1.msra.mxu1 %v16329_v54  ;;  %2426 = vmatprep.subr.mxu0 %v16330_v7  ;;  %v16340_v54 = vld [vmem:[#allocation52_spill] sm:$0xff]  ;;  %v16341_v7 = vld [vmem:[#allocation66_spill] sm:$0xff] }
 0x230   :  { %2620 = vmatprep.subr.mxu1 %v16331_v25  ;;  %2429 = vmatpush1.msra.mxu0 %v16332_v2  ;;  %v16342_v25 = vld [vmem:[#allocation54_spill] sm:$0xff]  ;;  %v16343_v2 = vld [vmem:[#allocation67_spill] sm:$0xff] }
 0x231   :  { %2622 = vmatpush2.msra.mxu1 %v16333_v17  ;;  %2432 = vmatprep.subr.mxu0 %v16334_v41  ;;  %v16344_v17 = vld [vmem:[#allocation56_spill] sm:$0xff]  ;;  %v16345_v41 = vld [vmem:[#allocation69_spill] sm:$0xff] }
 0x232   :  { %2624 = vmatprep.subr.mxu1 %v16335_v53  ;;  %2435 = vmatpush1.msra.mxu0 %v16336_v56  ;;  %v16346_v53 = vld [vmem:[#allocation58_spill] sm:$0xff]  ;;  %v16347_v56 = vld [vmem:[#allocation71_spill] sm:$0xff] }
 0x233   :  { %2626 = vmatpush2.msra.mxu1 %v16337_v38  ;;  %2438 = vmatprep.subr.mxu0 %v16338_v33  ;;  %v16348_v38 = vld [vmem:[#allocation60_spill] sm:$0xff]  ;;  %v16349_v33 = vld [vmem:[#allocation73_spill] sm:$0xff] }
 0x234   :  { %2628 = vmatprep.subr.mxu1 %v16339_v63  ;;  %2441 = vmatpush1.msra.mxu0 %v16340_v54  ;;  %v16350_v63 = vld [vmem:[#allocation62_spill] sm:$0xff]  ;;  %v16351_v54 = vld [vmem:[#allocation75_spill] sm:$0xff] }
 0x235   :  { %2630 = vmatpush2.msra.mxu1 %v16341_v7  ;;  %2444 = vmatprep.subr.mxu0 %v16342_v25  ;;  %v16352_v7 = vld [vmem:[#allocation64_spill] sm:$0xff]  ;;  %v16353_v25 = vld [vmem:[#allocation77_spill] sm:$0xff] }
 0x236   :  { %2632 = vmatprep.subr.mxu1 %v16343_v2  ;;  %2447 = vmatpush1.msra.mxu0 %v16344_v17  ;;  %v16354_v2 = vld [vmem:[#allocation65_spill] sm:$0xff]  ;;  %v16355_v17 = vld [vmem:[#allocation79_spill] sm:$0xff] }
 0x237   :  { %2634 = vmatpush2.msra.mxu1 %v16345_v41  ;;  %2450 = vmatprep.subr.mxu0 %v16346_v53  ;;  %v16356_v41 = vld [vmem:[#allocation68_spill] sm:$0xff]  ;;  %v16357_v53 = vld [vmem:[#allocation82_spill] sm:$0xff] }
 0x238   :  { %2636 = vmatprep.subr.mxu1 %v16347_v56  ;;  %2453 = vmatpush2.msra.mxu0 %v16348_v38  ;;  %v16358_v56 = vld [vmem:[#allocation70_spill] sm:$0xff]  ;;  %v16359_v38 = vld [vmem:[#allocation83_spill] sm:$0xff] }
 0x239   :  { %2638 = vmatpush2.msra.mxu1 %v16349_v33  ;;  %2456 = vmatprep.subr.mxu0 %v16350_v63  ;;  %v16360_v33 = vld [vmem:[#allocation72_spill] sm:$0xff]  ;;  %v16361_v63 = vld [vmem:[#allocation85_spill] sm:$0xff] }
 0x23a   :  { %2640 = vmatprep.subr.mxu1 %v16351_v54  ;;  %2459 = vmatpush2.msra.mxu0 %v16352_v7  ;;  %v16362_v54 = vld [vmem:[#allocation74_spill] sm:$0xff]  ;;  %v16363_v7 = vld [vmem:[#allocation87_spill] sm:$0xff] }
 0x23b   :  { %2642 = vmatpush2.msra.mxu1 %v16353_v25  ;;  %2462 = vmatprep.subr.mxu0 %v16354_v2  ;;  %v16364_v25 = vld [vmem:[#allocation76_spill] sm:$0xff]  ;;  %v16365_v2 = vld [vmem:[#allocation89_spill] sm:$0xff] }
 0x23c   :  { %2644 = vmatprep.subr.mxu1 %v16355_v17  ;;  %2465 = vmatpush2.msra.mxu0 %v16356_v41  ;;  %v16366_v17 = vld [vmem:[#allocation78_spill] sm:$0xff]  ;;  %v16367_v41 = vld [vmem:[#allocation91_spill] sm:$0xff] }
 0x23d   :  { %2646 = vmatpush2.msra.mxu1 %v16357_v53  ;;  %2468 = vmatprep.subr.mxu0 %v16358_v56  ;;  %v16368_v53 = vld [vmem:[#allocation80_spill] sm:$0xff]  ;;  %v16369_v56 = vld [vmem:[#allocation93_spill] sm:$0xff] }
 0x23e   :  { %2648 = vmatprep.subr.mxu1 %v16359_v38  ;;  %2471 = vmatpush2.msra.mxu0 %v16360_v33  ;;  %v16370_v38 = vld [vmem:[#allocation81_spill] sm:$0xff]  ;;  %v16371_v33 = vld [vmem:[#allocation95_spill] sm:$0xff] }
 0x23f   :  { %2650 = vmatpush2.msra.mxu1 %v16361_v63  ;;  %2474 = vmatprep.subr.mxu0 %v16362_v54  ;;  %v16372_v63 = vld [vmem:[#allocation84_spill] sm:$0xff]  ;;  %v16373_v54 = vld [vmem:[#allocation98_spill] sm:$0xff] }
 0x240   :  { %2652 = vmatprep.subr.mxu1 %v16363_v7  ;;  %2477 = vmatpush2.msra.mxu0 %v16364_v25  ;;  %v16374_v7 = vld [vmem:[#allocation86_spill] sm:$0xff]  ;;  %v16375_v25 = vld [vmem:[#allocation99_spill] sm:$0xff] }
 0x241   :  { %2654 = vmatpush2.msra.mxu1 %v16365_v2  ;;  %2480 = vmatprep.subr.mxu0 %v16366_v17  ;;  %v16376_v2 = vld [vmem:[#allocation88_spill] sm:$0xff]  ;;  %v16377_v17 = vld [vmem:[#allocation101_spill] sm:$0xff] }
 0x242   :  { %2656 = vmatprep.subr.mxu1 %v16367_v41  ;;  %2483 = vmatpush2.msra.mxu0 %v16368_v53  ;;  %v16378_v41 = vld [vmem:[#allocation90_spill] sm:$0xff]  ;;  %v16379_v53 = vld [vmem:[#allocation103_spill] sm:$0xff] }
 0x243   :  { %2658 = vmatpush2.msra.mxu1 %v16369_v56  ;;  %2486 = vmatprep.subr.mxu0 %v16370_v38  ;;  %v16380_v56 = vld [vmem:[#allocation92_spill] sm:$0xff]  ;;  %v16381_v38 = vld [vmem:[#allocation105_spill] sm:$0xff] }
 0x244   :  { %2660 = vmatprep.subr.mxu1 %v16371_v33  ;;  %2489 = vmatpush2.msra.mxu0 %v16372_v63  ;;  %v16382_v33 = vld [vmem:[#allocation94_spill] sm:$0xff]  ;;  %v16383_v63 = vld [vmem:[#allocation107_spill] sm:$0xff] }
 0x245   :  { %2662 = vmatpush2.msra.mxu1 %v16373_v54  ;;  %2492 = vmatprep.subr.mxu0 %v16374_v7  ;;  %v16384_v54 = vld [vmem:[#allocation96_spill] sm:$0xff]  ;;  %v16385_v7 = vld [vmem:[#allocation109_spill] sm:$0xff] }
 0x246   :  { %2664 = vmatprep.subr.mxu1 %v16375_v25  ;;  %2495 = vmatpush2.msra.mxu0 %v16376_v2  ;;  %v16386_v25 = vld [vmem:[#allocation97_spill] sm:$0xff]  ;;  %v16387_v2 = vld [vmem:[#allocation111_spill] sm:$0xff] }
 0x247   :  { %2666 = vmatpush2.msra.mxu1 %v16377_v17  ;;  %2498 = vmatprep.subr.mxu0 %v16378_v41  ;;  %v16388_v17 = vld [vmem:[#allocation100_spill] sm:$0xff]  ;;  %v16389_v41 = vld [vmem:[#allocation114_spill] sm:$0xff] }
 0x248   :  { %2668 = vmatprep.subr.mxu1 %v16379_v53  ;;  %2501 = vmatpush2.msra.mxu0 %v16380_v56  ;;  %v16390_v53 = vld [vmem:[#allocation102_spill] sm:$0xff]  ;;  %v16391_v56 = vld [vmem:[#allocation115_spill] sm:$0xff] }
 0x249   :  { %2670 = vmatpush2.msra.mxu1 %v16381_v38  ;;  %2504 = vmatprep.subr.mxu0 %v16382_v33  ;;  %v16392_v38 = vld [vmem:[#allocation104_spill] sm:$0xff]  ;;  %v16393_v33 = vld [vmem:[#allocation117_spill] sm:$0xff] }
 0x24a   :  { %2672 = vmatprep.subr.mxu1 %v16383_v63  ;;  %2507 = vmatpush2.msra.mxu0 %v16384_v54  ;;  %v16394_v63 = vld [vmem:[#allocation106_spill] sm:$0xff] }
 0x24b   :  { %2674 = vmatpush2.msra.mxu1 %v16385_v7  ;;  %2510 = vmatprep.subr.mxu0 %v16386_v25  ;;  %v16395_v7 = vld [vmem:[#allocation5_spill] sm:$0xff]  ;;  %v16396_v25 = vld [vmem:[#allocation108_spill] sm:$0xff] }
 0x24c   :  { %2676 = vmatprep.subr.mxu1 %v16387_v2  ;;  %2513 = vmatpush2.msra.mxu0 %v16388_v17 }
 0x24d   :  { %2678 = vmatpush2.msra.mxu1 %v16389_v41  ;;  %2516 = vmatprep.subr.mxu0 %v16390_v53  ;;  %v16397_v41 = vld [vmem:[#allocation110_spill] sm:$0xff] }
 0x24e   :  { %2680 = vmatprep.subr.mxu1 %v16391_v56  ;;  %2519 = vmatpush2.msra.mxu0 %v16392_v38  ;;  %v16398_v56 = vld [vmem:[#allocation112_spill] sm:$0xff] }
 0x24f   :  { %2682 = vmatpush2.msra.mxu1 %v16393_v33  ;;  %2522 = vmatprep.subr.mxu0 %v16394_v63  ;;  %v16399_v33 = vld [vmem:[#allocation113_spill] sm:$0xff] }
 0x250   :  { %2690 = vmatmul.mubr.f32.vlgmr.msra.gmra.mxu1 %v11180_v46  ;;  %2962 = vmatprep.subr.mxu1 %v16395_v7  ;;  %v16400_v46 = vld [vmem:[#allocation116_spill] sm:$0xff]  ;;  %v16401_v7 = vld [vmem:[#allocation118_spill] sm:$0xff] }
 0x251   :  { %2525 = vmatpush2.msra.mxu0 %v16396_v25  ;;  %2964 = vmatpush1.msra.mxu1 %v10279_v61  ;;  %v16402_v61 = vld [vmem:[#allocation119_spill] sm:$0xff] }
 0x252   :  { %3090 = vmatprep.mubr.f32.mxu1 %v11163_v27  ;;  %2528 = vmatprep.subr.mxu0 %v16397_v41 }
 0x253   :  { %2966 = vmatprep.subr.mxu1 %v10284_v18  ;;  %2531 = vmatpush2.msra.mxu0 %v16398_v56  ;;  %v16403_v18 = vld [vmem:[#allocation6_spill] sm:$0xff] }
 0x254   :  { %2968 = vmatpush1.msra.mxu1 %v10292_v39  ;;  %2534 = vmatprep.subr.mxu0 %v16399_v33  ;;  %v16404_v39 = vand.u32 4294901760, %v16403_v18  ;;  %v16445_v18 = vld [vmem:[#allocation124_spill] sm:$0xff] }
 0x255   :  { %2970 = vmatprep.subr.mxu1 %v10301_v5  ;;  %2537 = vmatpush2.msra.mxu0 %v16400_v46  ;;  %v16405_v5 = vand.u32 4294901760, %v10290_v36  ;;  %v16409_v36 = vand.u32 4294901760, %v10339_v34  ;;  %v16413_v34 = vand.u32 4294901760, %v16300_v57  ;;  %v16424_v57 = vand.u32 4294901760, %v16322_v50  ;;  %v16442_v50 = vld [vmem:[#allocation59_spill] sm:$0xff] }
 0x256   :  { %2972 = vmatpush1.msra.mxu1 %v10321_v29  ;;  %2540 = vmatprep.subr.mxu0 %v16401_v7  ;;  %v16406_v29 = vand.u32 4294901760, %v10299_v10  ;;  %v16410_v10 = vand.u32 4294901760, %v16294_v0  ;;  %v16420_v0 = vand.u32 4294901760, %v16314_v14  ;;  %v16434_v14 = vld [vmem:[#allocation55_spill] sm:$0xff] }
 0x257   :  { %2974 = vmatprep.subr.mxu1 %v10330_v1  ;;  %2543 = vmatpush2.msra.mxu0 %v16402_v61  ;;  %v16407_v1 = vand.u32 4294901760, %v10306_v20  ;;  %v16411_v20 = vand.u32 4294901760, %v16296_v47  ;;  %v16422_v47 = vand.u32 4294901760, %v16318_v32  ;;  %v16438_v32 = vld [vmem:[#allocation57_spill] sm:$0xff] }
 0x258   :  { %2976 = vmatpush1.msra.mxu1 %v10341_v58  ;;  %2549 = vmatmul.mubr.f32.vlgmr.msra.gmra.mxu0 %v11172_v60  ;;  %v16408_v58 = vand.u32 4294901760, %v10311_v16  ;;  %v16412_v16 = vand.u32 4294901760, %v16298_v11  ;;  %v16423_v11 = vand.u32 4294901760, %v16320_v26  ;;  %v16516_v60 = vld [vmem:[#allocation80_spill] sm:$0xff] }
 0x259   :  { %2699 = vmatprep.subr.mxu0 %v16404_v39  ;;  %2978 = vmatprep.subr.mxu1 %v10353_v9  ;;  %v16414_v9 = vand.u32 4294901760, %v16302_v6  ;;  %v1607_v39 = vmax.f32 %v16445_v18, 0.0  ;;  %v1735_v18 = vld [vmem:[%s15445_s2 + $0x3f8] sm:$0xff] }
 0x25a   :  { %2703 = vmatpush1.msra.mxu0 %v16405_v5  ;;  %2953 = vmatprep.mubr.f32.mxu0 %v11163_v27 }
 0x25b   :  { %2980 = vmatpush1.msra.mxu1 %v10363_v4  ;;  %2707 = vmatprep.subr.mxu0 %v16406_v29  ;;  %v16415_v4 = vand.u32 4294901760, %v16304_v3  ;;  %v16426_v3 = vld [vmem:[#allocation38_spill] sm:$0xff]  ;;  %v1744_v29 = vld [vmem:[%s15445_s2 + $0x440] sm:$0xff] }
 0x25c   :  { %2982 = vmatprep.subr.mxu1 %v10373_v44  ;;  %2711 = vmatpush1.msra.mxu0 %v16407_v1  ;;  %v16416_v44 = vand.u32 4294901760, %v16306_v19  ;;  %v16446_v1 = vld [vmem:[#allocation61_spill] sm:$0xff] }
 0x25d   :  { %2984 = vmatpush1.msra.mxu1 %v10386_v28  ;;  %2715 = vmatprep.subr.mxu0 %v16408_v58  ;;  %v16417_v28 = vand.u32 4294901760, %v16308_v43  ;;  %v16429_v43 = vld [vmem:[#allocation40_spill] sm:$0xff]  ;;  %v16447_v58 = vld [vmem:[#allocation49_spill] sm:$0xff] }
 0x25e   :  { %2986 = vmatprep.subr.mxu1 %v10399_v59  ;;  %2719 = vmatpush1.msra.mxu0 %v16409_v36  ;;  %v16418_v59 = vand.u32 4294901760, %v16310_v45  ;;  %v16431_v45 = vld [vmem:[#allocation53_spill] sm:$0xff]  ;;  %v16448_v36 = vand.u32 4294901760, %v16447_v58 }
 0x25f   :  { %2988 = vmatpush1.msra.mxu1 %v16293_v30  ;;  %2723 = vmatprep.subr.mxu0 %v16410_v10  ;;  %v16419_v30 = vand.u32 4294901760, %v16312_v40 }
 0x260   :  { %2990 = vmatprep.subr.mxu1 %v16295_v35  ;;  %2727 = vmatpush1.msra.mxu0 %v16411_v20  ;;  %v16421_v35 = vand.u32 4294901760, %v16316_v12  ;;  %v1743_v20 = vld [vmem:[%s15445_s2 + $0x438] sm:$0xff] }
 0x261   :  { %2992 = vmatpush1.msra.mxu1 %v16297_v21  ;;  %2731 = vmatprep.subr.mxu0 %v16412_v16  ;;  %v1750_v21 = vld [vmem:[%s15445_s2 + $0x470] sm:$0xff] }
 0x262   :  { %2994 = vmatprep.subr.mxu1 %v16299_v13  ;;  %2735 = vmatpush1.msra.mxu0 %v16413_v34  ;;  %v1749_v13 = vld [vmem:[%s15445_s2 + $0x468] sm:$0xff]  ;;  %v11402_v6 = vand.u32 4294901760, %v1750_v21  ;;  %v16450_v16 = vld [vmem:[#allocation63_spill] sm:$0xff]  ;;  %v16451_v34 = vld [vmem:[#allocation52_spill] sm:$0xff] }
 0x263   :  { %2996 = vmatpush1.msra.mxu1 %v16301_v49  ;;  %2739 = vmatprep.subr.mxu0 %v16414_v9  ;;  %v16425_v49 = vand.u32 4294901760, %v16324_v23  ;;  %v11410_v19 = vand.u32 4294901760, %v1749_v13  ;;  %v16452_v9 = vand.u32 4294901760, %v16451_v34 }
 0x264   :  { %2998 = vmatprep.subr.mxu1 %v16303_v15  ;;  %2743 = vmatpush1.msra.mxu0 %v16415_v4  ;;  %v1747_v15 = vld [vmem:[%s15445_s2 + $0x458] sm:$0xff] }
 0x265   :  { %3000 = vmatpush1.msra.mxu1 %v16305_v52  ;;  %2747 = vmatprep.subr.mxu0 %v16416_v44  ;;  %v16427_v52 = vand.u32 4294901760, %v16426_v3  ;;  %v1741_v44 = vld [vmem:[%s15445_s2 + $0x428] sm:$0xff] }
 0x266   :  { %3002 = vmatprep.subr.mxu1 %v16307_v31  ;;  %2751 = vmatpush1.msra.mxu0 %v16417_v28  ;;  %v16428_v31 = vld [vmem:[#allocation51_spill] sm:$0xff]  ;;  %v16453_v28 = vld [vmem:[#allocation66_spill] sm:$0xff]  ;;  %v16460_v3 = vld [vmem:[#allocation69_spill] sm:$0xff] }
 0x267   :  { %3004 = vmatpush1.msra.mxu1 %v16309_v55  ;;  %2755 = vmatprep.subr.mxu0 %v16418_v59  ;;  %v16430_v55 = vand.u32 4294901760, %v16429_v43  ;;  %v16454_v59 = vld [vmem:[#allocation54_spill] sm:$0xff] }
 0x268   :  { %3006 = vmatprep.subr.mxu1 %v16311_v51  ;;  %2759 = vmatpush1.msra.mxu0 %v16419_v30  ;;  %v16432_v51 = vld [vmem:[#allocation42_spill] sm:$0xff]  ;;  %v16455_v30 = vand.u32 4294901760, %v16454_v59 }
 0x269   :  { %3008 = vmatpush1.msra.mxu1 %v16313_v24  ;;  %2763 = vmatprep.subr.mxu0 %v16420_v0  ;;  %v16433_v40 = vand.u32 4294901760, %v16432_v51  ;;  %v11418_v24 = vand.u32 4294901760, %v1747_v15  ;;  %v16464_v51 = vld [vmem:[#allocation71_spill] sm:$0xff] }
 0x26a   :  { %3010 = vmatprep.subr.mxu1 %v16315_v62  ;;  %2767 = vmatpush1.msra.mxu0 %v16421_v35  ;;  %v16435_v62 = vld [vmem:[#allocation44_spill] sm:$0xff]  ;;  %v11464_v35 = vand.u32 4294901760, %v1744_v29 }
 0x26b   :  { %3012 = vmatpush1.msra.mxu1 %v16317_v22  ;;  %2771 = vmatprep.subr.mxu0 %v16422_v47  ;;  %v16436_v12 = vand.u32 4294901760, %v16435_v62  ;;  %v11427_v22 = vsub.f32 %v1750_v21, %v11402_v6  ;;  %v11448_v10 = vsub.f32 %v1747_v15, %v11418_v24  ;;  %v1740_v47 = vld [vmem:[%s15445_s2 + $0x420] sm:$0xff]  ;;  %v16456_v21 = vld [vmem:[#allocation67_spill] sm:$0xff]  ;;  %v11475_v15 = vand.u32 4294901760, %v1743_v20 }
 0x26c   :  { %3014 = vmatprep.subr.mxu1 %v16319_v48  ;;  %2775 = vmatpush1.msra.mxu0 %v16423_v11  ;;  %v16439_v48 = vld [vmem:[#allocation46_spill] sm:$0xff]  ;;  %v16457_v11 = vld [vmem:[#allocation56_spill] sm:$0xff]  ;;  %v11494_v62 = vand.u32 4294901760, %v1740_v47 }
 0x26d   :  { %3016 = vmatpush1.msra.mxu1 %v16321_v42  ;;  %2779 = vmatprep.subr.mxu0 %v16424_v57  ;;  %16437 = vst [vmem:[#allocation18_spill] sm:$0xff] %v11427_v22  ;;  %v16440_v26 = vand.u32 4294901760, %v16439_v48  ;;  %v11433_v42 = vsub.f32 %v1749_v13, %v11410_v19  ;;  %16449 = vst [vmem:[#allocation19_spill] sm:$0xff] %v11448_v10  ;;  %v15730_v4 = vand.u32 4294901760, %v11427_v22  ;;  %v16458_v13 = vand.u32 4294901760, %v16457_v11  ;;  %v16469_v48 = vld [vmem:[#allocation62_spill] sm:$0xff] }
 0x26e   :  { %3018 = vmatprep.subr.mxu1 %v16323_v37  ;;  %2783 = vmatpush1.msra.mxu0 %v16425_v49  ;;  %v16443_v37 = vld [vmem:[#allocation48_spill] sm:$0xff]  ;;  %v1802_v57 = vsel %vm1800_vm2, %v1607_v39, 0  ;;  %v15728_v43 = vand.u32 4294901760, %v11448_v10  ;;  %16467 = vst [vmem:[#allocation13_spill] sm:$0xff] %v11494_v62  ;;  %v16473_v39 = vld [vmem:[#allocation75_spill] sm:$0xff]  ;;  %vm7774_vm2 = vcmask 852992  }
 0x26f   :  { %3020 = vmatpush1.msra.mxu1 %v16325_v8  ;;  %2787 = vmatprep.subr.mxu0 %v16427_v52  ;;  %v1746_v8 = vld [vmem:[%s15445_s2 + $0x450] sm:$0xff]  ;;  %16441 = vst [vmem:[#allocation11_spill] sm:$0xff] %v11433_v42  ;;  %v16444_v23 = vand.u32 4294901760, %v16443_v37  ;;  %v15729_v0 = vand.u32 4294901760, %v11433_v42  ;;  %v11507_v37 = vand.u32 4294901760, %v1802_v57  ;;  %v1732_v11 = vld [vmem:[%s15445_s2 + $0x3e0] sm:$0xff] }
 0x270   :  { %3022 = vmatprep.subr.mxu1 %v16428_v31  ;;  %2791 = vmatpush1.msra.mxu0 %v16430_v55  ;;  %v11439_v5 = vand.u32 4294901760, %v1746_v8  ;;  %v16461_v52 = vld [vmem:[#allocation58_spill] sm:$0xff]  ;;  %v11481_v55 = vand.u32 4294901760, %v1741_v44 }
 0x271   :  { %3024 = vmatpush1.msra.mxu1 %v16431_v45  ;;  %2795 = vmatprep.subr.mxu0 %v16433_v40  ;;  %v16462_v31 = vand.u32 4294901760, %v16461_v52  ;;  %v1738_v45 = vld [vmem:[%s15445_s2 + $0x410] sm:$0xff]  ;;  %v16465_v40 = vld [vmem:[#allocation60_spill] sm:$0xff]  ;;  %16471 = vst [vmem:[#allocation23_spill] sm:$0xff] %v11507_v37 }
 0x272   :  { %3026 = vmatprep.subr.mxu1 %v16434_v14  ;;  %2799 = vmatpush1.msra.mxu0 %v16436_v12  ;;  %v11473_v49 = vsub.f32 %v1746_v8, %v11439_v5  ;;  %16463 = vst [vmem:[#allocation21_spill] sm:$0xff] %v11481_v55  ;;  %v16466_v8 = vand.u32 4294901760, %v16465_v40  ;;  %v11492_v14 = vsub.f32 %v11427_v22, %v15730_v4  ;;  %v1737_v12 = vld [vmem:[%s15445_s2 + $0x408] sm:$0xff]  ;;  %v11522_v34 = vand.u32 4294901760, %v1738_v45  ;;  %v16504_v4 = vld [vmem:[#allocation76_spill] sm:$0xff] }
 0x273   :  { %3028 = vmatpush2.msra.mxu1 %v16438_v32  ;;  %2803 = vmatprep.subr.mxu0 %v16440_v26  ;;  %v16468_v32 = vld [vmem:[#allocation73_spill] sm:$0xff]  ;;  %v16470_v26 = vand.u32 4294901760, %v16469_v48  ;;  %v11550_v40 = vand.u32 4294901760, %v1735_v18 }
 0x274   :  { %3030 = vmatprep.subr.mxu1 %v16442_v50  ;;  %2807 = vmatpush1.msra.mxu0 %v16444_v23  ;;  %16459 = vst [vmem:[#allocation12_spill] sm:$0xff] %v11473_v49  ;;  %v11505_v50 = vsub.f32 %v11433_v42, %v15729_v0  ;;  %v11510_v23 = vsub.f32 %v1744_v29, %v11464_v35  ;;  %16477 = vst [vmem:[#allocation15_spill] sm:$0xff] %v11522_v34  ;;  %v1734_v29 = vld [vmem:[%s15445_s2 + $0x3f0] sm:$0xff]  ;;  %v1720_v22 = vld [vmem:[%s15445_s2 + $0x380] sm:$0xff] }
 0x275   :  { %3032 = vmatpush2.msra.mxu1 %v16446_v1  ;;  %2811 = vmatprep.subr.mxu0 %v16448_v36  ;;  %v16474_v1 = vld [vmem:[#allocation64_spill] sm:$0xff]  ;;  %v15727_v36 = vand.u32 4294901760, %v11473_v49  ;;  %16487 = vst [vmem:[#allocation17_spill] sm:$0xff] %v11550_v40  ;;  %v16503_v0 = vld [vmem:[#allocation87_spill] sm:$0xff]  ;;  %v16533_v42 = vld [vmem:[#allocation86_spill] sm:$0xff] }
 0x276   :  { %3034 = vmatprep.subr.mxu1 %v16450_v16  ;;  %2815 = vmatpush1.msra.mxu0 %v16452_v9  ;;  %16472 = vst [vmem:[#allocation14_spill] sm:$0xff] %v11510_v23  ;;  %v16475_v58 = vand.u32 4294901760, %v16474_v1  ;;  %v11520_v16 = vsub.f32 %v1743_v20, %v11475_v15  ;;  %v16478_v9 = vld [vmem:[#allocation77_spill] sm:$0xff]  ;;  %v11538_v20 = vand.u32 4294901760, %v1737_v12  ;;  %v11561_v1 = vsub.f32 %v1802_v57, %v11507_v37 }
 0x277   :  { %3036 = vmatpush2.msra.mxu1 %v16453_v28  ;;  %2819 = vmatprep.subr.mxu0 %v16455_v30  ;;  %v16479_v28 = vld [vmem:[#allocation65_spill] sm:$0xff]  ;;  %v11533_v30 = vsub.f32 %v11448_v10, %v15728_v43  ;;  %v11577_v57 = vsub.f32 %v11473_v49, %v15727_v36  ;;  %v16510_v36 = vld [vmem:[#allocation78_spill] sm:$0xff] }
 0x278   :  { %3038 = vmatprep.subr.mxu1 %v16456_v21  ;;  %2823 = vmatpush1.msra.mxu0 %v16458_v13  ;;  %16476 = vst [vmem:[#allocation25_spill] sm:$0xff] %v11520_v16  ;;  %v16480_v59 = vand.u32 4294901760, %v16479_v28  ;;  %v11536_v21 = vsub.f32 %v1741_v44, %v11481_v55  ;;  %16482 = vst [vmem:[#allocation16_spill] sm:$0xff] %v11538_v20  ;;  %v16483_v13 = vld [vmem:[#allocation79_spill] sm:$0xff]  ;;  %v11594_v43 = vsub.f32 %v1737_v12, %v11538_v20  ;;  %v1725_v12 = vld [vmem:[%s15445_s2 + $0x3a8] sm:$0xff] }
 0x279   :  { %3040 = vmatpush2.msra.mxu1 %v16460_v3  ;;  %2827 = vmatprep.subr.mxu0 %v16462_v31  ;;  %v16484_v3 = vld [vmem:[#allocation68_spill] sm:$0xff]  ;;  %16491 = vst [vmem:[#allocation31_spill] sm:$0xff] %v11561_v1  ;;  %v16493_v28 = vld [vmem:[#allocation83_spill] sm:$0xff]  ;;  %v16521_v49 = vld [vmem:[#allocation81_spill] sm:$0xff] }
 0x27a   :  { %3042 = vmatprep.subr.mxu1 %v16464_v51  ;;  %2831 = vmatpush2.msra.mxu0 %v16466_v8  ;;  %16481 = vst [vmem:[#allocation27_spill] sm:$0xff] %v11536_v21  ;;  %v16485_v52 = vand.u32 4294901760, %v16484_v3  ;;  %v11548_v51 = vsub.f32 %v1740_v47, %v11494_v62  ;;  %v1731_v44 = vld [vmem:[%s15445_s2 + $0x3d8] sm:$0xff]  ;;  %v16488_v8 = vld [vmem:[#allocation82_spill] sm:$0xff]  ;;  %v11563_v47 = vand.u32 4294901760, %v1734_v29  ;;  %16501 = vst [vmem:[#allocation35_spill] sm:$0xff] %v11594_v43 }
 0x27b   :  { %3044 = vmatpush2.msra.mxu1 %v16468_v32  ;;  %2835 = vmatprep.subr.mxu0 %v16470_v26  ;;  %v16489_v32 = vld [vmem:[#allocation70_spill] sm:$0xff]  ;;  %v16505_v26 = vand.u32 4294901760, %v16504_v4  ;;  %v16515_v3 = vld [vmem:[#allocation91_spill] sm:$0xff]  ;;  %v16522_v10 = vand.u32 4294901760, %v16521_v49  ;;  %v16527_v49 = vld [vmem:[#allocation84_spill] sm:$0xff] }
 0x27c   :  { %3046 = vmatprep.subr.mxu1 %v16473_v39  ;;  %2839 = vmatpush2.msra.mxu0 %v16475_v58  ;;  %16486 = vst [vmem:[#allocation29_spill] sm:$0xff] %v11548_v51  ;;  %v16490_v48 = vand.u32 4294901760, %v16489_v32  ;;  %v15732_v39 = vand.u32 4294901760, %v11510_v23  ;;  %16492 = vst [vmem:[#allocation20_spill] sm:$0xff] %v11563_v47  ;;  %v1729_v58 = vld [vmem:[%s15445_s2 + $0x3c8] sm:$0xff]  ;;  %v1726_v32 = vld [vmem:[%s15445_s2 + $0x3b0] sm:$0xff] }
 0x27d   :  { %3048 = vmatpush2.msra.mxu1 %v16478_v9  ;;  %2843 = vmatprep.subr.mxu0 %v16480_v59  ;;  %v1728_v9 = vld [vmem:[%s15445_s2 + $0x3c0] sm:$0xff]  ;;  %v11626_v31 = vand.u32 4294901760, %v1726_v32  ;;  %v16529_v27 = vand.u32 4294901760, %v11548_v51 }
 0x27e   :  { %3050 = vmatprep.subr.mxu1 %v16483_v13  ;;  %2847 = vmatpush2.msra.mxu0 %v16485_v52  ;;  %v16494_v59 = vld [vmem:[#allocation72_spill] sm:$0xff]  ;;  %v11581_v52 = vsub.f32 %v1738_v45, %v11522_v34  ;;  %v11596_v45 = vand.u32 4294901760, %v1731_v44  ;;  %v11618_v4 = vsub.f32 %v11510_v23, %v15732_v39 }
 0x27f   :  { %3052 = vmatpush2.msra.mxu1 %v16488_v8  ;;  %2851 = vmatprep.subr.mxu0 %v16490_v48  ;;  %v16495_v13 = vand.u32 4294901760, %v16494_v59  ;;  %v11583_v8 = vand.u32 4294901760, %v1732_v11  ;;  %v16498_v48 = vld [vmem:[#allocation85_spill] sm:$0xff]  ;;  %16514 = vst [vmem:[#allocation30_spill] sm:$0xff] %v11626_v31 }
 0x280   :  { %3054 = vmatprep.subr.mxu1 %v16493_v28  ;;  %16496 = vst [vmem:[#allocation34_spill] sm:$0xff] %v11581_v52  ;;  %v16499_v28 = vld [vmem:[#allocation74_spill] sm:$0xff]  ;;  %16502 = vst [vmem:[#allocation24_spill] sm:$0xff] %v11596_v45 }
 0x281   :  { %2855 = vmatpush2.msra.mxu0 %v16495_v13  ;;  %16497 = vst [vmem:[#allocation22_spill] sm:$0xff] %v11583_v8  ;;  %3056 = vmatpush2.msra.mxu1 %v16498_v48  ;;  %v16500_v59 = vand.u32 4294901760, %v16499_v28  ;;  %v11603_v48 = vsub.f32 %v1735_v18, %v11550_v40  ;;  %v11605_v28 = vand.u32 4294901760, %v1729_v58  ;;  %v16509_v13 = vld [vmem:[#allocation89_spill] sm:$0xff]  ;;  %v11621_v18 = vand.u32 4294901760, %v11561_v1 }
 0x282   :  { %3058 = vmatprep.subr.mxu1 %v16503_v0  ;;  %v16511_v0 = vand.u32 4294901760, %v16510_v36  ;;  %v11639_v23 = vsub.f32 %v1732_v11, %v11583_v8  ;;  %v11653_v36 = vand.u32 4294901760, %v1725_v12  ;;  %v1723_v11 = vld [vmem:[%s15445_s2 + $0x398] sm:$0xff] }
 0x283   :  { %2859 = vmatprep.subr.mxu0 %v16500_v59  ;;  %16506 = vst [vmem:[#allocation37_spill] sm:$0xff] %v11603_v48  ;;  %16507 = vst [vmem:[#allocation26_spill] sm:$0xff] %v11605_v28  ;;  %v11607_v59 = vand.u32 4294901760, %v1728_v9  ;;  %3060 = vmatpush2.msra.mxu1 %v16509_v13  ;;  %v16517_v13 = vand.u32 4294901760, %v16516_v60  ;;  %v16523_v60 = vand.u32 4294901760, %v11536_v21 }
 0x284   :  { %2863 = vmatpush2.msra.mxu0 %v16505_v26  ;;  %16512 = vst [vmem:[#allocation28_spill] sm:$0xff] %v11621_v18  ;;  %v11624_v26 = vsub.f32 %v1734_v29, %v11563_v47  ;;  %3062 = vmatprep.subr.mxu1 %v16515_v3  ;;  %16519 = vst [vmem:[#allocation43_spill] sm:$0xff] %v11639_v23  ;;  %v16520_v29 = vld [vmem:[#allocation93_spill] sm:$0xff] }
 0x285   :  { %16508 = vst [vmem:[#allocation39_spill] sm:$0xff] %v11607_v59  ;;  %2867 = vmatprep.subr.mxu0 %v16511_v0  ;;  %v16518_v0 = vand.u32 4294901760, %v11520_v16  ;;  %3064 = vmatpush2.msra.mxu1 %v16520_v29  ;;  %v11647_v3 = vsub.f32 %v11536_v21, %v16523_v60  ;;  %16525 = vst [vmem:[#allocation45_spill] sm:$0xff] %v11653_v36  ;;  %v16526_v29 = vld [vmem:[#allocation95_spill] sm:$0xff]  ;;  %v11664_v60 = vsub.f32 %v11548_v51, %v16529_v27  ;;  %v16537_v51 = vld [vmem:[#allocation88_spill] sm:$0xff] }
 0x286   :  { %16513 = vst [vmem:[#allocation41_spill] sm:$0xff] %v11624_v26  ;;  %2871 = vmatpush2.msra.mxu0 %v16517_v13  ;;  %3066 = vmatprep.subr.mxu1 %v16526_v29  ;;  %v11671_v21 = vsub.f32 %v1728_v9, %v11607_v59  ;;  %v16534_v29 = vand.u32 4294901760, %v16533_v42  ;;  %v11681_v13 = vsub.f32 %v1726_v32, %v11626_v31  ;;  %v16538_v9 = vand.u32 4294901760, %v16537_v51  ;;  %v1722_v32 = vld [vmem:[%s15445_s2 + $0x390] sm:$0xff]  ;;  %v16541_v27 = vld [vmem:[#allocation101_spill] sm:$0xff] }
 0x287   :  { %v11635_v39 = vsub.f32 %v11520_v16, %v16518_v0  ;;  %2875 = vmatprep.subr.mxu0 %v16522_v10  ;;  %v11651_v0 = vsub.f32 %v1731_v44, %v11596_v45  ;;  %v16528_v10 = vand.u32 4294901760, %v16527_v49  ;;  %v11668_v44 = vsub.f32 %v1729_v58, %v11605_v28  ;;  %v16532_v16 = vld [vmem:[#allocation98_spill] sm:$0xff]  ;;  %v16536_v58 = vld [vmem:[#allocation99_spill] sm:$0xff] }
 0x288   :  { %16531 = vst [vmem:[#allocation47_spill] sm:$0xff] %v11671_v21  ;;  %3068 = vmatpush2.msra.mxu1 %v16532_v16  ;;  %16535 = vst [vmem:[#allocation36_spill] sm:$0xff] %v11681_v13  ;;  %v16539_v42 = vand.u32 4294901760, %v11581_v52  ;;  %v16544_v16 = vand.u32 4294901760, %v11594_v43  ;;  %v16556_v31 = vld [vmem:[#allocation107_spill] sm:$0xff]  ;;  %v11756_v49 = vand.u32 4294901760, %v1720_v22 }
 0x289   :  { %16524 = vst [vmem:[#allocation32_spill] sm:$0xff] %v11651_v0  ;;  %2879 = vmatpush2.msra.mxu0 %v16528_v10  ;;  %16530 = vst [vmem:[#allocation33_spill] sm:$0xff] %v11668_v44  ;;  %v3229_v10 = vsub.f32 %v11561_v1, %v11621_v18  ;;  %3070 = vmatprep.subr.mxu1 %v16536_v58  ;;  %v11693_v1 = vand.u32 4294901760, %v1723_v11  ;;  %v16542_v58 = vld [vmem:[#allocation90_spill] sm:$0xff]  ;;  %v16549_v18 = vand.u32 4294901760, %v11603_v48  ;;  %v16564_v59 = vand.u32 4294901760, %v11651_v0 }
 0x28a   :  { %2883 = vmatprep.subr.mxu0 %v16534_v29  ;;  %v11690_v29 = vsub.f32 %v11581_v52, %v16539_v42  ;;  %3072 = vmatpush2.msra.mxu1 %v16541_v27  ;;  %v16543_v51 = vand.u32 4294901760, %v16542_v58  ;;  %v11705_v42 = vsub.f32 %v11594_v43, %v16544_v16  ;;  %v11709_v52 = vsub.f32 %v1725_v12, %v11653_v36  ;;  %v16546_v27 = vld [vmem:[#allocation103_spill] sm:$0xff]  ;;  %v16547_v58 = vld [vmem:[#allocation92_spill] sm:$0xff]  ;;  %v16550_v36 = vld [vmem:[#allocation105_spill] sm:$0xff] }
 0x28b   :  { %2887 = vmatpush2.msra.mxu0 %v16538_v9  ;;  %16540 = vst [vmem:[#allocation50_spill] sm:$0xff] %v11693_v1  ;;  %3074 = vmatprep.subr.mxu1 %v16546_v27  ;;  %v11721_v16 = vsub.f32 %v11603_v48, %v16549_v18  ;;  %v1719_v43 = vld [vmem:[%s15445_s2 + $0x378] sm:$0xff]  ;;  %v16551_v27 = vld [vmem:[#allocation94_spill] sm:$0xff]  ;;  %v16554_v9 = vand.u32 4294901760, %v11624_v26  ;;  %v11739_v48 = vand.u32 4294901760, %v1722_v32  ;;  %16560 = vst [vmem:[#allocation104_spill] sm:$0xff] %v11756_v49 }
 0x28c   :  { %2891 = vmatprep.subr.mxu0 %v16543_v51  ;;  %16545 = vst [vmem:[#allocation96_spill] sm:$0xff] %v11709_v52  ;;  %v16548_v51 = vand.u32 4294901760, %v16547_v58  ;;  %3076 = vmatpush2.msra.mxu1 %v16550_v36  ;;  %v16552_v58 = vand.u32 4294901760, %v16551_v27  ;;  %v1717_v12 = vld [vmem:[%s15445_s2 + $0x368] sm:$0xff]  ;;  %v16557_v36 = vand.u32 4294901760, %v16384_v54  ;;  %v16558_v27 = vand.u32 4294901760, %v11639_v23 }
 0x28d   :  { %v11736_v18 = vsub.f32 %v11624_v26, %v16554_v9  ;;  %16555 = vst [vmem:[#allocation100_spill] sm:$0xff] %v11739_v48  ;;  %3078 = vmatprep.subr.mxu1 %v16556_v31  ;;  %v1716_v26 = vld [vmem:[%s15445_s2 + $0x360] sm:$0xff]  ;;  %v1711_v28 = vld [vmem:[%s15445_s2 + $0x338] sm:$0xff]  ;;  %v16589_v45 = vand.u32 4294901760, %v11505_v50 }
 0x28e   :  { %2895 = vmatpush2.msra.mxu0 %v16548_v51  ;;  %v11731_v51 = vand.u32 4294901760, %v3229_v10  ;;  %v11751_v9 = vsub.f32 %v11639_v23, %v16558_v27  ;;  %v16561_v31 = vld [vmem:[#allocation109_spill] sm:$0xff]  ;;  %v11768_v27 = vsub.f32 %v11651_v0, %v16564_v59  ;;  %v11771_v23 = vand.u32 4294901760, %v1719_v43 }
 0x28f   :  { %2899 = vmatprep.subr.mxu0 %v16552_v58  ;;  %v11754_v58 = vsub.f32 %v1723_v11, %v11693_v1  ;;  %3080 = vmatpush2.msra.mxu1 %v16561_v31  ;;  %v16562_v54 = vld [vmem:[#allocation97_spill] sm:$0xff]  ;;  %v1714_v1 = vld [vmem:[%s15445_s2 + $0x350] sm:$0xff]  ;;  %v16566_v31 = vand.u32 4294901760, %v16388_v17  ;;  %v16568_v10 = vand.u32 4294901760, %v11671_v21  ;;  %v11790_v0 = vand.u32 4294901760, %v1717_v12 }
 0x290   :  { %16553 = vst [vmem:[#allocation111_spill] sm:$0xff] %v11731_v51  ;;  %2903 = vmatpush2.msra.mxu0 %v16557_v36  ;;  %v16563_v36 = vand.u32 4294901760, %v16562_v54  ;;  %16565 = vst [vmem:[#allocation106_spill] sm:$0xff] %v11771_v23  ;;  %3082 = vmatprep.subr.mxu1 %v16387_v2  ;;  %v1713_v2 = vld [vmem:[%s15445_s2 + $0x348] sm:$0xff] }
 0x291   :  { %16559 = vst [vmem:[#allocation102_spill] sm:$0xff] %v11754_v58  ;;  %v11788_v11 = vsub.f32 %v11671_v21, %v16568_v10  ;;  %16569 = vst [vmem:[#allocation5_spill] sm:$0xff] %v11790_v0  ;;  %v16570_v17 = vld [vmem:[#allocation114_spill] sm:$0xff]  ;;  %v11805_v10 = vsub.f32 %v1722_v32, %v11739_v48  ;;  %v11807_v21 = vand.u32 4294901760, %v1716_v26  ;;  %v11820_v32 = vand.u32 4294901760, %v1714_v1  ;;  %v16579_v48 = vld [vmem:[#allocation117_spill] sm:$0xff] }
 0x292   :  { %2907 = vmatprep.subr.mxu0 %v16563_v36  ;;  %v16567_v36 = vand.u32 4294901760, %v11668_v44  ;;  %3084 = vmatpush2.msra.mxu1 %v16570_v17  ;;  %v16575_v17 = vld [vmem:[#allocation115_spill] sm:$0xff]  ;;  %v11837_v54 = vand.u32 4294901760, %v1713_v2  ;;  %v16593_v50 = vand.u32 4294901760, %v11754_v58 }
 0x293   :  { %2911 = vmatpush2.msra.mxu0 %v16566_v31  ;;  %v16571_v31 = vand.u32 4294901760, %v16390_v53  ;;  %16573 = vst [vmem:[#allocation108_spill] sm:$0xff] %v11805_v10  ;;  %16574 = vst [vmem:[#allocation110_spill] sm:$0xff] %v11807_v21  ;;  %3086 = vmatprep.subr.mxu1 %v16575_v17  ;;  %v16576_v53 = vand.u32 4294901760, %v16392_v38  ;;  %v16580_v17 = vand.u32 4294901760, %v16394_v63  ;;  %v16585_v63 = vand.u32 4294901760, %v11492_v14 }
 0x294   :  { %v11783_v59 = vsub.f32 %v11668_v44, %v16567_v36  ;;  %v16572_v36 = vand.u32 4294901760, %v11681_v13  ;;  %16578 = vst [vmem:[#allocation113_spill] sm:$0xff] %v11820_v32  ;;  %3088 = vmatpush2.msra.mxu1 %v16579_v48  ;;  %16583 = vst [vmem:[#allocation118_spill] sm:$0xff] %v11837_v54  ;;  %v16584_v48 = vld [vmem:[#allocation127_spill] sm:$0xff]  ;;  %v11862_v38 = vsub.f32 %v1716_v26, %v11807_v21 }
 0x295   :  { %2915 = vmatprep.subr.mxu0 %v16571_v31  ;;  %3092 = vmatmul.mubr.f32.vlgmr.msra.gmra.mxu1 %v16584_v48  ;;  %v11879_v26 = vsub.f32 %v1714_v1, %v11820_v32  ;;  %v16601_v32 = vand.u32 4294901760, %v16399_v33  ;;  %v16606_v33 = vand.u32 4294901760, %v11805_v10 }
 0x296   :  { %v11802_v44 = vsub.f32 %v11681_v13, %v16572_v36  ;;  %2919 = vmatpush2.msra.mxu0 %v16576_v53  ;;  %v11818_v36 = vsub.f32 %v1720_v22, %v11756_v49  ;;  %v1710_v13 = vld [vmem:[%s15445_s2 + $0x330] sm:$0xff]  ;;  %v16581_v53 = vand.u32 4294901760, %v11709_v52  ;;  %v11835_v22 = vsub.f32 %v1719_v43, %v11771_v23  ;;  %v1708_v49 = vld [vmem:[%s15445_s2 + $0x320] sm:$0xff]  ;;  %3248 = vmatprep.subr.mxu1 %v16585_v63 }
 0x297   :  { %2923 = vmatprep.subr.mxu0 %v16580_v17  ;;  %v11850_v43 = vand.u32 4294901760, %v1711_v28  ;;  %v16588_v23 = vand.u32 4294901760, %v16396_v25  ;;  %3254 = vmatpush1.msra.mxu1 %v16589_v45  ;;  %16590 = vst [vmem:[#allocation38_spill] sm:$0xff] %v11862_v38  ;;  %v1705_v17 = vld [vmem:[%s15445_s2 + $0x308] sm:$0xff]  ;;  %v16592_v25 = vand.u32 4294901760, %v16397_v41  ;;  %16594 = vst [vmem:[#allocation40_spill] sm:$0xff] %v11879_v26  ;;  %v11893_v45 = vsub.f32 %v1713_v2, %v11837_v54 }
 0x298   :  { %16577 = vst [vmem:[#allocation112_spill] sm:$0xff] %v11818_v36  ;;  %v11832_v31 = vsub.f32 %v11709_v52, %v16581_v53  ;;  %16582 = vst [vmem:[#allocation116_spill] sm:$0xff] %v11835_v22  ;;  %v11848_v53 = vsub.f32 %v1717_v12, %v11790_v0  ;;  %v1707_v52 = vld [vmem:[%s15445_s2 + $0x318] sm:$0xff]  ;;  %v11864_v12 = vand.u32 4294901760, %v1710_v13  ;;  %3628 = vmatprep.mubr.f32.mxu1 %v11507_v37  ;;  %v11881_v14 = vand.u32 4294901760, %v1708_v49  ;;  %v1704_v63 = vld [vmem:[%s15445_s2 + $0x300] sm:$0xff] }
 0x299   :  { %16587 = vst [vmem:[#allocation6_spill] sm:$0xff] %v11850_v43  ;;  %2927 = vmatpush2.msra.mxu0 %v16588_v23  ;;  %v11875_v23 = vsub.f32 %v11754_v58, %v16593_v50  ;;  %v16596_v37 = vand.u32 4294901760, %v11533_v30  ;;  %v16597_v41 = vand.u32 4294901760, %v16398_v56  ;;  %16598 = vst [vmem:[#allocation42_spill] sm:$0xff] %v11893_v45  ;;  %v11895_v1 = vand.u32 4294901760, %v1707_v52 }
 0x29a   :  { %16586 = vst [vmem:[#allocation119_spill] sm:$0xff] %v11848_v53  ;;  %16591 = vst [vmem:[#allocation51_spill] sm:$0xff] %v11864_v12  ;;  %2931 = vmatprep.subr.mxu0 %v16592_v25  ;;  %v16600_v58 = vand.u32 4294901760, %v11577_v57  ;;  %v11903_v56 = vsub.f32 %v1711_v28, %v11850_v43  ;;  %v11905_v30 = vand.u32 4294901760, %v1705_v17  ;;  %v1798_v2 = vld [vmem:[%s15445_s2 + $0x5f0] sm:$0x1] }
 0x29b   :  { %16595 = vst [vmem:[#allocation53_spill] sm:$0xff] %v11881_v14  ;;  %3260 = vmatprep.subr.mxu1 %v16596_v37  ;;  %2935 = vmatpush2.msra.mxu0 %v16597_v41  ;;  %16599 = vst [vmem:[#allocation55_spill] sm:$0xff] %v11895_v1  ;;  %v16604_v41 = vand.u32 4294901760, %v11618_v4  ;;  %v16605_v57 = vand.u32 4294901760, %v16400_v46  ;;  %v11923_v25 = vand.u32 4294901760, %v1704_v63  ;;  %v16610_v46 = vand.u32 4294901760, %v16401_v7 }
 0x29c   :  { %3266 = vmatpush1.msra.mxu1 %v16600_v58  ;;  %2939 = vmatprep.subr.mxu0 %v16601_v32  ;;  %16602 = vst [vmem:[#allocation44_spill] sm:$0xff] %v11903_v56  ;;  %16603 = vst [vmem:[#allocation57_spill] sm:$0xff] %v11905_v30  ;;  %v11917_v58 = vsub.f32 %v11805_v10, %v16606_v33  ;;  %v11921_v32 = vsub.f32 %v1710_v13, %v11864_v12  ;;  %v1797_v4 = vld [vmem:[%s15445_s2 + $0x5e8] sm:$0x1]  ;;  %v16611_v33 = vand.u32 4294901760, %v11818_v36 }
 0x29d   :  { %3272 = vmatprep.subr.mxu1 %v16604_v41  ;;  %2943 = vmatpush2.msra.mxu0 %v16605_v57  ;;  %16608 = vst [vmem:[#allocation59_spill] sm:$0xff] %v11923_v25  ;;  %v16609_v41 = vand.u32 4294901760, %v11635_v39  ;;  %v15799_v13 = vand.u32 4294901760, %v11879_v26  ;;  %v11940_v37 = vsub.f32 %v1708_v49, %v11881_v14  ;;  %v16613_v50 = vand.u32 4294901760, %v11647_v3 }
 0x29e   :  { %16607 = vst [vmem:[#allocation46_spill] sm:$0xff] %v11921_v32  ;;  %2947 = vmatprep.subr.mxu0 %v16610_v46  ;;  %v11936_v28 = vsub.f32 %v11818_v36, %v16611_v33  ;;  %v16614_v39 = vand.u32 4294901760, %v16402_v61  ;;  %v16615_v7 = vand.u32 4294901760, %v11835_v22  ;;  %v15801_v46 = vand.u32 4294901760, %v11893_v45  ;;  %v1783_v36 = vld [vmem:[%s15445_s2 + $0x578] sm:$0xff] }
 0x29f   :  { %3278 = vmatpush1.msra.mxu1 %v16609_v41  ;;  %16612 = vst [vmem:[#allocation48_spill] sm:$0xff] %v11940_v37  ;;  %v11953_v33 = vsub.f32 %v1707_v52, %v11895_v1  ;;  %v1809_v57 = vsel %vm1804_vm3, %v1798_v2, 0  ;;  %v16617_v49 = vand.u32 4294901760, %v11664_v60  ;;  %v16618_v61 = vand.u32 4294901760, %v11848_v53 }
 0x2a0   :  { %3284 = vmatprep.subr.mxu1 %v16613_v50  ;;  %2951 = vmatpush2.msra.mxu0 %v16614_v39  ;;  %v11949_v41 = vsub.f32 %v11835_v22, %v16615_v7  ;;  %v11966_v39 = vsub.f32 %v1705_v17, %v11905_v30  ;;  %v1806_v52 = vsel %vm1804_vm3, %v1797_v4, 0  ;;  %v16620_v2 = vand.u32 4294901760, %v11690_v29  ;;  %v1795_v17 = vld [vmem:[%s15445_s2 + $0x5d8] sm:$0xff]  ;;  %v1785_v22 = vld [vmem:[%s15445_s2 + $0x588] sm:$0xff] }
 0x2a1   :  { %16616 = vst [vmem:[#allocation124_spill] sm:$0xff] %v11953_v33  ;;  %3290 = vmatpush1.msra.mxu1 %v16617_v49  ;;  %2955 = vmatmul.mubr.f32.vlgmr.msra.gmra.mxu0 %v16584_v48  ;;  %v11962_v3 = vsub.f32 %v11848_v53, %v16618_v61  ;;  %v16621_v7 = vand.u32 4294901760, %v11862_v38  ;;  %v11980_v50 = vsub.f32 %v1704_v63, %v11923_v25  ;;  %v1794_v63 = vld [vmem:[%s15445_s2 + $0x5d0] sm:$0xff]  ;;  %v16624_v60 = vand.u32 4294901760, %v11705_v42 }
 0x2a2   :  { %16619 = vst [vmem:[#allocation61_spill] sm:$0xff] %v11966_v39  ;;  %3099 = vmatprep.subr.mxu0 %v11402_v6  ;;  %3296 = vmatprep.subr.mxu1 %v16620_v2  ;;  %v11991_v4 = vsub.f32 %v11879_v26, %v15799_v13  ;;  %v12006_v13 = vsub.f32 %v11893_v45, %v15801_v46  ;;  %v12009_v61 = vand.u32 4294901760, %v1806_v52  ;;  %v16626_v42 = vand.u32 4294901760, %v11721_v16  ;;  %v1791_v45 = vld [vmem:[%s15445_s2 + $0x5b8] sm:$0xff]  ;;  %v1789_v26 = vld [vmem:[%s15445_s2 + $0x5a8] sm:$0xff]  ;;  %v1786_v53 = vld [vmem:[%s15445_s2 + $0x590] sm:$0xff] }
 0x2a3   :  { %v11976_v49 = vsub.f32 %v11862_v38, %v16621_v7  ;;  %16622 = vst [vmem:[#allocation49_spill] sm:$0xff] %v11980_v50  ;;  %3101 = vmatpush1.msra.mxu0 %v11410_v19  ;;  %3231 = vmatprep.mubr.f32.mxu0 %v11731_v51  ;;  %v11994_v7 = vand.u32 4294901760, %v1809_v57  ;;  %v1792_v51 = vld [vmem:[%s15445_s2 + $0x5c0] sm:$0xff]  ;;  %v16627_v29 = vand.u32 4294901760, %v11903_v56  ;;  %v12024_v48 = vand.u32 4294901760, %v1795_v17 }
 0x2a4   :  { %3302 = vmatpush1.msra.mxu1 %v16624_v60  ;;  %3103 = vmatprep.subr.mxu0 %v11418_v24  ;;  %16625 = vst [vmem:[#allocation52_spill] sm:$0xff] %v12009_v61  ;;  %v16629_v16 = vand.u32 4294901760, %v11736_v18  ;;  %v16630_v60 = vand.u32 4294901760, %v11921_v32  ;;  %v16632_v18 = vand.u32 4294901760, %v11751_v9  ;;  %v1788_v38 = vld [vmem:[%s15445_s2 + $0x5a0] sm:$0xff]  ;;  %v16636_v9 = vand.u32 4294901760, %v11768_v27 }
 0x2a5   :  { %16623 = vst [vmem:[#allocation63_spill] sm:$0xff] %v11994_v7  ;;  %3308 = vmatprep.subr.mxu1 %v16626_v42  ;;  %3105 = vmatpush1.msra.mxu0 %v11439_v5  ;;  %v12021_v46 = vsub.f32 %v11903_v56, %v16627_v29  ;;  %16628 = vst [vmem:[#allocation66_spill] sm:$0xff] %v12024_v48  ;;  %v12039_v56 = vand.u32 4294901760, %v1794_v63  ;;  %v16633_v42 = vand.u32 4294901760, %v11940_v37  ;;  %v16640_v27 = vand.u32 4294901760, %v11783_v59 }
 0x2a6   :  { %3314 = vmatpush1.msra.mxu1 %v16629_v16  ;;  %3107 = vmatprep.subr.mxu0 %v11464_v35  ;;  %v12036_v29 = vsub.f32 %v11921_v32, %v16630_v60  ;;  %v12054_v2 = vsub.f32 %v1809_v57, %v11994_v7  ;;  %v12056_v32 = vand.u32 4294901760, %v1792_v51  ;;  %v16637_v16 = vand.u32 4294901760, %v11953_v33 }
 0x2a7   :  { %16631 = vst [vmem:[#allocation54_spill] sm:$0xff] %v12039_v56  ;;  %3320 = vmatprep.subr.mxu1 %v16632_v18  ;;  %3109 = vmatpush1.msra.mxu0 %v11475_v15  ;;  %v12051_v60 = vsub.f32 %v11940_v37, %v16633_v42  ;;  %v12071_v57 = vsub.f32 %v1806_v52, %v12009_v61  ;;  %v12073_v37 = vand.u32 4294901760, %v1791_v45  ;;  %v16641_v18 = vand.u32 4294901760, %v11966_v39 }
 0x2a8   :  { %16634 = vst [vmem:[#allocation67_spill] sm:$0xff] %v12054_v2  ;;  %16635 = vst [vmem:[#allocation56_spill] sm:$0xff] %v12056_v32  ;;  %3326 = vmatpush1.msra.mxu1 %v16636_v9  ;;  %3111 = vmatprep.subr.mxu0 %v11481_v55  ;;  %v12068_v42 = vsub.f32 %v11953_v33, %v16637_v16  ;;  %v12088_v52 = vsub.f32 %v1795_v17, %v12024_v48  ;;  %v12090_v33 = vand.u32 4294901760, %v1789_v26  ;;  %v16671_v55 = vld [vmem:[#allocation39_spill] sm:$0xff] }
 0x2a9   :  { %16638 = vst [vmem:[#allocation69_spill] sm:$0xff] %v12071_v57  ;;  %16639 = vst [vmem:[#allocation58_spill] sm:$0xff] %v12073_v37  ;;  %3332 = vmatprep.subr.mxu1 %v16640_v27  ;;  %3113 = vmatpush1.msra.mxu0 %v11494_v62  ;;  %v12085_v16 = vsub.f32 %v11966_v39, %v16641_v18  ;;  %v16644_v59 = vand.u32 4294901760, %v11788_v11  ;;  %v16645_v9 = vand.u32 4294901760, %v11980_v50  ;;  %v12107_v39 = vand.u32 4294901760, %v1788_v38  ;;  %v1780_v27 = vld [vmem:[%s15445_s2 + $0x560] sm:$0xff] }
 0x2aa   :  { %16642 = vst [vmem:[#allocation71_spill] sm:$0xff] %v12088_v52  ;;  %16643 = vst [vmem:[#allocation60_spill] sm:$0xff] %v12090_v33  ;;  %3115 = vmatprep.subr.mxu0 %v11522_v34  ;;  %v12105_v17 = vsub.f32 %v1794_v63, %v12039_v56  ;;  %v16648_v11 = vand.u32 4294901760, %v11802_v44  ;;  %v12120_v63 = vand.u32 4294901760, %v1786_v53  ;;  %v16651_v10 = vand.u32 4294901760, %v11832_v31  ;;  %v1777_v31 = vld [vmem:[%s15445_s2 + $0x548] sm:$0xff] }
 0x2ab   :  { %3338 = vmatpush1.msra.mxu1 %v16644_v59  ;;  %v12102_v18 = vsub.f32 %v11980_v50, %v16645_v9  ;;  %16647 = vst [vmem:[#allocation62_spill] sm:$0xff] %v12107_v39  ;;  %3117 = vmatpush1.msra.mxu0 %v11538_v20  ;;  %v12118_v9 = vsub.f32 %v1792_v51, %v12056_v32  ;;  %v1782_v50 = vld [vmem:[%s15445_s2 + $0x570] sm:$0xff]  ;;  %v12133_v51 = vand.u32 4294901760, %v1785_v22  ;;  %v16654_v20 = vand.u32 4294901760, %v11875_v23  ;;  %v1776_v34 = vld [vmem:[%s15445_s2 + $0x540] sm:$0xff] }
 0x2ac   :  { %16646 = vst [vmem:[#allocation73_spill] sm:$0xff] %v12105_v17  ;;  %3344 = vmatprep.subr.mxu1 %v16648_v11  ;;  %16650 = vst [vmem:[#allocation64_spill] sm:$0xff] %v12120_v63  ;;  %3119 = vmatprep.subr.mxu0 %v11550_v40  ;;  %v12131_v59 = vsub.f32 %v1791_v45, %v12073_v37  ;;  %v12144_v44 = vsub.f32 %v1789_v26, %v12090_v33  ;;  %v12146_v45 = vand.u32 4294901760, %v1783_v36  ;;  %v1779_v11 = vld [vmem:[%s15445_s2 + $0x558] sm:$0xff] }
 0x2ad   :  { %16649 = vst [vmem:[#allocation75_spill] sm:$0xff] %v12118_v9  ;;  %3350 = vmatpush1.msra.mxu1 %v16651_v10  ;;  %16653 = vst [vmem:[#allocation65_spill] sm:$0xff] %v12133_v51  ;;  %3121 = vmatpush1.msra.mxu0 %v11563_v47  ;;  %v16657_v40 = vand.u32 4294901760, %v11917_v58  ;;  %v12157_v10 = vsub.f32 %v1788_v38, %v12107_v39  ;;  %v12159_v26 = vand.u32 4294901760, %v1782_v50  ;;  %v16660_v47 = vand.u32 4294901760, %v11936_v28  ;;  %v16661_v58 = vld [vmem:[#allocation24_spill] sm:$0xff] }
 0x2ae   :  { %16652 = vst [vmem:[#allocation77_spill] sm:$0xff] %v12131_v59  ;;  %3356 = vmatprep.subr.mxu1 %v16654_v20  ;;  %16655 = vst [vmem:[#allocation79_spill] sm:$0xff] %v12144_v44  ;;  %3123 = vmatprep.subr.mxu0 %v11583_v8  ;;  %v12174_v38 = vsub.f32 %v1786_v53, %v12120_v63  ;;  %v12176_v8 = vand.u32 4294901760, %v1780_v27  ;;  %v16666_v28 = vld [vmem:[#allocation26_spill] sm:$0xff]  ;;  %v12191_v53 = vsub.f32 %v1785_v22, %v12133_v51 }
 0x2af   :  { %16656 = vst [vmem:[#allocation68_spill] sm:$0xff] %v12146_v45  ;;  %3362 = vmatpush1.msra.mxu1 %v16657_v40  ;;  %16658 = vst [vmem:[#allocation82_spill] sm:$0xff] %v12157_v10  ;;  %3125 = vmatpush1.msra.mxu0 %v16661_v58  ;;  %v16662_v40 = vand.u32 4294901760, %v12054_v2  ;;  %v16667_v58 = vand.u32 4294901760, %v12071_v57  ;;  %v16670_v62 = vand.u32 4294901760, %v11962_v3  ;;  %v12207_v23 = vand.u32 4294901760, %v1777_v31 }
 0x2b0   :  { %16659 = vst [vmem:[#allocation70_spill] sm:$0xff] %v12159_v26  ;;  %3368 = vmatprep.subr.mxu1 %v16660_v47  ;;  %16663 = vst [vmem:[#allocation83_spill] sm:$0xff] %v12174_v38  ;;  %v16665_v47 = vand.u32 4294901760, %v11949_v41  ;;  %3127 = vmatprep.subr.mxu0 %v16666_v28  ;;  %v16672_v41 = vand.u32 4294901760, %v12088_v52  ;;  %v16675_v22 = vand.u32 4294901760, %v11976_v49  ;;  %v16676_v28 = vld [vmem:[#allocation30_spill] sm:$0xff] }
 0x2b1   :  { %v12170_v20 = vsub.f32 %v12054_v2, %v16662_v40  ;;  %16664 = vst [vmem:[#allocation72_spill] sm:$0xff] %v12176_v8  ;;  %v12187_v40 = vsub.f32 %v12071_v57, %v16667_v58  ;;  %16668 = vst [vmem:[#allocation85_spill] sm:$0xff] %v12191_v53  ;;  %v12193_v2 = vand.u32 4294901760, %v1779_v11  ;;  %3129 = vmatpush1.msra.mxu0 %v16671_v55  ;;  %v12221_v58 = vand.u32 4294901760, %v1776_v34  ;;  %v16681_v55 = vld [vmem:[#allocation45_spill] sm:$0xff] }
 0x2b2   :  { %3374 = vmatpush1.msra.mxu1 %v16665_v47  ;;  %v12201_v47 = vsub.f32 %v12088_v52, %v16672_v41  ;;  %v12205_v57 = vsub.f32 %v1783_v36, %v12146_v45  ;;  %16674 = vst [vmem:[#allocation76_spill] sm:$0xff] %v12207_v23  ;;  %3131 = vmatprep.subr.mxu0 %v16676_v28  ;;  %v16680_v36 = vand.u32 4294901760, %v11991_v4 }
 0x2b3   :  { %16669 = vst [vmem:[#allocation74_spill] sm:$0xff] %v12193_v2  ;;  %3380 = vmatprep.subr.mxu1 %v16670_v62  ;;  %v16677_v62 = vand.u32 4294901760, %v12105_v17  ;;  %v12219_v52 = vsub.f32 %v1782_v50, %v12159_v26  ;;  %16679 = vst [vmem:[#allocation78_spill] sm:$0xff] %v12221_v58  ;;  %3133 = vmatpush1.msra.mxu0 %v16681_v55  ;;  %v3439_v49 = vand.u32 4294901760, %v12170_v20  ;;  %v16684_v50 = vand.u32 4294901760, %v12006_v13 }
 0x2b4   :  { %16673 = vst [vmem:[#allocation87_spill] sm:$0xff] %v12205_v57  ;;  %3386 = vmatpush1.msra.mxu1 %v16675_v22  ;;  %v16682_v22 = vand.u32 4294901760, %v12118_v9  ;;  %v12234_v41 = vsub.f32 %v1780_v27, %v12176_v8  ;;  %v3445_v4 = vand.u32 4294901760, %v12187_v40  ;;  %v1774_v27 = vld [vmem:[%s15445_s2 + $0x530] sm:$0xff]  ;;  %v16688_v13 = vand.u32 4294901760, %v12021_v46 }
 0x2b5   :  { %v12215_v3 = vsub.f32 %v12105_v17, %v16677_v62  ;;  %16678 = vst [vmem:[#allocation89_spill] sm:$0xff] %v12219_v52  ;;  %3392 = vmatprep.subr.mxu1 %v16680_v36  ;;  %v16685_v17 = vld [vmem:[#allocation50_spill] sm:$0xff]  ;;  %v16686_v36 = vand.u32 4294901760, %v12131_v59  ;;  %v3451_v40 = vand.u32 4294901760, %v12201_v47  ;;  %v16690_v62 = vand.u32 4294901760, %v12144_v44 }
 0x2b6   :  { %v12230_v28 = vsub.f32 %v12118_v9, %v16682_v22  ;;  %16683 = vst [vmem:[#allocation91_spill] sm:$0xff] %v12234_v41  ;;  %3398 = vmatpush1.msra.mxu1 %v16684_v50  ;;  %3135 = vmatprep.subr.mxu0 %v16685_v17  ;;  %v12247_v9 = vsub.f32 %v1779_v11, %v12193_v2  ;;  %v16689_v50 = vld [vmem:[#allocation100_spill] sm:$0xff]  ;;  %v16692_v46 = vand.u32 4294901760, %v12036_v29  ;;  %v16696_v29 = vand.u32 4294901760, %v12051_v60  ;;  %v1765_v17 = vld [vmem:[%s15445_s2 + $0x4e8] sm:$0xff] }
 0x2b7   :  { %v12243_v20 = vsub.f32 %v12131_v59, %v16686_v36  ;;  %3404 = vmatprep.subr.mxu1 %v16688_v13  ;;  %3137 = vmatpush1.msra.mxu0 %v16689_v50  ;;  %v12259_v36 = vsub.f32 %v12144_v44, %v16690_v62  ;;  %v12263_v11 = vsub.f32 %v1777_v31, %v12207_v23  ;;  %v1773_v59 = vld [vmem:[%s15445_s2 + $0x528] sm:$0xff]  ;;  %v16693_v13 = vld [vmem:[#allocation104_spill] sm:$0xff]  ;;  %v3457_v47 = vand.u32 4294901760, %v12215_v3 }
 0x2b8   :  { %16687 = vst [vmem:[#allocation80_spill] sm:$0xff] %v12247_v9  ;;  %3410 = vmatpush1.msra.mxu1 %v16692_v46  ;;  %3139 = vmatprep.subr.mxu0 %v16693_v13  ;;  %v16694_v50 = vand.u32 4294901760, %v12157_v10  ;;  %v12279_v31 = vsub.f32 %v1776_v34, %v12221_v58  ;;  %v1771_v44 = vld [vmem:[%s15445_s2 + $0x518] sm:$0xff]  ;;  %v16697_v46 = vld [vmem:[#allocation106_spill] sm:$0xff]  ;;  %v3463_v3 = vand.u32 4294901760, %v12230_v28  ;;  %v16698_v13 = vand.u32 4294901760, %v12174_v38 }
 0x2b9   :  { %16691 = vst [vmem:[#allocation93_spill] sm:$0xff] %v12263_v11  ;;  %3416 = vmatprep.subr.mxu1 %v16696_v29  ;;  %3141 = vmatpush1.msra.mxu0 %v16697_v46  ;;  %v12294_v34 = vand.u32 4294901760, %v1774_v27  ;;  %v16700_v60 = vand.u32 4294901760, %v12068_v42  ;;  %v3469_v28 = vand.u32 4294901760, %v12243_v20  ;;  %v16701_v29 = vand.u32 4294901760, %v12191_v53  ;;  %v1768_v46 = vld [vmem:[%s15445_s2 + $0x500] sm:$0xff] }
 0x2ba   :  { %v12275_v62 = vsub.f32 %v12157_v10, %v16694_v50  ;;  %16695 = vst [vmem:[#allocation81_spill] sm:$0xff] %v12279_v31  ;;  %v12291_v50 = vsub.f32 %v12174_v38, %v16698_v13  ;;  %v1770_v10 = vld [vmem:[%s15445_s2 + $0x510] sm:$0xff]  ;;  %3143 = vmatprep.subr.mxu0 %v11790_v0  ;;  %v12309_v38 = vand.u32 4294901760, %v1773_v59  ;;  %v16703_v42 = vand.u32 4294901760, %v12085_v16  ;;  %v1767_v0 = vld [vmem:[%s15445_s2 + $0x4f8] sm:$0xff] }
 0x2bb   :  { %16699 = vst [vmem:[#allocation95_spill] sm:$0xff] %v12294_v34  ;;  %3422 = vmatpush1.msra.mxu1 %v16700_v60  ;;  %v12306_v13 = vsub.f32 %v12191_v53, %v16701_v29  ;;  %3145 = vmatpush1.msra.mxu0 %v11807_v21  ;;  %v3475_v20 = vand.u32 4294901760, %v12259_v36  ;;  %v16704_v60 = vand.u32 4294901760, %v12205_v57  ;;  %v12324_v53 = vand.u32 4294901760, %v1771_v44 }
 0x2bc   :  { %16702 = vst [vmem:[#allocation84_spill] sm:$0xff] %v12309_v38  ;;  %3428 = vmatprep.subr.mxu1 %v16703_v42  ;;  %v16706_v16 = vand.u32 4294901760, %v12102_v18  ;;  %v16707_v42 = vld [vmem:[#allocation113_spill] sm:$0xff]  ;;  %v3481_v36 = vand.u32 4294901760, %v12275_v62  ;;  %v16708_v21 = vand.u32 4294901760, %v12219_v52  ;;  %v3487_v18 = vand.u32 4294901760, %v12291_v50 }
 0x2bd   :  { %v12321_v29 = vsub.f32 %v12205_v57, %v16704_v60  ;;  %16705 = vst [vmem:[#allocation98_spill] sm:$0xff] %v12324_v53  ;;  %3147 = vmatprep.subr.mxu0 %v16707_v42  ;;  %v12339_v57 = vand.u32 4294901760, %v1770_v10  ;;  %v16710_v62 = vand.u32 4294901760, %v12234_v41  ;;  %v12354_v22 = vand.u32 4294901760, %v1768_v46 }
 0x2be   :  { %3434 = vmatpush1.msra.mxu1 %v16706_v16  ;;  %v12336_v60 = vsub.f32 %v12219_v52, %v16708_v21  ;;  %3149 = vmatpush1.msra.mxu0 %v11837_v54  ;;  %v12352_v21 = vsub.f32 %v1774_v27, %v12294_v34  ;;  %v1764_v52 = vld [vmem:[%s15445_s2 + $0x4e0] sm:$0xff]  ;;  %v16713_v50 = vand.u32 4294901760, %v12247_v9  ;;  %v12369_v27 = vand.u32 4294901760, %v1767_v0 }
 0x2bf   :  { %16709 = vst [vmem:[#allocation86_spill] sm:$0xff] %v12339_v57  ;;  %3440 = vmatprep.subr.mxu1 %v3439_v49  ;;  %v12349_v16 = vsub.f32 %v12234_v41, %v16710_v62  ;;  %16712 = vst [vmem:[#allocation88_spill] sm:$0xff] %v12354_v22  ;;  %3151 = vmatprep.subr.mxu0 %v11850_v43  ;;  %v3493_v49 = vand.u32 4294901760, %v12306_v13  ;;  %v12367_v62 = vsub.f32 %v1773_v59, %v12309_v38  ;;  %v1762_v41 = vld [vmem:[%s15445_s2 + $0x4d0] sm:$0xff] }
 0x2c0   :  { %16711 = vst [vmem:[#allocation99_spill] sm:$0xff] %v12352_v21  ;;  %3446 = vmatpush2.msra.mxu1 %v3445_v4  ;;  %v12364_v54 = vsub.f32 %v12247_v9, %v16713_v50  ;;  %3153 = vmatpush1.msra.mxu0 %v11864_v12  ;;  %v3499_v4 = vand.u32 4294901760, %v12321_v29  ;;  %v16715_v13 = vand.u32 4294901760, %v12263_v11  ;;  %v12382_v50 = vsub.f32 %v1771_v44, %v12324_v53  ;;  %v1761_v9 = vld [vmem:[%s15445_s2 + $0x4c8] sm:$0xff] }
 0x2c1   :  { %16714 = vst [vmem:[#allocation101_spill] sm:$0xff] %v12367_v62  ;;  %3452 = vmatprep.subr.mxu1 %v3451_v40  ;;  %v12384_v59 = vand.u32 4294901760, %v1765_v17  ;;  %3155 = vmatprep.subr.mxu0 %v11881_v14  ;;  %v3505_v40 = vand.u32 4294901760, %v12336_v60  ;;  %v16717_v29 = vand.u32 4294901760, %v12279_v31  ;;  %v12399_v44 = vand.u32 4294901760, %v1764_v52 }
 0x2c2   :  { %v12379_v43 = vsub.f32 %v12263_v11, %v16715_v13  ;;  %16716 = vst [vmem:[#allocation90_spill] sm:$0xff] %v12382_v50  ;;  %3458 = vmatpush2.msra.mxu1 %v3457_v47  ;;  %v12397_v13 = vsub.f32 %v1770_v10, %v12339_v57  ;;  %v1759_v11 = vld [vmem:[%s15445_s2 + $0x4b8] sm:$0xff]  ;;  %3157 = vmatpush1.msra.mxu0 %v11895_v1  ;;  %v3511_v47 = vand.u32 4294901760, %v12349_v16  ;;  %v1758_v10 = vld [vmem:[%s15445_s2 + $0x4b0] sm:$0xff]  ;;  %v12421_v60 = vand.u32 4294901760, %v1761_v9  ;;  %v1752_v1 = vld [vmem:[%s15445_s2 + $0x480] sm:$0xff] }
 0x2c3   :  { %v12394_v12 = vsub.f32 %v12279_v31, %v16717_v29  ;;  %3464 = vmatprep.subr.mxu1 %v3463_v3  ;;  %v12408_v14 = vsub.f32 %v1768_v46, %v12354_v22  ;;  %v12410_v29 = vand.u32 4294901760, %v1762_v41  ;;  %3159 = vmatprep.subr.mxu0 %v11905_v30  ;;  %v3517_v3 = vand.u32 4294901760, %v12364_v54  ;;  %v1756_v46 = vld [vmem:[%s15445_s2 + $0x4a0] sm:$0xff] }
 0x2c4   :  { %3470 = vmatpush2.msra.mxu1 %v3469_v28  ;;  %v12419_v16 = vsub.f32 %v1767_v0, %v12369_v27  ;;  %3161 = vmatpush1.msra.mxu0 %v11923_v25  ;;  %v3523_v28 = vand.u32 4294901760, %v12379_v43  ;;  %v12430_v54 = vsub.f32 %v1765_v17, %v12384_v59  ;;  %v12432_v31 = vand.u32 4294901760, %v1759_v11  ;;  %v1755_v0 = vld [vmem:[%s15445_s2 + $0x498] sm:$0xff]  ;;  %v1753_v17 = vld [vmem:[%s15445_s2 + $0x488] sm:$0xff] }
 0x2c5   :  { %3476 = vmatprep.subr.mxu1 %v3475_v20  ;;  %3163 = vmatprep.subr.mxu0 %v11994_v7  ;;  %v3529_v20 = vand.u32 4294901760, %v12394_v12  ;;  %v12441_v43 = vsub.f32 %v1764_v52, %v12399_v44  ;;  %v12443_v30 = vand.u32 4294901760, %v1758_v10  ;;  %v12454_v25 = vsub.f32 %v1762_v41, %v12410_v29 }
 0x2c6   :  { %16718 = vst [vmem:[#allocation103_spill] sm:$0xff] %v12419_v16  ;;  %16719 = vst [vmem:[#allocation92_spill] sm:$0xff] %v12432_v31  ;;  %3482 = vmatpush2.msra.mxu1 %v3481_v36  ;;  %3165 = vmatpush2.msra.mxu0 %v12009_v61  ;;  %v16720_v36 = vand.u32 4294901760, %v12352_v21  ;;  %v12456_v52 = vand.u32 4294901760, %v1756_v46  ;;  %v12467_v12 = vsub.f32 %v1761_v9, %v12421_v60  ;;  %v12469_v41 = vand.u32 4294901760, %v1755_v0 }
 0x2c7   :  { %3488 = vmatprep.subr.mxu1 %v3487_v18  ;;  %16721 = vst [vmem:[#allocation105_spill] sm:$0xff] %v12454_v25  ;;  %3167 = vmatprep.subr.mxu0 %v12024_v48  ;;  %v16722_v18 = vand.u32 4294901760, %v12367_v62  ;;  %v12477_v42 = vsub.f32 %v1759_v11, %v12432_v31  ;;  %v16724_v9 = vand.u32 4294901760, %v12397_v13  ;;  %v16725_v48 = vand.u32 4294901760, %v12408_v14 }
 0x2c8   :  { %v3534_v7 = vsub.f32 %v12352_v21, %v16720_v36  ;;  %3494 = vmatpush2.msra.mxu1 %v3493_v49  ;;  %3169 = vmatpush2.msra.mxu0 %v12039_v56  ;;  %v16723_v21 = vand.u32 4294901760, %v12382_v50 }
 0x2c9   :  { %v3540_v61 = vsub.f32 %v12367_v62, %v16722_v18  ;;  %3500 = vmatprep.subr.mxu1 %v3499_v4  ;;  %v12479_v18 = vand.u32 4294901760, %v1753_v17  ;;  %3171 = vmatprep.subr.mxu0 %v12056_v32  ;;  %v3552_v4 = vsub.f32 %v12397_v13, %v16724_v9  ;;  %v12487_v62 = vsub.f32 %v1758_v10, %v12443_v30 }
 0x2ca   :  { %v3546_v49 = vsub.f32 %v12382_v50, %v16723_v21  ;;  %3506 = vmatpush2.msra.mxu1 %v3505_v40  ;;  %v12489_v21 = vand.u32 4294901760, %v1752_v1  ;;  %3173 = vmatpush2.msra.mxu0 %v12073_v37  ;;  %v3535_v11 = vand.u32 4294901760, %v3534_v7  ;;  %v3558_v40 = vsub.f32 %v12408_v14, %v16725_v48 }
 0x2cb   :  { %3512 = vmatprep.subr.mxu1 %v3511_v47  ;;  %v12497_v32 = vsub.f32 %v1756_v46, %v12456_v52  ;;  %3175 = vmatprep.subr.mxu0 %v12090_v33  ;;  %v3541_v10 = vand.u32 4294901760, %v3540_v61  ;;  %v16726_v9 = vand.u32 4294901760, %v12419_v16  ;;  %v12505_v7 = vsub.f32 %v1755_v0, %v12469_v41 }
 0x2cc   :  { %3518 = vmatpush2.msra.mxu1 %v3517_v3  ;;  %3177 = vmatpush2.msra.mxu0 %v12107_v39  ;;  %v3547_v48 = vand.u32 4294901760, %v3546_v49  ;;  %v16727_v46 = vand.u32 4294901760, %v12430_v54  ;;  %v12513_v61 = vsub.f32 %v1753_v17, %v12479_v18  ;;  %v16728_v0 = vand.u32 4294901760, %v12441_v43 }
 0x2cd   :  { %v3564_v47 = vsub.f32 %v12419_v16, %v16726_v9  ;;  %3524 = vmatprep.subr.mxu1 %v3523_v28  ;;  %3179 = vmatprep.subr.mxu0 %v12120_v63  ;;  %v3553_v9 = vand.u32 4294901760, %v3552_v4  ;;  %v12521_v49 = vsub.f32 %v1752_v1, %v12489_v21  ;;  %v16729_v17 = vand.u32 4294901760, %v12454_v25 }
 0x2ce   :  { %v3570_v3 = vsub.f32 %v12430_v54, %v16727_v46  ;;  %3530 = vmatpush2.msra.mxu1 %v3529_v20  ;;  %v3576_v28 = vsub.f32 %v12441_v43, %v16728_v0  ;;  %3181 = vmatpush2.msra.mxu0 %v12133_v51  ;;  %v3559_v46 = vand.u32 4294901760, %v3558_v40  ;;  %v16730_v0 = vand.u32 4294901760, %v12467_v12 }
 0x2cf   :  { %3536 = vmatprep.subr.mxu1 %v3535_v11  ;;  %v3582_v20 = vsub.f32 %v12454_v25, %v16729_v17  ;;  %3183 = vmatprep.subr.mxu0 %v12146_v45  ;;  %v3565_v4 = vand.u32 4294901760, %v3564_v47  ;;  %v16731_v40 = vand.u32 4294901760, %v12477_v42 }
 0x2d0   :  { %3542 = vmatpush2.msra.mxu1 %v3541_v10  ;;  %v3588_v36 = vsub.f32 %v12467_v12, %v16730_v0  ;;  %3185 = vmatpush2.msra.mxu0 %v12159_v26  ;;  %v3571_v11 = vand.u32 4294901760, %v3570_v3  ;;  %v16732_v10 = vld [vmem:[#allocation125_spill] sm:$0xff]  ;;  %v3577_v47 = vand.u32 4294901760, %v3576_v28  ;;  %v16733_v0 = vand.u32 4294901760, %v12487_v62 }
 0x2d1   :  { %3548 = vmatprep.subr.mxu1 %v3547_v48  ;;  %v3594_v17 = vsub.f32 %v12477_v42, %v16731_v40  ;;  %v1606_v25 = vmax.f32 %v16732_v10, 0.0  ;;  %3187 = vmatprep.subr.mxu0 %v12176_v8  ;;  %v3583_v3 = vand.u32 4294901760, %v3582_v20  ;;  %v16734_v40 = vand.u32 4294901760, %v12497_v32 }
 0x2d2   :  { %3554 = vmatpush2.msra.mxu1 %v3553_v9  ;;  %v3600_v1 = vsub.f32 %v12487_v62, %v16733_v0  ;;  %3189 = vmatpush2.msra.mxu0 %v12193_v2  ;;  %v3589_v9 = vand.u32 4294901760, %v3588_v36  ;;  %v16735_v28 = vand.u32 4294901760, %v12505_v7  ;;  %v16738_v36 = vand.u32 4294901760, %v12521_v49 }
 0x2d3   :  { %3560 = vmatprep.subr.mxu1 %v3559_v46  ;;  %v3606_v50 = vsub.f32 %v12497_v32, %v16734_v40  ;;  %3191 = vmatprep.subr.mxu0 %v12207_v23  ;;  %v3595_v0 = vand.u32 4294901760, %v3594_v17  ;;  %v16736_v46 = vand.u32 4294901760, %v12513_v61  ;;  %v12556_v48 = vand.u32 4294901760, %v1606_v25 }
 0x2d4   :  { %3566 = vmatpush2.msra.mxu1 %v3565_v4  ;;  %v3612_v10 = vsub.f32 %v12505_v7, %v16735_v28  ;;  %3193 = vmatpush2.msra.mxu0 %v12221_v58  ;;  %v3601_v4 = vand.u32 4294901760, %v3600_v1  ;;  %v3624_v40 = vsub.f32 %v12521_v49, %v16738_v36  ;;  %v16748_v36 = vld [vmem:[#allocation31_spill] sm:$0xff] }
 0x2d5   :  { %3572 = vmatprep.subr.mxu1 %v3571_v11  ;;  %v3618_v20 = vsub.f32 %v12513_v61, %v16736_v46  ;;  %16737 = vst [vmem:[#allocation94_spill] sm:$0xff] %v12556_v48  ;;  %3195 = vmatprep.subr.mxu0 %v12294_v34  ;;  %v3607_v11 = vand.u32 4294901760, %v3606_v50  ;;  %v16745_v46 = vld [vmem:[#allocation18_spill] sm:$0xff] }
 0x2d6   :  { %3578 = vmatpush2.msra.mxu1 %v3577_v47  ;;  %3197 = vmatpush2.msra.mxu0 %v12309_v38  ;;  %v3613_v17 = vand.u32 4294901760, %v3612_v10  ;;  %v12566_v47 = vsub.f32 %v1606_v25, %v12556_v48  ;;  %v3625_v1 = vand.u32 4294901760, %v3624_v40  ;;  %v16741_v25 = vld [vmem:[#allocation28_spill] sm:$0xff]  ;;  %v16743_v10 = vld [vmem:[#allocation21_spill] sm:$0xff] }
 0x2d7   :  { %3584 = vmatprep.subr.mxu1 %v3583_v3  ;;  %3199 = vmatprep.subr.mxu0 %v12324_v53  ;;  %v3619_v28 = vand.u32 4294901760, %v3618_v20  ;;  %v16746_v20 = vld [vmem:[#allocation15_spill] sm:$0xff]  ;;  %v16749_v40 = vld [vmem:[#allocation16_spill] sm:$0xff] }
 0x2d8   :  { %3590 = vmatpush2.msra.mxu1 %v3589_v9  ;;  %3201 = vmatpush2.msra.mxu0 %v12339_v57  ;;  %16739 = vst [vmem:[#allocation107_spill] sm:$0xff] %v12566_v47  ;;  %v12573_v50 = vand.u32 4294901760, %v12566_v47 }
 0x2d9   :  { %3596 = vmatprep.subr.mxu1 %v3595_v0  ;;  %3203 = vmatprep.subr.mxu0 %v12354_v22  ;;  %v16744_v0 = vld [vmem:[#allocation13_spill] sm:$0xff] }
 0x2da   :  { %3602 = vmatpush2.msra.mxu1 %v3601_v4  ;;  %3205 = vmatpush2.msra.mxu0 %v12369_v27  ;;  %16740 = vst [vmem:[#allocation109_spill] sm:$0xff] %v12573_v50  ;;  %v3235_v3 = vsub.f32 %v12566_v47, %v12573_v50  ;;  %v16747_v4 = vld [vmem:[#allocation11_spill] sm:$0xff] }
 0x2db   :  { %3608 = vmatprep.subr.mxu1 %v3607_v11  ;;  %3207 = vmatprep.subr.mxu0 %v12384_v59  ;;  %v16750_v11 = vld [vmem:[#allocation19_spill] sm:$0xff] }
 0x2dc   :  { %3614 = vmatpush2.msra.mxu1 %v3613_v17  ;;  %3209 = vmatpush2.msra.mxu0 %v12399_v44  ;;  %v12592_v9 = vand.u32 4294901760, %v3235_v3  ;;  %v16751_v17 = vld [vmem:[#allocation17_spill] sm:$0xff]  ;;  %v16754_v3 = vld [vmem:[#allocation14_spill] sm:$0xff] }
 0x2dd   :  { %3620 = vmatprep.subr.mxu1 %v3619_v28  ;;  %3211 = vmatprep.subr.mxu0 %v12410_v29  ;;  %v16752_v28 = vld [vmem:[#allocation12_spill] sm:$0xff] }
 0x2de   :  { %3626 = vmatpush2.msra.mxu1 %v3625_v1  ;;  %3213 = vmatpush2.msra.mxu0 %v12421_v60  ;;  %16742 = vst [vmem:[#allocation97_spill] sm:$0xff] %v12592_v9  ;;  %v16753_v1 = vld [vmem:[#allocation20_spill] sm:$0xff] }
 0x2df   :  { %3630 = vmatmul.mubr.f32.vlgmr.msra.gmra.mxu1 %v12556_v48  ;;  %3840 = vmatprep.subr.mxu1 %v11402_v6  ;;  %v16757_v48 = vld [vmem:[#allocation24_spill] sm:$0xff] }
 0x2e0   :  { %3842 = vmatpush1.msra.mxu1 %v11410_v19  ;;  %3970 = vmatprep.mubr.f32.mxu1 %v16741_v25  ;;  %v16756_v25 = vld [vmem:[#allocation25_spill] sm:$0xff] }
 0x2e1   :  { %3215 = vmatprep.subr.mxu0 %v12432_v31  ;;  %3844 = vmatprep.subr.mxu1 %v11418_v24 }
 0x2e2   :  { %3217 = vmatpush2.msra.mxu0 %v12443_v30  ;;  %3846 = vmatpush1.msra.mxu1 %v11439_v5 }
 0x2e3   :  { %3219 = vmatprep.subr.mxu0 %v12456_v52  ;;  %3848 = vmatprep.subr.mxu1 %v11464_v35 }
 0x2e4   :  { %3221 = vmatpush2.msra.mxu0 %v12469_v41  ;;  %3850 = vmatpush1.msra.mxu1 %v11475_v15 }
 0x2e5   :  { %3223 = vmatprep.subr.mxu0 %v12479_v18  ;;  %3852 = vmatprep.subr.mxu1 %v16743_v10 }
 0x2e6   :  { %3225 = vmatpush2.msra.mxu0 %v12489_v21  ;;  %3854 = vmatpush1.msra.mxu1 %v16744_v0 }
 0x2e7   :  { %3237 = vmatmul.mubr.f32.vlgmr.msra.gmra.mxu0 %v12592_v9  ;;  %3638 = vmatprep.subr.mxu0 %v16745_v46  ;;  %v16755_v9 = vld [vmem:[#allocation22_spill] sm:$0xff] }
 0x2e8   :  { %3856 = vmatprep.subr.mxu1 %v16746_v20  ;;  %3641 = vmatpush1.msra.mxu0 %v16747_v4  ;;  %v16758_v4 = vld [vmem:[#allocation27_spill] sm:$0xff] }
 0x2e9   :  { %3830 = vmatprep.mubr.f32.mxu0 %v16748_v36  ;;  %3858 = vmatpush1.msra.mxu1 %v16749_v40  ;;  %v16759_v36 = vld [vmem:[#allocation26_spill] sm:$0xff]  ;;  %v16760_v40 = vld [vmem:[#allocation29_spill] sm:$0xff] }
 0x2ea   :  { %3644 = vmatprep.subr.mxu0 %v16750_v11  ;;  %3860 = vmatprep.subr.mxu1 %v16751_v17  ;;  %v16761_v11 = vld [vmem:[#allocation39_spill] sm:$0xff]  ;;  %v16762_v17 = vld [vmem:[#allocation34_spill] sm:$0xff] }
 0x2eb   :  { %3647 = vmatpush1.msra.mxu0 %v16752_v28  ;;  %3862 = vmatpush1.msra.mxu1 %v16753_v1  ;;  %v16763_v28 = vld [vmem:[#allocation30_spill] sm:$0xff]  ;;  %v16764_v1 = vld [vmem:[#allocation35_spill] sm:$0xff] }
 0x2ec   :  { %3650 = vmatprep.subr.mxu0 %v16754_v3  ;;  %3864 = vmatprep.subr.mxu1 %v16755_v9  ;;  %v16765_v9 = vld [vmem:[#allocation37_spill] sm:$0xff] }
 0x2ed   :  { %3653 = vmatpush1.msra.mxu0 %v16756_v25  ;;  %3866 = vmatpush1.msra.mxu1 %v16757_v48  ;;  %v16766_v25 = vld [vmem:[#allocation50_spill] sm:$0xff]  ;;  %v16767_v48 = vld [vmem:[#allocation41_spill] sm:$0xff] }
 0x2ee   :  { %3656 = vmatprep.subr.mxu0 %v16758_v4  ;;  %3868 = vmatprep.subr.mxu1 %v16759_v36  ;;  %v16768_v4 = vld [vmem:[#allocation100_spill] sm:$0xff]  ;;  %v16769_v36 = vld [vmem:[#allocation43_spill] sm:$0xff] }
 0x2ef   :  { %3659 = vmatpush1.msra.mxu0 %v16760_v40  ;;  %3870 = vmatpush1.msra.mxu1 %v16761_v11  ;;  %v16770_v40 = vld [vmem:[#allocation104_spill] sm:$0xff] }
 0x2f0   :  { %3662 = vmatprep.subr.mxu0 %v16762_v17  ;;  %3872 = vmatprep.subr.mxu1 %v16763_v28  ;;  %v16771_v11 = vld [vmem:[#allocation32_spill] sm:$0xff]  ;;  %v16772_v17 = vld [vmem:[#allocation106_spill] sm:$0xff]  ;;  %v16773_v28 = vld [vmem:[#allocation33_spill] sm:$0xff] }
 0x2f1   :  { %3665 = vmatpush1.msra.mxu0 %v16764_v1  ;;  %3874 = vmatpush1.msra.mxu1 %v16681_v55  ;;  %v16774_v1 = vld [vmem:[#allocation5_spill] sm:$0xff]  ;;  %v16775_v55 = vld [vmem:[#allocation47_spill] sm:$0xff] }
 0x2f2   :  { %3668 = vmatprep.subr.mxu0 %v16765_v9  ;;  %3876 = vmatprep.subr.mxu1 %v16766_v25  ;;  %v16776_v9 = vld [vmem:[#allocation110_spill] sm:$0xff]  ;;  %v16777_v25 = vld [vmem:[#allocation36_spill] sm:$0xff] }
 0x2f3   :  { %3671 = vmatpush1.msra.mxu0 %v16767_v48  ;;  %3878 = vmatpush1.msra.mxu1 %v16768_v4  ;;  %v16778_v48 = vld [vmem:[#allocation113_spill] sm:$0xff]  ;;  %v16779_v4 = vld [vmem:[#allocation96_spill] sm:$0xff] }
 0x2f4   :  { %3674 = vmatprep.subr.mxu0 %v16769_v36  ;;  %3880 = vmatprep.subr.mxu1 %v16770_v40  ;;  %v16780_v36 = vld [vmem:[#allocation118_spill] sm:$0xff] }
 0x2f5   :  { %3677 = vmatpush1.msra.mxu0 %v16771_v11  ;;  %3882 = vmatpush1.msra.mxu1 %v16772_v17  ;;  %v16781_v40 = vld [vmem:[#allocation102_spill] sm:$0xff]  ;;  %v16783_v17 = vld [vmem:[#allocation108_spill] sm:$0xff] }
 0x2f6   :  { %3680 = vmatprep.subr.mxu0 %v16773_v28  ;;  %3884 = vmatprep.subr.mxu1 %v16774_v1  ;;  %v16782_v11 = vld [vmem:[#allocation6_spill] sm:$0xff]  ;;  %v16784_v28 = vld [vmem:[#allocation51_spill] sm:$0xff]  ;;  %v16785_v1 = vld [vmem:[#allocation112_spill] sm:$0xff] }
 0x2f7   :  { %3683 = vmatpush1.msra.mxu0 %v16775_v55  ;;  %3886 = vmatpush1.msra.mxu1 %v16776_v9  ;;  %v16786_v55 = vld [vmem:[#allocation53_spill] sm:$0xff]  ;;  %v16787_v9 = vld [vmem:[#allocation116_spill] sm:$0xff] }
 0x2f8   :  { %3686 = vmatprep.subr.mxu0 %v16777_v25  ;;  %3888 = vmatprep.subr.mxu1 %v16778_v48  ;;  %v16788_v25 = vld [vmem:[#allocation55_spill] sm:$0xff] }
 0x2f9   :  { %3689 = vmatpush1.msra.mxu0 %v16779_v4  ;;  %3890 = vmatpush1.msra.mxu1 %v16780_v36  ;;  %v16789_v48 = vld [vmem:[#allocation119_spill] sm:$0xff]  ;;  %v16790_v4 = vld [vmem:[#allocation57_spill] sm:$0xff]  ;;  %v16791_v36 = vld [vmem:[#allocation38_spill] sm:$0xff] }
 0x2fa   :  { %3692 = vmatprep.subr.mxu0 %v16781_v40  ;;  %3892 = vmatprep.subr.mxu1 %v16782_v11  ;;  %v16792_v40 = vld [vmem:[#allocation59_spill] sm:$0xff]  ;;  %v16793_v11 = vld [vmem:[#allocation40_spill] sm:$0xff] }
 0x2fb   :  { %3695 = vmatpush1.msra.mxu0 %v16783_v17  ;;  %3894 = vmatpush1.msra.mxu1 %v16784_v28  ;;  %v16794_v17 = vld [vmem:[#allocation63_spill] sm:$0xff]  ;;  %v16795_v28 = vld [vmem:[#allocation42_spill] sm:$0xff] }
 0x2fc   :  { %3698 = vmatprep.subr.mxu0 %v16785_v1  ;;  %3896 = vmatprep.subr.mxu1 %v16786_v55  ;;  %v16796_v1 = vld [vmem:[#allocation52_spill] sm:$0xff] }
 0x2fd   :  { %3701 = vmatpush1.msra.mxu0 %v16787_v9  ;;  %3898 = vmatpush1.msra.mxu1 %v16788_v25  ;;  %v16797_v55 = vld [vmem:[#allocation44_spill] sm:$0xff]  ;;  %v16798_v9 = vld [vmem:[#allocation66_spill] sm:$0xff] }
 0x2fe   :  { %3704 = vmatprep.subr.mxu0 %v16789_v48  ;;  %3900 = vmatprep.subr.mxu1 %v16790_v4  ;;  %v16799_v25 = vld [vmem:[#allocation46_spill] sm:$0xff]  ;;  %v16800_v4 = vld [vmem:[#allocation48_spill] sm:$0xff] }
 0x2ff   :  { %3707 = vmatpush1.msra.mxu0 %v16791_v36  ;;  %3902 = vmatpush1.msra.mxu1 %v16792_v40  ;;  %v16801_v36 = vld [vmem:[#allocation56_spill] sm:$0xff] }
 0x300   :  { %3710 = vmatprep.subr.mxu0 %v16793_v11  ;;  %3904 = vmatprep.subr.mxu1 %v16794_v17  ;;  %v16802_v40 = vld [vmem:[#allocation124_spill] sm:$0xff]  ;;  %v16803_v17 = vld [vmem:[#allocation61_spill] sm:$0xff] }
 0x301   :  { %3713 = vmatpush1.msra.mxu0 %v16795_v28  ;;  %3906 = vmatpush2.msra.mxu1 %v16796_v1  ;;  %v16804_v1 = vld [vmem:[#allocation49_spill] sm:$0xff] }
 0x302   :  { %3716 = vmatprep.subr.mxu0 %v16797_v55  ;;  %3908 = vmatprep.subr.mxu1 %v16798_v9  ;;  %v16805_v9 = vld [vmem:[#allocation67_spill] sm:$0xff] }
 0x303   :  { %3719 = vmatpush1.msra.mxu0 %v16799_v25  ;;  %3910 = vmatpush2.msra.mxu1 %v12039_v56  ;;  %v16806_v56 = vld [vmem:[#allocation69_spill] sm:$0xff] }
 0x304   :  { %3722 = vmatprep.subr.mxu0 %v16800_v4  ;;  %3912 = vmatprep.subr.mxu1 %v16801_v36  ;;  %v16807_v36 = vld [vmem:[#allocation71_spill] sm:$0xff] }
 0x305   :  { %3725 = vmatpush1.msra.mxu0 %v16802_v40  ;;  %3914 = vmatpush2.msra.mxu1 %v12073_v37  ;;  %v16808_v37 = vld [vmem:[#allocation73_spill] sm:$0xff] }
 0x306   :  { %3728 = vmatprep.subr.mxu0 %v16803_v17  ;;  %3916 = vmatprep.subr.mxu1 %v12090_v33  ;;  %v16809_v33 = vld [vmem:[#allocation75_spill] sm:$0xff] }
 0x307   :  { %3731 = vmatpush1.msra.mxu0 %v16804_v1  ;;  %3918 = vmatpush2.msra.mxu1 %v12107_v39  ;;  %v16810_v39 = vld [vmem:[#allocation77_spill] sm:$0xff] }
 0x308   :  { %3734 = vmatprep.subr.mxu0 %v16805_v9  ;;  %3920 = vmatprep.subr.mxu1 %v12120_v63  ;;  %v16811_v63 = vld [vmem:[#allocation79_spill] sm:$0xff] }
 0x309   :  { %3737 = vmatpush2.msra.mxu0 %v16806_v56  ;;  %3922 = vmatpush2.msra.mxu1 %v12133_v51  ;;  %v16812_v51 = vld [vmem:[#allocation82_spill] sm:$0xff] }
 0x30a   :  { %3740 = vmatprep.subr.mxu0 %v16807_v36  ;;  %3924 = vmatprep.subr.mxu1 %v12146_v45  ;;  %v16813_v45 = vld [vmem:[#allocation83_spill] sm:$0xff] }
 0x30b   :  { %3743 = vmatpush2.msra.mxu0 %v16808_v37  ;;  %3926 = vmatpush2.msra.mxu1 %v12159_v26  ;;  %v16814_v26 = vld [vmem:[#allocation85_spill] sm:$0xff] }
 0x30c   :  { %3746 = vmatprep.subr.mxu0 %v16809_v33  ;;  %3928 = vmatprep.subr.mxu1 %v12176_v8  ;;  %v16815_v8 = vld [vmem:[#allocation87_spill] sm:$0xff] }
 0x30d   :  { %3749 = vmatpush2.msra.mxu0 %v16810_v39  ;;  %3930 = vmatpush2.msra.mxu1 %v12193_v2  ;;  %v16816_v2 = vld [vmem:[#allocation89_spill] sm:$0xff] }
 0x30e   :  { %3752 = vmatprep.subr.mxu0 %v16811_v63  ;;  %3932 = vmatprep.subr.mxu1 %v12207_v23  ;;  %v16817_v23 = vld [vmem:[#allocation91_spill] sm:$0xff] }
 0x30f   :  { %3755 = vmatpush2.msra.mxu0 %v16812_v51  ;;  %3934 = vmatpush2.msra.mxu1 %v12221_v58  ;;  %v16818_v58 = vld [vmem:[#allocation80_spill] sm:$0xff] }
 0x310   :  { %3758 = vmatprep.subr.mxu0 %v16813_v45  ;;  %3936 = vmatprep.subr.mxu1 %v12294_v34  ;;  %v16819_v34 = vld [vmem:[#allocation93_spill] sm:$0xff] }
 0x311   :  { %3761 = vmatpush2.msra.mxu0 %v16814_v26  ;;  %3938 = vmatpush2.msra.mxu1 %v12309_v38  ;;  %v16820_v38 = vld [vmem:[#allocation81_spill] sm:$0xff] }
 0x312   :  { %3764 = vmatprep.subr.mxu0 %v16815_v8  ;;  %3940 = vmatprep.subr.mxu1 %v12324_v53  ;;  %v16821_v53 = vld [vmem:[#allocation99_spill] sm:$0xff] }
 0x313   :  { %3767 = vmatpush2.msra.mxu0 %v16816_v2  ;;  %3942 = vmatpush2.msra.mxu1 %v12339_v57  ;;  %v16822_v57 = vld [vmem:[#allocation101_spill] sm:$0xff] }
 0x314   :  { %3770 = vmatprep.subr.mxu0 %v16817_v23  ;;  %3944 = vmatprep.subr.mxu1 %v12354_v22  ;;  %v16823_v22 = vld [vmem:[#allocation90_spill] sm:$0xff] }
 0x315   :  { %3773 = vmatpush2.msra.mxu0 %v16818_v58  ;;  %3946 = vmatpush2.msra.mxu1 %v12369_v27 }
 0x316   :  { %3776 = vmatprep.subr.mxu0 %v16819_v34  ;;  %3948 = vmatprep.subr.mxu1 %v12384_v59 }
 0x317   :  { %3779 = vmatpush2.msra.mxu0 %v16820_v38  ;;  %3950 = vmatpush2.msra.mxu1 %v12399_v44 }
 0x318   :  { %3782 = vmatprep.subr.mxu0 %v16821_v53  ;;  %3952 = vmatprep.subr.mxu1 %v12410_v29 }
 0x319   :  { %3785 = vmatpush2.msra.mxu0 %v16822_v57  ;;  %3954 = vmatpush2.msra.mxu1 %v12421_v60 }
 0x31a   :  { %3788 = vmatprep.subr.mxu0 %v16823_v22  ;;  %3956 = vmatprep.subr.mxu1 %v12432_v31  ;;  %v16824_v31 = vld [vmem:[#allocation105_spill] sm:$0xff] }
 0x31b   :  { %3791 = vmatpush2.msra.mxu0 %v12397_v13  ;;  %3958 = vmatpush2.msra.mxu1 %v12443_v30 }
 0x31c   :  { %3794 = vmatprep.subr.mxu0 %v12408_v14  ;;  %3960 = vmatprep.subr.mxu1 %v12456_v52 }
 0x31d   :  { %3797 = vmatpush2.msra.mxu0 %v12419_v16  ;;  %3962 = vmatpush2.msra.mxu1 %v12469_v41  ;;  %v16825_v16 = vld [vmem:[#allocation23_spill] sm:$0xff] }
 0x31e   :  { %3800 = vmatprep.subr.mxu0 %v12430_v54  ;;  %3964 = vmatprep.subr.mxu1 %v12479_v18 }
 0x31f   :  { %3803 = vmatpush2.msra.mxu0 %v12441_v43  ;;  %3966 = vmatpush2.msra.mxu1 %v12489_v21 }
 0x320   :  { %3806 = vmatprep.subr.mxu0 %v16824_v31  ;;  %3974 = vmatmul.mubr.f32.vlgmr.msra.gmra.mxu1 %v12573_v50 }
 0x321   :  { %4246 = vmatprep.subr.mxu1 %v11402_v6  ;;  %3809 = vmatpush2.msra.mxu0 %v12467_v12  ;;  %v16826_v6 = vand.u32 4294901760, %v16745_v46  ;;  %v16836_v46 = vand.u32 4294901760, %v16754_v3 }
 0x322   :  { %4248 = vmatpush1.msra.mxu1 %v11410_v19  ;;  %4374 = vmatprep.mubr.f32.mxu1 %v16825_v16  ;;  %v16827_v19 = vld [vmem:[#allocation11_spill] sm:$0xff] }
 0x323   :  { %3812 = vmatprep.subr.mxu0 %v12477_v42  ;;  %4250 = vmatprep.subr.mxu1 %v11418_v24  ;;  %v16828_v24 = vand.u32 4294901760, %v16827_v19 }
 0x324   :  { %3815 = vmatpush2.msra.mxu0 %v12487_v62  ;;  %4252 = vmatpush1.msra.mxu1 %v11439_v5  ;;  %v16829_v5 = vld [vmem:[#allocation16_spill] sm:$0xff] }
 0x325   :  { %3818 = vmatprep.subr.mxu0 %v12497_v32  ;;  %4254 = vmatprep.subr.mxu1 %v11464_v35  ;;  %v16830_v35 = vld [vmem:[#allocation19_spill] sm:$0xff] }
 0x326   :  { %3821 = vmatpush2.msra.mxu0 %v12505_v7  ;;  %4256 = vmatpush1.msra.mxu1 %v11475_v15  ;;  %v16831_v15 = vand.u32 4294901760, %v16830_v35 }
 0x327   :  { %3824 = vmatprep.subr.mxu0 %v12513_v61  ;;  %4258 = vmatprep.subr.mxu1 %v16743_v10  ;;  %v16832_v10 = vld [vmem:[#allocation17_spill] sm:$0xff] }
 0x328   :  { %3827 = vmatpush2.msra.mxu0 %v12521_v49  ;;  %4260 = vmatpush1.msra.mxu1 %v16744_v0  ;;  %v16833_v0 = vld [vmem:[#allocation12_spill] sm:$0xff] }
 0x329   :  { %3833 = vmatmul.mubr.f32.vlgmr.msra.gmra.mxu0 %v12566_v47  ;;  %3983 = vmatprep.subr.mxu0 %v16826_v6  ;;  %v16834_v50 = vand.u32 4294901760, %v16833_v0  ;;  %v16835_v47 = vld [vmem:[#allocation20_spill] sm:$0xff]  ;;  %v16838_v6 = vld [vmem:[#allocation25_spill] sm:$0xff] }
 0x32a   :  { %4262 = vmatprep.subr.mxu1 %v16746_v20  ;;  %3987 = vmatpush1.msra.mxu0 %v16828_v24  ;;  %v16837_v20 = vld [vmem:[#allocation22_spill] sm:$0xff]  ;;  %v16839_v19 = vand.u32 4294901760, %v16838_v6  ;;  %v16840_v24 = vld [vmem:[#allocation24_spill] sm:$0xff] }
 0x32b   :  { %4237 = vmatprep.mubr.f32.mxu0 %v16825_v16  ;;  %4264 = vmatpush1.msra.mxu1 %v16829_v5  ;;  %v16841_v5 = vld [vmem:[#allocation27_spill] sm:$0xff]  ;;  %v16967_v16 = vand.u32 4294901760, %v12467_v12 }
 0x32c   :  { %3991 = vmatprep.subr.mxu0 %v16831_v15  ;;  %4266 = vmatprep.subr.mxu1 %v16832_v10  ;;  %v16842_v35 = vand.u32 4294901760, %v16841_v5  ;;  %v16843_v15 = vld [vmem:[#allocation26_spill] sm:$0xff]  ;;  %v16844_v10 = vld [vmem:[#allocation29_spill] sm:$0xff] }
 0x32d   :  { %3995 = vmatpush1.msra.mxu0 %v16834_v50  ;;  %4268 = vmatpush1.msra.mxu1 %v16835_v47  ;;  %v16845_v0 = vand.u32 4294901760, %v16844_v10  ;;  %v16846_v50 = vld [vmem:[#allocation39_spill] sm:$0xff]  ;;  %v16847_v47 = vld [vmem:[#allocation34_spill] sm:$0xff] }
 0x32e   :  { %3999 = vmatprep.subr.mxu0 %v16836_v46  ;;  %4270 = vmatprep.subr.mxu1 %v16837_v20  ;;  %v16848_v3 = vand.u32 4294901760, %v16847_v47  ;;  %v16849_v46 = vld [vmem:[#allocation30_spill] sm:$0xff]  ;;  %v16850_v20 = vld [vmem:[#allocation35_spill] sm:$0xff] }
 0x32f   :  { %4003 = vmatpush1.msra.mxu0 %v16839_v19  ;;  %4272 = vmatpush1.msra.mxu1 %v16840_v24  ;;  %v16851_v6 = vand.u32 4294901760, %v16850_v20  ;;  %v16852_v19 = vld [vmem:[#allocation45_spill] sm:$0xff] }
 0x330   :  { %4007 = vmatprep.subr.mxu0 %v16842_v35  ;;  %4274 = vmatprep.subr.mxu1 %v16843_v15  ;;  %v16853_v24 = vld [vmem:[#allocation37_spill] sm:$0xff]  ;;  %v16855_v35 = vld [vmem:[#allocation50_spill] sm:$0xff] }
 0x331   :  { %4011 = vmatpush1.msra.mxu0 %v16845_v0  ;;  %4276 = vmatpush1.msra.mxu1 %v16846_v50  ;;  %v16854_v5 = vand.u32 4294901760, %v16853_v24  ;;  %v16856_v15 = vld [vmem:[#allocation41_spill] sm:$0xff]  ;;  %v16858_v0 = vld [vmem:[#allocation100_spill] sm:$0xff]  ;;  %v16859_v50 = vld [vmem:[#allocation43_spill] sm:$0xff] }
 0x332   :  { %4015 = vmatprep.subr.mxu0 %v16848_v3  ;;  %4278 = vmatprep.subr.mxu1 %v16849_v46  ;;  %v16857_v10 = vand.u32 4294901760, %v16856_v15  ;;  %v16860_v47 = vand.u32 4294901760, %v16859_v50  ;;  %v16861_v3 = vld [vmem:[#allocation104_spill] sm:$0xff] }
 0x333   :  { %4019 = vmatpush1.msra.mxu0 %v16851_v6  ;;  %4280 = vmatpush1.msra.mxu1 %v16852_v19  ;;  %v16862_v46 = vld [vmem:[#allocation32_spill] sm:$0xff]  ;;  %v16864_v6 = vld [vmem:[#allocation106_spill] sm:$0xff]  ;;  %v16865_v19 = vld [vmem:[#allocation33_spill] sm:$0xff] }
 0x334   :  { %4023 = vmatprep.subr.mxu0 %v16854_v5  ;;  %4282 = vmatprep.subr.mxu1 %v16855_v35  ;;  %v16863_v20 = vand.u32 4294901760, %v16862_v46  ;;  %v16866_v24 = vand.u32 4294901760, %v16865_v19  ;;  %v16867_v5 = vld [vmem:[#allocation5_spill] sm:$0xff]  ;;  %v16868_v35 = vld [vmem:[#allocation47_spill] sm:$0xff] }
 0x335   :  { %4027 = vmatpush1.msra.mxu0 %v16857_v10  ;;  %4284 = vmatpush1.msra.mxu1 %v16858_v0  ;;  %v16869_v15 = vand.u32 4294901760, %v16868_v35  ;;  %v16870_v10 = vld [vmem:[#allocation110_spill] sm:$0xff]  ;;  %v16871_v0 = vld [vmem:[#allocation36_spill] sm:$0xff] }
 0x336   :  { %4031 = vmatprep.subr.mxu0 %v16860_v47  ;;  %4286 = vmatprep.subr.mxu1 %v16861_v3  ;;  %v16872_v50 = vand.u32 4294901760, %v16871_v0  ;;  %v16873_v47 = vld [vmem:[#allocation113_spill] sm:$0xff]  ;;  %v16874_v3 = vld [vmem:[#allocation96_spill] sm:$0xff] }
 0x337   :  { %4035 = vmatpush1.msra.mxu0 %v16863_v20  ;;  %4288 = vmatpush1.msra.mxu1 %v16864_v6  ;;  %v16875_v46 = vand.u32 4294901760, %v16874_v3  ;;  %v16876_v20 = vld [vmem:[#allocation118_spill] sm:$0xff] }
 0x338   :  { %4039 = vmatprep.subr.mxu0 %v16866_v24  ;;  %4290 = vmatprep.subr.mxu1 %v16867_v5  ;;  %v16877_v6 = vld [vmem:[#allocation102_spill] sm:$0xff]  ;;  %v16880_v5 = vld [vmem:[#allocation108_spill] sm:$0xff] }
 0x339   :  { %4043 = vmatpush1.msra.mxu0 %v16869_v15  ;;  %4292 = vmatpush1.msra.mxu1 %v16870_v10  ;;  %v16878_v19 = vand.u32 4294901760, %v16877_v6  ;;  %v16879_v24 = vld [vmem:[#allocation6_spill] sm:$0xff]  ;;  %v16881_v35 = vand.u32 4294901760, %v16880_v5  ;;  %v16882_v15 = vld [vmem:[#allocation51_spill] sm:$0xff]  ;;  %v16883_v10 = vld [vmem:[#allocation112_spill] sm:$0xff] }
 0x33a   :  { %4047 = vmatprep.subr.mxu0 %v16872_v50  ;;  %4294 = vmatprep.subr.mxu1 %v16873_v47  ;;  %v16884_v0 = vand.u32 4294901760, %v16883_v10  ;;  %v16885_v50 = vld [vmem:[#allocation53_spill] sm:$0xff]  ;;  %v16886_v47 = vld [vmem:[#allocation116_spill] sm:$0xff]  ;;  %v16893_v5 = vld [vmem:[#allocation59_spill] sm:$0xff]  ;;  %v16896_v10 = vand.u32 4294901760, %v16795_v28  ;;  %v16904_v28 = vand.u32 4294901760, %v16802_v40 }
 0x33b   :  { %4051 = vmatpush1.msra.mxu0 %v16875_v46  ;;  %4296 = vmatpush1.msra.mxu1 %v16876_v20  ;;  %v16887_v3 = vand.u32 4294901760, %v16886_v47  ;;  %v16888_v46 = vld [vmem:[#allocation55_spill] sm:$0xff]  ;;  %v16889_v20 = vand.u32 4294901760, %v16789_v48  ;;  %v16890_v6 = vld [vmem:[#allocation57_spill] sm:$0xff]  ;;  %v16898_v48 = vand.u32 4294901760, %v16797_v55  ;;  %v16900_v47 = vand.u32 4294901760, %v16799_v25 }
 0x33c   :  { %4055 = vmatprep.subr.mxu0 %v16878_v19  ;;  %4298 = vmatprep.subr.mxu1 %v16879_v24  ;;  %v16891_v19 = vld [vmem:[#allocation38_spill] sm:$0xff]  ;;  %v16906_v55 = vand.u32 4294901760, %v16803_v17  ;;  %v16908_v25 = vand.u32 4294901760, %v16804_v1  ;;  %v1703_v40 = vld [vmem:[%s15445_s2 + $0x2f8] sm:$0xff]  ;;  %v16913_v1 = vld [vmem:[#allocation65_spill] sm:$0xff] }
 0x33d   :  { %4059 = vmatpush1.msra.mxu0 %v16881_v35  ;;  %4300 = vmatpush1.msra.mxu1 %v16882_v15  ;;  %v16892_v24 = vand.u32 4294901760, %v16891_v19  ;;  %v16894_v35 = vand.u32 4294901760, %v16793_v11  ;;  %v16895_v15 = vld [vmem:[#allocation63_spill] sm:$0xff]  ;;  %v16902_v11 = vand.u32 4294901760, %v16800_v4  ;;  %v16909_v19 = vld [vmem:[#allocation62_spill] sm:$0xff]  ;;  %v16910_v4 = vand.u32 4294901760, %v16805_v9 }
 0x33e   :  { %4063 = vmatprep.subr.mxu0 %v16884_v0  ;;  %4302 = vmatprep.subr.mxu1 %v16885_v50  ;;  %v16897_v0 = vld [vmem:[#allocation52_spill] sm:$0xff]  ;;  %v16899_v50 = vld [vmem:[#allocation66_spill] sm:$0xff] }
 0x33f   :  { %4067 = vmatpush1.msra.mxu0 %v16887_v3  ;;  %4304 = vmatpush1.msra.mxu1 %v16888_v46  ;;  %v16901_v3 = vld [vmem:[#allocation54_spill] sm:$0xff]  ;;  %v16903_v46 = vld [vmem:[#allocation56_spill] sm:$0xff] }
 0x340   :  { %4071 = vmatprep.subr.mxu0 %v16889_v20  ;;  %4306 = vmatprep.subr.mxu1 %v16890_v6  ;;  %v16905_v20 = vld [vmem:[#allocation58_spill] sm:$0xff]  ;;  %v16907_v6 = vld [vmem:[#allocation60_spill] sm:$0xff] }
 0x341   :  { %4075 = vmatpush1.msra.mxu0 %v16892_v24  ;;  %4308 = vmatpush1.msra.mxu1 %v16893_v5  ;;  %v16911_v24 = vld [vmem:[#allocation64_spill] sm:$0xff]  ;;  %v16912_v5 = vand.u32 4294901760, %v16806_v56  ;;  %v12847_v56 = vand.u32 4294901760, %v1703_v40 }
 0x342   :  { %4079 = vmatprep.subr.mxu0 %v16894_v35  ;;  %4310 = vmatprep.subr.mxu1 %v16895_v15  ;;  %v1655_v17 = vld [vmem:[%s15445_s2 + $0x178] sm:$0xff]  ;;  %v16914_v35 = vand.u32 4294901760, %v16807_v36  ;;  %v1700_v9 = vld [vmem:[%s15445_s2 + $0x2e0] sm:$0xff]  ;;  %v16918_v36 = vand.u32 4294901760, %v16809_v33  ;;  %v16922_v33 = vand.u32 4294901760, %v16811_v63  ;;  %v1646_v63 = vld [vmem:[%s15445_s2 + $0x130] sm:$0xff] }
 0x343   :  { %4083 = vmatpush1.msra.mxu0 %v16896_v10  ;;  %4312 = vmatpush2.msra.mxu1 %v16897_v0  ;;  %v16915_v15 = vld [vmem:[#allocation68_spill] sm:$0xff]  ;;  %v16916_v10 = vand.u32 4294901760, %v16808_v37  ;;  %v16920_v37 = vand.u32 4294901760, %v16810_v39  ;;  %v16924_v39 = vand.u32 4294901760, %v16812_v51 }
 0x344   :  { %4087 = vmatprep.subr.mxu0 %v16898_v48  ;;  %4314 = vmatprep.subr.mxu1 %v16899_v50  ;;  %v1652_v0 = vld [vmem:[%s15445_s2 + $0x160] sm:$0xff]  ;;  %v16917_v48 = vld [vmem:[#allocation70_spill] sm:$0xff]  ;;  %v12855_v50 = vand.u32 4294901760, %v1655_v17  ;;  %v1691_v51 = vld [vmem:[%s15445_s2 + $0x298] sm:$0xff] }
 0x345   :  { %4091 = vmatpush1.msra.mxu0 %v16900_v47  ;;  %4316 = vmatpush2.msra.mxu1 %v16901_v3  ;;  %v1697_v47 = vld [vmem:[%s15445_s2 + $0x2c8] sm:$0xff]  ;;  %v16919_v3 = vld [vmem:[#allocation72_spill] sm:$0xff] }
 0x346   :  { %4095 = vmatprep.subr.mxu0 %v16902_v11  ;;  %4318 = vmatprep.subr.mxu1 %v16903_v46  ;;  %v12863_v11 = vand.u32 4294901760, %v1700_v9  ;;  %v1649_v46 = vld [vmem:[%s15445_s2 + $0x148] sm:$0xff] }
 0x347   :  { %4099 = vmatpush1.msra.mxu0 %v16904_v28  ;;  %4320 = vmatpush2.msra.mxu1 %v16905_v20  ;;  %v16921_v28 = vld [vmem:[#allocation74_spill] sm:$0xff]  ;;  %v12871_v20 = vand.u32 4294901760, %v1652_v0 }
 0x348   :  { %4103 = vmatprep.subr.mxu0 %v16906_v55  ;;  %4322 = vmatprep.subr.mxu1 %v16907_v6  ;;  %v1694_v55 = vld [vmem:[%s15445_s2 + $0x2b0] sm:$0xff]  ;;  %v16923_v6 = vld [vmem:[#allocation76_spill] sm:$0xff] }
 0x349   :  { %4107 = vmatpush1.msra.mxu0 %v16908_v25  ;;  %4324 = vmatpush2.msra.mxu1 %v16909_v19  ;;  %v12880_v25 = vsub.f32 %v1703_v40, %v12847_v56  ;;  %v12882_v19 = vand.u32 4294901760, %v1697_v47  ;;  %v16927_v40 = vld [vmem:[#allocation95_spill] sm:$0xff] }
 0x34a   :  { %4111 = vmatprep.subr.mxu0 %v16910_v4  ;;  %4326 = vmatprep.subr.mxu1 %v16911_v24  ;;  %v16925_v4 = vld [vmem:[#allocation78_spill] sm:$0xff]  ;;  %v16926_v24 = vand.u32 4294901760, %v16813_v45  ;;  %v1643_v45 = vld [vmem:[%s15445_s2 + $0x118] sm:$0xff] }
 0x34b   :  { %4115 = vmatpush2.msra.mxu0 %v16912_v5  ;;  %4328 = vmatpush2.msra.mxu1 %v16913_v1  ;;  %v12891_v5 = vsub.f32 %v1655_v17, %v12855_v50  ;;  %v12893_v1 = vand.u32 4294901760, %v1649_v46  ;;  %v16929_v17 = vld [vmem:[#allocation84_spill] sm:$0xff] }
 0x34c   :  { %4119 = vmatprep.subr.mxu0 %v16914_v35  ;;  %4330 = vmatprep.subr.mxu1 %v16915_v15  ;;  %v16928_v35 = vand.u32 4294901760, %v16814_v26  ;;  %v12902_v15 = vsub.f32 %v1700_v9, %v12863_v11  ;;  %v1688_v26 = vld [vmem:[%s15445_s2 + $0x280] sm:$0xff]  ;;  %v16932_v9 = vld [vmem:[#allocation98_spill] sm:$0xff] }
 0x34d   :  { %4123 = vmatpush2.msra.mxu0 %v16916_v10  ;;  %4332 = vmatpush2.msra.mxu1 %v16917_v48  ;;  %v12904_v10 = vand.u32 4294901760, %v1694_v55  ;;  %v16930_v48 = vand.u32 4294901760, %v16815_v8  ;;  %v12927_v8 = vand.u32 4294901760, %v1691_v51 }
 0x34e   :  { %4127 = vmatprep.subr.mxu0 %v16918_v36  ;;  %4334 = vmatprep.subr.mxu1 %v16919_v3  ;;  %v12913_v36 = vsub.f32 %v1652_v0, %v12871_v20  ;;  %v12915_v3 = vand.u32 4294901760, %v1646_v63  ;;  %v1640_v0 = vld [vmem:[%s15445_s2 + $0x100] sm:$0xff] }
 0x34f   :  { %4131 = vmatpush2.msra.mxu0 %v16920_v37  ;;  %4336 = vmatpush2.msra.mxu1 %v16921_v28  ;;  %v16933_v37 = vand.u32 4294901760, %v16816_v2  ;;  %v15934_v28 = vand.u32 4294901760, %v12880_v25  ;;  %v12937_v2 = vsub.f32 %v1649_v46, %v12893_v1  ;;  %v1637_v46 = vld [vmem:[%s15445_s2 + $0xe8] sm:$0xff] }
 0x350   :  { %4135 = vmatprep.subr.mxu0 %v16922_v33  ;;  %4338 = vmatprep.subr.mxu1 %v16923_v6  ;;  %16931 = vst [vmem:[#allocation114_spill] sm:$0xff] %v12913_v36  ;;  %v12925_v33 = vsub.f32 %v1697_v47, %v12882_v19  ;;  %v16935_v6 = vld [vmem:[#allocation86_spill] sm:$0xff] }
 0x351   :  { %4139 = vmatpush2.msra.mxu0 %v16924_v39  ;;  %4340 = vmatpush2.msra.mxu1 %v16925_v4  ;;  %v16936_v39 = vand.u32 4294901760, %v16817_v23  ;;  %v15935_v4 = vand.u32 4294901760, %v12891_v5  ;;  %16937 = vst [vmem:[#allocation117_spill] sm:$0xff] %v12937_v2  ;;  %v1685_v47 = vld [vmem:[%s15445_s2 + $0x268] sm:$0xff]  ;;  %v12949_v23 = vsub.f32 %v1694_v55, %v12904_v10  ;;  %v1682_v55 = vld [vmem:[%s15445_s2 + $0x250] sm:$0xff] }
 0x352   :  { %4143 = vmatprep.subr.mxu0 %v16926_v24  ;;  %4342 = vmatprep.subr.mxu1 %v16927_v40  ;;  %16934 = vst [vmem:[#allocation115_spill] sm:$0xff] %v12925_v33  ;;  %v12939_v24 = vand.u32 4294901760, %v1643_v45  ;;  %v16938_v40 = vld [vmem:[#allocation88_spill] sm:$0xff] }
 0x353   :  { %4147 = vmatpush2.msra.mxu0 %v16928_v35  ;;  %4344 = vmatpush2.msra.mxu1 %v16929_v17  ;;  %v16939_v35 = vand.u32 4294901760, %v16818_v58  ;;  %v15936_v17 = vand.u32 4294901760, %v12902_v15  ;;  %16940 = vst [vmem:[#allocation125_spill] sm:$0xff] %v12949_v23  ;;  %v12961_v58 = vsub.f32 %v1646_v63, %v12915_v3  ;;  %v12978_v63 = vsub.f32 %v1691_v51, %v12927_v8 }
 0x354   :  { %4151 = vmatprep.subr.mxu0 %v16930_v48  ;;  %4346 = vmatprep.subr.mxu1 %v16932_v9  ;;  %v12951_v48 = vand.u32 4294901760, %v1688_v26  ;;  %v16941_v9 = vand.u32 4294901760, %v16819_v34  ;;  %v12974_v34 = vsub.f32 %v12880_v25, %v15934_v28  ;;  %v12995_v51 = vsub.f32 %v1643_v45, %v12939_v24 }
 0x355   :  { %4155 = vmatpush2.msra.mxu0 %v16933_v37  ;;  %4348 = vmatpush2.msra.mxu1 %v16935_v6  ;;  %v15937_v37 = vand.u32 4294901760, %v12913_v36  ;;  %16942 = vst [vmem:[#allocation21_spill] sm:$0xff] %v12961_v58  ;;  %v12963_v6 = vand.u32 4294901760, %v1640_v0  ;;  %16944 = vst [vmem:[#allocation13_spill] sm:$0xff] %v12978_v63  ;;  %v16947_v28 = vand.u32 4294901760, %v16822_v57  ;;  %v16949_v45 = vand.u32 4294901760, %v16823_v22 }
 0x356   :  { %4159 = vmatprep.subr.mxu0 %v16936_v39  ;;  %4350 = vmatprep.subr.mxu1 %v16938_v40  ;;  %v16943_v39 = vand.u32 4294901760, %v16820_v38  ;;  %v12980_v40 = vand.u32 4294901760, %v1685_v47  ;;  %v16945_v38 = vand.u32 4294901760, %v16821_v53  ;;  %16946 = vst [vmem:[#allocation18_spill] sm:$0xff] %v12995_v51  ;;  %v13005_v53 = vsub.f32 %v12902_v15, %v15936_v17 }
 0x357   :  { %4163 = vmatpush2.msra.mxu0 %v16939_v35  ;;  %4352 = vmatpush2.msra.mxu1 %v12369_v27  ;;  %v15939_v27 = vand.u32 4294901760, %v12925_v33  ;;  %v1634_v35 = vld [vmem:[%s15445_s2 + $0xd0] sm:$0xff]  ;;  %v13019_v57 = vsub.f32 %v12913_v36, %v15937_v37  ;;  %v4611_v22 = vand.u32 4294901760, %v12974_v34 }
 0x358   :  { %4167 = vmatprep.subr.mxu0 %v16941_v9  ;;  %4354 = vmatprep.subr.mxu1 %v12384_v59  ;;  %v12991_v59 = vsub.f32 %v12891_v5, %v15935_v4  ;;  %v15938_v9 = vand.u32 4294901760, %v12937_v2  ;;  %v13011_v4 = vand.u32 4294901760, %v1682_v55  ;;  %v13025_v17 = vand.u32 4294901760, %v1634_v35 }
 0x359   :  { %4171 = vmatpush2.msra.mxu0 %v16943_v39  ;;  %4356 = vmatpush2.msra.mxu1 %v12399_v44  ;;  %v12997_v39 = vand.u32 4294901760, %v1637_v46  ;;  %v16952_v44 = vand.u32 4294901760, %v12397_v13  ;;  %v13038_v37 = vsub.f32 %v1685_v47, %v12980_v40  ;;  %v1679_v47 = vld [vmem:[%s15445_s2 + $0x238] sm:$0xff] }
 0x35a   :  { %4175 = vmatprep.subr.mxu0 %v16945_v38  ;;  %4358 = vmatprep.subr.mxu1 %v12410_v29  ;;  %v13009_v38 = vsub.f32 %v1688_v26, %v12951_v48  ;;  %v15940_v29 = vand.u32 4294901760, %v12961_v58  ;;  %v16951_v26 = vld [vmem:[#allocation92_spill] sm:$0xff]  ;;  %v4499_v13 = vand.u32 4294901760, %v12991_v59  ;;  %v13047_v34 = vsub.f32 %v12937_v2, %v15938_v9 }
 0x35b   :  { %4179 = vmatpush2.msra.mxu0 %v16947_v28  ;;  %4360 = vmatpush2.msra.mxu1 %v12421_v60  ;;  %v13023_v28 = vsub.f32 %v1640_v0, %v12963_v6  ;;  %v13034_v60 = vsub.f32 %v12925_v33, %v15939_v27  ;;  %16953 = vst [vmem:[#allocation119_spill] sm:$0xff] %v13038_v37  ;;  %v16954_v0 = vand.u32 4294901760, %v12408_v14  ;;  %v16956_v14 = vld [vmem:[#allocation103_spill] sm:$0xff]  ;;  %v4618_v59 = vand.u32 4294901760, %v13005_v53  ;;  %v16965_v27 = vld [vmem:[#allocation94_spill] sm:$0xff] }
 0x35c   :  { %16948 = vst [vmem:[#allocation15_spill] sm:$0xff] %v13009_v38  ;;  %4183 = vmatprep.subr.mxu0 %v16949_v45  ;;  %4362 = vmatprep.subr.mxu1 %v16951_v26  ;;  %v15941_v45 = vand.u32 4294901760, %v12978_v63  ;;  %v13051_v26 = vsub.f32 %v1637_v46, %v12997_v39  ;;  %v13067_v46 = vsub.f32 %v1682_v55, %v13011_v4  ;;  %v4506_v53 = vand.u32 4294901760, %v13019_v57 }
 0x35d   :  { %16950 = vst [vmem:[#allocation14_spill] sm:$0xff] %v13023_v28  ;;  %4187 = vmatpush2.msra.mxu0 %v16952_v44  ;;  %4364 = vmatpush2.msra.mxu1 %v12443_v30  ;;  %v16957_v30 = vand.u32 4294901760, %v16956_v14  ;;  %v1631_v44 = vld [vmem:[%s15445_s2 + $0xb8] sm:$0xff]  ;;  %v13079_v14 = vsub.f32 %v12961_v58, %v15940_v29  ;;  %v13083_v55 = vsub.f32 %v1634_v35, %v13025_v17  ;;  %v13098_v35 = vand.u32 4294901760, %v1679_v47  ;;  %v1628_v29 = vld [vmem:[%s15445_s2 + $0xa0] sm:$0xff]  ;;  %v1610_v58 = vld [vmem:[%s15445_s2 + $0x10] sm:$0xff] }
 0x35e   :  { %4191 = vmatprep.subr.mxu0 %v16954_v0  ;;  %16955 = vst [vmem:[#allocation40_spill] sm:$0xff] %v13051_v26  ;;  %4366 = vmatprep.subr.mxu1 %v12456_v52  ;;  %v16958_v0 = vand.u32 4294901760, %v12949_v23  ;;  %16959 = vst [vmem:[#allocation42_spill] sm:$0xff] %v13067_v46  ;;  %v16960_v52 = vand.u32 4294901760, %v12430_v54  ;;  %v16962_v54 = vand.u32 4294901760, %v12441_v43  ;;  %v13095_v57 = vsub.f32 %v12978_v63, %v15941_v45  ;;  %v1625_v45 = vld [vmem:[%s15445_s2 + $0x88] sm:$0xff] }
 0x35f   :  { %4195 = vmatpush2.msra.mxu0 %v16957_v30  ;;  %4368 = vmatpush2.msra.mxu1 %v12469_v41  ;;  %16961 = vst [vmem:[#allocation44_spill] sm:$0xff] %v13083_v55  ;;  %v4625_v41 = vand.u32 4294901760, %v13034_v60  ;;  %v16963_v43 = vand.u32 4294901760, %v16824_v31  ;;  %v16964_v60 = vand.u32 4294901760, %v12995_v51  ;;  %v1673_v30 = vld [vmem:[%s15445_s2 + $0x208] sm:$0xff] }
 0x360   :  { %v13063_v9 = vsub.f32 %v12949_v23, %v16958_v0  ;;  %4199 = vmatprep.subr.mxu0 %v16960_v52  ;;  %v1676_v0 = vld [vmem:[%s15445_s2 + $0x220] sm:$0xff]  ;;  %4370 = vmatprep.subr.mxu1 %v12479_v18  ;;  %v4513_v18 = vand.u32 4294901760, %v13047_v34  ;;  %v13113_v52 = vand.u32 4294901760, %v1631_v44  ;;  %v16969_v63 = vld [vmem:[#allocation126_spill] sm:$0xff]  ;;  %v4639_v12 = vand.u32 4294901760, %v13095_v57 }
 0x361   :  { %4203 = vmatpush2.msra.mxu0 %v16962_v54  ;;  %4372 = vmatpush2.msra.mxu1 %v12489_v21  ;;  %v13110_v54 = vsub.f32 %v12995_v51, %v16964_v60  ;;  %v16966_v21 = vand.u32 4294901760, %v13009_v38  ;;  %v13126_v60 = vand.u32 4294901760, %v1676_v0 }
 0x362   :  { %4207 = vmatprep.subr.mxu0 %v16963_v43  ;;  %4376 = vmatmul.mubr.f32.vlgmr.msra.gmra.mxu1 %v16965_v27  ;;  %v4632_v31 = vand.u32 4294901760, %v13063_v9  ;;  %v16968_v9 = vand.u32 4294901760, %v13023_v28  ;;  %v13140_v43 = vand.u32 4294901760, %v1628_v29 }
 0x363   :  { %8521 = vmatprep.subr.mxu1 %v4611_v22  ;;  %v13123_v34 = vsub.f32 %v13009_v38, %v16966_v21  ;;  %4211 = vmatpush2.msra.mxu0 %v16967_v16  ;;  %v4520_v22 = vand.u32 4294901760, %v13079_v14  ;;  %v1670_v38 = vld [vmem:[%s15445_s2 + $0x1f0] sm:$0xff]  ;;  %v16970_v16 = vand.u32 4294901760, %v12477_v42  ;;  %v13157_v21 = vand.u32 4294901760, %v1673_v30 }
 0x364   :  { %8522 = vmatpush3.msra.mxu1 %v4499_v13  ;;  %v13137_v51 = vsub.f32 %v13023_v28, %v16968_v9  ;;  %4719 = vmatprep.mubr.f32.mxu1 %v16969_v63  ;;  %v16971_v13 = vand.u32 4294901760, %v13038_v37  ;;  %v13155_v9 = vsub.f32 %v1679_v47, %v13098_v35  ;;  %v1622_v28 = vld [vmem:[%s15445_s2 + $0x70] sm:$0xff]  ;;  %v16973_v42 = vand.u32 4294901760, %v12487_v62 }
 0x365   :  { %4215 = vmatprep.subr.mxu0 %v16970_v16  ;;  %8523 = vmatprep.subr.mxu1 %v4618_v59  ;;  %v4527_v57 = vand.u32 4294901760, %v13110_v54  ;;  %v16974_v16 = vand.u32 4294901760, %v13051_v26  ;;  %v13171_v47 = vsub.f32 %v1631_v44, %v13113_v52  ;;  %v13173_v63 = vand.u32 4294901760, %v1625_v45 }
 0x366   :  { %v13152_v14 = vsub.f32 %v13038_v37, %v16971_v13  ;;  %16972 = vst [vmem:[#allocation46_spill] sm:$0xff] %v13155_v9  ;;  %4219 = vmatpush2.msra.mxu0 %v16973_v42  ;;  %v1667_v37 = vld [vmem:[%s15445_s2 + $0x1d8] sm:$0xff]  ;;  %8524 = vmatpush3.msra.mxu1 %v4506_v53  ;;  %v16976_v62 = vand.u32 4294901760, %v12497_v32  ;;  %v4646_v59 = vand.u32 4294901760, %v13123_v34  ;;  %v16977_v54 = vand.u32 4294901760, %v13067_v46 }
 0x367   :  { %v13168_v13 = vsub.f32 %v13051_v26, %v16974_v16  ;;  %16975 = vst [vmem:[#allocation48_spill] sm:$0xff] %v13171_v47  ;;  %v13187_v44 = vsub.f32 %v1676_v0, %v13126_v60  ;;  %v13189_v16 = vand.u32 4294901760, %v1670_v38  ;;  %v1619_v26 = vld [vmem:[%s15445_s2 + $0x58] sm:$0xff]  ;;  %8525 = vmatprep.subr.mxu1 %v4625_v41  ;;  %v16979_v32 = vand.u32 4294901760, %v12505_v7 }
 0x368   :  { %4223 = vmatprep.subr.mxu0 %v16976_v62  ;;  %v13184_v42 = vsub.f32 %v13067_v46, %v16977_v54  ;;  %v4534_v53 = vand.u32 4294901760, %v13137_v51  ;;  %v16980_v34 = vand.u32 4294901760, %v13083_v55  ;;  %v13203_v0 = vsub.f32 %v1628_v29, %v13140_v43  ;;  %v1664_v46 = vld [vmem:[%s15445_s2 + $0x1c0] sm:$0xff]  ;;  %8526 = vmatpush3.msra.mxu1 %v4513_v18 }
 0x369   :  { %16978 = vst [vmem:[#allocation124_spill] sm:$0xff] %v13187_v44  ;;  %4227 = vmatpush2.msra.mxu0 %v16979_v32  ;;  %v13205_v54 = vand.u32 4294901760, %v1622_v28  ;;  %v16982_v7 = vand.u32 4294901760, %v12513_v61  ;;  %v4653_v51 = vand.u32 4294901760, %v13152_v14  ;;  %v13215_v32 = vsub.f32 %v1673_v30, %v13157_v21  ;;  %v1616_v29 = vld [vmem:[%s15445_s2 + $0x40] sm:$0xff]  ;;  %8527 = vmatprep.subr.mxu1 %v4632_v31  ;;  %v1661_v30 = vld [vmem:[%s15445_s2 + $0x1a8] sm:$0xff] }
 0x36a   :  { %v13200_v62 = vsub.f32 %v13083_v55, %v16980_v34  ;;  %16981 = vst [vmem:[#allocation61_spill] sm:$0xff] %v13203_v0  ;;  %v13217_v34 = vand.u32 4294901760, %v1667_v37  ;;  %v16983_v55 = vand.u32 4294901760, %v12521_v49  ;;  %v4541_v61 = vand.u32 4294901760, %v13168_v13  ;;  %8528 = vmatpush3.msra.mxu1 %v4520_v22  ;;  %v16985_v41 = vld [vmem:[#allocation132_spill] sm:$0xff] }
 0x36b   :  { %4231 = vmatprep.subr.mxu0 %v16982_v7  ;;  %v13227_v14 = vsub.f32 %v1625_v45, %v13173_v63  ;;  %v13229_v7 = vand.u32 4294901760, %v1619_v26  ;;  %v4660_v31 = vand.u32 4294901760, %v13184_v42  ;;  %v13240_v13 = vand.u32 4294901760, %v1664_v46  ;;  %v1613_v45 = vld [vmem:[%s15445_s2 + $0x28] sm:$0xff]  ;;  %8529 = vmatprep.subr.mxu1 %v4639_v12 }
 0x36c   :  { %4235 = vmatpush2.msra.mxu0 %v16983_v55  ;;  %v13238_v55 = vsub.f32 %v1670_v38, %v13189_v16  ;;  %v4548_v22 = vand.u32 4294901760, %v13200_v62  ;;  %v13249_v42 = vsub.f32 %v1622_v28, %v13205_v54  ;;  %v13251_v49 = vand.u32 4294901760, %v1616_v29  ;;  %v1658_v38 = vld [vmem:[%s15445_s2 + $0x190] sm:$0xff]  ;;  %8530 = vmatpush3.msra.mxu1 %v4527_v57 }
 0x36d   :  { %16984 = vst [vmem:[#allocation49_spill] sm:$0xff] %v13227_v14  ;;  %4239 = vmatmul.mubr.f32.vlgmr.msra.gmra.mxu0 %v16965_v27  ;;  %8486 = vmatprep.subr.mxu0 %v12847_v56  ;;  %v16986_v27 = vand.u32 4294901760, %v13155_v9  ;;  %v13263_v18 = vsub.f32 %v1667_v37, %v13217_v34  ;;  %v13265_v28 = vand.u32 4294901760, %v1661_v30  ;;  %v13276_v62 = vsub.f32 %v1619_v26, %v13229_v7 }
 0x36e   :  { %8487 = vmatpush3.msra.mxu0 %v12855_v50  ;;  %4483 = vmatprep.mubr.f32.mxu0 %v16985_v41  ;;  %v16987_v41 = vand.u32 4294901760, %v13171_v47  ;;  %v13278_v37 = vand.u32 4294901760, %v1613_v45  ;;  %v13286_v33 = vsub.f32 %v1664_v46, %v13240_v13  ;;  %v16989_v26 = vand.u32 4294901760, %v13203_v0 }
 0x36f   :  { %v4666_v12 = vsub.f32 %v13155_v9, %v16986_v27  ;;  %8488 = vmatprep.subr.mxu0 %v12863_v11  ;;  %8531 = vmatprep.subr.mxu1 %v4646_v59  ;;  %v16988_v9 = vand.u32 4294901760, %v13187_v44  ;;  %v16990_v2 = vand.u32 4294901760, %v13215_v32  ;;  %v13306_v36 = vsub.f32 %v1661_v30, %v13265_v28 }
 0x370   :  { %v4554_v23 = vsub.f32 %v13171_v47, %v16987_v41  ;;  %8489 = vmatpush3.msra.mxu0 %v12871_v20  ;;  %v13288_v41 = vand.u32 4294901760, %v1658_v38  ;;  %8532 = vmatpush3.msra.mxu1 %v4534_v53  ;;  %v4561_v59 = vsub.f32 %v13203_v0, %v16989_v26  ;;  %v13296_v47 = vsub.f32 %v1616_v29, %v13251_v49 }
 0x371   :  { %v4673_v57 = vsub.f32 %v13187_v44, %v16988_v9  ;;  %8490 = vmatprep.subr.mxu0 %v12882_v19  ;;  %v13298_v9 = vand.u32 4294901760, %v1610_v58  ;;  %8533 = vmatprep.subr.mxu1 %v4653_v51  ;;  %v4667_v46 = vand.u32 4294901760, %v4666_v12  ;;  %v4680_v53 = vsub.f32 %v13215_v32, %v16990_v2 }
 0x372   :  { %8491 = vmatpush3.msra.mxu0 %v12893_v1  ;;  %8534 = vmatpush3.msra.mxu1 %v4541_v61  ;;  %v4555_v29 = vand.u32 4294901760, %v4554_v23  ;;  %v16991_v26 = vand.u32 4294901760, %v13227_v14  ;;  %v13314_v12 = vsub.f32 %v1613_v45, %v13278_v37  ;;  %v16992_v30 = vand.u32 4294901760, %v13238_v55 }
 0x373   :  { %8492 = vmatprep.subr.mxu0 %v12904_v10  ;;  %8535 = vmatprep.subr.mxu1 %v4660_v31  ;;  %v4674_v2 = vand.u32 4294901760, %v4673_v57  ;;  %v13322_v23 = vsub.f32 %v1658_v38, %v13288_v41  ;;  %v16993_v45 = vand.u32 4294901760, %v13249_v42  ;;  %v13330_v57 = vsub.f32 %v1610_v58, %v13298_v9 }
 0x374   :  { %v4568_v51 = vsub.f32 %v13227_v14, %v16991_v26  ;;  %8493 = vmatpush3.msra.mxu0 %v12915_v3  ;;  %v4687_v61 = vsub.f32 %v13238_v55, %v16992_v30  ;;  %8536 = vmatpush3.msra.mxu1 %v4548_v22  ;;  %v4562_v26 = vand.u32 4294901760, %v4561_v59  ;;  %v4681_v30 = vand.u32 4294901760, %v4680_v53 }
 0x375   :  { %8494 = vmatprep.subr.mxu0 %v12927_v8  ;;  %v4575_v31 = vsub.f32 %v13249_v42, %v16993_v45  ;;  %8537 = vmatprep.subr.mxu1 %v4667_v46  ;;  %v16994_v38 = vand.u32 4294901760, %v13263_v18  ;;  %v16995_v45 = vand.u32 4294901760, %v13276_v62  ;;  %v16996_v53 = vand.u32 4294901760, %v13286_v33 }
 0x376   :  { %8495 = vmatpush3.msra.mxu0 %v12939_v24  ;;  %8538 = vmatpush3.msra.mxu1 %v4555_v29  ;;  %v4569_v59 = vand.u32 4294901760, %v4568_v51  ;;  %v4688_v46 = vand.u32 4294901760, %v4687_v61  ;;  %v16997_v51 = vand.u32 4294901760, %v13296_v47  ;;  %v15976_v58 = vand.u32 4294901760, %v13330_v57 }
 0x377   :  { %v4694_v22 = vsub.f32 %v13263_v18, %v16994_v38  ;;  %8496 = vmatprep.subr.mxu0 %v12951_v48  ;;  %v4582_v27 = vsub.f32 %v13276_v62, %v16995_v45  ;;  %8539 = vmatprep.subr.mxu1 %v4674_v2  ;;  %v4701_v38 = vsub.f32 %v13286_v33, %v16996_v53  ;;  %v4576_v29 = vand.u32 4294901760, %v4575_v31 }
 0x378   :  { %8497 = vmatpush3.msra.mxu0 %v12963_v6  ;;  %8540 = vmatpush3.msra.mxu1 %v4562_v26  ;;  %v4589_v45 = vsub.f32 %v13296_v47, %v16997_v51  ;;  %v16998_v61 = vand.u32 4294901760, %v13306_v36  ;;  %v16999_v31 = vand.u32 4294901760, %v13314_v12 }
 0x379   :  { %8498 = vmatprep.subr.mxu0 %v12980_v40  ;;  %8541 = vmatprep.subr.mxu1 %v4681_v30  ;;  %v4695_v2 = vand.u32 4294901760, %v4694_v22  ;;  %v4583_v26 = vand.u32 4294901760, %v4582_v27  ;;  %v4702_v51 = vand.u32 4294901760, %v4701_v38  ;;  %v17000_v30 = vand.u32 4294901760, %v13322_v23 }
 0x37a   :  { %8499 = vmatpush3.msra.mxu0 %v12997_v39  ;;  %v4708_v53 = vsub.f32 %v13306_v36, %v16998_v61  ;;  %8542 = vmatpush3.msra.mxu1 %v4569_v59  ;;  %v4596_v44 = vsub.f32 %v13314_v12, %v16999_v31  ;;  %v4590_v61 = vand.u32 4294901760, %v4589_v45  ;;  %v4603_v27 = vsub.f32 %v13330_v57, %v15976_v58  ;;  %v17002_v45 = vld [vmem:[#allocation130_spill] sm:$0xff]  ;;  %v17006_v31 = vld [vmem:[#allocation115_spill] sm:$0xff]  ;;  %v17019_v58 = vld [vmem:[#allocation48_spill] sm:$0xff] }
 0x37b   :  { %8500 = vmatprep.subr.mxu0 %v13011_v4  ;;  %8543 = vmatprep.subr.mxu1 %v4688_v46  ;;  %v4715_v22 = vsub.f32 %v13322_v23, %v17000_v30  ;;  %v17008_v30 = vld [vmem:[#allocation125_spill] sm:$0xff] }
 0x37c   :  { %8501 = vmatpush3.msra.mxu0 %v13025_v17  ;;  %8544 = vmatpush3.msra.mxu1 %v4576_v29  ;;  %v4709_v59 = vand.u32 4294901760, %v4708_v53  ;;  %v4597_v46 = vand.u32 4294901760, %v4596_v44  ;;  %v4604_v29 = vand.u32 4294901760, %v4603_v27  ;;  %v17001_v44 = vld [vmem:[#allocation127_spill] sm:$0xff]  ;;  %v17004_v53 = vld [vmem:[#allocation128_spill] sm:$0xff]  ;;  %v17011_v27 = vld [vmem:[#allocation18_spill] sm:$0xff] }
 0x37d   :  { %8502 = vmatprep.subr.mxu0 %v13098_v35  ;;  %8545 = vmatprep.subr.mxu1 %v4695_v2  ;;  %v4716_v38 = vand.u32 4294901760, %v4715_v22  ;;  %v17003_v2 = vld [vmem:[#allocation133_spill] sm:$0xff] }
 0x37e   :  { %8503 = vmatpush3.msra.mxu0 %v13113_v52  ;;  %8546 = vmatpush3.msra.mxu1 %v4583_v26  ;;  %v17005_v26 = vld [vmem:[#allocation114_spill] sm:$0xff]  ;;  %v17009_v22 = vld [vmem:[#allocation21_spill] sm:$0xff] }
 0x37f   :  { %8504 = vmatprep.subr.mxu0 %v13126_v60  ;;  %8547 = vmatprep.subr.mxu1 %v4702_v51  ;;  %v17007_v51 = vld [vmem:[#allocation117_spill] sm:$0xff] }
 0x380   :  { %8505 = vmatpush3.msra.mxu0 %v13140_v43  ;;  %8548 = vmatpush3.msra.mxu1 %v4590_v61  ;;  %v17010_v61 = vld [vmem:[#allocation13_spill] sm:$0xff] }
 0x381   :  { %8506 = vmatprep.subr.mxu0 %v13157_v21  ;;  %8549 = vmatprep.subr.mxu1 %v4709_v59  ;;  %v17012_v59 = vld [vmem:[#allocation15_spill] sm:$0xff] }
 0x382   :  { %8507 = vmatpush3.msra.mxu0 %v13173_v63  ;;  %8550 = vmatpush3.msra.mxu1 %v4597_v46  ;;  %v17013_v46 = vld [vmem:[#allocation14_spill] sm:$0xff] }
 0x383   :  { %8508 = vmatprep.subr.mxu0 %v13189_v16  ;;  %8551 = vmatprep.subr.mxu1 %v4716_v38  ;;  %v17014_v38 = vld [vmem:[#allocation119_spill] sm:$0xff] }
 0x384   :  { %8509 = vmatpush3.msra.mxu0 %v13205_v54  ;;  %8552 = vmatpush3.msra.mxu1 %v4604_v29  ;;  %v17015_v29 = vld [vmem:[#allocation40_spill] sm:$0xff] }
 0x385   :  { %8510 = vmatprep.subr.mxu0 %v13217_v34  ;;  %4721 = vmatmul.mubr.f32.vlgmr.msra.gmra.mxu1 %v17001_v44  ;;  %v17020_v44 = vld [vmem:[#allocation124_spill] sm:$0xff] }
 0x386   :  { %8591 = vmatprep.subr.mxu1 %v12847_v56  ;;  %8511 = vmatpush3.msra.mxu0 %v13229_v7 }
 0x387   :  { %8592 = vmatpush3.msra.mxu1 %v12855_v50  ;;  %4963 = vmatprep.mubr.f32.mxu1 %v17002_v45  ;;  %v17016_v45 = vld [vmem:[#allocation42_spill] sm:$0xff] }
 0x388   :  { %8512 = vmatprep.subr.mxu0 %v13240_v13  ;;  %8593 = vmatprep.subr.mxu1 %v12863_v11 }
 0x389   :  { %8513 = vmatpush3.msra.mxu0 %v13251_v49  ;;  %8594 = vmatpush3.msra.mxu1 %v12871_v20 }
 0x38a   :  { %8514 = vmatprep.subr.mxu0 %v13265_v28  ;;  %8595 = vmatprep.subr.mxu1 %v12882_v19 }
 0x38b   :  { %8515 = vmatpush3.msra.mxu0 %v13278_v37  ;;  %8596 = vmatpush3.msra.mxu1 %v12893_v1 }
 0x38c   :  { %8516 = vmatprep.subr.mxu0 %v13288_v41  ;;  %8597 = vmatprep.subr.mxu1 %v12904_v10 }
 0x38d   :  { %8517 = vmatpush3.msra.mxu0 %v13298_v9  ;;  %8598 = vmatpush3.msra.mxu1 %v12915_v3 }
 0x38e   :  { %4489 = vmatmul.mubr.f32.vlgmr.msra.gmra.mxu0 %v17003_v2  ;;  %8556 = vmatprep.subr.mxu0 %v12880_v25  ;;  %v17017_v2 = vld [vmem:[#allocation44_spill] sm:$0xff] }
 0x38f   :  { %8599 = vmatprep.subr.mxu1 %v12927_v8  ;;  %8557 = vmatpush3.msra.mxu0 %v12891_v5 }
 0x390   :  { %4856 = vmatprep.mubr.f32.mxu0 %v17004_v53  ;;  %8600 = vmatpush3.msra.mxu1 %v12939_v24  ;;  %v17018_v53 = vld [vmem:[#allocation46_spill] sm:$0xff] }
 0x391   :  { %8558 = vmatprep.subr.mxu0 %v12902_v15  ;;  %8601 = vmatprep.subr.mxu1 %v12951_v48 }
 0x392   :  { %8559 = vmatpush3.msra.mxu0 %v17005_v26  ;;  %8602 = vmatpush3.msra.mxu1 %v12963_v6 }
 0x393   :  { %8560 = vmatprep.subr.mxu0 %v17006_v31  ;;  %8603 = vmatprep.subr.mxu1 %v12980_v40 }
 0x394   :  { %8561 = vmatpush3.msra.mxu0 %v17007_v51  ;;  %8604 = vmatpush3.msra.mxu1 %v12997_v39 }
 0x395   :  { %8562 = vmatprep.subr.mxu0 %v17008_v30  ;;  %8605 = vmatprep.subr.mxu1 %v13011_v4 }
 0x396   :  { %8563 = vmatpush3.msra.mxu0 %v17009_v22  ;;  %8606 = vmatpush3.msra.mxu1 %v13025_v17 }
 0x397   :  { %8564 = vmatprep.subr.mxu0 %v17010_v61  ;;  %8607 = vmatprep.subr.mxu1 %v13098_v35 }
 0x398   :  { %8565 = vmatpush3.msra.mxu0 %v17011_v27  ;;  %8608 = vmatpush3.msra.mxu1 %v13113_v52 }
 0x399   :  { %8566 = vmatprep.subr.mxu0 %v17012_v59  ;;  %8609 = vmatprep.subr.mxu1 %v13126_v60 }
 0x39a   :  { %8567 = vmatpush3.msra.mxu0 %v17013_v46  ;;  %8610 = vmatpush3.msra.mxu1 %v13140_v43 }
 0x39b   :  { %8568 = vmatprep.subr.mxu0 %v17014_v38  ;;  %8611 = vmatprep.subr.mxu1 %v13157_v21 }
 0x39c   :  { %8569 = vmatpush3.msra.mxu0 %v17015_v29  ;;  %8612 = vmatpush3.msra.mxu1 %v13173_v63 }
 0x39d   :  { %8570 = vmatprep.subr.mxu0 %v17016_v45  ;;  %8613 = vmatprep.subr.mxu1 %v13189_v16 }
 0x39e   :  { %8571 = vmatpush3.msra.mxu0 %v17017_v2  ;;  %8614 = vmatpush3.msra.mxu1 %v13205_v54 }
 0x39f   :  { %8572 = vmatprep.subr.mxu0 %v17018_v53  ;;  %8615 = vmatprep.subr.mxu1 %v13217_v34 }
 0x3a0   :  { %8573 = vmatpush3.msra.mxu0 %v17019_v58  ;;  %8616 = vmatpush3.msra.mxu1 %v13229_v7 }
 0x3a1   :  { %8574 = vmatprep.subr.mxu0 %v17020_v44  ;;  %8617 = vmatprep.subr.mxu1 %v13240_v13 }
 0x3a2   :  { %8575 = vmatpush3.msra.mxu0 %v13203_v0  ;;  %8618 = vmatpush3.msra.mxu1 %v13251_v49  ;;  %v17021_v0 = vld [vmem:[#allocation131_spill] sm:$0xff] }
 0x3a3   :  { %8576 = vmatprep.subr.mxu0 %v13215_v32  ;;  %8619 = vmatprep.subr.mxu1 %v13265_v28 }
 0x3a4   :  { %8577 = vmatpush3.msra.mxu0 %v13227_v14  ;;  %8620 = vmatpush3.msra.mxu1 %v13278_v37  ;;  %v17022_v14 = vld [vmem:[#allocation126_spill] sm:$0xff] }
 0x3a5   :  { %8578 = vmatprep.subr.mxu0 %v13238_v55  ;;  %8621 = vmatprep.subr.mxu1 %v13288_v41 }
 0x3a6   :  { %8579 = vmatpush3.msra.mxu0 %v13249_v42  ;;  %8622 = vmatpush3.msra.mxu1 %v13298_v9 }
 0x3a7   :  { %8580 = vmatprep.subr.mxu0 %v13263_v18  ;;  %4967 = vmatmul.mubr.f32.vlgmr.msra.gmra.mxu1 %v17021_v0  ;;  %v17029_v0 = vand.u32 4294901760, %v17007_v51  ;;  %v17031_v51 = vand.u32 4294901760, %v17009_v22  ;;  %v1787_v22 = vld [vmem:[%s15445_s2 + $0x598] sm:$0xff] }
 0x3a8   :  { %8661 = vmatprep.subr.mxu1 %v12847_v56  ;;  %8581 = vmatpush3.msra.mxu0 %v13276_v62  ;;  %v1799_v56 = vld [vmem:[%s15445_s2 + $0x5f8] sm:$0x1] }
 0x3a9   :  { %8662 = vmatpush3.msra.mxu1 %v12855_v50  ;;  %5237 = vmatprep.mubr.f32.mxu1 %v17022_v14  ;;  %v17023_v50 = vld [vmem:[#allocation129_spill] sm:$0xff] }
 0x3aa   :  { %8582 = vmatprep.subr.mxu0 %v13286_v33  ;;  %8663 = vmatprep.subr.mxu1 %v12863_v11  ;;  %v17024_v11 = vand.u32 4294901760, %v12880_v25  ;;  %v1796_v25 = vld [vmem:[%s15445_s2 + $0x5e0] sm:$0xff] }
 0x3ab   :  { %8583 = vmatpush3.msra.mxu0 %v13296_v47  ;;  %8664 = vmatpush3.msra.mxu1 %v12871_v20  ;;  %v1812_v20 = vsel %vm1804_vm3, %v1799_v56, 0 }
 0x3ac   :  { %8584 = vmatprep.subr.mxu0 %v13306_v36  ;;  %8665 = vmatprep.subr.mxu1 %v12882_v19  ;;  %v17025_v19 = vand.u32 4294901760, %v12891_v5  ;;  %v17027_v5 = vand.u32 4294901760, %v17005_v26  ;;  %v17030_v26 = vand.u32 4294901760, %v17008_v30  ;;  %v17032_v30 = vand.u32 4294901760, %v17010_v61  ;;  %v1739_v61 = vld [vmem:[%s15445_s2 + $0x418] sm:$0xff] }
 0x3ad   :  { %8585 = vmatpush3.msra.mxu0 %v13314_v12  ;;  %8666 = vmatpush3.msra.mxu1 %v12893_v1  ;;  %v1751_v1 = vld [vmem:[%s15445_s2 + $0x478] sm:$0xff] }
 0x3ae   :  { %8586 = vmatprep.subr.mxu0 %v13322_v23  ;;  %8667 = vmatprep.subr.mxu1 %v12904_v10  ;;  %v17026_v10 = vand.u32 4294901760, %v12902_v15  ;;  %v17028_v15 = vand.u32 4294901760, %v17006_v31 }
 0x3af   :  { %8587 = vmatpush3.msra.mxu0 %v13330_v57  ;;  %8668 = vmatpush3.msra.mxu1 %v12915_v3  ;;  %v13484_v3 = vand.u32 4294901760, %v1812_v20 }
 0x3b0   :  { %4859 = vmatmul.mubr.f32.vlgmr.msra.gmra.mxu0 %v17023_v50  ;;  %8626 = vmatprep.subr.mxu0 %v17024_v11 }
 0x3b1   :  { %8669 = vmatprep.subr.mxu1 %v12927_v8  ;;  %8627 = vmatpush3.msra.mxu0 %v17025_v19  ;;  %v1748_v8 = vld [vmem:[%s15445_s2 + $0x460] sm:$0xff]  ;;  %v13517_v56 = vsub.f32 %v1812_v20, %v13484_v3  ;;  %v17033_v20 = vand.u32 4294901760, %v17011_v27 }
 0x3b2   :  { %5133 = vmatprep.mubr.f32.mxu0 %v17022_v14  ;;  %8670 = vmatpush3.msra.mxu1 %v12939_v24  ;;  %v13492_v24 = vand.u32 4294901760, %v1751_v1  ;;  %v13500_v14 = vand.u32 4294901760, %v1796_v25  ;;  %v13508_v31 = vand.u32 4294901760, %v1748_v8  ;;  %v1784_v27 = vld [vmem:[%s15445_s2 + $0x580] sm:$0xff] }
 0x3b3   :  { %8628 = vmatprep.subr.mxu0 %v17026_v10  ;;  %8671 = vmatprep.subr.mxu1 %v12951_v48  ;;  %v1793_v48 = vld [vmem:[%s15445_s2 + $0x5c8] sm:$0xff] }
 0x3b4   :  { %8629 = vmatpush3.msra.mxu0 %v17027_v5  ;;  %8672 = vmatpush3.msra.mxu1 %v12963_v6  ;;  %v1745_v6 = vld [vmem:[%s15445_s2 + $0x448] sm:$0xff]  ;;  %v13519_v50 = vand.u32 4294901760, %v1793_v48  ;;  %v13528_v11 = vsub.f32 %v1751_v1, %v13492_v24  ;;  %v13539_v19 = vsub.f32 %v1796_v25, %v13500_v14  ;;  %v17034_v1 = vand.u32 4294901760, %v17012_v59 }
 0x3b5   :  { %8630 = vmatprep.subr.mxu0 %v17028_v15  ;;  %8673 = vmatprep.subr.mxu1 %v12980_v40  ;;  %v1790_v40 = vld [vmem:[%s15445_s2 + $0x5b0] sm:$0xff]  ;;  %v13550_v10 = vsub.f32 %v1748_v8, %v13508_v31  ;;  %v17036_v25 = vand.u32 4294901760, %v17013_v46  ;;  %v15981_v5 = vand.u32 4294901760, %v13517_v56  ;;  %v13564_v59 = vand.u32 4294901760, %v1787_v22  ;;  %v1736_v8 = vld [vmem:[%s15445_s2 + $0x400] sm:$0xff] }
 0x3b6   :  { %8631 = vmatpush3.msra.mxu0 %v17029_v0  ;;  %8674 = vmatpush3.msra.mxu1 %v12997_v39  ;;  %v1742_v39 = vld [vmem:[%s15445_s2 + $0x430] sm:$0xff]  ;;  %v17038_v15 = vand.u32 4294901760, %v17014_v38  ;;  %v13576_v0 = vand.u32 4294901760, %v1739_v61 }
 0x3b7   :  { %8632 = vmatprep.subr.mxu0 %v17030_v26  ;;  %8675 = vmatprep.subr.mxu1 %v13011_v4  ;;  %v13530_v4 = vand.u32 4294901760, %v1745_v6  ;;  %17035 = vst [vmem:[#allocation67_spill] sm:$0xff] %v13550_v10  ;;  %v17040_v26 = vand.u32 4294901760, %v17015_v29 }
 0x3b8   :  { %8633 = vmatpush3.msra.mxu0 %v17031_v51  ;;  %8676 = vmatpush3.msra.mxu1 %v13025_v17  ;;  %v13541_v17 = vand.u32 4294901760, %v1790_v40  ;;  %v13588_v51 = vand.u32 4294901760, %v1784_v27 }
 0x3b9   :  { %8634 = vmatprep.subr.mxu0 %v17032_v30  ;;  %8677 = vmatprep.subr.mxu1 %v13098_v35  ;;  %v13552_v35 = vand.u32 4294901760, %v1742_v39  ;;  %v13574_v46 = vsub.f32 %v1745_v6, %v13530_v4  ;;  %v1733_v6 = vld [vmem:[%s15445_s2 + $0x3e8] sm:$0xff]  ;;  %v17042_v30 = vand.u32 4294901760, %v17016_v45 }
 0x3ba   :  { %8635 = vmatpush3.msra.mxu0 %v17033_v20  ;;  %8678 = vmatpush3.msra.mxu1 %v13113_v52  ;;  %v13562_v52 = vsub.f32 %v1793_v48, %v13519_v50  ;;  %v1781_v48 = vld [vmem:[%s15445_s2 + $0x568] sm:$0xff]  ;;  %v13586_v38 = vsub.f32 %v1790_v40, %v13541_v17  ;;  %v13600_v20 = vand.u32 4294901760, %v1736_v8  ;;  %v1778_v40 = vld [vmem:[%s15445_s2 + $0x550] sm:$0xff] }
 0x3bb   :  { %8636 = vmatprep.subr.mxu0 %v17034_v1  ;;  %8679 = vmatprep.subr.mxu1 %v13126_v60  ;;  %v15979_v60 = vand.u32 4294901760, %v13528_v11  ;;  %17039 = vst [vmem:[#allocation71_spill] sm:$0xff] %v13574_v46  ;;  %v13598_v29 = vsub.f32 %v1742_v39, %v13552_v35  ;;  %v17044_v1 = vand.u32 4294901760, %v17017_v2  ;;  %v13615_v39 = vsub.f32 %v1787_v22, %v13564_v59 }
 0x3bc   :  { %8637 = vmatpush3.msra.mxu0 %v17036_v25  ;;  %17037 = vst [vmem:[#allocation69_spill] sm:$0xff] %v13562_v52  ;;  %8680 = vmatpush3.msra.mxu1 %v13140_v43  ;;  %v15980_v43 = vand.u32 4294901760, %v13539_v19  ;;  %17041 = vst [vmem:[#allocation73_spill] sm:$0xff] %v13586_v38  ;;  %v15984_v45 = vand.u32 4294901760, %v13562_v52  ;;  %v13617_v25 = vand.u32 4294901760, %v1781_v48  ;;  %v13632_v22 = vsub.f32 %v1739_v61, %v13576_v0 }
 0x3bd   :  { %8638 = vmatprep.subr.mxu0 %v17038_v15  ;;  %8681 = vmatprep.subr.mxu1 %v13157_v21  ;;  %v15982_v21 = vand.u32 4294901760, %v13550_v10  ;;  %17043 = vst [vmem:[#allocation75_spill] sm:$0xff] %v13598_v29  ;;  %17045 = vst [vmem:[#allocation77_spill] sm:$0xff] %v13615_v39  ;;  %v1730_v15 = vld [vmem:[%s15445_s2 + $0x3d0] sm:$0xff]  ;;  %v13628_v2 = vsub.f32 %v13528_v11, %v15979_v60  ;;  %v13648_v60 = vand.u32 4294901760, %v1778_v40  ;;  %v17050_v61 = vand.u32 4294901760, %v17020_v44 }
 0x3be   :  { %8639 = vmatpush3.msra.mxu0 %v17040_v26  ;;  %8682 = vmatpush3.msra.mxu1 %v13173_v63  ;;  %v13611_v63 = vsub.f32 %v13517_v56, %v15981_v5  ;;  %v15983_v26 = vand.u32 4294901760, %v13574_v46  ;;  %17047 = vst [vmem:[#allocation79_spill] sm:$0xff] %v13632_v22  ;;  %v13671_v44 = vsub.f32 %v13562_v52, %v15984_v45  ;;  %v1727_v45 = vld [vmem:[%s15445_s2 + $0x3b8] sm:$0xff] }
 0x3bf   :  { %8640 = vmatprep.subr.mxu0 %v17042_v30  ;;  %8683 = vmatprep.subr.mxu1 %v13189_v16  ;;  %v17046_v16 = vand.u32 4294901760, %v17018_v53  ;;  %v13634_v30 = vand.u32 4294901760, %v1733_v6  ;;  %v15985_v53 = vand.u32 4294901760, %v13586_v38 }
 0x3c0   :  { %8641 = vmatpush3.msra.mxu0 %v17044_v1  ;;  %8684 = vmatpush3.msra.mxu1 %v13205_v54  ;;  %v17048_v1 = vand.u32 4294901760, %v17019_v58  ;;  %v13642_v54 = vsub.f32 %v13539_v19, %v15980_v43  ;;  %v15986_v58 = vand.u32 4294901760, %v13598_v29  ;;  %v13662_v43 = vand.u32 4294901760, %v1730_v15 }
 0x3c1   :  { %8642 = vmatprep.subr.mxu0 %v17046_v16  ;;  %8685 = vmatprep.subr.mxu1 %v13217_v34  ;;  %v13646_v16 = vsub.f32 %v1784_v27, %v13588_v51  ;;  %v13656_v34 = vsub.f32 %v13550_v10, %v15982_v21  ;;  %v17052_v27 = vld [vmem:[#allocation61_spill] sm:$0xff]  ;;  %v13675_v21 = vsub.f32 %v1781_v48, %v13617_v25  ;;  %v1775_v48 = vld [vmem:[%s15445_s2 + $0x538] sm:$0xff] }
 0x3c2   :  { %8643 = vmatpush3.msra.mxu0 %v17048_v1  ;;  %8686 = vmatpush3.msra.mxu1 %v13229_v7  ;;  %v13660_v1 = vsub.f32 %v1736_v8, %v13600_v20  ;;  %v17053_v5 = vand.u32 4294901760, %v17052_v27  ;;  %v5473_v7 = vand.u32 4294901760, %v13611_v63  ;;  %v17055_v8 = vand.u32 4294901760, %v13215_v32  ;;  %v17057_v32 = vld [vmem:[#allocation49_spill] sm:$0xff] }
 0x3c3   :  { %17049 = vst [vmem:[#allocation82_spill] sm:$0xff] %v13646_v16  ;;  %8644 = vmatprep.subr.mxu0 %v17050_v61  ;;  %8687 = vmatprep.subr.mxu1 %v13240_v13  ;;  %v15987_v61 = vand.u32 4294901760, %v13615_v39  ;;  %17054 = vst [vmem:[#allocation85_spill] sm:$0xff] %v13675_v21  ;;  %v5361_v13 = vand.u32 4294901760, %v13628_v2  ;;  %v15988_v63 = vand.u32 4294901760, %v13632_v22  ;;  %v13688_v27 = vsub.f32 %v1733_v6, %v13634_v30 }
 0x3c4   :  { %17051 = vst [vmem:[#allocation83_spill] sm:$0xff] %v13660_v1  ;;  %8645 = vmatpush3.msra.mxu0 %v17053_v5  ;;  %8688 = vmatpush3.msra.mxu1 %v13251_v49  ;;  %v13684_v5 = vsub.f32 %v13574_v46, %v15983_v26  ;;  %v17058_v49 = vand.u32 4294901760, %v17057_v32  ;;  %v5480_v2 = vand.u32 4294901760, %v13642_v54  ;;  %v15991_v26 = vand.u32 4294901760, %v13646_v16 }
 0x3c5   :  { %8646 = vmatprep.subr.mxu0 %v17055_v8  ;;  %17056 = vst [vmem:[#allocation87_spill] sm:$0xff] %v13688_v27  ;;  %8689 = vmatprep.subr.mxu1 %v13265_v28  ;;  %v13700_v8 = vsub.f32 %v13586_v38, %v15985_v53  ;;  %v13704_v6 = vsub.f32 %v1778_v40, %v13648_v60  ;;  %v17060_v28 = vand.u32 4294901760, %v13238_v55  ;;  %v5368_v54 = vand.u32 4294901760, %v13656_v34  ;;  %v1772_v53 = vld [vmem:[%s15445_s2 + $0x520] sm:$0xff] }
 0x3c6   :  { %8647 = vmatpush3.msra.mxu0 %v17058_v49  ;;  %8690 = vmatpush3.msra.mxu1 %v13278_v37  ;;  %v13716_v32 = vsub.f32 %v13598_v29, %v15986_v58  ;;  %v13720_v40 = vsub.f32 %v1730_v15, %v13662_v43  ;;  %v17062_v55 = vand.u32 4294901760, %v13249_v42  ;;  %v5487_v37 = vand.u32 4294901760, %v13671_v44  ;;  %v1724_v58 = vld [vmem:[%s15445_s2 + $0x3a0] sm:$0xff]  ;;  %v17064_v49 = vld [vmem:[#allocation127_spill] sm:$0xff] }
 0x3c7   :  { %17059 = vst [vmem:[#allocation89_spill] sm:$0xff] %v13704_v6  ;;  %8648 = vmatprep.subr.mxu0 %v17060_v28  ;;  %8691 = vmatprep.subr.mxu1 %v13288_v41  ;;  %v13732_v34 = vsub.f32 %v13615_v39, %v15987_v61  ;;  %v13735_v15 = vand.u32 4294901760, %v1775_v48  ;;  %v17063_v42 = vand.u32 4294901760, %v13263_v18  ;;  %v5375_v41 = vand.u32 4294901760, %v13684_v5  ;;  %v1769_v28 = vld [vmem:[%s15445_s2 + $0x508] sm:$0xff]  ;;  %v17067_v39 = vld [vmem:[#allocation23_spill] sm:$0xff] }
 0x3c8   :  { %17061 = vst [vmem:[#allocation91_spill] sm:$0xff] %v13720_v40  ;;  %8649 = vmatpush3.msra.mxu0 %v17062_v55  ;;  %8692 = vmatpush3.msra.mxu1 %v13298_v9  ;;  %v13747_v44 = vsub.f32 %v13632_v22, %v15988_v63  ;;  %v13750_v61 = vand.u32 4294901760, %v1727_v45  ;;  %v5494_v18 = vand.u32 4294901760, %v13700_v8  ;;  %v13760_v9 = vsub.f32 %v13646_v16, %v15991_v26  ;;  %v1721_v63 = vld [vmem:[%s15445_s2 + $0x388] sm:$0xff]  ;;  %v1766_v16 = vld [vmem:[%s15445_s2 + $0x4f0] sm:$0xff] }
 0x3c9   :  { %8650 = vmatprep.subr.mxu0 %v17063_v42  ;;  %5239 = vmatmul.mubr.f32.vlgmr.msra.gmra.mxu1 %v17064_v49  ;;  %v13763_v42 = vand.u32 4294901760, %v1772_v53  ;;  %v17065_v55 = vand.u32 4294901760, %v13276_v62  ;;  %v17066_v8 = vand.u32 4294901760, %v13660_v1  ;;  %v13777_v5 = vand.u32 4294901760, %v1724_v58  ;;  %v1706_v29 = vld [vmem:[%s15445_s2 + $0x310] sm:$0xff] }
 0x3ca   :  { %8731 = vmatprep.subr.mxu1 %v5473_v7  ;;  %v5382_v7 = vand.u32 4294901760, %v13716_v32  ;;  %5581 = vmatprep.mubr.f32.mxu1 %v17067_v39  ;;  %v17068_v62 = vand.u32 4294901760, %v13286_v33  ;;  %v17069_v32 = vand.u32 4294901760, %v13675_v21  ;;  %v13794_v26 = vand.u32 4294901760, %v1769_v28 }
 0x3cb   :  { %8651 = vmatpush3.msra.mxu0 %v17065_v55  ;;  %8732 = vmatpush3.msra.mxu1 %v5361_v13  ;;  %v13774_v22 = vsub.f32 %v13660_v1, %v17066_v8  ;;  %v5501_v13 = vand.u32 4294901760, %v13732_v34  ;;  %v13792_v8 = vsub.f32 %v1775_v48, %v13735_v15  ;;  %v1718_v1 = vld [vmem:[%s15445_s2 + $0x370] sm:$0xff]  ;;  %v17071_v33 = vand.u32 4294901760, %v13296_v47 }
 0x3cc   :  { %8652 = vmatprep.subr.mxu0 %v17068_v62  ;;  %v13789_v55 = vsub.f32 %v13675_v21, %v17069_v32  ;;  %8733 = vmatprep.subr.mxu1 %v5480_v2  ;;  %v5389_v34 = vand.u32 4294901760, %v13747_v44  ;;  %v17072_v62 = vand.u32 4294901760, %v13688_v27  ;;  %v13808_v48 = vsub.f32 %v1727_v45, %v13750_v61  ;;  %v1763_v21 = vld [vmem:[%s15445_s2 + $0x4d8] sm:$0xff] }
 0x3cd   :  { %17070 = vst [vmem:[#allocation80_spill] sm:$0xff] %v13792_v8  ;;  %8653 = vmatpush3.msra.mxu0 %v17071_v33  ;;  %v13810_v39 = vand.u32 4294901760, %v1721_v63  ;;  %8734 = vmatpush3.msra.mxu1 %v5368_v54  ;;  %v17074_v47 = vand.u32 4294901760, %v13306_v36  ;;  %v5508_v2 = vand.u32 4294901760, %v13760_v9  ;;  %v17075_v44 = vand.u32 4294901760, %v13704_v6 }
 0x3ce   :  { %v13805_v32 = vsub.f32 %v13688_v27, %v17072_v62  ;;  %17073 = vst [vmem:[#allocation93_spill] sm:$0xff] %v13808_v48  ;;  %v13824_v45 = vsub.f32 %v1772_v53, %v13763_v42  ;;  %v13826_v62 = vand.u32 4294901760, %v1766_v16  ;;  %v1715_v27 = vld [vmem:[%s15445_s2 + $0x358] sm:$0xff]  ;;  %8735 = vmatprep.subr.mxu1 %v5487_v37  ;;  %v17077_v36 = vand.u32 4294901760, %v13314_v12 }
 0x3cf   :  { %8654 = vmatprep.subr.mxu0 %v17074_v47  ;;  %v13821_v33 = vsub.f32 %v13704_v6, %v17075_v44  ;;  %v5396_v54 = vand.u32 4294901760, %v13774_v22  ;;  %v17078_v9 = vand.u32 4294901760, %v13720_v40  ;;  %v13840_v53 = vsub.f32 %v1724_v58, %v13777_v5  ;;  %v1760_v6 = vld [vmem:[%s15445_s2 + $0x4c0] sm:$0xff]  ;;  %8736 = vmatpush3.msra.mxu1 %v5375_v41  ;;  %v17083_v41 = vld [vmem:[#allocation111_spill] sm:$0xff] }
 0x3d0   :  { %17076 = vst [vmem:[#allocation81_spill] sm:$0xff] %v13824_v45  ;;  %8655 = vmatpush3.msra.mxu0 %v17077_v36  ;;  %v13842_v44 = vand.u32 4294901760, %v1718_v1  ;;  %v17080_v12 = vand.u32 4294901760, %v13322_v23  ;;  %v5515_v22 = vand.u32 4294901760, %v13789_v55  ;;  %v16010_v37 = vand.u32 4294901760, %v13792_v8  ;;  %v1712_v58 = vld [vmem:[%s15445_s2 + $0x340] sm:$0xff]  ;;  %8737 = vmatprep.subr.mxu1 %v5494_v18 }
 0x3d1   :  { %v13837_v47 = vsub.f32 %v13720_v40, %v17078_v9  ;;  %17079 = vst [vmem:[#allocation99_spill] sm:$0xff] %v13840_v53  ;;  %v13852_v36 = vsub.f32 %v1769_v28, %v13794_v26  ;;  %v13854_v9 = vand.u32 4294901760, %v1763_v21  ;;  %v17081_v40 = vand.u32 4294901760, %v13330_v57  ;;  %v1757_v28 = vld [vmem:[%s15445_s2 + $0x4a8] sm:$0xff]  ;;  %8738 = vmatpush3.msra.mxu1 %v5382_v7 }
 0x3d2   :  { %8656 = vmatprep.subr.mxu0 %v17080_v12  ;;  %v5403_v23 = vand.u32 4294901760, %v13805_v32  ;;  %v13864_v55 = vsub.f32 %v1721_v63, %v13810_v39  ;;  %v13866_v12 = vand.u32 4294901760, %v1715_v27  ;;  %v5522_v18 = vand.u32 4294901760, %v13821_v33  ;;  %v1709_v63 = vld [vmem:[%s15445_s2 + $0x328] sm:$0xff]  ;;  %8739 = vmatprep.subr.mxu1 %v5501_v13 }
 0x3d3   :  { %8657 = vmatpush3.msra.mxu0 %v17081_v40  ;;  %v13875_v40 = vsub.f32 %v1766_v16, %v13826_v62  ;;  %v13877_v32 = vand.u32 4294901760, %v1760_v6  ;;  %v5410_v7 = vand.u32 4294901760, %v13837_v47  ;;  %v13886_v33 = vsub.f32 %v1718_v1, %v13842_v44  ;;  %v1754_v16 = vld [vmem:[%s15445_s2 + $0x490] sm:$0xff]  ;;  %8740 = vmatpush3.msra.mxu1 %v5389_v34 }
 0x3d4   :  { %17082 = vst [vmem:[#allocation101_spill] sm:$0xff] %v13864_v55  ;;  %5135 = vmatmul.mubr.f32.vlgmr.msra.gmra.mxu0 %v17064_v49  ;;  %8696 = vmatprep.subr.mxu0 %v13484_v3  ;;  %v13888_v57 = vand.u32 4294901760, %v1712_v58  ;;  %v5528_v13 = vsub.f32 %v13792_v8, %v16010_v37  ;;  %v13900_v49 = vsub.f32 %v1763_v21, %v13854_v9  ;;  %v13902_v1 = vand.u32 4294901760, %v1757_v28 }
 0x3d5   :  { %8697 = vmatpush3.msra.mxu0 %v13492_v24  ;;  %5345 = vmatprep.mubr.f32.mxu0 %v17083_v41  ;;  %v17084_v41 = vand.u32 4294901760, %v13808_v48  ;;  %v13913_v47 = vsub.f32 %v1715_v27, %v13866_v12  ;;  %v13915_v21 = vand.u32 4294901760, %v1709_v63  ;;  %v17085_v8 = vand.u32 4294901760, %v13824_v45 }
 0x3d6   :  { %8698 = vmatprep.subr.mxu0 %v13500_v14  ;;  %8741 = vmatprep.subr.mxu1 %v5508_v2  ;;  %v13923_v52 = vsub.f32 %v1760_v6, %v13877_v32  ;;  %v17086_v27 = vand.u32 4294901760, %v13840_v53  ;;  %v5529_v6 = vand.u32 4294901760, %v5528_v13  ;;  %v17087_v46 = vand.u32 4294901760, %v13852_v36 }
 0x3d7   :  { %v5416_v38 = vsub.f32 %v13808_v48, %v17084_v41  ;;  %8699 = vmatpush3.msra.mxu0 %v13508_v31  ;;  %v5535_v34 = vsub.f32 %v13824_v45, %v17085_v8  ;;  %v13925_v41 = vand.u32 4294901760, %v1754_v16  ;;  %8742 = vmatpush3.msra.mxu1 %v5396_v54  ;;  %v13933_v48 = vsub.f32 %v1712_v58, %v13888_v57 }
 0x3d8   :  { %8700 = vmatprep.subr.mxu0 %v13519_v50  ;;  %v5423_v2 = vsub.f32 %v13840_v53, %v17086_v27  ;;  %v13935_v8 = vand.u32 4294901760, %v1706_v29  ;;  %8743 = vmatprep.subr.mxu1 %v5515_v22  ;;  %v5542_v54 = vsub.f32 %v13852_v36, %v17087_v46  ;;  %v13943_v10 = vsub.f32 %v1757_v28, %v13902_v1 }
 0x3d9   :  { %8701 = vmatpush3.msra.mxu0 %v13530_v4  ;;  %8744 = vmatpush3.msra.mxu1 %v5403_v23  ;;  %v5417_v58 = vand.u32 4294901760, %v5416_v38  ;;  %v17088_v27 = vand.u32 4294901760, %v13864_v55  ;;  %v13951_v13 = vsub.f32 %v1709_v63, %v13915_v21  ;;  %v5536_v46 = vand.u32 4294901760, %v5535_v34 }
 0x3da   :  { %8702 = vmatprep.subr.mxu0 %v13541_v17  ;;  %8745 = vmatprep.subr.mxu1 %v5522_v18  ;;  %v17089_v28 = vand.u32 4294901760, %v13875_v40  ;;  %v13959_v38 = vsub.f32 %v1754_v16, %v13925_v41  ;;  %v17090_v63 = vand.u32 4294901760, %v13886_v33  ;;  %v13967_v34 = vsub.f32 %v1706_v29, %v13935_v8 }
 0x3db   :  { %v5430_v22 = vsub.f32 %v13864_v55, %v17088_v27  ;;  %8703 = vmatpush3.msra.mxu0 %v13552_v35  ;;  %8746 = vmatpush3.msra.mxu1 %v5410_v7  ;;  %v5424_v27 = vand.u32 4294901760, %v5423_v2  ;;  %v17091_v16 = vand.u32 4294901760, %v13900_v49 }
 0x3dc   :  { %v5549_v23 = vsub.f32 %v13875_v40, %v17089_v28  ;;  %8704 = vmatprep.subr.mxu0 %v13564_v59  ;;  %v5437_v18 = vsub.f32 %v13886_v33, %v17090_v63  ;;  %8747 = vmatprep.subr.mxu1 %v5529_v6  ;;  %v5543_v28 = vand.u32 4294901760, %v5542_v54  ;;  %v17092_v63 = vand.u32 4294901760, %v13913_v47 }
 0x3dd   :  { %8705 = vmatpush3.msra.mxu0 %v13576_v0  ;;  %v5556_v7 = vsub.f32 %v13900_v49, %v17091_v16  ;;  %8748 = vmatpush3.msra.mxu1 %v5417_v58  ;;  %v5431_v2 = vand.u32 4294901760, %v5430_v22  ;;  %v17093_v54 = vand.u32 4294901760, %v13923_v52  ;;  %v17094_v22 = vand.u32 4294901760, %v13933_v48 }
 0x3de   :  { %8706 = vmatprep.subr.mxu0 %v13588_v51  ;;  %v5444_v37 = vsub.f32 %v13913_v47, %v17092_v63  ;;  %8749 = vmatprep.subr.mxu1 %v5536_v46  ;;  %v5550_v6 = vand.u32 4294901760, %v5549_v23  ;;  %v5438_v58 = vand.u32 4294901760, %v5437_v18  ;;  %v16023_v29 = vand.u32 4294901760, %v13967_v34 }
 0x3df   :  { %8707 = vmatpush3.msra.mxu0 %v13600_v20  ;;  %v5563_v16 = vsub.f32 %v13923_v52, %v17093_v54  ;;  %8750 = vmatpush3.msra.mxu1 %v5424_v27  ;;  %v5451_v63 = vsub.f32 %v13933_v48, %v17094_v22  ;;  %v5557_v46 = vand.u32 4294901760, %v5556_v7  ;;  %v17095_v23 = vand.u32 4294901760, %v13943_v10 }
 0x3e0   :  { %8708 = vmatprep.subr.mxu0 %v13617_v25  ;;  %8751 = vmatprep.subr.mxu1 %v5543_v28  ;;  %v5445_v27 = vand.u32 4294901760, %v5444_v37  ;;  %v17096_v18 = vand.u32 4294901760, %v13951_v13  ;;  %v17097_v28 = vand.u32 4294901760, %v13959_v38  ;;  %v5465_v37 = vsub.f32 %v13967_v34, %v16023_v29  ;;  %v17116_v29 = vld [vmem:[#allocation93_spill] sm:$0xff] }
 0x3e1   :  { %8709 = vmatpush3.msra.mxu0 %v13634_v30  ;;  %v5570_v54 = vsub.f32 %v13943_v10, %v17095_v23  ;;  %8752 = vmatpush3.msra.mxu1 %v5431_v2  ;;  %v5564_v22 = vand.u32 4294901760, %v5563_v16  ;;  %v5452_v23 = vand.u32 4294901760, %v5451_v63  ;;  %v17099_v63 = vld [vmem:[#allocation28_spill] sm:$0xff] }
 0x3e2   :  { %8710 = vmatprep.subr.mxu0 %v13648_v60  ;;  %v5458_v45 = vsub.f32 %v13951_v13, %v17096_v18  ;;  %8753 = vmatprep.subr.mxu1 %v5550_v6  ;;  %v5577_v7 = vsub.f32 %v13959_v38, %v17097_v28  ;;  %v17103_v18 = vld [vmem:[#allocation69_spill] sm:$0xff] }
 0x3e3   :  { %8711 = vmatpush3.msra.mxu0 %v13662_v43  ;;  %8754 = vmatpush3.msra.mxu1 %v5438_v58  ;;  %v5571_v2 = vand.u32 4294901760, %v5570_v54  ;;  %v5466_v58 = vand.u32 4294901760, %v5465_v37  ;;  %v17101_v54 = vld [vmem:[#allocation31_spill] sm:$0xff]  ;;  %v17105_v28 = vld [vmem:[#allocation73_spill] sm:$0xff] }
 0x3e4   :  { %8712 = vmatprep.subr.mxu0 %v13735_v15  ;;  %8755 = vmatprep.subr.mxu1 %v5557_v46  ;;  %v5459_v6 = vand.u32 4294901760, %v5458_v45  ;;  %v5578_v16 = vand.u32 4294901760, %v5577_v7  ;;  %v17098_v45 = vld [vmem:[#allocation94_spill] sm:$0xff]  ;;  %v17100_v46 = vld [vmem:[#allocation97_spill] sm:$0xff]  ;;  %v17106_v7 = vld [vmem:[#allocation75_spill] sm:$0xff] }
 0x3e5   :  { %8713 = vmatpush3.msra.mxu0 %v13750_v61  ;;  %8756 = vmatpush3.msra.mxu1 %v5445_v27  ;;  %v17102_v27 = vld [vmem:[#allocation67_spill] sm:$0xff] }
 0x3e6   :  { %8714 = vmatprep.subr.mxu0 %v13763_v42  ;;  %8757 = vmatprep.subr.mxu1 %v5564_v22  ;;  %v17104_v22 = vld [vmem:[#allocation71_spill] sm:$0xff] }
 0x3e7   :  { %8715 = vmatpush3.msra.mxu0 %v13777_v5  ;;  %8758 = vmatpush3.msra.mxu1 %v5452_v23  ;;  %v17107_v23 = vld [vmem:[#allocation77_spill] sm:$0xff]  ;;  %v17108_v37 = vld [vmem:[#allocation79_spill] sm:$0xff] }
 0x3e8   :  { %8716 = vmatprep.subr.mxu0 %v13794_v26  ;;  %8759 = vmatprep.subr.mxu1 %v5571_v2  ;;  %v17109_v2 = vld [vmem:[#allocation82_spill] sm:$0xff] }
 0x3e9   :  { %8717 = vmatpush3.msra.mxu0 %v13810_v39  ;;  %8760 = vmatpush3.msra.mxu1 %v5459_v6  ;;  %v17110_v6 = vld [vmem:[#allocation83_spill] sm:$0xff] }
 0x3ea   :  { %8718 = vmatprep.subr.mxu0 %v13826_v62  ;;  %8761 = vmatprep.subr.mxu1 %v5578_v16  ;;  %v17111_v16 = vld [vmem:[#allocation85_spill] sm:$0xff] }
 0x3eb   :  { %8719 = vmatpush3.msra.mxu0 %v13842_v44  ;;  %8762 = vmatpush3.msra.mxu1 %v5466_v58  ;;  %v17112_v58 = vld [vmem:[#allocation87_spill] sm:$0xff] }
 0x3ec   :  { %8720 = vmatprep.subr.mxu0 %v13854_v9  ;;  %5583 = vmatmul.mubr.f32.vlgmr.msra.gmra.mxu1 %v17098_v45  ;;  %v17117_v45 = vld [vmem:[#allocation81_spill] sm:$0xff] }
 0x3ed   :  { %8801 = vmatprep.subr.mxu1 %v13484_v3  ;;  %8721 = vmatpush3.msra.mxu0 %v13866_v12 }
 0x3ee   :  { %8802 = vmatpush3.msra.mxu1 %v13492_v24  ;;  %5825 = vmatprep.mubr.f32.mxu1 %v17099_v63  ;;  %v17113_v63 = vld [vmem:[#allocation89_spill] sm:$0xff] }
 0x3ef   :  { %8722 = vmatprep.subr.mxu0 %v13877_v32  ;;  %8803 = vmatprep.subr.mxu1 %v13500_v14 }
 0x3f0   :  { %8723 = vmatpush3.msra.mxu0 %v13888_v57  ;;  %8804 = vmatpush3.msra.mxu1 %v13508_v31 }
 0x3f1   :  { %8724 = vmatprep.subr.mxu0 %v13902_v1  ;;  %8805 = vmatprep.subr.mxu1 %v13519_v50 }
 0x3f2   :  { %8725 = vmatpush3.msra.mxu0 %v13915_v21  ;;  %8806 = vmatpush3.msra.mxu1 %v13530_v4 }
 0x3f3   :  { %8726 = vmatprep.subr.mxu0 %v13925_v41  ;;  %8807 = vmatprep.subr.mxu1 %v13541_v17 }
 0x3f4   :  { %8727 = vmatpush3.msra.mxu0 %v13935_v8  ;;  %8808 = vmatpush3.msra.mxu1 %v13552_v35 }
 0x3f5   :  { %5351 = vmatmul.mubr.f32.vlgmr.msra.gmra.mxu0 %v17100_v46  ;;  %8766 = vmatprep.subr.mxu0 %v13517_v56  ;;  %v17114_v46 = vld [vmem:[#allocation91_spill] sm:$0xff] }
 0x3f6   :  { %8809 = vmatprep.subr.mxu1 %v13564_v59  ;;  %8767 = vmatpush3.msra.mxu0 %v13528_v11 }
 0x3f7   :  { %5718 = vmatprep.mubr.f32.mxu0 %v17101_v54  ;;  %8810 = vmatpush3.msra.mxu1 %v13576_v0  ;;  %v17115_v54 = vld [vmem:[#allocation80_spill] sm:$0xff] }
 0x3f8   :  { %8768 = vmatprep.subr.mxu0 %v13539_v19  ;;  %8811 = vmatprep.subr.mxu1 %v13588_v51 }
 0x3f9   :  { %8769 = vmatpush3.msra.mxu0 %v17102_v27  ;;  %8812 = vmatpush3.msra.mxu1 %v13600_v20 }
 0x3fa   :  { %8770 = vmatprep.subr.mxu0 %v17103_v18  ;;  %8813 = vmatprep.subr.mxu1 %v13617_v25 }
 0x3fb   :  { %8771 = vmatpush3.msra.mxu0 %v17104_v22  ;;  %8814 = vmatpush3.msra.mxu1 %v13634_v30 }
 0x3fc   :  { %8772 = vmatprep.subr.mxu0 %v17105_v28  ;;  %8815 = vmatprep.subr.mxu1 %v13648_v60 }
 0x3fd   :  { %8773 = vmatpush3.msra.mxu0 %v17106_v7  ;;  %8816 = vmatpush3.msra.mxu1 %v13662_v43 }
 0x3fe   :  { %8774 = vmatprep.subr.mxu0 %v17107_v23  ;;  %8817 = vmatprep.subr.mxu1 %v13735_v15 }
 0x3ff   :  { %8775 = vmatpush3.msra.mxu0 %v17108_v37  ;;  %8818 = vmatpush3.msra.mxu1 %v13750_v61 }
 0x400   :  { %8776 = vmatprep.subr.mxu0 %v17109_v2  ;;  %8819 = vmatprep.subr.mxu1 %v13763_v42 }
 0x401   :  { %8777 = vmatpush3.msra.mxu0 %v17110_v6  ;;  %8820 = vmatpush3.msra.mxu1 %v13777_v5 }
 0x402   :  { %8778 = vmatprep.subr.mxu0 %v17111_v16  ;;  %8821 = vmatprep.subr.mxu1 %v13794_v26 }
 0x403   :  { %8779 = vmatpush3.msra.mxu0 %v17112_v58  ;;  %8822 = vmatpush3.msra.mxu1 %v13810_v39 }
 0x404   :  { %8780 = vmatprep.subr.mxu0 %v17113_v63  ;;  %8823 = vmatprep.subr.mxu1 %v13826_v62 }
 0x405   :  { %8781 = vmatpush3.msra.mxu0 %v17114_v46  ;;  %8824 = vmatpush3.msra.mxu1 %v13842_v44 }
 0x406   :  { %8782 = vmatprep.subr.mxu0 %v17115_v54  ;;  %8825 = vmatprep.subr.mxu1 %v13854_v9 }
 0x407   :  { %8783 = vmatpush3.msra.mxu0 %v17116_v29  ;;  %8826 = vmatpush3.msra.mxu1 %v13866_v12 }
 0x408   :  { %8784 = vmatprep.subr.mxu0 %v17117_v45  ;;  %8827 = vmatprep.subr.mxu1 %v13877_v32 }
 0x409   :  { %8785 = vmatpush3.msra.mxu0 %v13840_v53  ;;  %8828 = vmatpush3.msra.mxu1 %v13888_v57  ;;  %v17118_v53 = vld [vmem:[#allocation109_spill] sm:$0xff] }
 0x40a   :  { %8786 = vmatprep.subr.mxu0 %v13852_v36  ;;  %8829 = vmatprep.subr.mxu1 %v13902_v1 }
 0x40b   :  { %8787 = vmatpush3.msra.mxu0 %v13864_v55  ;;  %8830 = vmatpush3.msra.mxu1 %v13915_v21  ;;  %v17119_v55 = vld [vmem:[#allocation23_spill] sm:$0xff] }
 0x40c   :  { %8788 = vmatprep.subr.mxu0 %v13875_v40  ;;  %8831 = vmatprep.subr.mxu1 %v13925_v41 }
 0x40d   :  { %8789 = vmatpush3.msra.mxu0 %v13886_v33  ;;  %8832 = vmatpush3.msra.mxu1 %v13935_v8 }
 0x40e   :  { %8790 = vmatprep.subr.mxu0 %v13900_v49  ;;  %5829 = vmatmul.mubr.f32.vlgmr.msra.gmra.mxu1 %v17118_v53  ;;  %v17146_v53 = vand.u32 4294901760, %v13886_v33  ;;  %v1954_v33 = vpop.f32.mrf.mxu0 }
 0x40f   :  { %8871 = vmatprep.subr.mxu1 %v13484_v3  ;;  %8791 = vmatpush3.msra.mxu0 %v13913_v47  ;;  %v17120_v3 = vld [vmem:[#allocation107_spill] sm:$0xff] }
 0x410   :  { %8872 = vmatpush3.msra.mxu1 %v13492_v24  ;;  %6099 = vmatprep.mubr.f32.mxu1 %v17119_v55  ;;  %v17121_v24 = vand.u32 4294901760, %v13517_v56  ;;  %v17125_v56 = vand.u32 4294901760, %v17103_v18 }
 0x411   :  { %8792 = vmatprep.subr.mxu0 %v13923_v52  ;;  %8873 = vmatprep.subr.mxu1 %v13500_v14  ;;  %v17122_v14 = vand.u32 4294901760, %v13528_v11  ;;  %v17126_v11 = vand.u32 4294901760, %v17104_v22 }
 0x412   :  { %8793 = vmatpush3.msra.mxu0 %v13933_v48  ;;  %8874 = vmatpush3.msra.mxu1 %v13508_v31  ;;  %v17123_v31 = vand.u32 4294901760, %v13539_v19  ;;  %v17128_v19 = vand.u32 4294901760, %v17106_v7 }
 0x413   :  { %8794 = vmatprep.subr.mxu0 %v13943_v10  ;;  %8875 = vmatprep.subr.mxu1 %v13519_v50  ;;  %v17124_v50 = vand.u32 4294901760, %v17102_v27 }
 0x414   :  { %8795 = vmatpush3.msra.mxu0 %v13951_v13  ;;  %8876 = vmatpush3.msra.mxu1 %v13530_v4  ;;  %v17127_v4 = vand.u32 4294901760, %v17105_v28 }
 0x415   :  { %8796 = vmatprep.subr.mxu0 %v13959_v38  ;;  %8877 = vmatprep.subr.mxu1 %v13541_v17  ;;  %v17129_v17 = vand.u32 4294901760, %v17107_v23 }
 0x416   :  { %8797 = vmatpush3.msra.mxu0 %v13967_v34  ;;  %8878 = vmatpush3.msra.mxu1 %v13552_v35  ;;  %v17130_v35 = vand.u32 4294901760, %v17108_v37 }
 0x417   :  { %5721 = vmatmul.mubr.f32.vlgmr.msra.gmra.mxu0 %v17120_v3  ;;  %8836 = vmatprep.subr.mxu0 %v17121_v24 }
 0x418   :  { %8879 = vmatprep.subr.mxu1 %v13564_v59  ;;  %8837 = vmatpush3.msra.mxu0 %v17122_v14  ;;  %v17131_v59 = vand.u32 4294901760, %v17109_v2 }
 0x419   :  { %5995 = vmatprep.mubr.f32.mxu0 %v17119_v55  ;;  %8880 = vmatpush3.msra.mxu1 %v13576_v0  ;;  %v17133_v0 = vand.u32 4294901760, %v17111_v16  ;;  %v17150_v55 = vand.u32 4294901760, %v13923_v52  ;;  %v2347_v52 = vpop.f32.mrf.mxu1 }
 0x41a   :  { %8838 = vmatprep.subr.mxu0 %v17123_v31  ;;  %8881 = vmatprep.subr.mxu1 %v13588_v51  ;;  %v17135_v51 = vand.u32 4294901760, %v17113_v63  ;;  %v2348_v37 = vadd.f32 %v2347_v52, %v1954_v33 }
 0x41b   :  { %8839 = vmatpush3.msra.mxu0 %v17124_v50  ;;  %8882 = vmatpush3.msra.mxu1 %v13600_v20  ;;  %v17136_v20 = vand.u32 4294901760, %v17114_v46 }
 0x41c   :  { %8840 = vmatprep.subr.mxu0 %v17125_v56  ;;  %8883 = vmatprep.subr.mxu1 %v13617_v25  ;;  %v17137_v25 = vand.u32 4294901760, %v17115_v54 }
 0x41d   :  { %8841 = vmatpush3.msra.mxu0 %v17126_v11  ;;  %8884 = vmatpush3.msra.mxu1 %v13634_v30  ;;  %v17140_v30 = vld [vmem:[#allocation99_spill] sm:$0xff] }
 0x41e   :  { %8842 = vmatprep.subr.mxu0 %v17127_v4  ;;  %8885 = vmatprep.subr.mxu1 %v13648_v60  ;;  %v17132_v60 = vand.u32 4294901760, %v17110_v6 }
 0x41f   :  { %8843 = vmatpush3.msra.mxu0 %v17128_v19  ;;  %8886 = vmatpush3.msra.mxu1 %v13662_v43  ;;  %v17134_v43 = vand.u32 4294901760, %v17112_v58 }
 0x420   :  { %8844 = vmatprep.subr.mxu0 %v17129_v17  ;;  %8887 = vmatprep.subr.mxu1 %v13735_v15  ;;  %v17142_v15 = vand.u32 4294901760, %v13852_v36  ;;  %v17148_v36 = vld [vmem:[#allocation94_spill] sm:$0xff] }
 0x421   :  { %8845 = vmatpush3.msra.mxu0 %v17130_v35  ;;  %8888 = vmatpush3.msra.mxu1 %v13750_v61  ;;  %v17141_v61 = vand.u32 4294901760, %v17140_v30 }
 0x422   :  { %8846 = vmatprep.subr.mxu0 %v17131_v59  ;;  %8889 = vmatprep.subr.mxu1 %v13763_v42 }
 0x423   :  { %8847 = vmatpush3.msra.mxu0 %v17132_v60  ;;  %8890 = vmatpush3.msra.mxu1 %v13777_v5  ;;  %v17143_v5 = vld [vmem:[#allocation101_spill] sm:$0xff] }
 0x424   :  { %8848 = vmatprep.subr.mxu0 %v17133_v0  ;;  %8891 = vmatprep.subr.mxu1 %v13794_v26  ;;  %v17138_v26 = vand.u32 4294901760, %v17116_v29  ;;  %v17144_v42 = vand.u32 4294901760, %v17143_v5 }
 0x425   :  { %8849 = vmatpush3.msra.mxu0 %v17134_v43  ;;  %8892 = vmatpush3.msra.mxu1 %v13810_v39  ;;  %v17139_v39 = vand.u32 4294901760, %v17117_v45 }
 0x426   :  { %8850 = vmatprep.subr.mxu0 %v17135_v51  ;;  %8893 = vmatprep.subr.mxu1 %v13826_v62  ;;  %v17145_v62 = vand.u32 4294901760, %v13875_v40  ;;  %v17153_v40 = vand.u32 4294901760, %v13951_v13 }
 0x427   :  { %8851 = vmatpush3.msra.mxu0 %v17136_v20  ;;  %8894 = vmatpush3.msra.mxu1 %v13842_v44  ;;  %v17147_v44 = vand.u32 4294901760, %v13900_v49  ;;  %v17155_v49 = vand.u32 4294901760, %v13967_v34 }
 0x428   :  { %8852 = vmatprep.subr.mxu0 %v17137_v25  ;;  %8895 = vmatprep.subr.mxu1 %v13854_v9  ;;  %v17149_v9 = vand.u32 4294901760, %v13913_v47  ;;  %v1956_v47 = vpop.f32.mrf.mxu0 }
 0x429   :  { %8853 = vmatpush3.msra.mxu0 %v17138_v26  ;;  %8896 = vmatpush3.msra.mxu1 %v13866_v12  ;;  %v17151_v12 = vand.u32 4294901760, %v13933_v48  ;;  %v2349_v48 = vpop.f32.mrf.mxu1 }
 0x42a   :  { %8854 = vmatprep.subr.mxu0 %v17139_v39  ;;  %8897 = vmatprep.subr.mxu1 %v13877_v32  ;;  %v17154_v32 = vand.u32 4294901760, %v13959_v38  ;;  %v2350_v28 = vadd.f32 %v2349_v48, %v1956_v47 }
 0x42b   :  { %8855 = vmatpush3.msra.mxu0 %v17141_v61  ;;  %8898 = vmatpush3.msra.mxu1 %v13888_v57  ;;  %v17152_v57 = vand.u32 4294901760, %v13943_v10 }
 0x42c   :  { %8856 = vmatprep.subr.mxu0 %v17142_v15  ;;  %8899 = vmatprep.subr.mxu1 %v13902_v1  ;;  %v2550_v1 = vpop.f32.mrf.mxu0 }
 0x42d   :  { %8857 = vmatpush3.msra.mxu0 %v17144_v42  ;;  %8900 = vmatpush3.msra.mxu1 %v13915_v21  ;;  %v2691_v21 = vpop.f32.mrf.mxu1  ;;  %v2551_v16 = vadd.f32 %v2550_v1, %v2348_v37 }
 0x42e   :  { %8858 = vmatprep.subr.mxu0 %v17145_v62  ;;  %8901 = vmatprep.subr.mxu1 %v13925_v41  ;;  %v2552_v41 = vpop.f32.mrf.mxu0 }
 0x42f   :  { %8859 = vmatpush3.msra.mxu0 %v17146_v53  ;;  %8902 = vmatpush3.msra.mxu1 %v13935_v8  ;;  %v2693_v8 = vpop.f32.mrf.mxu1  ;;  %v2553_v2 = vadd.f32 %v2552_v41, %v2350_v28  ;;  %v2692_v3 = vadd.f32 %v2691_v21, %v2551_v16 }
 0x430   :  { %8860 = vmatprep.subr.mxu0 %v17147_v44  ;;  %6101 = vmatmul.mubr.f32.vlgmr.msra.gmra.mxu1 %v17148_v36  ;;  %v2956_v10 = vpop.f32.mrf.mxu0 }
 0x431   :  { %8861 = vmatpush3.msra.mxu0 %v17149_v9  ;;  %v3093_v29 = vpop.f32.mrf.mxu1  ;;  %v2694_v63 = vadd.f32 %v2693_v8, %v2553_v2  ;;  %v2957_v31 = vadd.f32 %v2956_v10, %v2692_v3 }
 0x432   :  { %8862 = vmatprep.subr.mxu0 %v17150_v55  ;;  %v2958_v13 = vpop.f32.mrf.mxu0 }
 0x433   :  { %8863 = vmatpush3.msra.mxu0 %v17151_v12  ;;  %v3095_v27 = vpop.f32.mrf.mxu1  ;;  %v2959_v24 = vadd.f32 %v2958_v13, %v2694_v63  ;;  %v3094_v19 = vadd.f32 %v3093_v29, %v2957_v31 }
 0x434   :  { %8864 = vmatprep.subr.mxu0 %v17152_v57  ;;  %v3238_v45 = vpop.f32.mrf.mxu0 }
 0x435   :  { %8865 = vmatpush3.msra.mxu0 %v17153_v40  ;;  %v3631_v38 = vpop.f32.mrf.mxu1  ;;  %v3096_v56 = vadd.f32 %v3095_v27, %v2959_v24  ;;  %v3239_v59 = vadd.f32 %v3238_v45, %v3094_v19  ;;  %v17156_v19 = vld [vmem:[#allocation7_spill] sm:$0xff] }
 0x436   :  { %8866 = vmatprep.subr.mxu0 %v17154_v32  ;;  %v3240_v18 = vpop.f32.mrf.mxu0 }
 0x437   :  { %8867 = vmatpush3.msra.mxu0 %v17155_v49  ;;  %v3633_v34 = vpop.f32.mrf.mxu1  ;;  %v3241_v17 = vadd.f32 %v3240_v18, %v3096_v56  ;;  %v3632_v20 = vadd.f32 %v3631_v38, %v3239_v59 }
 0x438   :  { %5997 = vmatmul.mubr.f32.vlgmr.msra.gmra.mxu0 %v17148_v36  ;;  %v3834_v22 = vpop.f32.mrf.mxu0 }
 0x439   :  { %v3975_v7 = vpop.f32.mrf.mxu1  ;;  %v3634_v0 = vadd.f32 %v3633_v34, %v3241_v17  ;;  %v3835_v30 = vadd.f32 %v3834_v22, %v3632_v20  ;;  %v6110_v17 = vmul.u32 103, %v17156_v19 }
 0x43a   :  { %v3836_v23 = vpop.f32.mrf.mxu0 }
 0x43b   :  { %v3977_v58 = vpop.f32.mrf.mxu1  ;;  %v3837_v25 = vadd.f32 %v3836_v23, %v3634_v0  ;;  %v3976_v36 = vadd.f32 %v3975_v7, %v3835_v30  ;;  %v6114_v30 = vadd.s32 103, %v6110_v17 }
 0x43c   :  { %v4240_v6 = vpop.f32.mrf.mxu0 }
 0x43d   :  { %v4377_v46 = vpop.f32.mrf.mxu1  ;;  %v3978_v42 = vadd.f32 %v3977_v58, %v3837_v25  ;;  %v4241_v57 = vadd.f32 %v4240_v6, %v3976_v36 }
 0x43e   :  { %v4242_v54 = vpop.f32.mrf.mxu0 }
 0x43f   :  { %v4379_v50 = vpop.f32.mrf.mxu1  ;;  %v4243_v9 = vadd.f32 %v4242_v54, %v3978_v42  ;;  %v14192_v48 = vadd.f32 %v4377_v46, %v4241_v57  ;;  %v17157_v42 = vld [vmem:[#allocation9_spill] sm:$0xff] }
 0x440   :  { %vm6112_vm4 = vcmp.ge.s32.totalorder %v17157_v42, %v6110_v17  ;;  %vm6116_vm5 = vcmp.lt.s32.totalorder %v17157_v42, %v6114_v30  ;;  %v6362_v42 = vld [vmem:[%s15446_s3 + $0xe0] sm:$0xff] }
 0x441   :  { %v14190_v33 = vadd.f32 %v4379_v50, %v4243_v9  ;;  %v6124_v27 = vsel %vm57_vm0, %v14192_v48, 0.0  ;;  %v6146_v38 = vmul.f32 %v14192_v48, %v14192_v48  ;;  %v17158_v9 = vld [vmem:[#allocation8_spill] sm:$0xff]  ;;  %vm6119_vm8 = vmand %vm6112_vm4, %vm6116_vm5 }
 0x442   :  { %v6125_v37 = vrot.slane %v6124_v27, 4  ;;  %vm6111_vm6 = vcmp.ge.s32.totalorder %v17158_v9, %v6110_v17  ;;  %vm6115_vm7 = vcmp.lt.s32.totalorder %v17158_v9, %v6114_v30 }
 0x443   :  { %v6131_v10 = vsel %vm57_vm0, %v14190_v33, 0.0  ;;  %v6147_v8 = vmul.f32 %v14190_v33, %v14190_v33  ;;  %v6149_v2 = vsel %vm57_vm0, %v6146_v38, 0.0  ;;  %vm6118_vm9 = vmand %vm6111_vm6, %vm6115_vm7  ;;  %vm7791_vm6 = vcmask 851968  }
 0x444   :  { %v6132_v22 = vrot.slane %v6131_v10, 4  ;;  %v6126_v3 = vadd.f32 %v6125_v37, %v6124_v27  ;;  %v6150_v24 = vrot.slane %v6149_v2, 4  ;;  %vm8466_vm7 = vcmask 402432  }
 0x445   :  { %v8553_v11 = vpop.f32.mrf.mxu1  ;;  %v6156_v7 = vsel %vm57_vm0, %v6147_v8, 0.0  ;;  %vm6138_vm0 = vcmask 427008  }
 0x446   :  { %v6133_v58 = vadd.f32 %v6132_v22, %v6131_v10  ;;  %v6157_v63 = vrot.slane %v6156_v7, 4  ;;  %v6151_v59 = vadd.f32 %v6150_v24, %v6149_v2 }
 0x447   :  { %v8554_v60 = vpop.f32.mrf.mxu1 }
 0x448   :  { %v8555_v61 = vadd.f32 %v8554_v60, %v8553_v11  ;;  %v6134_v50 = vrot.slane %v6133_v58, 2  ;;  %v6158_v56 = vadd.f32 %v6157_v63, %v6156_v7 }
 0x44a   :  { %v6159_v20 = vrot.slane %v6158_v56, 2  ;;  %v6135_v25 = vadd.f32 %v6134_v50, %v6133_v58 }
 0x44e   :  { %v8518_v14 = vpop.f32.mrf.mxu0 }
 0x450   :  { %v8519_v4 = vpop.f32.mrf.mxu0 }
 0x451   :  { %v8520_v26 = vadd.f32 %v8519_v4, %v8518_v14 }
 0x453   :  { %v4723_v62 = vadd.f32 %v8555_v61, %v8520_v26  ;;  %v6152_v61 = vrot.slane %v6151_v59, 2 }
 0x455   :  { %v6153_v57 = vadd.f32 %v6152_v61, %v6151_v59  ;;  %v6365_v59 = vld [vmem:[%s15446_s3 + $0xf8] sm:$0xff] }
 0x467   :  { %v8623_v43 = vpop.f32.mrf.mxu1 }
 0x469   :  { %v8624_v5 = vpop.f32.mrf.mxu1 }
 0x46a   :  { %v8625_v40 = vadd.f32 %v8624_v5, %v8623_v43 }
 0x470   :  { %v8588_v35 = vpop.f32.mrf.mxu0 }
 0x472   :  { %v8589_v51 = vpop.f32.mrf.mxu0 }
 0x473   :  { %v8590_v15 = vadd.f32 %v8589_v51, %v8588_v35  ;;  %v6127_v35 = vrot.slane %v6126_v3, 2 }
 0x475   :  { %v4861_v55 = vadd.f32 %v8590_v15, %v4723_v62  ;;  %v6128_v15 = vadd.f32 %v6127_v35, %v6126_v3  ;;  %v6136_v62 = vrot.slane %v6135_v25, 1 }
 0x477   :  { %v4969_v52 = vadd.f32 %v8625_v40, %v4861_v55 }
 0x489   :  { %v8693_v53 = vpop.f32.mrf.mxu1 }
 0x48b   :  { %v8694_v49 = vpop.f32.mrf.mxu1 }
 0x48c   :  { %v8695_v29 = vadd.f32 %v8694_v49, %v8693_v53  ;;  %v6160_v53 = vadd.f32 %v6159_v20, %v6158_v56  ;;  %v6137_v49 = vadd.f32 %v6136_v62, %v6135_v25  ;;  %v6348_v25 = vld [vmem:[%s15446_s3 + $0x70] sm:$0xff]  ;;  %v6346_v62 = vld [vmem:[%s15446_s3 + $0x60] sm:$0xff] }
 0x494   :  { %v8658_v39 = vpop.f32.mrf.mxu0 }
 0x496   :  { %v8659_v44 = vpop.f32.mrf.mxu0 }
 0x497   :  { %v8660_v32 = vadd.f32 %v8659_v44, %v8658_v39 }
 0x499   :  { %v5137_v21 = vadd.f32 %v8660_v32, %v4969_v52 }
 0x49b   :  { %v5241_v18 = vadd.f32 %v8695_v29, %v5137_v21  ;;  %v17160_v21 = vmov 0.0   ;;  %v6154_v29 = vrot.slane %v6153_v57, 1 }
 0x49d   :  { %v6155_v7 = vadd.f32 %v6154_v29, %v6153_v57 }
 0x4ac   :  { %v8763_v47 = vpop.f32.mrf.mxu1 }
 0x4ae   :  { %v8764_v45 = vpop.f32.mrf.mxu1 }
 0x4af   :  { %v8765_v6 = vadd.f32 %v8764_v45, %v8763_v47  ;;  %v6161_v47 = vrot.slane %v6160_v53, 1  ;;  %v14220_v45 = vsel %vm6118_vm9, 1.0, %v17160_v21 }
 0x4b0   :  { %v6182_v3 = vmul.f32 %v6155_v7, %v14220_v45 }
 0x4b5   :  { %v8728_v12 = vpop.f32.mrf.mxu0 }
 0x4b7   :  { %v8729_v1 = vpop.f32.mrf.mxu0 }
 0x4b8   :  { %v8730_v13 = vadd.f32 %v8729_v1, %v8728_v12  ;;  %v6129_v12 = vrot.slane %v6128_v15, 1  ;;  %v17159_v1 = vld [vmem:[#allocation10_spill] sm:$0xff] }
 0x4b9   :  { %vm6113_vm10 = vcmp.ge.s32.totalorder %v17159_v1, %v6110_v17  ;;  %vm6117_vm11 = vcmp.lt.s32.totalorder %v17159_v1, %v6114_v30  ;;  %v14261_v30 = vand.u32 4294901760, %v6348_v25 }
 0x4ba   :  { %v5353_v23 = vadd.f32 %v8730_v13, %v5241_v18  ;;  %v6130_v10 = vadd.f32 %v6129_v12, %v6128_v15  ;;  %vm6120_vm12 = vmand %vm6113_vm10, %vm6117_vm11  ;;  %v6162_v18 = vadd.f32 %v6161_v47, %v6160_v53 }
 0x4bb   :  { %v14225_v37 = vsel %vm6120_vm12, 1.0, %v17160_v21  ;;  %v14286_v12 = vsub.f32 %v6348_v25, %v14261_v30 }
 0x4bc   :  { %v5585_v54 = vadd.f32 %v8765_v6, %v5353_v23 }
 0x4ce   :  { %v8833_v34 = vpop.f32.mrf.mxu1 }
 0x4d0   :  { %v8834_v46 = vpop.f32.mrf.mxu1 }
 0x4d1   :  { %v8835_v4 = vadd.f32 %v8834_v46, %v8833_v34 }
 0x4d7   :  { %v8798_v41 = vpop.f32.mrf.mxu0 }
 0x4d9   :  { %v8799_v28 = vpop.f32.mrf.mxu0 }
 0x4da   :  { %v8800_v16 = vadd.f32 %v8799_v28, %v8798_v41  ;;  %v14217_v41 = vsel %vm6119_vm8, 1.0, %v17160_v21  ;;  %v6170_v28 = vmul.f32 %v6130_v10, %v14220_v45  ;;  %v16037_v10 = vand.u32 4294901760, %v14286_v12 }
 0x4db   :  { %v6171_v38 = vmul.f32 %v6137_v49, %v14217_v41  ;;  %v6183_v58 = vmul.f32 %v6162_v18, %v14217_v41 }
 0x4dc   :  { %v5723_v31 = vadd.f32 %v8800_v16, %v5585_v54  ;;  %v6174_v46 = vsel %vm6173_vm13, %v6170_v28, 0.0 }
 0x4dd   :  { %v6175_v6 = vsel %vm6173_vm13, %v6171_v38, 0.0  ;;  %v6186_v50 = vsel %vm6173_vm13, %v6183_v58, 0.0 }
 0x4de   :  { %v5831_v43 = vadd.f32 %v8835_v4, %v5723_v31  ;;  %v6176_v24 = vadd.f32 %v6175_v6, %v6174_v46  ;;  %v6345_v6 = vld [vmem:[%s15446_s3 + $0x58] sm:$0xff] }
 0x4f0   :  { %v8903_v14 = vpop.f32.mrf.mxu1 }
 0x4f2   :  { %v8904_v60 = vpop.f32.mrf.mxu1 }
 0x4f3   :  { %v8905_v26 = vadd.f32 %v8904_v60, %v8903_v14  ;;  %v6349_v60 = vld [vmem:[%s15446_s3 + $0x78] sm:$0xff] }
 0x4f8   :  { %v8868_v11 = vpop.f32.mrf.mxu0 }
 0x4fa   :  { %v8869_v0 = vpop.f32.mrf.mxu0 }
 0x4fb   :  { %v8870_v51 = vadd.f32 %v8869_v0, %v8868_v11  ;;  %v6185_v11 = vsel %vm6173_vm13, %v6182_v3, 0.0  ;;  %v6364_v0 = vld [vmem:[%s15446_s3 + $0xf0] sm:$0xff] }
 0x4fc   :  { %v6187_v17 = vadd.f32 %v6186_v50, %v6185_v11  ;;  %v14250_v20 = vand.u32 4294901760, %v6364_v0  ;;  %v6344_v3 = vld [vmem:[%s15446_s3 + $0x50] sm:$0xff] }
 0x4fd   :  { %v5999_v39 = vadd.f32 %v8870_v51, %v5831_v43  ;;  %v14246_v43 = vand.u32 4294901760, %v6365_v59  ;;  %v14248_v51 = vand.u32 4294901760, %v6349_v60 }
 0x4ff   :  { %v14205_v5 = vadd.f32 %v8905_v26, %v5999_v39  ;;  %17161 = vst [vmem:[#allocation90_spill] sm:$0xff] %v14246_v43  ;;  %v6363_v26 = vld [vmem:[%s15446_s3 + $0xe8] sm:$0xff]  ;;  %v14274_v53 = vsub.f32 %v6365_v59, %v14246_v43  ;;  %8906 = vmatprep.subr.mxu0 %v14246_v43  ;;  %v14364_v59 = vand.u32 4294901760, %v6345_v6 }
 0x500   :  { %v6347_v39 = vld [vmem:[%s15446_s3 + $0x68] sm:$0xff]  ;;  %v14263_v61 = vand.u32 4294901760, %v6363_v26  ;;  %8907 = vmatpush3.msra.mxu0 %v14248_v51 }
 0x501   :  { %v6139_v44 = vsel %vm6138_vm0, %v14205_v5, 0.0  ;;  %v6148_v36 = vmul.f32 %v14205_v5, %v14205_v5  ;;  %v14265_v15 = vand.u32 4294901760, %v6347_v39  ;;  %17162 = vst [vmem:[#allocation105_spill] sm:$0xff] %v14274_v53  ;;  %v16040_v49 = vand.u32 4294901760, %v14274_v53  ;;  %8908 = vmatprep.subr.mxu0 %v14250_v20 }
 0x502   :  { %v6140_v55 = vrot.slane %v6139_v44, 4  ;;  %v14289_v57 = vsub.f32 %v6363_v26, %v14263_v61  ;;  %8909 = vmatpush3.msra.mxu0 %v14261_v30  ;;  %v14371_v26 = vand.u32 4294901760, %v6344_v3 }
 0x503   :  { %v6163_v40 = vsel %vm6138_vm0, %v6148_v36, 0.0  ;;  %v14280_v36 = vsub.f32 %v6364_v0, %v14250_v20  ;;  %8910 = vmatprep.subr.mxu0 %v14263_v61  ;;  %v6342_v0 = vld [vmem:[%s15446_s3 + $0x40] sm:$0xff] }
 0x504   :  { %v6164_v32 = vrot.slane %v6163_v40, 4  ;;  %v6141_v52 = vadd.f32 %v6140_v55, %v6139_v44  ;;  %v14277_v44 = vsub.f32 %v6349_v60, %v14248_v51  ;;  %v14282_v55 = vand.u32 4294901760, %v6362_v42  ;;  %8911 = vmatpush3.msra.mxu0 %v14265_v15 }
 0x505   :  { %v16038_v47 = vand.u32 4294901760, %v14280_v36 }
 0x506   :  { %v6142_v8 = vrot.slane %v6141_v52, 2  ;;  %v6165_v13 = vadd.f32 %v6164_v32, %v6163_v40  ;;  %v14292_v40 = vsub.f32 %v6347_v39, %v14265_v15  ;;  %v14294_v32 = vand.u32 4294901760, %v6346_v62  ;;  %8912 = vmatprep.subr.mxu0 %v14282_v55 }
 0x507   :  { %v14301_v1 = vsub.f32 %v6362_v42, %v14282_v55  ;;  %v6615_v18 = vsub.f32 %v14280_v36, %v16038_v47 }
 0x508   :  { %v6143_v27 = vadd.f32 %v6142_v8, %v6141_v52  ;;  %v6166_v22 = vrot.slane %v6165_v13, 2  ;;  %v16039_v52 = vand.u32 4294901760, %v14277_v44  ;;  %v16036_v8 = vand.u32 4294901760, %v14289_v57  ;;  %8913 = vmatpush3.msra.mxu0 %v14294_v32 }
 0x509   :  { %v16034_v29 = vand.u32 4294901760, %v14292_v40  ;;  %v6616_v46 = vand.u32 4294901760, %v6615_v18 }
 0x50a   :  { %v6144_v34 = vrot.slane %v6143_v27, 1  ;;  %v6167_v23 = vadd.f32 %v6166_v22, %v6165_v13  ;;  %v14308_v13 = vsub.f32 %v6346_v62, %v14294_v32  ;;  %v6496_v38 = vsub.f32 %v14277_v44, %v16039_v52 }
 0x50b   :  { %v16033_v22 = vand.u32 4294901760, %v14301_v1  ;;  %v6622_v28 = vsub.f32 %v14289_v57, %v16036_v8  ;;  %v6510_v7 = vsub.f32 %v14292_v40, %v16034_v29  ;;  %v6339_v29 = vld [vmem:[%s15446_s3 + $0x28] sm:$0xff]  ;;  %v6354_v8 = vld [vmem:[%s15446_s3 + $0xa0] sm:$0xff] }
 0x50c   :  { %v6145_v2 = vadd.f32 %v6144_v34, %v6143_v27  ;;  %v6168_v16 = vrot.slane %v6167_v23, 1  ;;  %v6608_v27 = vsub.f32 %v14274_v53, %v16040_v49  ;;  %v6503_v34 = vsub.f32 %v14286_v12, %v16037_v10 }
 0x50d   :  { %v6623_v50 = vand.u32 4294901760, %v6622_v28  ;;  %v14479_v9 = vand.u32 4294901760, %v6339_v29  ;;  %v14490_v21 = vand.u32 4294901760, %v6354_v8 }
 0x50e   :  { %v6172_v63 = vmul.f32 %v6145_v2, %v14225_v37  ;;  %v6169_v54 = vadd.f32 %v6168_v16, %v6167_v23  ;;  %v16032_v23 = vand.u32 4294901760, %v14308_v13  ;;  %v6361_v2 = vld [vmem:[%s15446_s3 + $0xd8] sm:$0xff]  ;;  %v6360_v16 = vld [vmem:[%s15446_s3 + $0xd0] sm:$0xff]  ;;  %v6609_v58 = vand.u32 4294901760, %v6608_v27 }
 0x50f   :  { %v14366_v60 = vand.u32 4294901760, %v6360_v16  ;;  %v14381_v27 = vsub.f32 %v6345_v6, %v14364_v59  ;;  %17172 = vst [vmem:[#allocation27_spill] sm:$0xff] %v14479_v9  ;;  %17176 = vst [vmem:[#allocation34_spill] sm:$0xff] %v14490_v21 }
 0x510   :  { %v6178_v14 = vsel %vm6177_vm15, %v6172_v63, 0.0  ;;  %v6184_v31 = vmul.f32 %v6169_v54, %v14225_v37  ;;  %v6497_v63 = vand.u32 4294901760, %v6496_v38  ;;  %v6629_v54 = vsub.f32 %v14301_v1, %v16033_v22  ;;  %8941 = vmatprep.subr.mxu1 %v6609_v58  ;;  %v6355_v22 = vld [vmem:[%s15446_s3 + $0xa8] sm:$0xff] }
 0x511   :  { %v6179_v56 = vadd.f32 %v6178_v14, %v6176_v24  ;;  %v6359_v24 = vld [vmem:[%s15446_s3 + $0xc8] sm:$0xff]  ;;  %v6517_v11 = vsub.f32 %v14308_v13, %v16032_v23  ;;  %v14384_v38 = vsub.f32 %v6360_v16, %v14366_v60  ;;  %v16029_v16 = vand.u32 4294901760, %v14381_v27  ;;  %v6340_v23 = vld [vmem:[%s15446_s3 + $0x30] sm:$0xff] }
 0x512   :  { %v6188_v4 = vsel %vm6177_vm15, %v6184_v31, 0.0  ;;  %v6343_v14 = vld [vmem:[%s15446_s3 + $0x48] sm:$0xff]  ;;  %v6504_v31 = vand.u32 4294901760, %v6503_v34  ;;  %8942 = vmatpush3.msra.mxu1 %v6497_v63  ;;  %v14373_v39 = vand.u32 4294901760, %v6359_v24  ;;  %v14390_v34 = vsub.f32 %v6344_v3, %v14371_v26 }
 0x513   :  { %6180 = vadd.xlane.f32.xlu1 %v6179_v56  ;;  %v6189_v35 = vadd.f32 %v6188_v4, %v6187_v17  ;;  %v6511_v56 = vand.u32 4294901760, %v6510_v7  ;;  %v6358_v4 = vld [vmem:[%s15446_s3 + $0xc0] sm:$0xff]  ;;  %v6630_v17 = vand.u32 4294901760, %v6629_v54  ;;  %v6518_v25 = vand.u32 4294901760, %v6517_v11  ;;  %8943 = vmatprep.subr.mxu1 %v6616_v46  ;;  %17163 = vst [vmem:[#allocation11_spill] sm:$0xff] %v14384_v38 }
 0x514   :  { %v14375_v42 = vand.u32 4294901760, %v6343_v14  ;;  %v14386_v18 = vand.u32 4294901760, %v6358_v4  ;;  %8944 = vmatpush3.msra.mxu1 %v6504_v31  ;;  %17164 = vst [vmem:[#allocation16_spill] sm:$0xff] %v14390_v34  ;;  %v14393_v28 = vsub.f32 %v6359_v24, %v14373_v39  ;;  %v16026_v58 = vand.u32 4294901760, %v14384_v38 }
 0x515   :  { %8945 = vmatprep.subr.mxu1 %v6623_v50  ;;  %v16027_v46 = vand.u32 4294901760, %v14390_v34  ;;  %v6524_v31 = vsub.f32 %v14381_v27, %v16029_v16 }
 0x516   :  { %17165 = vst [vmem:[#allocation19_spill] sm:$0xff] %v14393_v28  ;;  %v14396_v7 = vsub.f32 %v6343_v14, %v14375_v42  ;;  %v14405_v63 = vsub.f32 %v6358_v4, %v14386_v18  ;;  %8946 = vmatpush3.msra.mxu1 %v6511_v56  ;;  %v16028_v54 = vand.u32 4294901760, %v14393_v28  ;;  %v6643_v50 = vsub.f32 %v14384_v38, %v16026_v58  ;;  %v6357_v58 = vld [vmem:[%s15446_s3 + $0xb8] sm:$0xff] }
 0x517   :  { %6190 = vadd.xlane.f32.xlu1 %v6189_v35  ;;  %v14362_v35 = vand.u32 4294901760, %v6361_v2  ;;  %8947 = vmatprep.subr.mxu1 %v6630_v17  ;;  %v6531_v11 = vsub.f32 %v14390_v34, %v16027_v46  ;;  %v6356_v46 = vld [vmem:[%s15446_s3 + $0xb0] sm:$0xff]  ;;  %v6525_v16 = vand.u32 4294901760, %v6524_v31  ;;  %v14466_v47 = vand.u32 4294901760, %v6357_v58 }
 0x518   :  { %17166 = vst [vmem:[#allocation17_spill] sm:$0xff] %v14396_v7  ;;  %17167 = vst [vmem:[#allocation12_spill] sm:$0xff] %v14405_v63  ;;  %v16031_v3 = vand.u32 4294901760, %v14396_v7  ;;  %v16035_v56 = vand.u32 4294901760, %v14405_v63  ;;  %8948 = vmatpush3.msra.mxu1 %v6518_v25  ;;  %v6650_v4 = vsub.f32 %v14393_v28, %v16028_v54  ;;  %v6341_v25 = vld [vmem:[%s15446_s3 + $0x38] sm:$0xff]  ;;  %v14470_v49 = vand.u32 4294901760, %v6356_v46 }
 0x519   :  { %v14378_v62 = vsub.f32 %v6361_v2, %v14362_v35  ;;  %8914 = vmatprep.subr.mxu0 %v14362_v35  ;;  %v14398_v2 = vand.u32 4294901760, %v6342_v0  ;;  %v14468_v52 = vand.u32 4294901760, %v6341_v25  ;;  %v17209_v34 = vld [vmem:[#allocation123_spill] sm:$0xff] }
 0x51a   :  { %8915 = vmatpush3.msra.mxu0 %v14364_v59  ;;  %v6538_v17 = vsub.f32 %v14396_v7, %v16031_v3  ;;  %v6657_v3 = vsub.f32 %v14405_v63, %v16035_v56  ;;  %v6651_v31 = vand.u32 4294901760, %v6650_v4  ;;  %17169 = vst [vmem:[#allocation22_spill] sm:$0xff] %v14470_v49  ;;  %v14488_v19 = vsub.f32 %v6356_v46, %v14470_v49 }
 0x51b   :  { %v16030_v6 = vand.u32 4294901760, %v14378_v62  ;;  %8916 = vmatprep.subr.mxu0 %v14366_v60  ;;  %v14412_v24 = vsub.f32 %v6342_v0, %v14398_v2 }
 0x51c   :  { %8917 = vmatpush3.msra.mxu0 %v14371_v26  ;;  %v6658_v10 = vand.u32 4294901760, %v6657_v3  ;;  %v14485_v3 = vsub.f32 %v6341_v25, %v14468_v52  ;;  %17175 = vst [vmem:[#allocation39_spill] sm:$0xff] %v14488_v19 }
 0x51d   :  { %17168 = vst [vmem:[#allocation20_spill] sm:$0xff] %v14412_v24  ;;  %v6636_v14 = vsub.f32 %v14378_v62, %v16030_v6  ;;  %8918 = vmatprep.subr.mxu0 %v14373_v39  ;;  %v16041_v0 = vand.u32 4294901760, %v14412_v24  ;;  %v6644_v6 = vand.u32 4294901760, %v6643_v50  ;;  %v6539_v50 = vand.u32 4294901760, %v6538_v17 }
 0x51e   :  { %8919 = vmatpush3.msra.mxu0 %v14375_v42  ;;  %v14475_v17 = vand.u32 4294901760, %v6340_v23  ;;  %17174 = vst [vmem:[#allocation29_spill] sm:$0xff] %v14485_v3  ;;  %v16049_v25 = vand.u32 4294901760, %v14485_v3 }
 0x51f   :  { %v6637_v54 = vand.u32 4294901760, %v6636_v14  ;;  %8920 = vmatprep.subr.mxu0 %v14386_v18  ;;  %v6532_v14 = vand.u32 4294901760, %v6531_v11  ;;  %v6545_v56 = vsub.f32 %v14412_v24, %v16041_v0  ;;  %v6338_v11 = vld [vmem:[%s15446_s3 + $0x20] sm:$0xff]  ;;  %v14477_v0 = vand.u32 4294901760, %v6355_v22 }
 0x520   :  { %8921 = vmatpush3.msra.mxu0 %v14398_v2  ;;  %17170 = vst [vmem:[#allocation25_spill] sm:$0xff] %v14475_v17 }
 0x521   :  { %8949 = vmatprep.subr.mxu1 %v6637_v54  ;;  %v6546_v4 = vand.u32 4294901760, %v6545_v56  ;;  %17171 = vst [vmem:[#allocation24_spill] sm:$0xff] %v14477_v0  ;;  %v14482_v54 = vsub.f32 %v6357_v58, %v14466_v47  ;;  %8922 = vmatprep.subr.mxu0 %v14466_v47  ;;  %v14497_v56 = vsub.f32 %v6355_v22, %v14477_v0  ;;  %v14502_v58 = vand.u32 4294901760, %v6338_v11 }
 0x522   :  { %8950 = vmatpush3.msra.mxu1 %v6525_v16  ;;  %v14494_v16 = vsub.f32 %v6340_v23, %v14475_v17  ;;  %8923 = vmatpush3.msra.mxu0 %v14468_v52  ;;  %v14509_v23 = vsub.f32 %v6354_v8, %v14490_v21 }
 0x523   :  { %8951 = vmatprep.subr.mxu1 %v6644_v6  ;;  %17173 = vst [vmem:[#allocation26_spill] sm:$0xff] %v14482_v54  ;;  %17178 = vst [vmem:[#allocation35_spill] sm:$0xff] %v14497_v56  ;;  %v14500_v6 = vsub.f32 %v6339_v29, %v14479_v9  ;;  %v16046_v46 = vand.u32 4294901760, %v14482_v54  ;;  %8924 = vmatprep.subr.mxu0 %v14470_v49 }
 0x524   :  { %8952 = vmatpush3.msra.mxu1 %v6532_v14  ;;  %17177 = vst [vmem:[#allocation30_spill] sm:$0xff] %v14494_v16  ;;  %17180 = vst [vmem:[#allocation37_spill] sm:$0xff] %v14502_v58  ;;  %v16052_v14 = vand.u32 4294901760, %v14488_v19  ;;  %v16053_v29 = vand.u32 4294901760, %v14494_v16  ;;  %8925 = vmatpush3.msra.mxu0 %v14475_v17 }
 0x525   :  { %17179 = vst [vmem:[#allocation45_spill] sm:$0xff] %v14500_v6  ;;  %8953 = vmatprep.subr.mxu1 %v6651_v31  ;;  %17181 = vst [vmem:[#allocation50_spill] sm:$0xff] %v14509_v23  ;;  %v14516_v31 = vsub.f32 %v6338_v11, %v14502_v58  ;;  %v6664_v8 = vsub.f32 %v14482_v54, %v16046_v46  ;;  %8926 = vmatprep.subr.mxu0 %v14477_v0  ;;  %v17183_v11 = vand.u32 4294901760, %v14497_v56 }
 0x526   :  { %8954 = vmatpush3.msra.mxu1 %v6539_v50  ;;  %v6552_v50 = vsub.f32 %v14485_v3, %v16049_v25  ;;  %v6671_v22 = vsub.f32 %v14488_v19, %v16052_v14  ;;  %v17184_v54 = vand.u32 4294901760, %v14500_v6  ;;  %v6353_v14 = vld [vmem:[%s15446_s3 + $0x98] sm:$0xff]  ;;  %8927 = vmatpush3.msra.mxu0 %v14479_v9  ;;  %v6335_v19 = vld [vmem:[%s15446_s3 + $0x8] sm:$0xff] }
 0x527   :  { %17182 = vst [vmem:[#allocation41_spill] sm:$0xff] %v14516_v31  ;;  %8955 = vmatprep.subr.mxu1 %v6658_v10  ;;  %v6559_v10 = vsub.f32 %v14494_v16, %v16053_v29  ;;  %v6678_v46 = vsub.f32 %v14497_v56, %v17183_v11  ;;  %v6352_v29 = vld [vmem:[%s15446_s3 + $0x90] sm:$0xff]  ;;  %v6665_v11 = vand.u32 4294901760, %v6664_v8  ;;  %v6351_v16 = vld [vmem:[%s15446_s3 + $0x88] sm:$0xff]  ;;  %8928 = vmatprep.subr.mxu0 %v14490_v21  ;;  %v17186_v63 = vand.u32 4294901760, %v14516_v31 }
 0x528   :  { %8956 = vmatpush3.msra.mxu1 %v6546_v4  ;;  %v6566_v25 = vsub.f32 %v14500_v6, %v17184_v54  ;;  %v6337_v4 = vld [vmem:[%s15446_s3 + $0x18] sm:$0xff]  ;;  %v6553_v24 = vand.u32 4294901760, %v6552_v50  ;;  %v6672_v56 = vand.u32 4294901760, %v6671_v22  ;;  %v17185_v54 = vand.u32 4294901760, %v14509_v23  ;;  %v6336_v6 = vld [vmem:[%s15446_s3 + $0x10] sm:$0xff]  ;;  %8929 = vmatpush3.msra.mxu0 %v14502_v58 }
 0x529   :  { %v6560_v8 = vand.u32 4294901760, %v6559_v10  ;;  %v6679_v22 = vand.u32 4294901760, %v6678_v46  ;;  %8957 = vmatprep.subr.mxu1 %v6665_v11  ;;  %v14570_v7 = vand.u32 4294901760, %v6353_v14  ;;  %v14572_v0 = vand.u32 4294901760, %v6337_v4  ;;  %v6334_v46 = vld [vmem:[%s15446_s3] sm:$0xff] }
 0x52a   :  { %v6685_v3 = vsub.f32 %v14509_v23, %v17185_v54  ;;  %v6567_v50 = vand.u32 4294901760, %v6566_v25  ;;  %v6573_v54 = vsub.f32 %v14516_v31, %v17186_v63  ;;  %v6350_v23 = vld [vmem:[%s15446_s3 + $0x80] sm:$0xff]  ;;  %v14574_v21 = vand.u32 4294901760, %v6352_v29  ;;  %8958 = vmatpush3.msra.mxu1 %v6553_v24 }
 0x52b   :  { %17187 = vst [vmem:[#allocation100_spill] sm:$0xff] %v14570_v7  ;;  %17188 = vst [vmem:[#allocation43_spill] sm:$0xff] %v14572_v0  ;;  %v14579_v25 = vand.u32 4294901760, %v6336_v6  ;;  %v14581_v10 = vand.u32 4294901760, %v6351_v16  ;;  %v14583_v31 = vand.u32 4294901760, %v6335_v19  ;;  %8959 = vmatprep.subr.mxu1 %v6672_v56  ;;  %v14589_v11 = vsub.f32 %v6337_v4, %v14572_v0  ;;  %8930 = vmatprep.subr.mxu0 %v14570_v7 }
 0x52c   :  { %v6686_v9 = vand.u32 4294901760, %v6685_v3  ;;  %17189 = vst [vmem:[#allocation104_spill] sm:$0xff] %v14574_v21  ;;  %v6574_v63 = vand.u32 4294901760, %v6573_v54  ;;  %v14586_v3 = vsub.f32 %v6353_v14, %v14570_v7  ;;  %v14592_v58 = vsub.f32 %v6352_v29, %v14574_v21  ;;  %8960 = vmatpush3.msra.mxu1 %v6560_v8  ;;  %8931 = vmatpush3.msra.mxu0 %v14572_v0 }
 0x52d   :  { %17190 = vst [vmem:[#allocation32_spill] sm:$0xff] %v14579_v25  ;;  %17191 = vst [vmem:[#allocation106_spill] sm:$0xff] %v14581_v10  ;;  %v14594_v28 = vand.u32 4294901760, %v6350_v23  ;;  %v14598_v24 = vsub.f32 %v6336_v6, %v14579_v25  ;;  %v14601_v54 = vsub.f32 %v6351_v16, %v14581_v10  ;;  %v14604_v56 = vsub.f32 %v6335_v19, %v14583_v31 }
 0x52e   :  { %17192 = vst [vmem:[#allocation33_spill] sm:$0xff] %v14583_v31  ;;  %17193 = vst [vmem:[#allocation5_spill] sm:$0xff] %v14586_v3  ;;  %v14606_v14 = vand.u32 4294901760, %v6334_v46  ;;  %8961 = vmatprep.subr.mxu1 %v6679_v22  ;;  %v16082_v29 = vand.u32 4294901760, %v14586_v3  ;;  %v16085_v4 = vand.u32 4294901760, %v14589_v11  ;;  %v16088_v8 = vand.u32 4294901760, %v14592_v58  ;;  %8932 = vmatprep.subr.mxu0 %v14574_v21 }
 0x52f   :  { %17194 = vst [vmem:[#allocation47_spill] sm:$0xff] %v14589_v11  ;;  %17195 = vst [vmem:[#allocation110_spill] sm:$0xff] %v14592_v58  ;;  %v14613_v6 = vsub.f32 %v6350_v23, %v14594_v28  ;;  %8962 = vmatpush3.msra.mxu1 %v6567_v50  ;;  %v16093_v19 = vand.u32 4294901760, %v14598_v24  ;;  %8933 = vmatpush3.msra.mxu0 %v14579_v25 }
 0x530   :  { %17196 = vst [vmem:[#allocation36_spill] sm:$0xff] %v14594_v28  ;;  %17197 = vst [vmem:[#allocation113_spill] sm:$0xff] %v14598_v24  ;;  %v14620_v22 = vsub.f32 %v6334_v46, %v14606_v14  ;;  %8963 = vmatprep.subr.mxu1 %v6686_v9  ;;  %v6692_v23 = vsub.f32 %v14586_v3, %v16082_v29  ;;  %v6580_v50 = vsub.f32 %v14589_v11, %v16085_v4 }
 0x531   :  { %17198 = vst [vmem:[#allocation96_spill] sm:$0xff] %v14601_v54  ;;  %17199 = vst [vmem:[#allocation118_spill] sm:$0xff] %v14604_v56  ;;  %v6699_v16 = vsub.f32 %v14592_v58, %v16088_v8  ;;  %8934 = vmatprep.subr.mxu0 %v14581_v10  ;;  %8964 = vmatpush3.msra.mxu1 %v6574_v63  ;;  %v6587_v9 = vsub.f32 %v14598_v24, %v16093_v19  ;;  %v17203_v46 = vand.u32 4294901760, %v14601_v54 }
 0x532   :  { %17200 = vst [vmem:[#allocation102_spill] sm:$0xff] %v14606_v14  ;;  %17201 = vst [vmem:[#allocation6_spill] sm:$0xff] %v14613_v6  ;;  %v17204_v3 = vand.u32 4294901760, %v14604_v56  ;;  %v16094_v11 = vand.u32 4294901760, %v14620_v22  ;;  %8935 = vmatpush3.msra.mxu0 %v14583_v31  ;;  %v6693_v8 = vand.u32 4294901760, %v6692_v23  ;;  %v6581_v7 = vand.u32 4294901760, %v6580_v50 }
 0x533   :  { %17202 = vst [vmem:[#allocation108_spill] sm:$0xff] %v14620_v22  ;;  %v6706_v29 = vsub.f32 %v14601_v54, %v17203_v46  ;;  %v6700_v58 = vand.u32 4294901760, %v6699_v16  ;;  %v17205_v63 = vand.u32 4294901760, %v14613_v6  ;;  %8936 = vmatprep.subr.mxu0 %v14594_v28  ;;  %v6588_v19 = vand.u32 4294901760, %v6587_v9 }
 0x534   :  { %v6594_v4 = vsub.f32 %v14604_v56, %v17204_v3  ;;  %v6601_v46 = vsub.f32 %v14620_v22, %v16094_v11  ;;  %8937 = vmatpush3.msra.mxu0 %v14606_v14  ;;  %8965 = vmatprep.subr.mxu1 %v6693_v8  ;;  %v17206_v14 = vld [vmem:[#allocation120_spill] sm:$0xff] }
 0x535   :  { %v6713_v10 = vsub.f32 %v14613_v6, %v17205_v63  ;;  %v6707_v3 = vand.u32 4294901760, %v6706_v29  ;;  %8976 = vmatprep.subr.mxu0 %v14274_v53  ;;  %8966 = vmatpush3.msra.mxu1 %v6581_v7 }
 0x536   :  { %v6595_v23 = vand.u32 4294901760, %v6594_v4  ;;  %8967 = vmatprep.subr.mxu1 %v6700_v58  ;;  %v6602_v50 = vand.u32 4294901760, %v6601_v46 }
 0x537   :  { %v6714_v16 = vand.u32 4294901760, %v6713_v10  ;;  %8968 = vmatpush3.msra.mxu1 %v6588_v19 }
 0x538   :  { %8969 = vmatprep.subr.mxu1 %v6707_v3 }
 0x539   :  { %8970 = vmatpush3.msra.mxu1 %v6595_v23 }
 0x53a   :  { %8971 = vmatprep.subr.mxu1 %v6714_v16 }
 0x53b   :  { %8972 = vmatpush3.msra.mxu1 %v6602_v50 }
 0x53c   :  { %9011 = vmatprep.subr.mxu1 %v14246_v43 }
 0x59c   :  { %v6181_v9 = vpop.xlane.xlu1 %6180 }
 0x59d   :  { %v6192_v63 = vmul.f32 0.004854369, %v6181_v9 }
 0x59f   :  { %v6194_v22 = vmul.f32 %v6192_v63, %v6192_v63  ;;  %v6199_v7 = vmul.f32 %v6192_v63, %v14220_v45  ;;  %v6200_v58 = vmul.f32 %v6192_v63, %v14217_v41  ;;  %v6201_v10 = vmul.f32 %v6192_v63, %v14225_v37 }
 0x5a0   :  { %v6191_v11 = vpop.xlane.xlu1 %6190 }
 0x5a1   :  { %v6193_v8 = vmul.f32 0.004854369, %v6191_v11  ;;  %v6202_v4 = vsel %vm6173_vm13, %v6199_v7, 0.0  ;;  %v6209_v19 = vsel %vm6173_vm13, %v6200_v58, 0.0  ;;  %v6216_v46 = vsel %vm6177_vm15, %v6201_v10, 0.0 }
 0x5a2   :  { %v6203_v3 = vrot.slane %v6202_v4, 4  ;;  %v6210_v23 = vrot.slane %v6209_v19, 4  ;;  %v6217_v16 = vrot.slane %v6216_v46, 4 }
 0x5a3   :  { %v6195_v29 = vsub.f32 %v6193_v8, %v6194_v22 }
 0x5a4   :  { %v6204_v11 = vadd.f32 %v6203_v3, %v6202_v4  ;;  %v6211_v22 = vadd.f32 %v6210_v23, %v6209_v19 }
 0x5a5   :  { %v6196_v6 = vmax.f32 %v6195_v29, 0.0 }
 0x5a6   :  { %v6205_v63 = vrot.slane %v6204_v11, 2  ;;  %v6212_v29 = vrot.slane %v6211_v22, 2 }
 0x5a7   :  { %v6197_v53 = vadd.f32 1e-05, %v6196_v6  ;;  %v6218_v6 = vadd.f32 %v6217_v16, %v6216_v46 }
 0x5a8   :  { %v6213_v16 = vadd.f32 %v6212_v29, %v6211_v22 }
 0x5a9   :  { %9548 = vrsqrt.f32 %v6197_v53  ;;  %v6219_v56 = vrot.slane %v6218_v6, 2 }
 0x5aa   :  { %v6214_v25 = vrot.slane %v6213_v16, 1 }
 0x5ac   :  { %v6215_v21 = vadd.f32 %v6214_v25, %v6213_v16 }
 0x5b6   :  { %v9549_v50 = vpop.eup %9548 }
 0x5b7   :  { %v6223_v9 = vmul.f32 %v9549_v50, %v14220_v45  ;;  %v6224_v53 = vmul.f32 %v9549_v50, %v14217_v41  ;;  %v6225_v8 = vmul.f32 %v9549_v50, %v14225_v37  ;;  %v6206_v45 = vadd.f32 %v6205_v63, %v6204_v11  ;;  %v8483_v41 = vld [vmem:[%s15448_s5 + $0x8] ss:$2 sm:$0x7] }
 0x5b8   :  { %v6220_v37 = vadd.f32 %v6219_v56, %v6218_v6  ;;  %v6251_v28 = vrot.slane %v8483_v41, %v17206_v14 }
 0x5b9   :  { %v6226_v7 = vsel %vm6173_vm13, %v6223_v9, 0.0  ;;  %v6233_v58 = vsel %vm6173_vm13, %v6224_v53, 0.0  ;;  %v6240_v10 = vsel %vm6177_vm15, %v6225_v8, 0.0  ;;  %v6207_v31 = vrot.slane %v6206_v45, 1 }
 0x5ba   :  { %v6227_v54 = vrot.slane %v6226_v7, 4  ;;  %v6234_v4 = vrot.slane %v6233_v58, 4  ;;  %v6241_v19 = vrot.slane %v6240_v10, 4  ;;  %v6221_v22 = vrot.slane %v6220_v37, 1 }
 0x5bc   :  { %v6228_v3 = vadd.f32 %v6227_v54, %v6226_v7  ;;  %v6235_v46 = vadd.f32 %v6234_v4, %v6233_v58  ;;  %v6242_v23 = vadd.f32 %v6241_v19, %v6240_v10  ;;  %v17207_v54 = vld [vmem:[#allocation121_spill] sm:$0xff]  ;;  %v17208_v58 = vld [vmem:[#allocation122_spill] sm:$0xff]  ;;  %v6208_v19 = vadd.f32 %v6207_v31, %v6206_v45 }
 0x5bd   :  { %v6255_v7 = vrot.slane %v8483_v41, %v17207_v54  ;;  %v6259_v11 = vrot.slane %v8483_v41, %v17208_v58 }
 0x5be   :  { %v6229_v50 = vrot.slane %v6228_v3, 2  ;;  %v6236_v9 = vrot.slane %v6235_v46, 2  ;;  %v6243_v24 = vrot.slane %v6242_v23, 2 }
 0x5c0   :  { %v6230_v53 = vadd.f32 %v6229_v50, %v6228_v3  ;;  %v6237_v43 = vadd.f32 %v6236_v9, %v6235_v46  ;;  %v6244_v8 = vadd.f32 %v6243_v24, %v6242_v23  ;;  %v6222_v3 = vadd.f32 %v6221_v22, %v6220_v37 }
 0x5c2   :  { %v6231_v63 = vrot.slane %v6230_v53, 1  ;;  %v6238_v29 = vrot.slane %v6237_v43, 1  ;;  %v6245_v10 = vrot.slane %v6244_v8, 1 }
 0x5c4   :  { %v6232_v4 = vadd.f32 %v6231_v63, %v6230_v53  ;;  %v6239_v56 = vadd.f32 %v6238_v29, %v6237_v43  ;;  %v6246_v6 = vadd.f32 %v6245_v10, %v6244_v8  ;;  %v8484_v43 = vld [vmem:[%s15448_s5 + $0x9] ss:$2 sm:$0x7] }
 0x5c6   :  { %v6263_v46 = vmul.f32 %v6251_v28, %v6232_v4  ;;  %v6264_v24 = vmul.f32 %v6255_v7, %v6239_v56  ;;  %v6265_v23 = vmul.f32 %v6259_v11, %v6246_v6  ;;  %v17211_v56 = vld [vmem:[#allocation11_spill] sm:$0xff]  ;;  %v17212_v6 = vld [vmem:[#allocation22_spill] sm:$0xff] }
 0x5c8   :  { %v6266_v50 = vmul.f32 %v6263_v46, %v6208_v19  ;;  %v6267_v9 = vmul.f32 %v6264_v24, %v6215_v21  ;;  %v6268_v0 = vmul.f32 %v6265_v23, %v6222_v3  ;;  %v6304_v31 = vrot.slane %v6264_v24, %v17206_v14  ;;  %v17213_v19 = vld [vmem:[#allocation16_spill] sm:$0xff]  ;;  %v17214_v3 = vld [vmem:[#allocation25_spill] sm:$0xff] }
 0x5c9   :  { %v6300_v25 = vrot.slane %v6263_v46, %v17206_v14  ;;  %v6308_v45 = vrot.slane %v6265_v23, %v17206_v14  ;;  %v17215_v46 = vld [vmem:[#allocation19_spill] sm:$0xff]  ;;  %v17216_v24 = vld [vmem:[#allocation24_spill] sm:$0xff]  ;;  %v17217_v23 = vld [vmem:[#allocation17_spill] sm:$0xff] }
 0x5ca   :  { %v6272_v17 = vcombine.low %v6266_v50, %v6267_v9  ;;  %v6286_v41 = vrot.slane %v6268_v0, %v17209_v34  ;;  %v6310_v16 = vmul.f32 %v6304_v31, %v14190_v33  ;;  %v17218_v50 = vld [vmem:[#allocation27_spill] sm:$0xff]  ;;  %v17219_v9 = vld [vmem:[#allocation12_spill] sm:$0xff]  ;;  %v17222_v31 = vld [vmem:[#allocation37_spill] sm:$0xff] }
 0x5cb   :  { %v6311_v37 = vmul.f32 %v6308_v45, %v14205_v5  ;;  %v17225_v45 = vld [vmem:[#allocation29_spill] sm:$0xff] }
 0x5cc   :  { %v6279_v49 = vrot.slane %v6272_v17, %v17209_v34  ;;  %v6309_v17 = vmul.f32 %v6300_v25, %v14192_v48  ;;  %v17223_v25 = vld [vmem:[#allocation26_spill] sm:$0xff] }
 0x5ce   :  { %v6287_v38 = vcombine.low %v6279_v49, %v6286_v41  ;;  %v17220_v41 = vld [vmem:[#allocation34_spill] sm:$0xff] }
 0x5d0   :  { %v6294_v28 = vrot.slane %v6287_v38, %v17209_v34 }
 0x5d2   :  { %v6296_v21 = vsub.f32 %v8484_v43, %v6294_v28  ;;  %v17221_v43 = vld [vmem:[#allocation20_spill] sm:$0xff] }
 0x5d3   :  { %v17224_v28 = vld [vmem:[#allocation100_spill] sm:$0xff] }
 0x5d4   :  { %v6320_v0 = vrot.slane %v6296_v21, %v17207_v54  ;;  %v6316_v49 = vrot.slane %v6296_v21, %v17206_v14  ;;  %v6324_v53 = vrot.slane %v6296_v21, %v17208_v58  ;;  %v17226_v21 = vld [vmem:[#allocation43_spill] sm:$0xff]  ;;  %v17243_v14 = vld [vmem:[#allocation113_spill] sm:$0xff] }
 0x5d6   :  { %v6329_v8 = vadd.f32 %v6320_v0, %v6310_v16  ;;  %v6328_v7 = vadd.f32 %v6316_v49, %v6309_v17  ;;  %v14688_v11 = vadd.f32 %v6324_v53, %v6311_v37  ;;  %v17227_v16 = vld [vmem:[#allocation39_spill] sm:$0xff]  ;;  %v17228_v17 = vld [vmem:[#allocation104_spill] sm:$0xff]  ;;  %v17229_v0 = vld [vmem:[#allocation30_spill] sm:$0xff] }
 0x5d7   :  { %v17230_v49 = vld [vmem:[#allocation32_spill] sm:$0xff]  ;;  %v17231_v37 = vld [vmem:[#allocation35_spill] sm:$0xff]  ;;  %v17232_v53 = vld [vmem:[#allocation106_spill] sm:$0xff] }
 0x5d8   :  { %v6332_v38 = vmax.f32 %v6329_v8, 0.0  ;;  %v6331_v34 = vmax.f32 %v6328_v7, 0.0  ;;  %v17233_v8 = vld [vmem:[#allocation45_spill] sm:$0xff] }
 0x5d9   :  { %v17234_v7 = vld [vmem:[#allocation33_spill] sm:$0xff] }
 0x5da   :  { %v14690_v22 = vand.u32 4294901760, %v6332_v38  ;;  %v14692_v63 = vand.u32 4294901760, %v6331_v34 }
 0x5dc   :  { %17210 = vst [vmem:[#allocation51_spill] sm:$0xff] %v14692_v63  ;;  %6717 = vmatprep.mubr.f32.mxu1 %v14690_v22  ;;  %v14696_v33 = vsub.f32 %v6331_v34, %v14692_v63  ;;  %v6477_v48 = vsub.f32 %v6332_v38, %v14690_v22  ;;  %v17235_v38 = vld [vmem:[#allocation50_spill] sm:$0xff]  ;;  %v17236_v34 = vld [vmem:[#allocation36_spill] sm:$0xff] }
 0x5dd   :  { %6719 = vmatmul.mubr.f32.vlgmr.msra.gmra.mxu1 %v14692_v63  ;;  %v17244_v63 = vld [vmem:[#allocation96_spill] sm:$0xff] }
 0x5de   :  { %9012 = vmatpush3.msra.mxu1 %v14248_v51  ;;  %v6478_v5 = vand.u32 4294901760, %v6477_v48  ;;  %v6484_v54 = vand.u32 4294901760, %v14696_v33 }
 0x5df   :  { %9013 = vmatprep.subr.mxu1 %v14250_v20 }
 0x5e0   :  { %9014 = vmatpush3.msra.mxu1 %v14261_v30  ;;  %6961 = vmatprep.mubr.f32.mxu1 %v6478_v5  ;;  %v6479_v58 = vsub.f32 %v6477_v48, %v6478_v5  ;;  %v6485_v29 = vsub.f32 %v14696_v33, %v6484_v54  ;;  %v17238_v5 = vld [vmem:[#allocation102_spill] sm:$0xff] }
 0x5e1   :  { %9015 = vmatprep.subr.mxu1 %v14263_v61 }
 0x5e2   :  { %9016 = vmatpush3.msra.mxu1 %v14265_v15  ;;  %v6480_v10 = vand.u32 4294901760, %v6479_v58  ;;  %v6486_v4 = vand.u32 4294901760, %v6485_v29  ;;  %v17239_v58 = vld [vmem:[#allocation5_spill] sm:$0xff]  ;;  %v17240_v29 = vld [vmem:[#allocation90_spill] sm:$0xff] }
 0x5e3   :  { %9017 = vmatprep.subr.mxu1 %v14282_v55 }
 0x5e4   :  { %9018 = vmatpush3.msra.mxu1 %v14294_v32  ;;  %6481 = vmatprep.mubr.f32.mxu0 %v6480_v10  ;;  %v17241_v10 = vld [vmem:[#allocation47_spill] sm:$0xff] }
 0x5e5   :  { %9019 = vmatprep.subr.mxu1 %v14362_v35  ;;  %6487 = vmatmul.mubr.f32.vlgmr.msra.gmra.mxu0 %v6486_v4  ;;  %v17242_v4 = vld [vmem:[#allocation110_spill] sm:$0xff] }
 0x5e6   :  { %8977 = vmatpush3.msra.mxu0 %v14277_v44  ;;  %9020 = vmatpush3.msra.mxu1 %v14364_v59 }
 0x5e7   :  { %8978 = vmatprep.subr.mxu0 %v14280_v36  ;;  %6854 = vmatprep.mubr.f32.mxu0 %v6477_v48  ;;  %v17237_v48 = vld [vmem:[#allocation41_spill] sm:$0xff] }
 0x5e8   :  { %9021 = vmatprep.subr.mxu1 %v14366_v60  ;;  %8979 = vmatpush3.msra.mxu0 %v14286_v12 }
 0x5e9   :  { %9022 = vmatpush3.msra.mxu1 %v14371_v26  ;;  %8980 = vmatprep.subr.mxu0 %v14289_v57 }
 0x5ea   :  { %9023 = vmatprep.subr.mxu1 %v14373_v39  ;;  %8981 = vmatpush3.msra.mxu0 %v14292_v40 }
 0x5eb   :  { %9024 = vmatpush3.msra.mxu1 %v14375_v42  ;;  %8982 = vmatprep.subr.mxu0 %v14301_v1 }
 0x5ec   :  { %9025 = vmatprep.subr.mxu1 %v14386_v18  ;;  %8983 = vmatpush3.msra.mxu0 %v14308_v13 }
 0x5ed   :  { %9026 = vmatpush3.msra.mxu1 %v14398_v2  ;;  %8984 = vmatprep.subr.mxu0 %v14378_v62 }
 0x5ee   :  { %9027 = vmatprep.subr.mxu1 %v14466_v47  ;;  %8985 = vmatpush3.msra.mxu0 %v14381_v27 }
 0x5ef   :  { %9028 = vmatpush3.msra.mxu1 %v14468_v52  ;;  %8986 = vmatprep.subr.mxu0 %v17211_v56 }
 0x5f0   :  { %9029 = vmatprep.subr.mxu1 %v17212_v6  ;;  %8987 = vmatpush3.msra.mxu0 %v17213_v19 }
 0x5f1   :  { %9030 = vmatpush3.msra.mxu1 %v17214_v3  ;;  %8988 = vmatprep.subr.mxu0 %v17215_v46 }
 0x5f2   :  { %9031 = vmatprep.subr.mxu1 %v17216_v24  ;;  %8989 = vmatpush3.msra.mxu0 %v17217_v23 }
 0x5f3   :  { %9032 = vmatpush3.msra.mxu1 %v17218_v50  ;;  %8990 = vmatprep.subr.mxu0 %v17219_v9 }
 0x5f4   :  { %9033 = vmatprep.subr.mxu1 %v17220_v41  ;;  %8991 = vmatpush3.msra.mxu0 %v17221_v43 }
 0x5f5   :  { %9034 = vmatpush3.msra.mxu1 %v17222_v31  ;;  %8992 = vmatprep.subr.mxu0 %v17223_v25 }
 0x5f6   :  { %9035 = vmatprep.subr.mxu1 %v17224_v28  ;;  %8993 = vmatpush3.msra.mxu0 %v17225_v45 }
 0x5f7   :  { %9036 = vmatpush3.msra.mxu1 %v17226_v21  ;;  %8994 = vmatprep.subr.mxu0 %v17227_v16 }
 0x5f8   :  { %9037 = vmatprep.subr.mxu1 %v17228_v17  ;;  %8995 = vmatpush3.msra.mxu0 %v17229_v0 }
 0x5f9   :  { %9038 = vmatpush3.msra.mxu1 %v17230_v49  ;;  %8996 = vmatprep.subr.mxu0 %v17231_v37 }
 0x5fa   :  { %9039 = vmatprep.subr.mxu1 %v17232_v53  ;;  %8997 = vmatpush3.msra.mxu0 %v17233_v8 }
 0x5fb   :  { %9040 = vmatpush3.msra.mxu1 %v17234_v7  ;;  %8998 = vmatprep.subr.mxu0 %v17235_v38 }
 0x5fc   :  { %9041 = vmatprep.subr.mxu1 %v17236_v34  ;;  %8999 = vmatpush3.msra.mxu0 %v17237_v48 }
 0x5fd   :  { %9042 = vmatpush3.msra.mxu1 %v17238_v5  ;;  %9000 = vmatprep.subr.mxu0 %v17239_v58 }
 0x5fe   :  { %6965 = vmatmul.mubr.f32.vlgmr.msra.gmra.mxu1 %v6484_v54  ;;  %9081 = vmatprep.subr.mxu1 %v17240_v29  ;;  %v17245_v54 = vld [vmem:[#allocation118_spill] sm:$0xff] }
 0x5ff   :  { %9001 = vmatpush3.msra.mxu0 %v17241_v10  ;;  %9082 = vmatpush3.msra.mxu1 %v14248_v51  ;;  %v17246_v29 = vld [vmem:[#allocation6_spill] sm:$0xff]  ;;  %v17247_v51 = vld [vmem:[#allocation108_spill] sm:$0xff] }
 0x600   :  { %7235 = vmatprep.mubr.f32.mxu1 %v14690_v22  ;;  %9002 = vmatprep.subr.mxu0 %v17242_v4 }
 0x601   :  { %9083 = vmatprep.subr.mxu1 %v14250_v20  ;;  %9003 = vmatpush3.msra.mxu0 %v17243_v14  ;;  %v17248_v20 = vld [vmem:[#allocation105_spill] sm:$0xff] }
 0x602   :  { %9084 = vmatpush3.msra.mxu1 %v14261_v30  ;;  %9004 = vmatprep.subr.mxu0 %v17244_v63  ;;  %v17249_v30 = vand.u32 4294901760, %v17248_v20  ;;  %v6366_v20 = vld [vmem:[%s15446_s3 + $0x100] sm:$0xff] }
 0x603   :  { %9085 = vmatprep.subr.mxu1 %v14263_v61  ;;  %9005 = vmatpush3.msra.mxu0 %v17245_v54  ;;  %v6372_v61 = vld [vmem:[%s15446_s3 + $0x130] sm:$0x1f] }
 0x604   :  { %9086 = vmatpush3.msra.mxu1 %v14265_v15  ;;  %9006 = vmatprep.subr.mxu0 %v17246_v29  ;;  %v17250_v15 = vand.u32 4294901760, %v14277_v44  ;;  %v17254_v44 = vand.u32 4294901760, %v14292_v40  ;;  %v6370_v40 = vld [vmem:[%s15446_s3 + $0x120] sm:$0xff] }
 0x605   :  { %9087 = vmatprep.subr.mxu1 %v14282_v55  ;;  %9007 = vmatpush3.msra.mxu0 %v17247_v51  ;;  %v17251_v55 = vand.u32 4294901760, %v14280_v36  ;;  %v6371_v36 = vld [vmem:[%s15446_s3 + $0x128] sm:$0xff] }
 0x606   :  { %9088 = vmatpush3.msra.mxu1 %v14294_v32  ;;  %6857 = vmatmul.mubr.f32.vlgmr.msra.gmra.mxu0 %v14696_v33  ;;  %v17252_v32 = vand.u32 4294901760, %v14286_v12  ;;  %v17253_v33 = vand.u32 4294901760, %v14289_v57  ;;  %v17255_v12 = vand.u32 4294901760, %v14301_v1  ;;  %v17256_v57 = vand.u32 4294901760, %v14308_v13  ;;  %v6369_v13 = vld [vmem:[%s15446_s3 + $0x118] sm:$0xff] }
 0x607   :  { %9046 = vmatprep.subr.mxu0 %v17249_v30  ;;  %9089 = vmatprep.subr.mxu1 %v14362_v35  ;;  %v6378_v35 = vsel %vm1405_vm14, %v6372_v61, 0  ;;  %v17258_v1 = vand.u32 4294901760, %v14381_v27  ;;  %v17261_v27 = vand.u32 4294901760, %v17215_v46  ;;  %v17264_v46 = vand.u32 4294901760, %v17221_v43 }
 0x608   :  { %9047 = vmatpush3.msra.mxu0 %v17250_v15  ;;  %7131 = vmatprep.mubr.f32.mxu0 %v14690_v22  ;;  %v17262_v22 = vand.u32 4294901760, %v17217_v23  ;;  %v17265_v23 = vand.u32 4294901760, %v17223_v25  ;;  %v14889_v61 = vand.u32 4294901760, %v6366_v20  ;;  %vm6373_vm14 = vcmask 433152  }
 0x609   :  { %9090 = vmatpush3.msra.mxu1 %v14364_v59  ;;  %9048 = vmatprep.subr.mxu0 %v17251_v55  ;;  %v14802_v59 = vand.u32 4294901760, %v6378_v35 }
 0x60a   :  { %9091 = vmatprep.subr.mxu1 %v14366_v60  ;;  %9049 = vmatpush3.msra.mxu0 %v17252_v32  ;;  %v17257_v60 = vand.u32 4294901760, %v14378_v62  ;;  %v14827_v62 = vand.u32 4294901760, %v6370_v40  ;;  %v14915_v32 = vsub.f32 %v6366_v20, %v14889_v61 }
 0x60b   :  { %9092 = vmatpush3.msra.mxu1 %v14371_v26  ;;  %9050 = vmatprep.subr.mxu0 %v17253_v33  ;;  %v14813_v26 = vand.u32 4294901760, %v6371_v36  ;;  %v17274_v33 = vld [vmem:[#allocation51_spill] sm:$0xff] }
 0x60c   :  { %9093 = vmatprep.subr.mxu1 %v14373_v39  ;;  %9051 = vmatpush3.msra.mxu0 %v17254_v44  ;;  %v17259_v39 = vand.u32 4294901760, %v17211_v56  ;;  %v17263_v56 = vand.u32 4294901760, %v17219_v9 }
 0x60d   :  { %9094 = vmatpush3.msra.mxu1 %v14375_v42  ;;  %9052 = vmatprep.subr.mxu0 %v17255_v12  ;;  %v14825_v42 = vsub.f32 %v6378_v35, %v14802_v59  ;;  %v7387_v12 = vand.u32 4294901760, %v14915_v32 }
 0x60e   :  { %9095 = vmatprep.subr.mxu1 %v14386_v18  ;;  %9053 = vmatpush3.msra.mxu0 %v17256_v57  ;;  %v14838_v18 = vand.u32 4294901760, %v6369_v13  ;;  %v17278_v57 = vand.u32 4294901760, %v17243_v14 }
 0x60f   :  { %9096 = vmatpush3.msra.mxu1 %v14398_v2  ;;  %9054 = vmatprep.subr.mxu0 %v17257_v60  ;;  %v6368_v2 = vld [vmem:[%s15446_s3 + $0x110] sm:$0xff]  ;;  %v17279_v60 = vand.u32 4294901760, %v17244_v63  ;;  %v7388_v63 = vsub.f32 %v14915_v32, %v7387_v12 }
 0x610   :  { %9097 = vmatprep.subr.mxu1 %v14466_v47  ;;  %9055 = vmatpush3.msra.mxu0 %v17258_v1  ;;  %v17260_v47 = vand.u32 4294901760, %v17213_v19  ;;  %v14851_v19 = vsub.f32 %v6370_v40, %v14827_v62  ;;  %v14866_v9 = vsub.f32 %v6369_v13, %v14838_v18  ;;  %v17280_v1 = vand.u32 4294901760, %v17245_v54 }
 0x611   :  { %9098 = vmatpush3.msra.mxu1 %v14468_v52  ;;  %9056 = vmatprep.subr.mxu0 %v17259_v39  ;;  %v14836_v52 = vsub.f32 %v6371_v36, %v14813_v26  ;;  %v17276_v36 = vand.u32 4294901760, %v17241_v10  ;;  %v17281_v13 = vand.u32 4294901760, %v17246_v29  ;;  %v7389_v29 = vand.u32 4294901760, %v7388_v63 }
 0x612   :  { %9099 = vmatprep.subr.mxu1 %v17212_v6  ;;  %9057 = vmatpush3.msra.mxu0 %v17260_v47  ;;  %v7345_v6 = vand.u32 4294901760, %v14825_v42  ;;  %v7359_v30 = vand.u32 4294901760, %v14851_v19  ;;  %v7366_v15 = vand.u32 4294901760, %v14866_v9  ;;  %v17282_v47 = vand.u32 4294901760, %v17247_v51 }
 0x613   :  { %9100 = vmatpush3.msra.mxu1 %v17214_v3  ;;  %9058 = vmatprep.subr.mxu0 %v17261_v27  ;;  %v6367_v3 = vld [vmem:[%s15446_s3 + $0x108] sm:$0xff] }
 0x614   :  { %9101 = vmatprep.subr.mxu1 %v17216_v24  ;;  %9059 = vmatpush3.msra.mxu0 %v17262_v22  ;;  %v14859_v24 = vand.u32 4294901760, %v6368_v2  ;;  %v14874_v43 = vand.u32 4294901760, %v6367_v3  ;;  %v7346_v25 = vsub.f32 %v14825_v42, %v7345_v6  ;;  %v7360_v55 = vsub.f32 %v14851_v19, %v7359_v30 }
 0x615   :  { %9102 = vmatpush3.msra.mxu1 %v17218_v50  ;;  %9060 = vmatprep.subr.mxu0 %v17263_v56  ;;  %v7352_v50 = vand.u32 4294901760, %v14836_v52  ;;  %v7367_v35 = vsub.f32 %v14866_v9, %v7366_v15 }
 0x616   :  { %9103 = vmatprep.subr.mxu1 %v17220_v41  ;;  %9061 = vmatpush3.msra.mxu0 %v17264_v46  ;;  %v17266_v41 = vand.u32 4294901760, %v17225_v45  ;;  %v14887_v45 = vsub.f32 %v6368_v2, %v14859_v24 }
 0x617   :  { %9104 = vmatpush3.msra.mxu1 %v17222_v31  ;;  %9062 = vmatprep.subr.mxu0 %v17265_v23  ;;  %v17267_v31 = vand.u32 4294901760, %v17227_v16  ;;  %v7353_v16 = vsub.f32 %v14836_v52, %v7352_v50  ;;  %v7368_v40 = vand.u32 4294901760, %v7367_v35 }
 0x618   :  { %9105 = vmatprep.subr.mxu1 %v17224_v28  ;;  %9063 = vmatpush3.msra.mxu0 %v17266_v41  ;;  %v17268_v28 = vand.u32 4294901760, %v17229_v0  ;;  %v14902_v0 = vsub.f32 %v6367_v3, %v14874_v43 }
 0x619   :  { %9106 = vmatpush3.msra.mxu1 %v17226_v21  ;;  %9064 = vmatprep.subr.mxu0 %v17267_v31  ;;  %v17269_v21 = vand.u32 4294901760, %v17231_v37  ;;  %v7347_v37 = vand.u32 4294901760, %v7346_v25 }
 0x61a   :  { %9107 = vmatprep.subr.mxu1 %v17228_v17  ;;  %9065 = vmatpush3.msra.mxu0 %v17268_v28  ;;  %v17270_v17 = vand.u32 4294901760, %v17233_v8  ;;  %v7373_v8 = vand.u32 4294901760, %v14887_v45  ;;  %v7380_v44 = vand.u32 4294901760, %v14902_v0 }
 0x61b   :  { %9108 = vmatpush3.msra.mxu1 %v17230_v49  ;;  %9066 = vmatprep.subr.mxu0 %v17269_v21  ;;  %v17271_v49 = vand.u32 4294901760, %v17235_v38  ;;  %v7354_v38 = vand.u32 4294901760, %v7353_v16 }
 0x61c   :  { %9109 = vmatprep.subr.mxu1 %v17232_v53  ;;  %9067 = vmatpush3.msra.mxu0 %v17270_v17  ;;  %v17272_v53 = vand.u32 4294901760, %v17237_v48  ;;  %v17275_v48 = vmov 0.0  }
 0x61d   :  { %9110 = vmatpush3.msra.mxu1 %v17234_v7  ;;  %9068 = vmatprep.subr.mxu0 %v17271_v49  ;;  %v17273_v7 = vand.u32 4294901760, %v17239_v58  ;;  %v17277_v58 = vand.u32 4294901760, %v17242_v4  ;;  %v7381_v4 = vsub.f32 %v14902_v0, %v7380_v44 }
 0x61e   :  { %9111 = vmatprep.subr.mxu1 %v17236_v34  ;;  %9069 = vmatpush3.msra.mxu0 %v17272_v53  ;;  %v6333_v34 = vmax.f32 %v14688_v11, 0.0  ;;  %v7374_v11 = vsub.f32 %v14887_v45, %v7373_v8 }
 0x61f   :  { %9112 = vmatpush3.msra.mxu1 %v17238_v5  ;;  %9070 = vmatprep.subr.mxu0 %v17273_v7  ;;  %v7361_v5 = vand.u32 4294901760, %v7360_v55  ;;  %v7382_v54 = vand.u32 4294901760, %v7381_v4  ;;  %v17284_v4 = vld [vmem:[#allocation8_spill] sm:$0xff] }
 0x620   :  { %7237 = vmatmul.mubr.f32.vlgmr.msra.gmra.mxu1 %v17274_v33  ;;  %9271 = vmatprep.subr.mxu1 %v17275_v48  ;;  %v6375_v10 = vsel %vm6373_vm14, %v6333_v34, 0  ;;  %v7375_v14 = vand.u32 4294901760, %v7374_v11 }
 0x621   :  { %9071 = vmatpush3.msra.mxu0 %v17276_v36  ;;  %9272 = vmatpush3.msra.mxu1 %v7347_v37  ;;  %v14952_v39 = vand.u32 4294901760, %v6375_v10 }
 0x622   :  { %9072 = vmatprep.subr.mxu0 %v17277_v58  ;;  %9273 = vmatprep.subr.mxu1 %v17275_v48 }
 0x623   :  { %9073 = vmatpush3.msra.mxu0 %v17278_v57  ;;  %9274 = vmatpush3.msra.mxu1 %v7354_v38  ;;  %v7315_v27 = vsub.f32 %v6375_v10, %v14952_v39 }
 0x624   :  { %9074 = vmatprep.subr.mxu0 %v17279_v60  ;;  %9275 = vmatprep.subr.mxu1 %v17275_v48 }
 0x625   :  { %9075 = vmatpush3.msra.mxu0 %v17280_v1  ;;  %9276 = vmatpush3.msra.mxu1 %v7361_v5  ;;  %v7316_v51 = vand.u32 4294901760, %v7315_v27 }
 0x626   :  { %9076 = vmatprep.subr.mxu0 %v17281_v13  ;;  %9277 = vmatprep.subr.mxu1 %v17275_v48 }
 0x627   :  { %9077 = vmatpush3.msra.mxu0 %v17282_v47  ;;  %9278 = vmatpush3.msra.mxu1 %v7368_v40  ;;  %v7317_v2 = vsub.f32 %v7315_v27, %v7316_v51 }
 0x628   :  { %7133 = vmatmul.mubr.f32.vlgmr.msra.gmra.mxu0 %v17274_v33  ;;  %9254 = vmatprep.subr.mxu0 %v17275_v48  ;;  %v17283_v33 = vld [vmem:[#allocation7_spill] sm:$0xff] }
 0x629   :  { %9279 = vmatprep.subr.mxu1 %v17275_v48  ;;  %9255 = vmatpush3.msra.mxu0 %v14802_v59  ;;  %v7318_v22 = vand.u32 4294901760, %v7317_v2 }
 0x62a   :  { %9280 = vmatpush3.msra.mxu1 %v7375_v14  ;;  %9256 = vmatprep.subr.mxu0 %v17275_v48 }
 0x62b   :  { %9281 = vmatprep.subr.mxu1 %v17275_v48  ;;  %9257 = vmatpush3.msra.mxu0 %v14813_v26 }
 0x62c   :  { %9282 = vmatpush3.msra.mxu1 %v7382_v54  ;;  %9258 = vmatprep.subr.mxu0 %v17275_v48 }
 0x62d   :  { %9283 = vmatprep.subr.mxu1 %v17275_v48  ;;  %9259 = vmatpush3.msra.mxu0 %v14827_v62 }
 0x62e   :  { %9284 = vmatpush3.msra.mxu1 %v7389_v29  ;;  %9285 = vmatprep.mubr.msk.f32.mxu1 %vm9578_vm1, %v17275_v48 }
 0x62f   :  { %9260 = vmatprep.subr.mxu0 %v17275_v48  ;;  %9286 = vmatmul.mubr.f32.vlgmr.msra.gmra.mxu1 %v14952_v39 }
 0x630   :  { %9305 = vmatprep.subr.mxu1 %v17275_v48  ;;  %9261 = vmatpush3.msra.mxu0 %v14838_v18 }
 0x631   :  { %9306 = vmatpush3.msra.mxu1 %v14802_v59  ;;  %9262 = vmatprep.subr.mxu0 %v17275_v48 }
 0x632   :  { %9307 = vmatprep.subr.mxu1 %v17275_v48  ;;  %9263 = vmatpush3.msra.mxu0 %v14859_v24 }
 0x633   :  { %9308 = vmatpush3.msra.mxu1 %v14813_v26  ;;  %9264 = vmatprep.subr.mxu0 %v17275_v48 }
 0x634   :  { %9309 = vmatprep.subr.mxu1 %v17275_v48  ;;  %9265 = vmatpush3.msra.mxu0 %v14874_v43 }
 0x635   :  { %9310 = vmatpush3.msra.mxu1 %v14827_v62  ;;  %9266 = vmatprep.subr.mxu0 %v17275_v48 }
 0x636   :  { %9311 = vmatprep.subr.mxu1 %v17275_v48  ;;  %9267 = vmatpush3.msra.mxu0 %v14889_v61 }
 0x637   :  { %9268 = vmatprep.mubr.msk.f32.mxu0 %vm9578_vm1, %v17275_v48  ;;  %9312 = vmatpush3.msra.mxu1 %v14838_v18 }
 0x638   :  { %9269 = vmatmul.mubr.f32.vlgmr.msra.gmra.mxu0 %v7318_v22  ;;  %9288 = vmatprep.subr.mxu0 %v17275_v48 }
 0x639   :  { %9313 = vmatprep.subr.mxu1 %v17275_v48  ;;  %9289 = vmatpush3.msra.mxu0 %v14825_v42 }
 0x63a   :  { %9314 = vmatpush3.msra.mxu1 %v14859_v24  ;;  %9290 = vmatprep.subr.mxu0 %v17275_v48 }
 0x63b   :  { %9315 = vmatprep.subr.mxu1 %v17275_v48  ;;  %9291 = vmatpush3.msra.mxu0 %v14836_v52 }
 0x63c   :  { %9316 = vmatpush3.msra.mxu1 %v14874_v43  ;;  %9292 = vmatprep.subr.mxu0 %v17275_v48 }
 0x63d   :  { %9317 = vmatprep.subr.mxu1 %v17275_v48  ;;  %9293 = vmatpush3.msra.mxu0 %v14851_v19 }
 0x63e   :  { %9318 = vmatpush3.msra.mxu1 %v14889_v61  ;;  %9319 = vmatprep.mubr.msk.f32.mxu1 %vm9578_vm1, %v17275_v48 }
 0x63f   :  { %9294 = vmatprep.subr.mxu0 %v17275_v48  ;;  %9320 = vmatmul.mubr.f32.vlgmr.msra.gmra.mxu1 %v7316_v51 }
 0x640   :  { %9339 = vmatprep.subr.mxu1 %v17275_v48  ;;  %9295 = vmatpush3.msra.mxu0 %v14866_v9 }
 0x641   :  { %9340 = vmatpush3.msra.mxu1 %v14802_v59  ;;  %9296 = vmatprep.subr.mxu0 %v17275_v48 }
 0x642   :  { %9341 = vmatprep.subr.mxu1 %v17275_v48  ;;  %9297 = vmatpush3.msra.mxu0 %v14887_v45 }
 0x643   :  { %9342 = vmatpush3.msra.mxu1 %v14813_v26  ;;  %9298 = vmatprep.subr.mxu0 %v17275_v48 }
 0x644   :  { %9343 = vmatprep.subr.mxu1 %v17275_v48  ;;  %9299 = vmatpush3.msra.mxu0 %v14902_v0 }
 0x645   :  { %9344 = vmatpush3.msra.mxu1 %v14827_v62  ;;  %9300 = vmatprep.subr.mxu0 %v17275_v48 }
 0x646   :  { %9345 = vmatprep.subr.mxu1 %v17275_v48  ;;  %9301 = vmatpush3.msra.mxu0 %v14915_v32 }
 0x647   :  { %9302 = vmatprep.mubr.msk.f32.mxu0 %vm9578_vm1, %v17275_v48  ;;  %9346 = vmatpush3.msra.mxu1 %v14838_v18 }
 0x648   :  { %9303 = vmatmul.mubr.f32.vlgmr.msra.gmra.mxu0 %v7315_v27  ;;  %9322 = vmatprep.subr.mxu0 %v17275_v48 }
 0x649   :  { %9347 = vmatprep.subr.mxu1 %v17275_v48  ;;  %9323 = vmatpush3.msra.mxu0 %v7345_v6 }
 0x64a   :  { %9348 = vmatpush3.msra.mxu1 %v14859_v24  ;;  %9324 = vmatprep.subr.mxu0 %v17275_v48 }
 0x64b   :  { %9349 = vmatprep.subr.mxu1 %v17275_v48  ;;  %9325 = vmatpush3.msra.mxu0 %v7352_v50 }
 0x64c   :  { %9350 = vmatpush3.msra.mxu1 %v14874_v43  ;;  %9326 = vmatprep.subr.mxu0 %v17275_v48 }
 0x64d   :  { %9351 = vmatprep.subr.mxu1 %v17275_v48  ;;  %9327 = vmatpush3.msra.mxu0 %v7359_v30 }
 0x64e   :  { %9352 = vmatpush3.msra.mxu1 %v14889_v61  ;;  %9353 = vmatprep.mubr.msk.f32.mxu1 %vm9578_vm1, %v17275_v48 }
 0x64f   :  { %9328 = vmatprep.subr.mxu0 %v17275_v48  ;;  %9354 = vmatmul.mubr.f32.vlgmr.msra.gmra.mxu1 %v14952_v39 }
 0x650   :  { %9329 = vmatpush3.msra.mxu0 %v7366_v15  ;;  %9336 = vmatprep.mubr.msk.f32.mxu0 %vm9578_vm1, %v17275_v48 }
 0x651   :  { %9330 = vmatprep.subr.mxu0 %v17275_v48  ;;  %9387 = vmatprep.subr.mxu1 %v17275_v48 }
 0x652   :  { %9331 = vmatpush3.msra.mxu0 %v7373_v8  ;;  %9415 = vmatprep.mubr.msk.f32.mxu1 %vm9578_vm1, %v17275_v48 }
 0x653   :  { %9332 = vmatprep.subr.mxu0 %v17275_v48 }
 0x654   :  { %9333 = vmatpush3.msra.mxu0 %v7380_v44  ;;  %v7768_v44 = vmul.u32 105, %v17283_v33 }
 0x655   :  { %9334 = vmatprep.subr.mxu0 %v17275_v48 }
 0x656   :  { %9335 = vmatpush3.msra.mxu0 %v7387_v12  ;;  %v7770_v12 = vadd.s32 105, %v7768_v44  ;;  %vm7769_vm0 = vcmp.ge.s32.totalorder %v17284_v4, %v7768_v44 }
 0x657   :  { %9337 = vmatmul.mubr.f32.vlgmr.msra.gmra.mxu0 %v14952_v39  ;;  %9356 = vmatprep.subr.mxu0 %v17275_v48 }
 0x658   :  { %9384 = vmatprep.mubr.msk.f32.mxu0 %vm9578_vm1, %v17275_v48  ;;  %vm7771_vm4 = vcmp.lt.s32.totalorder %v17284_v4, %v7770_v12 }
 0x659   :  { %vm7772_vm5 = vmand %vm7769_vm0, %vm7771_vm4 }
 0x65a   :  { %v15068_v54 = vsel %vm7772_vm5, 1.0, %v17275_v48 }
 0x69d   :  { %v8973_v59 = vpop.f32.mrf.mxu1 }
 0x69f   :  { %v8974_v26 = vpop.f32.mrf.mxu1 }
 0x6a0   :  { %v8975_v43 = vadd.f32 %v8974_v26, %v8973_v59 }
 0x6a5   :  { %v8938_v62 = vpop.f32.mrf.mxu0 }
 0x6a7   :  { %v8939_v56 = vpop.f32.mrf.mxu0 }
 0x6a8   :  { %v8940_v20 = vadd.f32 %v8939_v56, %v8938_v62  ;;  %v7836_v62 = vld [vmem:[%s15447_s4 + $0x60] sm:$0xff] }
 0x6a9   :  { %v15082_v56 = vand.u32 4294901760, %v7836_v62 }
 0x6aa   :  { %v6721_v25 = vadd.f32 %v8975_v43, %v8940_v20  ;;  %v7831_v20 = vld [vmem:[%s15447_s4 + $0x38] sm:$0xff] }
 0x6ab   :  { %v15110_v43 = vsub.f32 %v7836_v62, %v15082_v56 }
 0x6be   :  { %v9043_v42 = vpop.f32.mrf.mxu1 }
 0x6c0   :  { %v9044_v52 = vpop.f32.mrf.mxu1 }
 0x6c1   :  { %v9045_v61 = vadd.f32 %v9044_v52, %v9043_v42  ;;  %v7837_v42 = vld [vmem:[%s15447_s4 + $0x68] sm:$0x1]  ;;  %v7835_v52 = vld [vmem:[%s15447_s4 + $0x58] sm:$0xff] }
 0x6c6   :  { %v9008_v6 = vpop.f32.mrf.mxu0 }
 0x6c8   :  { %v9009_v46 = vpop.f32.mrf.mxu0 }
 0x6c9   :  { %v9010_v31 = vadd.f32 %v9009_v46, %v9008_v6  ;;  %v15084_v6 = vand.u32 4294901760, %v7835_v52  ;;  %v7832_v46 = vld [vmem:[%s15447_s4 + $0x40] sm:$0xff] }
 0x6cb   :  { %v6859_v28 = vadd.f32 %v9010_v31, %v6721_v25  ;;  %v15113_v31 = vsub.f32 %v7835_v52, %v15084_v6  ;;  %v15115_v25 = vand.u32 4294901760, %v7831_v20 }
 0x6cd   :  { %v6967_v16 = vadd.f32 %v9045_v61, %v6859_v28  ;;  %v7953_v61 = vand.u32 4294901760, %v15110_v43 }
 0x6e0   :  { %v9113_v18 = vpop.f32.mrf.mxu1 }
 0x6e2   :  { %v9114_v19 = vpop.f32.mrf.mxu1 }
 0x6e3   :  { %v9115_v17 = vadd.f32 %v9114_v19, %v9113_v18  ;;  %v7848_v18 = vsel %vm1804_vm3, %v7837_v42, 0  ;;  %v7834_v19 = vld [vmem:[%s15447_s4 + $0x50] sm:$0xff]  ;;  %vm7843_vm3 = vcmask 859136  }
 0x6e8   :  { %v9078_v23 = vpop.f32.mrf.mxu0 }
 0x6ea   :  { %v9079_v50 = vpop.f32.mrf.mxu0 }
 0x6eb   :  { %v9080_v21 = vadd.f32 %v9079_v50, %v9078_v23  ;;  %v15097_v23 = vand.u32 4294901760, %v7834_v19 }
 0x6ed   :  { %v7135_v15 = vadd.f32 %v9080_v21, %v6967_v16  ;;  %v15121_v28 = vsub.f32 %v7834_v19, %v15097_v23  ;;  %v7960_v21 = vand.u32 4294901760, %v15113_v31 }
 0x6ef   :  { %v7426_v3 = vpop.f32.mrf.mxu1  ;;  %v7239_v49 = vadd.f32 %v9115_v17, %v7135_v15  ;;  %v7967_v17 = vand.u32 4294901760, %v15121_v28 }
 0x6f1   :  { %v9287_v24 = vpop.f32.mrf.mxu1  ;;  %v7968_v44 = vsub.f32 %v15121_v28, %v7967_v17 }
 0x6f2   :  { %v15095_v24 = vand.u32 4294901760, %v7848_v18 }
 0x6f4   :  { %9357 = vmatpush3.msra.mxu0 %v15095_v24 }
 0x6f5   :  { %9358 = vmatprep.subr.mxu0 %v17275_v48 }
 0x6f6   :  { %9359 = vmatpush3.msra.mxu0 %v15082_v56 }
 0x6f7   :  { %9360 = vmatprep.subr.mxu0 %v17275_v48 }
 0x6f8   :  { %v7320_v9 = vpop.f32.mrf.mxu0  ;;  %9361 = vmatpush3.msra.mxu0 %v15084_v6 }
 0x6f9   :  { %v7321_v55 = vadd.f32 %v7320_v9, %v7239_v49  ;;  %v15101_v9 = vand.u32 4294901760, %v7832_v46  ;;  %v7954_v49 = vsub.f32 %v15110_v43, %v7953_v61  ;;  %9362 = vmatprep.subr.mxu0 %v17275_v48 }
 0x6fa   :  { %v9270_v41 = vpop.f32.mrf.mxu0  ;;  %9363 = vmatpush3.msra.mxu0 %v15097_v23 }
 0x6fb   :  { %v7427_v8 = vadd.f32 %v7426_v3, %v7321_v55  ;;  %v7833_v3 = vld [vmem:[%s15447_s4 + $0x48] sm:$0xff]  ;;  %v7830_v41 = vld [vmem:[%s15447_s4 + $0x30] sm:$0xff]  ;;  %v7955_v33 = vand.u32 4294901760, %v7954_v49  ;;  %9364 = vmatprep.subr.mxu0 %v17275_v48 }
 0x6fc   :  { %v15099_v50 = vand.u32 4294901760, %v7833_v3  ;;  %v15130_v16 = vand.u32 4294901760, %v7830_v41 }
 0x6fe   :  { %9365 = vmatpush3.msra.mxu0 %v15099_v50 }
 0x6ff   :  { %v7592_v30 = vpop.f32.mrf.mxu1  ;;  %9366 = vmatprep.subr.mxu0 %v17275_v48 }
 0x700   :  { %9367 = vmatpush3.msra.mxu0 %v15101_v9 }
 0x701   :  { %v9321_v45 = vpop.f32.mrf.mxu1  ;;  %9368 = vmatprep.subr.mxu0 %v17275_v48 }
 0x702   :  { %v15125_v45 = vsub.f32 %v7833_v3, %v15099_v50  ;;  %9369 = vmatpush3.msra.mxu0 %v15115_v25 }
 0x703   :  { %9370 = vmatprep.subr.mxu0 %v17275_v48 }
 0x704   :  { %9371 = vmatpush3.msra.mxu0 %v15130_v16 }
 0x705   :  { %9372 = vmatprep.subr.mxu0 %v17275_v48 }
 0x708   :  { %v7512_v0 = vpop.f32.mrf.mxu0 }
 0x709   :  { %v7513_v7 = vadd.f32 %v7512_v0, %v7427_v8  ;;  %v15136_v0 = vsub.f32 %v7832_v46, %v15101_v9  ;;  %v7974_v8 = vand.u32 4294901760, %v15125_v45 }
 0x70a   :  { %v9304_v37 = vpop.f32.mrf.mxu0 }
 0x70b   :  { %v7593_v38 = vadd.f32 %v7592_v30, %v7513_v7  ;;  %v15118_v30 = vsub.f32 %v7848_v18, %v15095_v24  ;;  %v15143_v37 = vsub.f32 %v7831_v20, %v15115_v25  ;;  %v7828_v7 = vld [vmem:[%s15447_s4 + $0x20] sm:$0xff] }
 0x70c   :  { %v15175_v12 = vand.u32 4294901760, %v7828_v7 }
 0x70d   :  { %v7946_v15 = vand.u32 4294901760, %v15118_v30 }
 0x70f   :  { %v7762_v53 = vpop.f32.mrf.mxu1  ;;  %v7947_v55 = vsub.f32 %v15118_v30, %v7946_v15 }
 0x711   :  { %v9355_v32 = vpop.f32.mrf.mxu1 }
 0x712   :  { %v7829_v32 = vld [vmem:[%s15447_s4 + $0x28] sm:$0xff] }
 0x717   :  { %v7684_v35 = vpop.f32.mrf.mxu0 }
 0x718   :  { %v7685_v34 = vadd.f32 %v7684_v35, %v7593_v38  ;;  %v15161_v38 = vsub.f32 %v7830_v41, %v15130_v16  ;;  %v7827_v35 = vld [vmem:[%s15447_s4 + $0x18] sm:$0xff] }
 0x719   :  { %v9338_v36 = vpop.f32.mrf.mxu0 }
 0x71a   :  { %v15060_v5 = vadd.f32 %v7762_v53, %v7685_v34  ;;  %v7961_v53 = vsub.f32 %v15113_v31, %v7960_v21  ;;  %v7948_v34 = vand.u32 4294901760, %v7947_v55  ;;  %v7981_v36 = vand.u32 4294901760, %v15136_v0 }
 0x71b   :  { %v7995_v4 = vand.u32 4294901760, %v15161_v38 }
 0x71c   :  { %v7775_v58 = vsel %vm7774_vm2, %v15060_v5, 0.0  ;;  %v7782_v11 = vmul.f32 %v15060_v5, %v15060_v5  ;;  %9388 = vmatpush3.msra.mxu1 %v7948_v34 }
 0x71d   :  { %v7776_v57 = vrot.slane %v7775_v58, 4  ;;  %9389 = vmatprep.subr.mxu1 %v17275_v48 }
 0x71e   :  { %v7783_v40 = vsel %vm7774_vm2, %v7782_v11, 0.0  ;;  %v15173_v11 = vand.u32 4294901760, %v7829_v32  ;;  %9390 = vmatpush3.msra.mxu1 %v7955_v33 }
 0x71f   :  { %v7777_v10 = vadd.f32 %v7776_v57, %v7775_v58  ;;  %v7784_v60 = vrot.slane %v7783_v40, 4  ;;  %v7988_v58 = vand.u32 4294901760, %v15143_v37  ;;  %v7826_v57 = vld [vmem:[%s15447_s4 + $0x10] sm:$0xff]  ;;  %9391 = vmatprep.subr.mxu1 %v17275_v48 }
 0x720   :  { %9373 = vmatpush3.msra.mxu0 %v15173_v11 }
 0x721   :  { %v7778_v1 = vrot.slane %v7777_v10, 2  ;;  %v7785_v13 = vadd.f32 %v7784_v60, %v7783_v40  ;;  %v7962_v40 = vand.u32 4294901760, %v7961_v53  ;;  %v15184_v60 = vand.u32 4294901760, %v7827_v35  ;;  %9374 = vmatprep.subr.mxu0 %v17275_v48 }
 0x722   :  { %9375 = vmatpush3.msra.mxu0 %v15175_v12 }
 0x723   :  { %v7779_v14 = vadd.f32 %v7778_v1, %v7777_v10  ;;  %v7786_v63 = vrot.slane %v7785_v13, 2  ;;  %v7975_v10 = vsub.f32 %v15125_v45, %v7974_v8  ;;  %v15189_v1 = vsub.f32 %v7829_v32, %v15173_v11  ;;  %9392 = vmatpush3.msra.mxu1 %v7962_v40  ;;  %9376 = vmatprep.subr.mxu0 %v17275_v48 }
 0x724   :  { %9393 = vmatprep.subr.mxu1 %v17275_v48  ;;  %9377 = vmatpush3.msra.mxu0 %v15184_v60 }
 0x725   :  { %v7780_v39 = vrot.slane %v7779_v14, 1  ;;  %v7787_v47 = vadd.f32 %v7786_v63, %v7785_v13  ;;  %v7825_v13 = vld [vmem:[%s15447_s4 + $0x8] sm:$0xff]  ;;  %v7982_v63 = vsub.f32 %v15136_v0, %v7981_v36  ;;  %9378 = vmatprep.subr.mxu0 %v17275_v48 }
 0x727   :  { %v7781_v29 = vadd.f32 %v7780_v39, %v7779_v14  ;;  %v7788_v27 = vrot.slane %v7787_v47, 1  ;;  %v7969_v14 = vand.u32 4294901760, %v7968_v44  ;;  %v15200_v39 = vsub.f32 %v7828_v7, %v15175_v12 }
 0x728   :  { %v7983_v42 = vand.u32 4294901760, %v7982_v63 }
 0x729   :  { %v7790_v51 = vmul.f32 %v7781_v29, %v15068_v54  ;;  %v7789_v2 = vadd.f32 %v7788_v27, %v7787_v47  ;;  %v15202_v47 = vand.u32 4294901760, %v7826_v57  ;;  %v7989_v29 = vsub.f32 %v15143_v37, %v7988_v58  ;;  %v7824_v27 = vld [vmem:[%s15447_s4] sm:$0xff]  ;;  %9394 = vmatpush3.msra.mxu1 %v7969_v14 }
 0x72a   :  { %v8009_v62 = vand.u32 4294901760, %v15200_v39  ;;  %v15229_v18 = vand.u32 4294901760, %v7824_v27  ;;  %9395 = vmatprep.subr.mxu1 %v17275_v48 }
 0x72b   :  { %v7792_v22 = vsel %vm7791_vm6, %v7790_v51, 0.0  ;;  %v7795_v59 = vmul.f32 %v7789_v2, %v15068_v54  ;;  %v7976_v51 = vand.u32 4294901760, %v7975_v10  ;;  %v8002_v2 = vand.u32 4294901760, %v15189_v1  ;;  %9379 = vmatpush3.msra.mxu0 %v15202_v47 }
 0x72c   :  { %7793 = vadd.xlane.f32.xlu0 %v7792_v22  ;;  %v15215_v22 = vsub.f32 %v7827_v35, %v15184_v60  ;;  %v15227_v52 = vsub.f32 %v7826_v57, %v15202_v47  ;;  %v7990_v19 = vand.u32 4294901760, %v7989_v29  ;;  %v8010_v49 = vsub.f32 %v15200_v39, %v8009_v62  ;;  %9380 = vmatprep.subr.mxu0 %v17275_v48 }
 0x72d   :  { %v7796_v26 = vsel %vm7791_vm6, %v7795_v59, 0.0  ;;  %v15217_v59 = vand.u32 4294901760, %v7825_v13  ;;  %9396 = vmatpush3.msra.mxu1 %v7976_v51  ;;  %v8003_v3 = vsub.f32 %v15189_v1, %v8002_v2  ;;  %v15249_v53 = vsub.f32 %v7824_v27, %v15229_v18 }
 0x72e   :  { %7797 = vadd.xlane.f32.xlu1 %v7796_v26  ;;  %v7996_v26 = vsub.f32 %v15161_v38, %v7995_v4  ;;  %v8016_v46 = vand.u32 4294901760, %v15215_v22  ;;  %9397 = vmatprep.subr.mxu1 %v17275_v48  ;;  %v8023_v55 = vand.u32 4294901760, %v15227_v52  ;;  %v8011_v34 = vand.u32 4294901760, %v8010_v49 }
 0x72f   :  { %v15239_v20 = vsub.f32 %v7825_v13, %v15217_v59  ;;  %9398 = vmatpush3.msra.mxu1 %v7983_v42  ;;  %v8004_v32 = vand.u32 4294901760, %v8003_v3  ;;  %v8037_v44 = vand.u32 4294901760, %v15249_v53  ;;  %9381 = vmatpush3.msra.mxu0 %v15217_v59 }
 0x730   :  { %v7997_v41 = vand.u32 4294901760, %v7996_v26  ;;  %9399 = vmatprep.subr.mxu1 %v17275_v48  ;;  %v8017_v7 = vsub.f32 %v15215_v22, %v8016_v46  ;;  %v8024_v33 = vsub.f32 %v15227_v52, %v8023_v55  ;;  %9382 = vmatprep.subr.mxu0 %v17275_v48 }
 0x731   :  { %9400 = vmatpush3.msra.mxu1 %v7990_v19  ;;  %v8030_v35 = vand.u32 4294901760, %v15239_v20  ;;  %v8038_v13 = vsub.f32 %v15249_v53, %v8037_v44  ;;  %9383 = vmatpush3.msra.mxu0 %v15229_v18 }
 0x732   :  { %9401 = vmatprep.subr.mxu1 %v17275_v48  ;;  %v8018_v57 = vand.u32 4294901760, %v8017_v7  ;;  %v8025_v10 = vand.u32 4294901760, %v8024_v33  ;;  %9418 = vmatprep.subr.mxu0 %v17275_v48 }
 0x733   :  { %9402 = vmatpush3.msra.mxu1 %v7997_v41  ;;  %v8031_v40 = vsub.f32 %v15239_v20, %v8030_v35  ;;  %v8039_v63 = vand.u32 4294901760, %v8038_v13 }
 0x734   :  { %9403 = vmatprep.subr.mxu1 %v17275_v48 }
 0x735   :  { %9404 = vmatpush3.msra.mxu1 %v8004_v32  ;;  %v8032_v14 = vand.u32 4294901760, %v8031_v40  ;;  %v7766_v32 = vld [vmem:[%s15448_s5 + $0xe] sm:$0x1] }
 0x736   :  { %9405 = vmatprep.subr.mxu1 %v17275_v48 }
 0x737   :  { %9406 = vmatpush3.msra.mxu1 %v8011_v34 }
 0x738   :  { %9407 = vmatprep.subr.mxu1 %v17275_v48 }
 0x739   :  { %9408 = vmatpush3.msra.mxu1 %v8018_v57  ;;  %v7767_v57 = vld [vmem:[%s15448_s5 + $0xf] sm:$0x1] }
 0x73a   :  { %9409 = vmatprep.subr.mxu1 %v17275_v48 }
 0x73b   :  { %9410 = vmatpush3.msra.mxu1 %v8025_v10  ;;  %v17285_v10 = vld [vmem:[#allocation120_spill] sm:$0xff] }
 0x73c   :  { %9411 = vmatprep.subr.mxu1 %v17275_v48 }
 0x73d   :  { %9412 = vmatpush3.msra.mxu1 %v8032_v14 }
 0x73e   :  { %9413 = vmatprep.subr.mxu1 %v17275_v48 }
 0x73f   :  { %9414 = vmatpush3.msra.mxu1 %v8039_v63 }
 0x740   :  { %9449 = vmatprep.subr.mxu1 %v17275_v48 }
 0x7b5   :  { %v7794_v29 = vpop.xlane.xlu0 %7793 }
 0x7b6   :  { %v7799_v27 = vmul.f32 0.004761905, %v7794_v29 }
 0x7b7   :  { %v7798_v51 = vpop.xlane.xlu1 %7797 }
 0x7b8   :  { %v7801_v26 = vmul.f32 %v7799_v27, %v7799_v27  ;;  %v7800_v42 = vmul.f32 0.004761905, %v7798_v51  ;;  %v7806_v34 = vmul.f32 %v7799_v27, %v15068_v54 }
 0x7ba   :  { %v7802_v19 = vsub.f32 %v7800_v42, %v7801_v26 }
 0x7bc   :  { %v7803_v3 = vmax.f32 %v7802_v19, 0.0 }
 0x7be   :  { %v7804_v41 = vadd.f32 1e-05, %v7803_v3 }
 0x7c0   :  { %9550 = vrsqrt.f32 %v7804_v41 }
 0x7cd   :  { %v9551_v49 = vpop.eup %9550 }
 0x7ce   :  { %v7808_v7 = vmul.f32 %v9551_v49, %v15068_v54 }
 0x7d0   :  { %v7810_v33 = vmul.f32 %v7808_v7, %v7766_v32 }
 0x7d2   :  { %v7811_v40 = vmul.f32 %v7810_v33, %v7806_v34  ;;  %v7816_v13 = vrot.slane %v7810_v33, %v17285_v10 }
 0x7d4   :  { %v7812_v14 = vsub.f32 %v7767_v57, %v7811_v40  ;;  %v7817_v63 = vmul.f32 %v7816_v13, %v15060_v5 }
 0x7d6   :  { %v7821_v29 = vrot.slane %v7812_v14, %v17285_v10 }
 0x7d8   :  { %v7822_v51 = vadd.f32 %v7821_v29, %v7817_v63 }
 0x7da   :  { %v7823_v26 = vmax.f32 %v7822_v51, 0.0 }
 0x7dc   :  { %v7845_v42 = vsel %vm7843_vm3, %v7823_v26, 0 }
 0x7dd   :  { %v15294_v19 = vand.u32 4294901760, %v7845_v42 }
 0x7df   :  { %v15297_v54 = vsub.f32 %v7845_v42, %v15294_v19  ;;  %9416 = vmatmul.mubr.f32.vlgmr.msra.gmra.mxu1 %v15294_v19 }
 0x7e0   :  { %9450 = vmatpush3.msra.mxu1 %v15095_v24  ;;  %9477 = vmatprep.mubr.msk.f32.mxu1 %vm9578_vm1, %v17275_v48 }
 0x7e1   :  { %9451 = vmatprep.subr.mxu1 %v17275_v48  ;;  %v7931_v5 = vand.u32 4294901760, %v15297_v54 }
 0x7e2   :  { %9452 = vmatpush3.msra.mxu1 %v15082_v56 }
 0x7e3   :  { %9453 = vmatprep.subr.mxu1 %v17275_v48  ;;  %v7932_v27 = vsub.f32 %v15297_v54, %v7931_v5 }
 0x7e4   :  { %9454 = vmatpush3.msra.mxu1 %v15084_v6 }
 0x7e5   :  { %9455 = vmatprep.subr.mxu1 %v17275_v48  ;;  %v7933_v3 = vand.u32 4294901760, %v7932_v27 }
 0x7e6   :  { %9456 = vmatpush3.msra.mxu1 %v15097_v23 }
 0x7e7   :  { %9457 = vmatprep.subr.mxu1 %v17275_v48  ;;  %9385 = vmatmul.mubr.f32.vlgmr.msra.gmra.mxu0 %v7933_v3 }
 0x7e8   :  { %9419 = vmatpush3.msra.mxu0 %v15118_v30  ;;  %9458 = vmatpush3.msra.mxu1 %v15099_v50 }
 0x7e9   :  { %9420 = vmatprep.subr.mxu0 %v17275_v48  ;;  %9459 = vmatprep.subr.mxu1 %v17275_v48 }
 0x7ea   :  { %9421 = vmatpush3.msra.mxu0 %v15110_v43  ;;  %9460 = vmatpush3.msra.mxu1 %v15101_v9 }
 0x7eb   :  { %9422 = vmatprep.subr.mxu0 %v17275_v48  ;;  %9461 = vmatprep.subr.mxu1 %v17275_v48 }
 0x7ec   :  { %9423 = vmatpush3.msra.mxu0 %v15113_v31  ;;  %9462 = vmatpush3.msra.mxu1 %v15115_v25 }
 0x7ed   :  { %9424 = vmatprep.subr.mxu0 %v17275_v48  ;;  %9463 = vmatprep.subr.mxu1 %v17275_v48 }
 0x7ee   :  { %9425 = vmatpush3.msra.mxu0 %v15121_v28  ;;  %9464 = vmatpush3.msra.mxu1 %v15130_v16 }
 0x7ef   :  { %9426 = vmatprep.subr.mxu0 %v17275_v48  ;;  %9465 = vmatprep.subr.mxu1 %v17275_v48 }
 0x7f0   :  { %9427 = vmatpush3.msra.mxu0 %v15125_v45  ;;  %9466 = vmatpush3.msra.mxu1 %v15173_v11 }
 0x7f1   :  { %9428 = vmatprep.subr.mxu0 %v17275_v48  ;;  %9467 = vmatprep.subr.mxu1 %v17275_v48 }
 0x7f2   :  { %9429 = vmatpush3.msra.mxu0 %v15136_v0  ;;  %9468 = vmatpush3.msra.mxu1 %v15175_v12 }
 0x7f3   :  { %9430 = vmatprep.subr.mxu0 %v17275_v48  ;;  %9469 = vmatprep.subr.mxu1 %v17275_v48 }
 0x7f4   :  { %9431 = vmatpush3.msra.mxu0 %v15143_v37  ;;  %9470 = vmatpush3.msra.mxu1 %v15184_v60 }
 0x7f5   :  { %9432 = vmatprep.subr.mxu0 %v17275_v48  ;;  %9471 = vmatprep.subr.mxu1 %v17275_v48 }
 0x7f6   :  { %9433 = vmatpush3.msra.mxu0 %v15161_v38  ;;  %9472 = vmatpush3.msra.mxu1 %v15202_v47 }
 0x7f7   :  { %9434 = vmatprep.subr.mxu0 %v17275_v48  ;;  %9473 = vmatprep.subr.mxu1 %v17275_v48 }
 0x7f8   :  { %9435 = vmatpush3.msra.mxu0 %v15189_v1  ;;  %9474 = vmatpush3.msra.mxu1 %v15217_v59 }
 0x7f9   :  { %9436 = vmatprep.subr.mxu0 %v17275_v48  ;;  %9475 = vmatprep.subr.mxu1 %v17275_v48 }
 0x7fa   :  { %9437 = vmatpush3.msra.mxu0 %v15200_v39  ;;  %9476 = vmatpush3.msra.mxu1 %v15229_v18 }
 0x7fb   :  { %9438 = vmatprep.subr.mxu0 %v17275_v48  ;;  %9478 = vmatmul.mubr.f32.vlgmr.msra.gmra.mxu1 %v7931_v5 }
 0x7fc   :  { %9511 = vmatprep.subr.mxu1 %v17275_v48  ;;  %9439 = vmatpush3.msra.mxu0 %v15215_v22 }
 0x7fd   :  { %9512 = vmatpush3.msra.mxu1 %v15095_v24  ;;  %9440 = vmatprep.subr.mxu0 %v17275_v48 }
 0x7fe   :  { %9513 = vmatprep.subr.mxu1 %v17275_v48  ;;  %9441 = vmatpush3.msra.mxu0 %v15227_v52 }
 0x7ff   :  { %9514 = vmatpush3.msra.mxu1 %v15082_v56  ;;  %9442 = vmatprep.subr.mxu0 %v17275_v48 }
 0x800   :  { %9515 = vmatprep.subr.mxu1 %v17275_v48  ;;  %9443 = vmatpush3.msra.mxu0 %v15239_v20 }
 0x801   :  { %9516 = vmatpush3.msra.mxu1 %v15084_v6  ;;  %9444 = vmatprep.subr.mxu0 %v17275_v48 }
 0x802   :  { %9517 = vmatprep.subr.mxu1 %v17275_v48  ;;  %9445 = vmatpush3.msra.mxu0 %v15249_v53 }
 0x803   :  { %9446 = vmatprep.mubr.msk.f32.mxu0 %vm9578_vm1, %v17275_v48  ;;  %9518 = vmatpush3.msra.mxu1 %v15097_v23 }
 0x804   :  { %9447 = vmatmul.mubr.f32.vlgmr.msra.gmra.mxu0 %v15297_v54  ;;  %9480 = vmatprep.subr.mxu0 %v17275_v48 }
 0x805   :  { %9519 = vmatprep.subr.mxu1 %v17275_v48  ;;  %9481 = vmatpush3.msra.mxu0 %v7946_v15 }
 0x806   :  { %9520 = vmatpush3.msra.mxu1 %v15099_v50  ;;  %9482 = vmatprep.subr.mxu0 %v17275_v48 }
 0x807   :  { %9521 = vmatprep.subr.mxu1 %v17275_v48  ;;  %9483 = vmatpush3.msra.mxu0 %v7953_v61 }
 0x808   :  { %9522 = vmatpush3.msra.mxu1 %v15101_v9  ;;  %9484 = vmatprep.subr.mxu0 %v17275_v48 }
 0x809   :  { %9523 = vmatprep.subr.mxu1 %v17275_v48  ;;  %9485 = vmatpush3.msra.mxu0 %v7960_v21 }
 0x80a   :  { %9524 = vmatpush3.msra.mxu1 %v15115_v25  ;;  %9486 = vmatprep.subr.mxu0 %v17275_v48  ;;  %v8485_v25 = vld [vmem:[%s15448_s5 + $0x10] ss:$0 sm:$0xff] }
 0x80b   :  { %9525 = vmatprep.subr.mxu1 %v17275_v48  ;;  %9487 = vmatpush3.msra.mxu0 %v7967_v17 }
 0x80c   :  { %9526 = vmatpush3.msra.mxu1 %v15130_v16  ;;  %9488 = vmatprep.subr.mxu0 %v17275_v48 }
 0x80d   :  { %9527 = vmatprep.subr.mxu1 %v17275_v48  ;;  %9489 = vmatpush3.msra.mxu0 %v7974_v8 }
 0x80e   :  { %9528 = vmatpush3.msra.mxu1 %v15173_v11  ;;  %9490 = vmatprep.subr.mxu0 %v17275_v48 }
 0x80f   :  { %9529 = vmatprep.subr.mxu1 %v17275_v48  ;;  %9491 = vmatpush3.msra.mxu0 %v7981_v36 }
 0x810   :  { %9530 = vmatpush3.msra.mxu1 %v15175_v12  ;;  %9492 = vmatprep.subr.mxu0 %v17275_v48 }
 0x811   :  { %9531 = vmatprep.subr.mxu1 %v17275_v48  ;;  %9493 = vmatpush3.msra.mxu0 %v7988_v58 }
 0x812   :  { %9532 = vmatpush3.msra.mxu1 %v15184_v60  ;;  %9494 = vmatprep.subr.mxu0 %v17275_v48 }
 0x813   :  { %9533 = vmatprep.subr.mxu1 %v17275_v48  ;;  %9495 = vmatpush3.msra.mxu0 %v7995_v4 }
 0x814   :  { %9534 = vmatpush3.msra.mxu1 %v15202_v47  ;;  %9496 = vmatprep.subr.mxu0 %v17275_v48 }
 0x815   :  { %9535 = vmatprep.subr.mxu1 %v17275_v48  ;;  %9497 = vmatpush3.msra.mxu0 %v8002_v2 }
 0x816   :  { %9536 = vmatpush3.msra.mxu1 %v15217_v59  ;;  %9498 = vmatprep.subr.mxu0 %v17275_v48 }
 0x817   :  { %9537 = vmatprep.subr.mxu1 %v17275_v48  ;;  %9499 = vmatpush3.msra.mxu0 %v8009_v62 }
 0x818   :  { %9538 = vmatpush3.msra.mxu1 %v15229_v18  ;;  %9539 = vmatprep.mubr.msk.f32.mxu1 %vm9578_vm1, %v17275_v48 }
 0x819   :  { %9500 = vmatprep.subr.mxu0 %v17275_v48  ;;  %9540 = vmatmul.mubr.f32.vlgmr.msra.gmra.mxu1 %v15294_v19 }
 0x81a   :  { %9501 = vmatpush3.msra.mxu0 %v8016_v46  ;;  %9508 = vmatprep.mubr.msk.f32.mxu0 %vm9578_vm1, %v17275_v48 }
 0x81b   :  { %9502 = vmatprep.subr.mxu0 %v17275_v48 }
 0x81c   :  { %9503 = vmatpush3.msra.mxu0 %v8023_v55 }
 0x81d   :  { %9504 = vmatprep.subr.mxu0 %v17275_v48 }
 0x81e   :  { %9505 = vmatpush3.msra.mxu0 %v8030_v35 }
 0x81f   :  { %9506 = vmatprep.subr.mxu0 %v17275_v48 }
 0x820   :  { %9507 = vmatpush3.msra.mxu0 %v8037_v44 }
 0x821   :  { %9509 = vmatmul.mubr.f32.vlgmr.msra.gmra.mxu0 %v15294_v19 }
 0x89f   :  { %v8076_v56 = vpop.f32.mrf.mxu1 }
 0x8a1   :  { %v9417_v6 = vpop.f32.mrf.mxu1 }
 0x8a7   :  { %v7935_v24 = vpop.f32.mrf.mxu0 }
 0x8a8   :  { %v7936_v30 = vadd.f32 %v8485_v25, %v7935_v24 }
 0x8a9   :  { %v9386_v23 = vpop.f32.mrf.mxu0 }
 0x8aa   :  { %v8077_v48 = vadd.f32 %v8076_v56, %v7936_v30 }
 0x8bb   :  { %v8263_v50 = vpop.f32.mrf.mxu1 }
 0x8bd   :  { %v9479_v9 = vpop.f32.mrf.mxu1 }
 0x8c4   :  { %v8176_v43 = vpop.f32.mrf.mxu0 }
 0x8c5   :  { %v8177_v61 = vadd.f32 %v8176_v43, %v8077_v48 }
 0x8c6   :  { %v9448_v31 = vpop.f32.mrf.mxu0 }
 0x8c7   :  { %v8264_v21 = vadd.f32 %v8263_v50, %v8177_v61 }
 0x8d9   :  { %v8461_v28 = vpop.f32.mrf.mxu1 }
 0x8db   :  { %v9541_v45 = vpop.f32.mrf.mxu1 }
 0x8e1   :  { %v8376_v16 = vpop.f32.mrf.mxu0 }
 0x8e2   :  { %v8377_v15 = vadd.f32 %v8376_v16, %v8264_v21 }
 0x8e3   :  { %v9510_v17 = vpop.f32.mrf.mxu0 }
 0x8e4   :  { %v8462_v0 = vadd.f32 %v8461_v28, %v8377_v15 }
 0x8e6   :  { %9552 = vtanh.f32 %v8462_v0 }
 0x8f3   :  { %v9553_v37 = vpop.eup %9552 }
 0x8f4   :  { %8467 = vst.msk [vmem:[#allocation2] sm:$0x3] %vm8466_vm7, %v9553_v37 }
 0x8f5   :  { %9565 = shalt.err (!%p9562_p4)
}
 0x8f6   :  { %8477 = dma.vmem_to_hbm [thread:$0]  %s8475_s7, 32, %s15449_s6, [#allocation3]  }
 0x8f7   :  { %9574 = dma.done.wait [#allocation3], 32  }
 0x8f8   :  { %9575 = vsyncadd [#allocation3], 4294967264 }
 0x8f9   :  { %8481 = vsyncpa [#allocation3], 1 }

</bundles_post_ra>
